<compile_context>
chip_gen: v5e
topology: v5e:2x2
jax: 0.10.0
libtpu: 0.0.40
codegen_flags: <defaults>
</compile_context>

<pallas_src>
import functools

import jax
import jax.numpy as jnp
from jax.experimental import pallas as pl
from jax.experimental.pallas import tpu as pltpu

_TM_MAX = 256                 # row-tile cap (the A operand carries 25 taps/row)
_VMEM_LIMIT_BYTES = 48 << 20  # > v5e 16MiB default, < v7x 64MiB physical


def _round_up(x, m):
    return ((x + m - 1) // m) * m


def _invariant_spec(block_shape, index_map):
    """BlockSpec for a grid-invariant operand: keep a single VMEM buffer.

    Falls back to the default (double-buffered) spec if this JAX version's
    BlockSpec does not take a `pipeline_mode` argument.
    """
    try:
        return pl.BlockSpec(block_shape, index_map, pipeline_mode=pl.Buffered(1))
    except (AttributeError, TypeError):
        return pl.BlockSpec(block_shape, index_map)


# ------------------------------ Pallas kernel -------------------------------

def _inception_aux_kernel(a_ref, w1_ref, b1_ref, w2_ref, b2_ref, w3_ref, b3_ref,
                          o_ref):
    """Fused InceptionAux forward for one batch-row tile.

    a:  (25, tm, Cin)  bf16  pooled 5x5 map, spatial-tap-major
    w1: (Cin, 128)     bf16  1x1 conv weight with BN scale folded in
    b1: (1, 128)       f32   conv bias + BN shift
    w2: (25, 128, 768) bf16  5x5 conv weight, tap-major
    b2: (1, 768)       f32
    w3: (768, Cpad)    bf16  linear weight, zero-padded to lane-dense Cpad
    b3: (1, Cpad)      f32
    o:  (tm, Cpad)     f32
    """
    s_taps, tm, _ = a_ref.shape
    c2 = w2_ref.shape[2]

    w1 = w1_ref[...]
    b1 = b1_ref[...]
    acc = jnp.zeros((tm, c2), jnp.float32) + b2_ref[...]   # conv2 bias init

    # Stage 1 + 2: per spatial tap, 1x1 conv + BN + ReLU6, then the matching
    # tap of the 5x5 conv.  Both matmuls hit the MXU with f32 accumulation;
    # the (tm, 128) intermediate never leaves VMEM/vregs.
    for s in range(s_taps):
        y1 = jnp.dot(a_ref[s], w1, preferred_element_type=jnp.float32) + b1
        y1 = jnp.minimum(jnp.maximum(y1, 0.0), 6.0)         # ReLU6
        acc = acc + jnp.dot(y1.astype(jnp.bfloat16), w2_ref[s],
                            preferred_element_type=jnp.float32)

    # Stage 3: Dropout(p=0.7) in eval mode is identity, then Linear.
    # TODO(synk): training-mode dropout (RNG mask + 1/(1-p) scaling) not implemented.
    y3 = jnp.dot(acc.astype(jnp.bfloat16), w3_ref[...],
                 preferred_element_type=jnp.float32) + b3_ref[...]
    o_ref[...] = y3.astype(o_ref.dtype)


# ------------------------------ layout glue ---------------------------------

def _avg_pool_5x5_s3(x_nhwc):
    """nn.AvgPool2d(kernel_size=5, stride=3), no padding. x: (N,H,W,C) f32."""
    N, H, W, C = x_nhwc.shape
    ho = (H - 5) // 3 + 1
    wo = (W - 5) // 3 + 1
    acc = jnp.zeros((N, ho, wo, C), jnp.float32)
    for i in range(5):
        for j in range(5):
            acc = acc + x_nhwc[:, i:i + 3 * ho:3, j:j + 3 * wo:3, :].astype(jnp.float32)
    return acc * (1.0 / 25.0), ho, wo


# --------------------------- one-time weight prep ---------------------------

def prepare_params(params, *, eps=1e-5):
    """Fold BN, transpose, pad and cast weights ONCE (outside the forward)."""
    p1 = params["conv1"]
    inv_std = 1.0 / jnp.sqrt(p1["var"] + eps)
    scale = p1["gamma"] * inv_std                                   # (128,)
    w1 = (jnp.transpose(p1["w"][:, :, 0, 0], (1, 0)) * scale[None, :]
          ).astype(jnp.bfloat16)                                    # (Cin,128)
    b1 = ((p1["b"] - p1["mean"]) * scale + p1["beta"]
          ).reshape(1, -1).astype(jnp.float32)                      # (1,128)

    p2 = params["conv2"]
    cout2, cin2, kh, kw = p2["w"].shape                             # (768,128,5,5)
    w2 = jnp.transpose(p2["w"], (2, 3, 1, 0)).reshape(kh * kw, cin2, cout2
                                                      ).astype(jnp.bfloat16)
    b2 = p2["b"].reshape(1, -1).astype(jnp.float32)                 # (1,768)

    p3 = params["fc"]
    out_features, fin = p3["w"].shape                               # (out,768)
    cpad = _round_up(out_features, 128)                             # lane-dense
    w3 = jnp.pad(jnp.transpose(p3["w"], (1, 0)),
                 ((0, 0), (0, cpad - out_features))).astype(jnp.bfloat16)
    b3 = jnp.pad(p3["b"], (0, cpad - out_features)).reshape(1, -1).astype(jnp.float32)

    prep = dict(w1=w1, b1=b1, w2=w2, b2=b2, w3=w3, b3=b3)
    return prep, out_features


# --------------------------------- forward ----------------------------------

def inception_aux_forward(x_nchw, prep, *, out_features):
    N, Cin, H, W = x_nchw.shape
    x = jnp.transpose(x_nchw, (0, 2, 3, 1))                # NCHW -> NHWC, f32
    pooled, ho, wo = _avg_pool_5x5_s3(x)                   # (N,5,5,Cin)
    assert ho == 5 and wo == 5, "conv2 (5x5) must cover the pooled map exactly"
    s_taps = ho * wo                                       # 25

    # spatial-tap-major operand: (25, N, Cin) bf16
    a = jnp.transpose(pooled.reshape(N, s_taps, Cin), (1, 0, 2)).astype(jnp.bfloat16)

    w1, b1 = prep["w1"], prep["b1"]
    w2, b2 = prep["w2"], prep["b2"]
    w3, b3 = prep["w3"], prep["b3"]
    c1 = w1.shape[1]            # 128
    c2 = w2.shape[2]            # 768
    cpad = w3.shape[1]

    # Row tile: full batch when small (block == full dim, no (8,128) issue);
    # otherwise >=2 multiple-of-8 row blocks so both v7x TensorCores get work.
    if N <= 8:
        tm = N
    else:
        tm = min(_TM_MAX, _round_up(-(-N // 2), 8))
    grid = (pl.cdiv(N, tm),)

    out = pl.pallas_call(
        _inception_aux_kernel,
        out_shape=jax.ShapeDtypeStruct((N, cpad), jnp.float32),
        grid=grid,
        in_specs=[
            pl.BlockSpec((s_taps, tm, Cin), lambda i: (0, i, 0)),
            _invariant_spec((Cin, c1), lambda i: (0, 0)),
            _invariant_spec((1, c1), lambda i: (0, 0)),
            _invariant_spec((s_taps, c1, c2), lambda i: (0, 0, 0)),
            _invariant_spec((1, c2), lambda i: (0, 0)),
            _invariant_spec((c2, cpad), lambda i: (0, 0)),
            _invariant_spec((1, cpad), lambda i: (0, 0)),
        ],
        out_specs=pl.BlockSpec((tm, cpad), lambda i: (i, 0)),
        compiler_params=pltpu.CompilerParams(
            dimension_semantics=("parallel",),
            vmem_limit_bytes=_VMEM_LIMIT_BYTES),
    )(a, w1, b1, w2, b2, w3, b3)

    return out[:, :out_features]


# --------------------------- deterministic params ---------------------------

def init_conv_bn(key, cin, cout, k):
    ks = jax.random.split(key, 6)
    return dict(
        w=jax.random.normal(ks[0], (cout, cin, k, k), jnp.float32) * 0.1,
        b=jax.random.normal(ks[1], (cout,), jnp.float32) * 0.05,
        gamma=1.0 + 0.1 * jax.random.normal(ks[2], (cout,), jnp.float32),
        beta=0.05 * jax.random.normal(ks[3], (cout,), jnp.float32),
        mean=0.1 * jax.random.normal(ks[4], (cout,), jnp.float32),
        var=jnp.abs(jax.random.normal(ks[5], (cout,), jnp.float32)) * 0.5 + 0.5,
    )


def init_conv(key, cin, cout, k):
    ks = jax.random.split(key, 2)
    return dict(
        w=jax.random.normal(ks[0], (cout, cin, k, k), jnp.float32) * 0.02,
        b=jax.random.normal(ks[1], (cout,), jnp.float32) * 0.02,
    )


def init_linear(key, cin, cout):
    ks = jax.random.split(key, 2)
    return dict(
        w=jax.random.normal(ks[0], (cout, cin), jnp.float32) * 0.02,
        b=jax.random.normal(ks[1], (cout,), jnp.float32) * 0.02,
    )


if __name__ == "__main__":
    key = jax.random.PRNGKey(0)
    kx, k1, k2, k3 = jax.random.split(key, 4)
    batch, in_channels, spatial, num_classes = 2, 8, 17, 16
    # 17x17 -> AvgPool(5,3) -> 5x5 -> Conv1x1(BN,ReLU6) -> Conv5x5 -> 768 -> Linear
    x = jax.random.normal(kx, (batch, in_channels, spatial, spatial), jnp.float32)
    params = {
        "conv1": init_conv_bn(k1, in_channels, 128, 1),
        "conv2": init_conv(k2, 128, 768, 5),
        "fc": init_linear(k3, 768, num_classes),
    }
    prep, out_features = prepare_params(params)   # one-time fold / cast / pad
    fwd = jax.jit(functools.partial(inception_aux_forward, out_features=out_features))
    out = fwd(x, prep)
    jax.block_until_ready(out)
    assert out.shape == (batch, out_features), out.shape
    assert bool(jnp.all(jnp.isfinite(out)))
    print("KERNEL_OK")
</pallas_src>

<mosaic_0001>
module attributes {stable_mosaic.version = 11 : i64} {
  func.func @_inception_aux_kernel(%arg0: i32, %arg1: memref<25x2x8xbf16, #tpu.memory_space<vmem>>, %arg2: memref<8x128xbf16, #tpu.memory_space<vmem>>, %arg3: memref<1x128xf32, #tpu.memory_space<vmem>>, %arg4: memref<25x128x768xbf16, #tpu.memory_space<vmem>>, %arg5: memref<1x768xf32, #tpu.memory_space<vmem>>, %arg6: memref<768x128xbf16, #tpu.memory_space<vmem>>, %arg7: memref<1x128xf32, #tpu.memory_space<vmem>>, %arg8: memref<2x128xf32, #tpu.memory_space<vmem>>) attributes {dimension_semantics = [#tpu.dimension_semantics<parallel>], iteration_bounds = array<i64: 1>, scalar_prefetch = 0 : i64, scratch_operands = 0 : i64, tpu.core_type = #tpu.core_type<tc>, window_params = [{transform_indices = @transform_0, window_bounds = array<i64: 25, 2, 8>}, {pipeline_mode = #tpu.pipeline_mode<synchronous>, transform_indices = @transform_1, window_bounds = array<i64: 8, 128>}, {pipeline_mode = #tpu.pipeline_mode<synchronous>, transform_indices = @transform_2, window_bounds = array<i64: 1, 128>}, {pipeline_mode = #tpu.pipeline_mode<synchronous>, transform_indices = @transform_3, window_bounds = array<i64: 25, 128, 768>}, {pipeline_mode = #tpu.pipeline_mode<synchronous>, transform_indices = @transform_4, window_bounds = array<i64: 1, 768>}, {pipeline_mode = #tpu.pipeline_mode<synchronous>, transform_indices = @transform_5, window_bounds = array<i64: 768, 128>}, {pipeline_mode = #tpu.pipeline_mode<synchronous>, transform_indices = @transform_6, window_bounds = array<i64: 1, 128>}, {transform_indices = @transform_7, window_bounds = array<i64: 2, 128>}]} {
    %c0 = arith.constant 0 : index
    %c0_0 = arith.constant 0 : index
    %0 = vector.load %arg2[%c0, %c0_0] : memref<8x128xbf16, #tpu.memory_space<vmem>>, vector<8x128xbf16>
    %c0_1 = arith.constant 0 : index
    %c0_2 = arith.constant 0 : index
    %1 = vector.load %arg3[%c0_1, %c0_2] : memref<1x128xf32, #tpu.memory_space<vmem>>, vector<1x128xf32>
    %cst = arith.constant 0.000000e+00 : f32
    %2 = vector.broadcast %cst : f32 to vector<2x768xf32>
    %c0_3 = arith.constant 0 : index
    %c0_4 = arith.constant 0 : index
    %3 = vector.load %arg5[%c0_3, %c0_4] : memref<1x768xf32, #tpu.memory_space<vmem>>, vector<1x768xf32>
    %4 = vector.broadcast %3 : vector<1x768xf32> to vector<2x768xf32>
    %5 = arith.addf %2, %4 : vector<2x768xf32>
    %c0_5 = arith.constant 0 : index
    %c0_6 = arith.constant 0 : index
    %c0_7 = arith.constant 0 : index
    %6 = vector.load %arg1[%c0_5, %c0_6, %c0_7] : memref<25x2x8xbf16, #tpu.memory_space<vmem>>, vector<1x2x8xbf16>
    %7 = vector.shape_cast %6 : vector<1x2x8xbf16> to vector<2x8xbf16>
    %cst_8 = arith.constant dense<0.000000e+00> : vector<2x128xf32>
    %8 = tpu.matmul %7, %0, %cst_8 {dimension_numbers = #tpu.dot_dimension_numbers<[1], [0], [0], [1], [0, 0, 1, 1], [], []>} : vector<2x8xbf16>, vector<8x128xbf16>, vector<2x128xf32> -> vector<2x128xf32>
    %9 = vector.broadcast %1 : vector<1x128xf32> to vector<2x128xf32>
    %10 = arith.addf %8, %9 : vector<2x128xf32>
    %cst_9 = arith.constant 0.000000e+00 : f32
    %11 = vector.broadcast %cst_9 : f32 to vector<2x128xf32>
    %12 = arith.maximumf %10, %11 : vector<2x128xf32>
    %cst_10 = arith.constant 6.000000e+00 : f32
    %13 = vector.broadcast %cst_10 : f32 to vector<2x128xf32>
    %14 = arith.minimumf %12, %13 : vector<2x128xf32>
    %15 = arith.truncf %14 : vector<2x128xf32> to vector<2x128xbf16>
    %c0_11 = arith.constant 0 : index
    %c0_12 = arith.constant 0 : index
    %c0_13 = arith.constant 0 : index
    %16 = vector.load %arg4[%c0_11, %c0_12, %c0_13] : memref<25x128x768xbf16, #tpu.memory_space<vmem>>, vector<1x128x768xbf16>
    %17 = vector.shape_cast %16 : vector<1x128x768xbf16> to vector<128x768xbf16>
    %cst_14 = arith.constant dense<0.000000e+00> : vector<2x768xf32>
    %18 = tpu.matmul %15, %17, %cst_14 {dimension_numbers = #tpu.dot_dimension_numbers<[1], [0], [0], [1], [0, 0, 1, 1], [], []>} : vector<2x128xbf16>, vector<128x768xbf16>, vector<2x768xf32> -> vector<2x768xf32>
    %19 = arith.addf %5, %18 : vector<2x768xf32>
    %c1 = arith.constant 1 : index
    %c0_15 = arith.constant 0 : index
    %c0_16 = arith.constant 0 : index
    %20 = vector.load %arg1[%c1, %c0_15, %c0_16] : memref<25x2x8xbf16, #tpu.memory_space<vmem>>, vector<1x2x8xbf16>
    %21 = vector.shape_cast %20 : vector<1x2x8xbf16> to vector<2x8xbf16>
    %cst_17 = arith.constant dense<0.000000e+00> : vector<2x128xf32>
    %22 = tpu.matmul %21, %0, %cst_17 {dimension_numbers = #tpu.dot_dimension_numbers<[1], [0], [0], [1], [0, 0, 1, 1], [], []>} : vector<2x8xbf16>, vector<8x128xbf16>, vector<2x128xf32> -> vector<2x128xf32>
    %23 = vector.broadcast %1 : vector<1x128xf32> to vector<2x128xf32>
    %24 = arith.addf %22, %23 : vector<2x128xf32>
    %cst_18 = arith.constant 0.000000e+00 : f32
    %25 = vector.broadcast %cst_18 : f32 to vector<2x128xf32>
    %26 = arith.maximumf %24, %25 : vector<2x128xf32>
    %cst_19 = arith.constant 6.000000e+00 : f32
    %27 = vector.broadcast %cst_19 : f32 to vector<2x128xf32>
    %28 = arith.minimumf %26, %27 : vector<2x128xf32>
    %29 = arith.truncf %28 : vector<2x128xf32> to vector<2x128xbf16>
    %c1_20 = arith.constant 1 : index
    %c0_21 = arith.constant 0 : index
    %c0_22 = arith.constant 0 : index
    %30 = vector.load %arg4[%c1_20, %c0_21, %c0_22] : memref<25x128x768xbf16, #tpu.memory_space<vmem>>, vector<1x128x768xbf16>
    %31 = vector.shape_cast %30 : vector<1x128x768xbf16> to vector<128x768xbf16>
    %cst_23 = arith.constant dense<0.000000e+00> : vector<2x768xf32>
    %32 = tpu.matmul %29, %31, %cst_23 {dimension_numbers = #tpu.dot_dimension_numbers<[1], [0], [0], [1], [0, 0, 1, 1], [], []>} : vector<2x128xbf16>, vector<128x768xbf16>, vector<2x768xf32> -> vector<2x768xf32>
    %33 = arith.addf %19, %32 : vector<2x768xf32>
    %c2 = arith.constant 2 : index
    %c0_24 = arith.constant 0 : index
    %c0_25 = arith.constant 0 : index
    %34 = vector.load %arg1[%c2, %c0_24, %c0_25] : memref<25x2x8xbf16, #tpu.memory_space<vmem>>, vector<1x2x8xbf16>
    %35 = vector.shape_cast %34 : vector<1x2x8xbf16> to vector<2x8xbf16>
    %cst_26 = arith.constant dense<0.000000e+00> : vector<2x128xf32>
    %36 = tpu.matmul %35, %0, %cst_26 {dimension_numbers = #tpu.dot_dimension_numbers<[1], [0], [0], [1], [0, 0, 1, 1], [], []>} : vector<2x8xbf16>, vector<8x128xbf16>, vector<2x128xf32> -> vector<2x128xf32>
    %37 = vector.broadcast %1 : vector<1x128xf32> to vector<2x128xf32>
    %38 = arith.addf %36, %37 : vector<2x128xf32>
    %cst_27 = arith.constant 0.000000e+00 : f32
    %39 = vector.broadcast %cst_27 : f32 to vector<2x128xf32>
    %40 = arith.maximumf %38, %39 : vector<2x128xf32>
    %cst_28 = arith.constant 6.000000e+00 : f32
    %41 = vector.broadcast %cst_28 : f32 to vector<2x128xf32>
    %42 = arith.minimumf %40, %41 : vector<2x128xf32>
    %43 = arith.truncf %42 : vector<2x128xf32> to vector<2x128xbf16>
    %c2_29 = arith.constant 2 : index
    %c0_30 = arith.constant 0 : index
    %c0_31 = arith.constant 0 : index
    %44 = vector.load %arg4[%c2_29, %c0_30, %c0_31] : memref<25x128x768xbf16, #tpu.memory_space<vmem>>, vector<1x128x768xbf16>
    %45 = vector.shape_cast %44 : vector<1x128x768xbf16> to vector<128x768xbf16>
    %cst_32 = arith.constant dense<0.000000e+00> : vector<2x768xf32>
    %46 = tpu.matmul %43, %45, %cst_32 {dimension_numbers = #tpu.dot_dimension_numbers<[1], [0], [0], [1], [0, 0, 1, 1], [], []>} : vector<2x128xbf16>, vector<128x768xbf16>, vector<2x768xf32> -> vector<2x768xf32>
    %47 = arith.addf %33, %46 : vector<2x768xf32>
    %c3 = arith.constant 3 : index
    %c0_33 = arith.constant 0 : index
    %c0_34 = arith.constant 0 : index
    %48 = vector.load %arg1[%c3, %c0_33, %c0_34] : memref<25x2x8xbf16, #tpu.memory_space<vmem>>, vector<1x2x8xbf16>
    %49 = vector.shape_cast %48 : vector<1x2x8xbf16> to vector<2x8xbf16>
    %cst_35 = arith.constant dense<0.000000e+00> : vector<2x128xf32>
    %50 = tpu.matmul %49, %0, %cst_35 {dimension_numbers = #tpu.dot_dimension_numbers<[1], [0], [0], [1], [0, 0, 1, 1], [], []>} : vector<2x8xbf16>, vector<8x128xbf16>, vector<2x128xf32> -> vector<2x128xf32>
    %51 = vector.broadcast %1 : vector<1x128xf32> to vector<2x128xf32>
    %52 = arith.addf %50, %51 : vector<2x128xf32>
    %cst_36 = arith.constant 0.000000e+00 : f32
    %53 = vector.broadcast %cst_36 : f32 to vector<2x128xf32>
    %54 = arith.maximumf %52, %53 : vector<2x128xf32>
    %cst_37 = arith.constant 6.000000e+00 : f32
    %55 = vector.broadcast %cst_37 : f32 to vector<2x128xf32>
    %56 = arith.minimumf %54, %55 : vector<2x128xf32>
    %57 = arith.truncf %56 : vector<2x128xf32> to vector<2x128xbf16>
    %c3_38 = arith.constant 3 : index
    %c0_39 = arith.constant 0 : index
    %c0_40 = arith.constant 0 : index
    %58 = vector.load %arg4[%c3_38, %c0_39, %c0_40] : memref<25x128x768xbf16, #tpu.memory_space<vmem>>, vector<1x128x768xbf16>
    %59 = vector.shape_cast %58 : vector<1x128x768xbf16> to vector<128x768xbf16>
    %cst_41 = arith.constant dense<0.000000e+00> : vector<2x768xf32>
    %60 = tpu.matmul %57, %59, %cst_41 {dimension_numbers = #tpu.dot_dimension_numbers<[1], [0], [0], [1], [0, 0, 1, 1], [], []>} : vector<2x128xbf16>, vector<128x768xbf16>, vector<2x768xf32> -> vector<2x768xf32>
    %61 = arith.addf %47, %60 : vector<2x768xf32>
    %c4 = arith.constant 4 : index
    %c0_42 = arith.constant 0 : index
    %c0_43 = arith.constant 0 : index
    %62 = vector.load %arg1[%c4, %c0_42, %c0_43] : memref<25x2x8xbf16, #tpu.memory_space<vmem>>, vector<1x2x8xbf16>
    %63 = vector.shape_cast %62 : vector<1x2x8xbf16> to vector<2x8xbf16>
    %cst_44 = arith.constant dense<0.000000e+00> : vector<2x128xf32>
    %64 = tpu.matmul %63, %0, %cst_44 {dimension_numbers = #tpu.dot_dimension_numbers<[1], [0], [0], [1], [0, 0, 1, 1], [], []>} : vector<2x8xbf16>, vector<8x128xbf16>, vector<2x128xf32> -> vector<2x128xf32>
    %65 = vector.broadcast %1 : vector<1x128xf32> to vector<2x128xf32>
    %66 = arith.addf %64, %65 : vector<2x128xf32>
    %cst_45 = arith.constant 0.000000e+00 : f32
    %67 = vector.broadcast %cst_45 : f32 to vector<2x128xf32>
    %68 = arith.maximumf %66, %67 : vector<2x128xf32>
    %cst_46 = arith.constant 6.000000e+00 : f32
    %69 = vector.broadcast %cst_46 : f32 to vector<2x128xf32>
    %70 = arith.minimumf %68, %69 : vector<2x128xf32>
    %71 = arith.truncf %70 : vector<2x128xf32> to vector<2x128xbf16>
    %c4_47 = arith.constant 4 : index
    %c0_48 = arith.constant 0 : index
    %c0_49 = arith.constant 0 : index
    %72 = vector.load %arg4[%c4_47, %c0_48, %c0_49] : memref<25x128x768xbf16, #tpu.memory_space<vmem>>, vector<1x128x768xbf16>
    %73 = vector.shape_cast %72 : vector<1x128x768xbf16> to vector<128x768xbf16>
    %cst_50 = arith.constant dense<0.000000e+00> : vector<2x768xf32>
    %74 = tpu.matmul %71, %73, %cst_50 {dimension_numbers = #tpu.dot_dimension_numbers<[1], [0], [0], [1], [0, 0, 1, 1], [], []>} : vector<2x128xbf16>, vector<128x768xbf16>, vector<2x768xf32> -> vector<2x768xf32>
    %75 = arith.addf %61, %74 : vector<2x768xf32>
    %c5 = arith.constant 5 : index
    %c0_51 = arith.constant 0 : index
    %c0_52 = arith.constant 0 : index
    %76 = vector.load %arg1[%c5, %c0_51, %c0_52] : memref<25x2x8xbf16, #tpu.memory_space<vmem>>, vector<1x2x8xbf16>
    %77 = vector.shape_cast %76 : vector<1x2x8xbf16> to vector<2x8xbf16>
    %cst_53 = arith.constant dense<0.000000e+00> : vector<2x128xf32>
    %78 = tpu.matmul %77, %0, %cst_53 {dimension_numbers = #tpu.dot_dimension_numbers<[1], [0], [0], [1], [0, 0, 1, 1], [], []>} : vector<2x8xbf16>, vector<8x128xbf16>, vector<2x128xf32> -> vector<2x128xf32>
    %79 = vector.broadcast %1 : vector<1x128xf32> to vector<2x128xf32>
    %80 = arith.addf %78, %79 : vector<2x128xf32>
    %cst_54 = arith.constant 0.000000e+00 : f32
    %81 = vector.broadcast %cst_54 : f32 to vector<2x128xf32>
    %82 = arith.maximumf %80, %81 : vector<2x128xf32>
    %cst_55 = arith.constant 6.000000e+00 : f32
    %83 = vector.broadcast %cst_55 : f32 to vector<2x128xf32>
    %84 = arith.minimumf %82, %83 : vector<2x128xf32>
    %85 = arith.truncf %84 : vector<2x128xf32> to vector<2x128xbf16>
    %c5_56 = arith.constant 5 : index
    %c0_57 = arith.constant 0 : index
    %c0_58 = arith.constant 0 : index
    %86 = vector.load %arg4[%c5_56, %c0_57, %c0_58] : memref<25x128x768xbf16, #tpu.memory_space<vmem>>, vector<1x128x768xbf16>
    %87 = vector.shape_cast %86 : vector<1x128x768xbf16> to vector<128x768xbf16>
    %cst_59 = arith.constant dense<0.000000e+00> : vector<2x768xf32>
    %88 = tpu.matmul %85, %87, %cst_59 {dimension_numbers = #tpu.dot_dimension_numbers<[1], [0], [0], [1], [0, 0, 1, 1], [], []>} : vector<2x128xbf16>, vector<128x768xbf16>, vector<2x768xf32> -> vector<2x768xf32>
    %89 = arith.addf %75, %88 : vector<2x768xf32>
    %c6 = arith.constant 6 : index
    %c0_60 = arith.constant 0 : index
    %c0_61 = arith.constant 0 : index
    %90 = vector.load %arg1[%c6, %c0_60, %c0_61] : memref<25x2x8xbf16, #tpu.memory_space<vmem>>, vector<1x2x8xbf16>
    %91 = vector.shape_cast %90 : vector<1x2x8xbf16> to vector<2x8xbf16>
    %cst_62 = arith.constant dense<0.000000e+00> : vector<2x128xf32>
    %92 = tpu.matmul %91, %0, %cst_62 {dimension_numbers = #tpu.dot_dimension_numbers<[1], [0], [0], [1], [0, 0, 1, 1], [], []>} : vector<2x8xbf16>, vector<8x128xbf16>, vector<2x128xf32> -> vector<2x128xf32>
    %93 = vector.broadcast %1 : vector<1x128xf32> to vector<2x128xf32>
    %94 = arith.addf %92, %93 : vector<2x128xf32>
    %cst_63 = arith.constant 0.000000e+00 : f32
    %95 = vector.broadcast %cst_63 : f32 to vector<2x128xf32>
    %96 = arith.maximumf %94, %95 : vector<2x128xf32>
    %cst_64 = arith.constant 6.000000e+00 : f32
    %97 = vector.broadcast %cst_64 : f32 to vector<2x128xf32>
    %98 = arith.minimumf %96, %97 : vector<2x128xf32>
    %99 = arith.truncf %98 : vector<2x128xf32> to vector<2x128xbf16>
    %c6_65 = arith.constant 6 : index
    %c0_66 = arith.constant 0 : index
    %c0_67 = arith.constant 0 : index
    %100 = vector.load %arg4[%c6_65, %c0_66, %c0_67] : memref<25x128x768xbf16, #tpu.memory_space<vmem>>, vector<1x128x768xbf16>
    %101 = vector.shape_cast %100 : vector<1x128x768xbf16> to vector<128x768xbf16>
    %cst_68 = arith.constant dense<0.000000e+00> : vector<2x768xf32>
    %102 = tpu.matmul %99, %101, %cst_68 {dimension_numbers = #tpu.dot_dimension_numbers<[1], [0], [0], [1], [0, 0, 1, 1], [], []>} : vector<2x128xbf16>, vector<128x768xbf16>, vector<2x768xf32> -> vector<2x768xf32>
    %103 = arith.addf %89, %102 : vector<2x768xf32>
    %c7 = arith.constant 7 : index
    %c0_69 = arith.constant 0 : index
    %c0_70 = arith.constant 0 : index
    %104 = vector.load %arg1[%c7, %c0_69, %c0_70] : memref<25x2x8xbf16, #tpu.memory_space<vmem>>, vector<1x2x8xbf16>
    %105 = vector.shape_cast %104 : vector<1x2x8xbf16> to vector<2x8xbf16>
    %cst_71 = arith.constant dense<0.000000e+00> : vector<2x128xf32>
    %106 = tpu.matmul %105, %0, %cst_71 {dimension_numbers = #tpu.dot_dimension_numbers<[1], [0], [0], [1], [0, 0, 1, 1], [], []>} : vector<2x8xbf16>, vector<8x128xbf16>, vector<2x128xf32> -> vector<2x128xf32>
    %107 = vector.broadcast %1 : vector<1x128xf32> to vector<2x128xf32>
    %108 = arith.addf %106, %107 : vector<2x128xf32>
    %cst_72 = arith.constant 0.000000e+00 : f32
    %109 = vector.broadcast %cst_72 : f32 to vector<2x128xf32>
    %110 = arith.maximumf %108, %109 : vector<2x128xf32>
    %cst_73 = arith.constant 6.000000e+00 : f32
    %111 = vector.broadcast %cst_73 : f32 to vector<2x128xf32>
    %112 = arith.minimumf %110, %111 : vector<2x128xf32>
    %113 = arith.truncf %112 : vector<2x128xf32> to vector<2x128xbf16>
    %c7_74 = arith.constant 7 : index
    %c0_75 = arith.constant 0 : index
    %c0_76 = arith.constant 0 : index
    %114 = vector.load %arg4[%c7_74, %c0_75, %c0_76] : memref<25x128x768xbf16, #tpu.memory_space<vmem>>, vector<1x128x768xbf16>
    %115 = vector.shape_cast %114 : vector<1x128x768xbf16> to vector<128x768xbf16>
    %cst_77 = arith.constant dense<0.000000e+00> : vector<2x768xf32>
    %116 = tpu.matmul %113, %115, %cst_77 {dimension_numbers = #tpu.dot_dimension_numbers<[1], [0], [0], [1], [0, 0, 1, 1], [], []>} : vector<2x128xbf16>, vector<128x768xbf16>, vector<2x768xf32> -> vector<2x768xf32>
    %117 = arith.addf %103, %116 : vector<2x768xf32>
    %c8 = arith.constant 8 : index
    %c0_78 = arith.constant 0 : index
    %c0_79 = arith.constant 0 : index
    %118 = vector.load %arg1[%c8, %c0_78, %c0_79] : memref<25x2x8xbf16, #tpu.memory_space<vmem>>, vector<1x2x8xbf16>
    %119 = vector.shape_cast %118 : vector<1x2x8xbf16> to vector<2x8xbf16>
    %cst_80 = arith.constant dense<0.000000e+00> : vector<2x128xf32>
    %120 = tpu.matmul %119, %0, %cst_80 {dimension_numbers = #tpu.dot_dimension_numbers<[1], [0], [0], [1], [0, 0, 1, 1], [], []>} : vector<2x8xbf16>, vector<8x128xbf16>, vector<2x128xf32> -> vector<2x128xf32>
    %121 = vector.broadcast %1 : vector<1x128xf32> to vector<2x128xf32>
    %122 = arith.addf %120, %121 : vector<2x128xf32>
    %cst_81 = arith.constant 0.000000e+00 : f32
    %123 = vector.broadcast %cst_81 : f32 to vector<2x128xf32>
    %124 = arith.maximumf %122, %123 : vector<2x128xf32>
    %cst_82 = arith.constant 6.000000e+00 : f32
    %125 = vector.broadcast %cst_82 : f32 to vector<2x128xf32>
    %126 = arith.minimumf %124, %125 : vector<2x128xf32>
    %127 = arith.truncf %126 : vector<2x128xf32> to vector<2x128xbf16>
    %c8_83 = arith.constant 8 : index
    %c0_84 = arith.constant 0 : index
    %c0_85 = arith.constant 0 : index
    %128 = vector.load %arg4[%c8_83, %c0_84, %c0_85] : memref<25x128x768xbf16, #tpu.memory_space<vmem>>, vector<1x128x768xbf16>
    %129 = vector.shape_cast %128 : vector<1x128x768xbf16> to vector<128x768xbf16>
    %cst_86 = arith.constant dense<0.000000e+00> : vector<2x768xf32>
    %130 = tpu.matmul %127, %129, %cst_86 {dimension_numbers = #tpu.dot_dimension_numbers<[1], [0], [0], [1], [0, 0, 1, 1], [], []>} : vector<2x128xbf16>, vector<128x768xbf16>, vector<2x768xf32> -> vector<2x768xf32>
    %131 = arith.addf %117, %130 : vector<2x768xf32>
    %c9 = arith.constant 9 : index
    %c0_87 = arith.constant 0 : index
    %c0_88 = arith.constant 0 : index
    %132 = vector.load %arg1[%c9, %c0_87, %c0_88] : memref<25x2x8xbf16, #tpu.memory_space<vmem>>, vector<1x2x8xbf16>
    %133 = vector.shape_cast %132 : vector<1x2x8xbf16> to vector<2x8xbf16>
    %cst_89 = arith.constant dense<0.000000e+00> : vector<2x128xf32>
    %134 = tpu.matmul %133, %0, %cst_89 {dimension_numbers = #tpu.dot_dimension_numbers<[1], [0], [0], [1], [0, 0, 1, 1], [], []>} : vector<2x8xbf16>, vector<8x128xbf16>, vector<2x128xf32> -> vector<2x128xf32>
    %135 = vector.broadcast %1 : vector<1x128xf32> to vector<2x128xf32>
    %136 = arith.addf %134, %135 : vector<2x128xf32>
    %cst_90 = arith.constant 0.000000e+00 : f32
    %137 = vector.broadcast %cst_90 : f32 to vector<2x128xf32>
    %138 = arith.maximumf %136, %137 : vector<2x128xf32>
    %cst_91 = arith.constant 6.000000e+00 : f32
    %139 = vector.broadcast %cst_91 : f32 to vector<2x128xf32>
    %140 = arith.minimumf %138, %139 : vector<2x128xf32>
    %141 = arith.truncf %140 : vector<2x128xf32> to vector<2x128xbf16>
    %c9_92 = arith.constant 9 : index
    %c0_93 = arith.constant 0 : index
    %c0_94 = arith.constant 0 : index
    %142 = vector.load %arg4[%c9_92, %c0_93, %c0_94] : memref<25x128x768xbf16, #tpu.memory_space<vmem>>, vector<1x128x768xbf16>
    %143 = vector.shape_cast %142 : vector<1x128x768xbf16> to vector<128x768xbf16>
    %cst_95 = arith.constant dense<0.000000e+00> : vector<2x768xf32>
    %144 = tpu.matmul %141, %143, %cst_95 {dimension_numbers = #tpu.dot_dimension_numbers<[1], [0], [0], [1], [0, 0, 1, 1], [], []>} : vector<2x128xbf16>, vector<128x768xbf16>, vector<2x768xf32> -> vector<2x768xf32>
    %145 = arith.addf %131, %144 : vector<2x768xf32>
    %c10 = arith.constant 10 : index
    %c0_96 = arith.constant 0 : index
    %c0_97 = arith.constant 0 : index
    %146 = vector.load %arg1[%c10, %c0_96, %c0_97] : memref<25x2x8xbf16, #tpu.memory_space<vmem>>, vector<1x2x8xbf16>
    %147 = vector.shape_cast %146 : vector<1x2x8xbf16> to vector<2x8xbf16>
    %cst_98 = arith.constant dense<0.000000e+00> : vector<2x128xf32>
    %148 = tpu.matmul %147, %0, %cst_98 {dimension_numbers = #tpu.dot_dimension_numbers<[1], [0], [0], [1], [0, 0, 1, 1], [], []>} : vector<2x8xbf16>, vector<8x128xbf16>, vector<2x128xf32> -> vector<2x128xf32>
    %149 = vector.broadcast %1 : vector<1x128xf32> to vector<2x128xf32>
    %150 = arith.addf %148, %149 : vector<2x128xf32>
    %cst_99 = arith.constant 0.000000e+00 : f32
    %151 = vector.broadcast %cst_99 : f32 to vector<2x128xf32>
    %152 = arith.maximumf %150, %151 : vector<2x128xf32>
    %cst_100 = arith.constant 6.000000e+00 : f32
    %153 = vector.broadcast %cst_100 : f32 to vector<2x128xf32>
    %154 = arith.minimumf %152, %153 : vector<2x128xf32>
    %155 = arith.truncf %154 : vector<2x128xf32> to vector<2x128xbf16>
    %c10_101 = arith.constant 10 : index
    %c0_102 = arith.constant 0 : index
    %c0_103 = arith.constant 0 : index
    %156 = vector.load %arg4[%c10_101, %c0_102, %c0_103] : memref<25x128x768xbf16, #tpu.memory_space<vmem>>, vector<1x128x768xbf16>
    %157 = vector.shape_cast %156 : vector<1x128x768xbf16> to vector<128x768xbf16>
    %cst_104 = arith.constant dense<0.000000e+00> : vector<2x768xf32>
    %158 = tpu.matmul %155, %157, %cst_104 {dimension_numbers = #tpu.dot_dimension_numbers<[1], [0], [0], [1], [0, 0, 1, 1], [], []>} : vector<2x128xbf16>, vector<128x768xbf16>, vector<2x768xf32> -> vector<2x768xf32>
    %159 = arith.addf %145, %158 : vector<2x768xf32>
    %c11 = arith.constant 11 : index
    %c0_105 = arith.constant 0 : index
    %c0_106 = arith.constant 0 : index
    %160 = vector.load %arg1[%c11, %c0_105, %c0_106] : memref<25x2x8xbf16, #tpu.memory_space<vmem>>, vector<1x2x8xbf16>
    %161 = vector.shape_cast %160 : vector<1x2x8xbf16> to vector<2x8xbf16>
    %cst_107 = arith.constant dense<0.000000e+00> : vector<2x128xf32>
    %162 = tpu.matmul %161, %0, %cst_107 {dimension_numbers = #tpu.dot_dimension_numbers<[1], [0], [0], [1], [0, 0, 1, 1], [], []>} : vector<2x8xbf16>, vector<8x128xbf16>, vector<2x128xf32> -> vector<2x128xf32>
    %163 = vector.broadcast %1 : vector<1x128xf32> to vector<2x128xf32>
    %164 = arith.addf %162, %163 : vector<2x128xf32>
    %cst_108 = arith.constant 0.000000e+00 : f32
    %165 = vector.broadcast %cst_108 : f32 to vector<2x128xf32>
    %166 = arith.maximumf %164, %165 : vector<2x128xf32>
    %cst_109 = arith.constant 6.000000e+00 : f32
    %167 = vector.broadcast %cst_109 : f32 to vector<2x128xf32>
    %168 = arith.minimumf %166, %167 : vector<2x128xf32>
    %169 = arith.truncf %168 : vector<2x128xf32> to vector<2x128xbf16>
    %c11_110 = arith.constant 11 : index
    %c0_111 = arith.constant 0 : index
    %c0_112 = arith.constant 0 : index
    %170 = vector.load %arg4[%c11_110, %c0_111, %c0_112] : memref<25x128x768xbf16, #tpu.memory_space<vmem>>, vector<1x128x768xbf16>
    %171 = vector.shape_cast %170 : vector<1x128x768xbf16> to vector<128x768xbf16>
    %cst_113 = arith.constant dense<0.000000e+00> : vector<2x768xf32>
    %172 = tpu.matmul %169, %171, %cst_113 {dimension_numbers = #tpu.dot_dimension_numbers<[1], [0], [0], [1], [0, 0, 1, 1], [], []>} : vector<2x128xbf16>, vector<128x768xbf16>, vector<2x768xf32> -> vector<2x768xf32>
    %173 = arith.addf %159, %172 : vector<2x768xf32>
    %c12 = arith.constant 12 : index
    %c0_114 = arith.constant 0 : index
    %c0_115 = arith.constant 0 : index
    %174 = vector.load %arg1[%c12, %c0_114, %c0_115] : memref<25x2x8xbf16, #tpu.memory_space<vmem>>, vector<1x2x8xbf16>
    %175 = vector.shape_cast %174 : vector<1x2x8xbf16> to vector<2x8xbf16>
    %cst_116 = arith.constant dense<0.000000e+00> : vector<2x128xf32>
    %176 = tpu.matmul %175, %0, %cst_116 {dimension_numbers = #tpu.dot_dimension_numbers<[1], [0], [0], [1], [0, 0, 1, 1], [], []>} : vector<2x8xbf16>, vector<8x128xbf16>, vector<2x128xf32> -> vector<2x128xf32>
    %177 = vector.broadcast %1 : vector<1x128xf32> to vector<2x128xf32>
    %178 = arith.addf %176, %177 : vector<2x128xf32>
    %cst_117 = arith.constant 0.000000e+00 : f32
    %179 = vector.broadcast %cst_117 : f32 to vector<2x128xf32>
    %180 = arith.maximumf %178, %179 : vector<2x128xf32>
    %cst_118 = arith.constant 6.000000e+00 : f32
    %181 = vector.broadcast %cst_118 : f32 to vector<2x128xf32>
    %182 = arith.minimumf %180, %181 : vector<2x128xf32>
    %183 = arith.truncf %182 : vector<2x128xf32> to vector<2x128xbf16>
    %c12_119 = arith.constant 12 : index
    %c0_120 = arith.constant 0 : index
    %c0_121 = arith.constant 0 : index
    %184 = vector.load %arg4[%c12_119, %c0_120, %c0_121] : memref<25x128x768xbf16, #tpu.memory_space<vmem>>, vector<1x128x768xbf16>
    %185 = vector.shape_cast %184 : vector<1x128x768xbf16> to vector<128x768xbf16>
    %cst_122 = arith.constant dense<0.000000e+00> : vector<2x768xf32>
    %186 = tpu.matmul %183, %185, %cst_122 {dimension_numbers = #tpu.dot_dimension_numbers<[1], [0], [0], [1], [0, 0, 1, 1], [], []>} : vector<2x128xbf16>, vector<128x768xbf16>, vector<2x768xf32> -> vector<2x768xf32>
    %187 = arith.addf %173, %186 : vector<2x768xf32>
    %c13 = arith.constant 13 : index
    %c0_123 = arith.constant 0 : index
    %c0_124 = arith.constant 0 : index
    %188 = vector.load %arg1[%c13, %c0_123, %c0_124] : memref<25x2x8xbf16, #tpu.memory_space<vmem>>, vector<1x2x8xbf16>
    %189 = vector.shape_cast %188 : vector<1x2x8xbf16> to vector<2x8xbf16>
    %cst_125 = arith.constant dense<0.000000e+00> : vector<2x128xf32>
    %190 = tpu.matmul %189, %0, %cst_125 {dimension_numbers = #tpu.dot_dimension_numbers<[1], [0], [0], [1], [0, 0, 1, 1], [], []>} : vector<2x8xbf16>, vector<8x128xbf16>, vector<2x128xf32> -> vector<2x128xf32>
    %191 = vector.broadcast %1 : vector<1x128xf32> to vector<2x128xf32>
    %192 = arith.addf %190, %191 : vector<2x128xf32>
    %cst_126 = arith.constant 0.000000e+00 : f32
    %193 = vector.broadcast %cst_126 : f32 to vector<2x128xf32>
    %194 = arith.maximumf %192, %193 : vector<2x128xf32>
    %cst_127 = arith.constant 6.000000e+00 : f32
    %195 = vector.broadcast %cst_127 : f32 to vector<2x128xf32>
    %196 = arith.minimumf %194, %195 : vector<2x128xf32>
    %197 = arith.truncf %196 : vector<2x128xf32> to vector<2x128xbf16>
    %c13_128 = arith.constant 13 : index
    %c0_129 = arith.constant 0 : index
    %c0_130 = arith.constant 0 : index
    %198 = vector.load %arg4[%c13_128, %c0_129, %c0_130] : memref<25x128x768xbf16, #tpu.memory_space<vmem>>, vector<1x128x768xbf16>
    %199 = vector.shape_cast %198 : vector<1x128x768xbf16> to vector<128x768xbf16>
    %cst_131 = arith.constant dense<0.000000e+00> : vector<2x768xf32>
    %200 = tpu.matmul %197, %199, %cst_131 {dimension_numbers = #tpu.dot_dimension_numbers<[1], [0], [0], [1], [0, 0, 1, 1], [], []>} : vector<2x128xbf16>, vector<128x768xbf16>, vector<2x768xf32> -> vector<2x768xf32>
    %201 = arith.addf %187, %200 : vector<2x768xf32>
    %c14 = arith.constant 14 : index
    %c0_132 = arith.constant 0 : index
    %c0_133 = arith.constant 0 : index
    %202 = vector.load %arg1[%c14, %c0_132, %c0_133] : memref<25x2x8xbf16, #tpu.memory_space<vmem>>, vector<1x2x8xbf16>
    %203 = vector.shape_cast %202 : vector<1x2x8xbf16> to vector<2x8xbf16>
    %cst_134 = arith.constant dense<0.000000e+00> : vector<2x128xf32>
    %204 = tpu.matmul %203, %0, %cst_134 {dimension_numbers = #tpu.dot_dimension_numbers<[1], [0], [0], [1], [0, 0, 1, 1], [], []>} : vector<2x8xbf16>, vector<8x128xbf16>, vector<2x128xf32> -> vector<2x128xf32>
    %205 = vector.broadcast %1 : vector<1x128xf32> to vector<2x128xf32>
    %206 = arith.addf %204, %205 : vector<2x128xf32>
    %cst_135 = arith.constant 0.000000e+00 : f32
    %207 = vector.broadcast %cst_135 : f32 to vector<2x128xf32>
    %208 = arith.maximumf %206, %207 : vector<2x128xf32>
    %cst_136 = arith.constant 6.000000e+00 : f32
    %209 = vector.broadcast %cst_136 : f32 to vector<2x128xf32>
    %210 = arith.minimumf %208, %209 : vector<2x128xf32>
    %211 = arith.truncf %210 : vector<2x128xf32> to vector<2x128xbf16>
    %c14_137 = arith.constant 14 : index
    %c0_138 = arith.constant 0 : index
    %c0_139 = arith.constant 0 : index
    %212 = vector.load %arg4[%c14_137, %c0_138, %c0_139] : memref<25x128x768xbf16, #tpu.memory_space<vmem>>, vector<1x128x768xbf16>
    %213 = vector.shape_cast %212 : vector<1x128x768xbf16> to vector<128x768xbf16>
    %cst_140 = arith.constant dense<0.000000e+00> : vector<2x768xf32>
    %214 = tpu.matmul %211, %213, %cst_140 {dimension_numbers = #tpu.dot_dimension_numbers<[1], [0], [0], [1], [0, 0, 1, 1], [], []>} : vector<2x128xbf16>, vector<128x768xbf16>, vector<2x768xf32> -> vector<2x768xf32>
    %215 = arith.addf %201, %214 : vector<2x768xf32>
    %c15 = arith.constant 15 : index
    %c0_141 = arith.constant 0 : index
    %c0_142 = arith.constant 0 : index
    %216 = vector.load %arg1[%c15, %c0_141, %c0_142] : memref<25x2x8xbf16, #tpu.memory_space<vmem>>, vector<1x2x8xbf16>
    %217 = vector.shape_cast %216 : vector<1x2x8xbf16> to vector<2x8xbf16>
    %cst_143 = arith.constant dense<0.000000e+00> : vector<2x128xf32>
    %218 = tpu.matmul %217, %0, %cst_143 {dimension_numbers = #tpu.dot_dimension_numbers<[1], [0], [0], [1], [0, 0, 1, 1], [], []>} : vector<2x8xbf16>, vector<8x128xbf16>, vector<2x128xf32> -> vector<2x128xf32>
    %219 = vector.broadcast %1 : vector<1x128xf32> to vector<2x128xf32>
    %220 = arith.addf %218, %219 : vector<2x128xf32>
    %cst_144 = arith.constant 0.000000e+00 : f32
    %221 = vector.broadcast %cst_144 : f32 to vector<2x128xf32>
    %222 = arith.maximumf %220, %221 : vector<2x128xf32>
    %cst_145 = arith.constant 6.000000e+00 : f32
    %223 = vector.broadcast %cst_145 : f32 to vector<2x128xf32>
    %224 = arith.minimumf %222, %223 : vector<2x128xf32>
    %225 = arith.truncf %224 : vector<2x128xf32> to vector<2x128xbf16>
    %c15_146 = arith.constant 15 : index
    %c0_147 = arith.constant 0 : index
    %c0_148 = arith.constant 0 : index
    %226 = vector.load %arg4[%c15_146, %c0_147, %c0_148] : memref<25x128x768xbf16, #tpu.memory_space<vmem>>, vector<1x128x768xbf16>
    %227 = vector.shape_cast %226 : vector<1x128x768xbf16> to vector<128x768xbf16>
    %cst_149 = arith.constant dense<0.000000e+00> : vector<2x768xf32>
    %228 = tpu.matmul %225, %227, %cst_149 {dimension_numbers = #tpu.dot_dimension_numbers<[1], [0], [0], [1], [0, 0, 1, 1], [], []>} : vector<2x128xbf16>, vector<128x768xbf16>, vector<2x768xf32> -> vector<2x768xf32>
    %229 = arith.addf %215, %228 : vector<2x768xf32>
    %c16 = arith.constant 16 : index
    %c0_150 = arith.constant 0 : index
    %c0_151 = arith.constant 0 : index
    %230 = vector.load %arg1[%c16, %c0_150, %c0_151] : memref<25x2x8xbf16, #tpu.memory_space<vmem>>, vector<1x2x8xbf16>
    %231 = vector.shape_cast %230 : vector<1x2x8xbf16> to vector<2x8xbf16>
    %cst_152 = arith.constant dense<0.000000e+00> : vector<2x128xf32>
    %232 = tpu.matmul %231, %0, %cst_152 {dimension_numbers = #tpu.dot_dimension_numbers<[1], [0], [0], [1], [0, 0, 1, 1], [], []>} : vector<2x8xbf16>, vector<8x128xbf16>, vector<2x128xf32> -> vector<2x128xf32>
    %233 = vector.broadcast %1 : vector<1x128xf32> to vector<2x128xf32>
    %234 = arith.addf %232, %233 : vector<2x128xf32>
    %cst_153 = arith.constant 0.000000e+00 : f32
    %235 = vector.broadcast %cst_153 : f32 to vector<2x128xf32>
    %236 = arith.maximumf %234, %235 : vector<2x128xf32>
    %cst_154 = arith.constant 6.000000e+00 : f32
    %237 = vector.broadcast %cst_154 : f32 to vector<2x128xf32>
    %238 = arith.minimumf %236, %237 : vector<2x128xf32>
    %239 = arith.truncf %238 : vector<2x128xf32> to vector<2x128xbf16>
    %c16_155 = arith.constant 16 : index
    %c0_156 = arith.constant 0 : index
    %c0_157 = arith.constant 0 : index
    %240 = vector.load %arg4[%c16_155, %c0_156, %c0_157] : memref<25x128x768xbf16, #tpu.memory_space<vmem>>, vector<1x128x768xbf16>
    %241 = vector.shape_cast %240 : vector<1x128x768xbf16> to vector<128x768xbf16>
    %cst_158 = arith.constant dense<0.000000e+00> : vector<2x768xf32>
    %242 = tpu.matmul %239, %241, %cst_158 {dimension_numbers = #tpu.dot_dimension_numbers<[1], [0], [0], [1], [0, 0, 1, 1], [], []>} : vector<2x128xbf16>, vector<128x768xbf16>, vector<2x768xf32> -> vector<2x768xf32>
    %243 = arith.addf %229, %242 : vector<2x768xf32>
    %c17 = arith.constant 17 : index
    %c0_159 = arith.constant 0 : index
    %c0_160 = arith.constant 0 : index
    %244 = vector.load %arg1[%c17, %c0_159, %c0_160] : memref<25x2x8xbf16, #tpu.memory_space<vmem>>, vector<1x2x8xbf16>
    %245 = vector.shape_cast %244 : vector<1x2x8xbf16> to vector<2x8xbf16>
    %cst_161 = arith.constant dense<0.000000e+00> : vector<2x128xf32>
    %246 = tpu.matmul %245, %0, %cst_161 {dimension_numbers = #tpu.dot_dimension_numbers<[1], [0], [0], [1], [0, 0, 1, 1], [], []>} : vector<2x8xbf16>, vector<8x128xbf16>, vector<2x128xf32> -> vector<2x128xf32>
    %247 = vector.broadcast %1 : vector<1x128xf32> to vector<2x128xf32>
    %248 = arith.addf %246, %247 : vector<2x128xf32>
    %cst_162 = arith.constant 0.000000e+00 : f32
    %249 = vector.broadcast %cst_162 : f32 to vector<2x128xf32>
    %250 = arith.maximumf %248, %249 : vector<2x128xf32>
    %cst_163 = arith.constant 6.000000e+00 : f32
    %251 = vector.broadcast %cst_163 : f32 to vector<2x128xf32>
    %252 = arith.minimumf %250, %251 : vector<2x128xf32>
    %253 = arith.truncf %252 : vector<2x128xf32> to vector<2x128xbf16>
    %c17_164 = arith.constant 17 : index
    %c0_165 = arith.constant 0 : index
    %c0_166 = arith.constant 0 : index
    %254 = vector.load %arg4[%c17_164, %c0_165, %c0_166] : memref<25x128x768xbf16, #tpu.memory_space<vmem>>, vector<1x128x768xbf16>
    %255 = vector.shape_cast %254 : vector<1x128x768xbf16> to vector<128x768xbf16>
    %cst_167 = arith.constant dense<0.000000e+00> : vector<2x768xf32>
    %256 = tpu.matmul %253, %255, %cst_167 {dimension_numbers = #tpu.dot_dimension_numbers<[1], [0], [0], [1], [0, 0, 1, 1], [], []>} : vector<2x128xbf16>, vector<128x768xbf16>, vector<2x768xf32> -> vector<2x768xf32>
    %257 = arith.addf %243, %256 : vector<2x768xf32>
    %c18 = arith.constant 18 : index
    %c0_168 = arith.constant 0 : index
    %c0_169 = arith.constant 0 : index
    %258 = vector.load %arg1[%c18, %c0_168, %c0_169] : memref<25x2x8xbf16, #tpu.memory_space<vmem>>, vector<1x2x8xbf16>
    %259 = vector.shape_cast %258 : vector<1x2x8xbf16> to vector<2x8xbf16>
    %cst_170 = arith.constant dense<0.000000e+00> : vector<2x128xf32>
    %260 = tpu.matmul %259, %0, %cst_170 {dimension_numbers = #tpu.dot_dimension_numbers<[1], [0], [0], [1], [0, 0, 1, 1], [], []>} : vector<2x8xbf16>, vector<8x128xbf16>, vector<2x128xf32> -> vector<2x128xf32>
    %261 = vector.broadcast %1 : vector<1x128xf32> to vector<2x128xf32>
    %262 = arith.addf %260, %261 : vector<2x128xf32>
    %cst_171 = arith.constant 0.000000e+00 : f32
    %263 = vector.broadcast %cst_171 : f32 to vector<2x128xf32>
    %264 = arith.maximumf %262, %263 : vector<2x128xf32>
    %cst_172 = arith.constant 6.000000e+00 : f32
    %265 = vector.broadcast %cst_172 : f32 to vector<2x128xf32>
    %266 = arith.minimumf %264, %265 : vector<2x128xf32>
    %267 = arith.truncf %266 : vector<2x128xf32> to vector<2x128xbf16>
    %c18_173 = arith.constant 18 : index
    %c0_174 = arith.constant 0 : index
    %c0_175 = arith.constant 0 : index
    %268 = vector.load %arg4[%c18_173, %c0_174, %c0_175] : memref<25x128x768xbf16, #tpu.memory_space<vmem>>, vector<1x128x768xbf16>
    %269 = vector.shape_cast %268 : vector<1x128x768xbf16> to vector<128x768xbf16>
    %cst_176 = arith.constant dense<0.000000e+00> : vector<2x768xf32>
    %270 = tpu.matmul %267, %269, %cst_176 {dimension_numbers = #tpu.dot_dimension_numbers<[1], [0], [0], [1], [0, 0, 1, 1], [], []>} : vector<2x128xbf16>, vector<128x768xbf16>, vector<2x768xf32> -> vector<2x768xf32>
    %271 = arith.addf %257, %270 : vector<2x768xf32>
    %c19 = arith.constant 19 : index
    %c0_177 = arith.constant 0 : index
    %c0_178 = arith.constant 0 : index
    %272 = vector.load %arg1[%c19, %c0_177, %c0_178] : memref<25x2x8xbf16, #tpu.memory_space<vmem>>, vector<1x2x8xbf16>
    %273 = vector.shape_cast %272 : vector<1x2x8xbf16> to vector<2x8xbf16>
    %cst_179 = arith.constant dense<0.000000e+00> : vector<2x128xf32>
    %274 = tpu.matmul %273, %0, %cst_179 {dimension_numbers = #tpu.dot_dimension_numbers<[1], [0], [0], [1], [0, 0, 1, 1], [], []>} : vector<2x8xbf16>, vector<8x128xbf16>, vector<2x128xf32> -> vector<2x128xf32>
    %275 = vector.broadcast %1 : vector<1x128xf32> to vector<2x128xf32>
    %276 = arith.addf %274, %275 : vector<2x128xf32>
    %cst_180 = arith.constant 0.000000e+00 : f32
    %277 = vector.broadcast %cst_180 : f32 to vector<2x128xf32>
    %278 = arith.maximumf %276, %277 : vector<2x128xf32>
    %cst_181 = arith.constant 6.000000e+00 : f32
    %279 = vector.broadcast %cst_181 : f32 to vector<2x128xf32>
    %280 = arith.minimumf %278, %279 : vector<2x128xf32>
    %281 = arith.truncf %280 : vector<2x128xf32> to vector<2x128xbf16>
    %c19_182 = arith.constant 19 : index
    %c0_183 = arith.constant 0 : index
    %c0_184 = arith.constant 0 : index
    %282 = vector.load %arg4[%c19_182, %c0_183, %c0_184] : memref<25x128x768xbf16, #tpu.memory_space<vmem>>, vector<1x128x768xbf16>
    %283 = vector.shape_cast %282 : vector<1x128x768xbf16> to vector<128x768xbf16>
    %cst_185 = arith.constant dense<0.000000e+00> : vector<2x768xf32>
    %284 = tpu.matmul %281, %283, %cst_185 {dimension_numbers = #tpu.dot_dimension_numbers<[1], [0], [0], [1], [0, 0, 1, 1], [], []>} : vector<2x128xbf16>, vector<128x768xbf16>, vector<2x768xf32> -> vector<2x768xf32>
    %285 = arith.addf %271, %284 : vector<2x768xf32>
    %c20 = arith.constant 20 : index
    %c0_186 = arith.constant 0 : index
    %c0_187 = arith.constant 0 : index
    %286 = vector.load %arg1[%c20, %c0_186, %c0_187] : memref<25x2x8xbf16, #tpu.memory_space<vmem>>, vector<1x2x8xbf16>
    %287 = vector.shape_cast %286 : vector<1x2x8xbf16> to vector<2x8xbf16>
    %cst_188 = arith.constant dense<0.000000e+00> : vector<2x128xf32>
    %288 = tpu.matmul %287, %0, %cst_188 {dimension_numbers = #tpu.dot_dimension_numbers<[1], [0], [0], [1], [0, 0, 1, 1], [], []>} : vector<2x8xbf16>, vector<8x128xbf16>, vector<2x128xf32> -> vector<2x128xf32>
    %289 = vector.broadcast %1 : vector<1x128xf32> to vector<2x128xf32>
    %290 = arith.addf %288, %289 : vector<2x128xf32>
    %cst_189 = arith.constant 0.000000e+00 : f32
    %291 = vector.broadcast %cst_189 : f32 to vector<2x128xf32>
    %292 = arith.maximumf %290, %291 : vector<2x128xf32>
    %cst_190 = arith.constant 6.000000e+00 : f32
    %293 = vector.broadcast %cst_190 : f32 to vector<2x128xf32>
    %294 = arith.minimumf %292, %293 : vector<2x128xf32>
    %295 = arith.truncf %294 : vector<2x128xf32> to vector<2x128xbf16>
    %c20_191 = arith.constant 20 : index
    %c0_192 = arith.constant 0 : index
    %c0_193 = arith.constant 0 : index
    %296 = vector.load %arg4[%c20_191, %c0_192, %c0_193] : memref<25x128x768xbf16, #tpu.memory_space<vmem>>, vector<1x128x768xbf16>
    %297 = vector.shape_cast %296 : vector<1x128x768xbf16> to vector<128x768xbf16>
    %cst_194 = arith.constant dense<0.000000e+00> : vector<2x768xf32>
    %298 = tpu.matmul %295, %297, %cst_194 {dimension_numbers = #tpu.dot_dimension_numbers<[1], [0], [0], [1], [0, 0, 1, 1], [], []>} : vector<2x128xbf16>, vector<128x768xbf16>, vector<2x768xf32> -> vector<2x768xf32>
    %299 = arith.addf %285, %298 : vector<2x768xf32>
    %c21 = arith.constant 21 : index
    %c0_195 = arith.constant 0 : index
    %c0_196 = arith.constant 0 : index
    %300 = vector.load %arg1[%c21, %c0_195, %c0_196] : memref<25x2x8xbf16, #tpu.memory_space<vmem>>, vector<1x2x8xbf16>
    %301 = vector.shape_cast %300 : vector<1x2x8xbf16> to vector<2x8xbf16>
    %cst_197 = arith.constant dense<0.000000e+00> : vector<2x128xf32>
    %302 = tpu.matmul %301, %0, %cst_197 {dimension_numbers = #tpu.dot_dimension_numbers<[1], [0], [0], [1], [0, 0, 1, 1], [], []>} : vector<2x8xbf16>, vector<8x128xbf16>, vector<2x128xf32> -> vector<2x128xf32>
    %303 = vector.broadcast %1 : vector<1x128xf32> to vector<2x128xf32>
    %304 = arith.addf %302, %303 : vector<2x128xf32>
    %cst_198 = arith.constant 0.000000e+00 : f32
    %305 = vector.broadcast %cst_198 : f32 to vector<2x128xf32>
    %306 = arith.maximumf %304, %305 : vector<2x128xf32>
    %cst_199 = arith.constant 6.000000e+00 : f32
    %307 = vector.broadcast %cst_199 : f32 to vector<2x128xf32>
    %308 = arith.minimumf %306, %307 : vector<2x128xf32>
    %309 = arith.truncf %308 : vector<2x128xf32> to vector<2x128xbf16>
    %c21_200 = arith.constant 21 : index
    %c0_201 = arith.constant 0 : index
    %c0_202 = arith.constant 0 : index
    %310 = vector.load %arg4[%c21_200, %c0_201, %c0_202] : memref<25x128x768xbf16, #tpu.memory_space<vmem>>, vector<1x128x768xbf16>
    %311 = vector.shape_cast %310 : vector<1x128x768xbf16> to vector<128x768xbf16>
    %cst_203 = arith.constant dense<0.000000e+00> : vector<2x768xf32>
    %312 = tpu.matmul %309, %311, %cst_203 {dimension_numbers = #tpu.dot_dimension_numbers<[1], [0], [0], [1], [0, 0, 1, 1], [], []>} : vector<2x128xbf16>, vector<128x768xbf16>, vector<2x768xf32> -> vector<2x768xf32>
    %313 = arith.addf %299, %312 : vector<2x768xf32>
    %c22 = arith.constant 22 : index
    %c0_204 = arith.constant 0 : index
    %c0_205 = arith.constant 0 : index
    %314 = vector.load %arg1[%c22, %c0_204, %c0_205] : memref<25x2x8xbf16, #tpu.memory_space<vmem>>, vector<1x2x8xbf16>
    %315 = vector.shape_cast %314 : vector<1x2x8xbf16> to vector<2x8xbf16>
    %cst_206 = arith.constant dense<0.000000e+00> : vector<2x128xf32>
    %316 = tpu.matmul %315, %0, %cst_206 {dimension_numbers = #tpu.dot_dimension_numbers<[1], [0], [0], [1], [0, 0, 1, 1], [], []>} : vector<2x8xbf16>, vector<8x128xbf16>, vector<2x128xf32> -> vector<2x128xf32>
    %317 = vector.broadcast %1 : vector<1x128xf32> to vector<2x128xf32>
    %318 = arith.addf %316, %317 : vector<2x128xf32>
    %cst_207 = arith.constant 0.000000e+00 : f32
    %319 = vector.broadcast %cst_207 : f32 to vector<2x128xf32>
    %320 = arith.maximumf %318, %319 : vector<2x128xf32>
    %cst_208 = arith.constant 6.000000e+00 : f32
    %321 = vector.broadcast %cst_208 : f32 to vector<2x128xf32>
    %322 = arith.minimumf %320, %321 : vector<2x128xf32>
    %323 = arith.truncf %322 : vector<2x128xf32> to vector<2x128xbf16>
    %c22_209 = arith.constant 22 : index
    %c0_210 = arith.constant 0 : index
    %c0_211 = arith.constant 0 : index
    %324 = vector.load %arg4[%c22_209, %c0_210, %c0_211] : memref<25x128x768xbf16, #tpu.memory_space<vmem>>, vector<1x128x768xbf16>
    %325 = vector.shape_cast %324 : vector<1x128x768xbf16> to vector<128x768xbf16>
    %cst_212 = arith.constant dense<0.000000e+00> : vector<2x768xf32>
    %326 = tpu.matmul %323, %325, %cst_212 {dimension_numbers = #tpu.dot_dimension_numbers<[1], [0], [0], [1], [0, 0, 1, 1], [], []>} : vector<2x128xbf16>, vector<128x768xbf16>, vector<2x768xf32> -> vector<2x768xf32>
    %327 = arith.addf %313, %326 : vector<2x768xf32>
    %c23 = arith.constant 23 : index
    %c0_213 = arith.constant 0 : index
    %c0_214 = arith.constant 0 : index
    %328 = vector.load %arg1[%c23, %c0_213, %c0_214] : memref<25x2x8xbf16, #tpu.memory_space<vmem>>, vector<1x2x8xbf16>
    %329 = vector.shape_cast %328 : vector<1x2x8xbf16> to vector<2x8xbf16>
    %cst_215 = arith.constant dense<0.000000e+00> : vector<2x128xf32>
    %330 = tpu.matmul %329, %0, %cst_215 {dimension_numbers = #tpu.dot_dimension_numbers<[1], [0], [0], [1], [0, 0, 1, 1], [], []>} : vector<2x8xbf16>, vector<8x128xbf16>, vector<2x128xf32> -> vector<2x128xf32>
    %331 = vector.broadcast %1 : vector<1x128xf32> to vector<2x128xf32>
    %332 = arith.addf %330, %331 : vector<2x128xf32>
    %cst_216 = arith.constant 0.000000e+00 : f32
    %333 = vector.broadcast %cst_216 : f32 to vector<2x128xf32>
    %334 = arith.maximumf %332, %333 : vector<2x128xf32>
    %cst_217 = arith.constant 6.000000e+00 : f32
    %335 = vector.broadcast %cst_217 : f32 to vector<2x128xf32>
    %336 = arith.minimumf %334, %335 : vector<2x128xf32>
    %337 = arith.truncf %336 : vector<2x128xf32> to vector<2x128xbf16>
    %c23_218 = arith.constant 23 : index
    %c0_219 = arith.constant 0 : index
    %c0_220 = arith.constant 0 : index
    %338 = vector.load %arg4[%c23_218, %c0_219, %c0_220] : memref<25x128x768xbf16, #tpu.memory_space<vmem>>, vector<1x128x768xbf16>
    %339 = vector.shape_cast %338 : vector<1x128x768xbf16> to vector<128x768xbf16>
    %cst_221 = arith.constant dense<0.000000e+00> : vector<2x768xf32>
    %340 = tpu.matmul %337, %339, %cst_221 {dimension_numbers = #tpu.dot_dimension_numbers<[1], [0], [0], [1], [0, 0, 1, 1], [], []>} : vector<2x128xbf16>, vector<128x768xbf16>, vector<2x768xf32> -> vector<2x768xf32>
    %341 = arith.addf %327, %340 : vector<2x768xf32>
    %c24 = arith.constant 24 : index
    %c0_222 = arith.constant 0 : index
    %c0_223 = arith.constant 0 : index
    %342 = vector.load %arg1[%c24, %c0_222, %c0_223] : memref<25x2x8xbf16, #tpu.memory_space<vmem>>, vector<1x2x8xbf16>
    %343 = vector.shape_cast %342 : vector<1x2x8xbf16> to vector<2x8xbf16>
    %cst_224 = arith.constant dense<0.000000e+00> : vector<2x128xf32>
    %344 = tpu.matmul %343, %0, %cst_224 {dimension_numbers = #tpu.dot_dimension_numbers<[1], [0], [0], [1], [0, 0, 1, 1], [], []>} : vector<2x8xbf16>, vector<8x128xbf16>, vector<2x128xf32> -> vector<2x128xf32>
    %345 = vector.broadcast %1 : vector<1x128xf32> to vector<2x128xf32>
    %346 = arith.addf %344, %345 : vector<2x128xf32>
    %cst_225 = arith.constant 0.000000e+00 : f32
    %347 = vector.broadcast %cst_225 : f32 to vector<2x128xf32>
    %348 = arith.maximumf %346, %347 : vector<2x128xf32>
    %cst_226 = arith.constant 6.000000e+00 : f32
    %349 = vector.broadcast %cst_226 : f32 to vector<2x128xf32>
    %350 = arith.minimumf %348, %349 : vector<2x128xf32>
    %351 = arith.truncf %350 : vector<2x128xf32> to vector<2x128xbf16>
    %c24_227 = arith.constant 24 : index
    %c0_228 = arith.constant 0 : index
    %c0_229 = arith.constant 0 : index
    %352 = vector.load %arg4[%c24_227, %c0_228, %c0_229] : memref<25x128x768xbf16, #tpu.memory_space<vmem>>, vector<1x128x768xbf16>
    %353 = vector.shape_cast %352 : vector<1x128x768xbf16> to vector<128x768xbf16>
    %cst_230 = arith.constant dense<0.000000e+00> : vector<2x768xf32>
    %354 = tpu.matmul %351, %353, %cst_230 {dimension_numbers = #tpu.dot_dimension_numbers<[1], [0], [0], [1], [0, 0, 1, 1], [], []>} : vector<2x128xbf16>, vector<128x768xbf16>, vector<2x768xf32> -> vector<2x768xf32>
    %355 = arith.addf %341, %354 : vector<2x768xf32>
    %356 = arith.truncf %355 : vector<2x768xf32> to vector<2x768xbf16>
    %c0_231 = arith.constant 0 : index
    %c0_232 = arith.constant 0 : index
    %357 = vector.load %arg6[%c0_231, %c0_232] : memref<768x128xbf16, #tpu.memory_space<vmem>>, vector<768x128xbf16>
    %cst_233 = arith.constant dense<0.000000e+00> : vector<2x128xf32>
    %358 = tpu.matmul %356, %357, %cst_233 {dimension_numbers = #tpu.dot_dimension_numbers<[1], [0], [0], [1], [0, 0, 1, 1], [], []>} : vector<2x768xbf16>, vector<768x128xbf16>, vector<2x128xf32> -> vector<2x128xf32>
    %c0_234 = arith.constant 0 : index
    %c0_235 = arith.constant 0 : index
    %359 = vector.load %arg7[%c0_234, %c0_235] : memref<1x128xf32, #tpu.memory_space<vmem>>, vector<1x128xf32>
    %360 = vector.broadcast %359 : vector<1x128xf32> to vector<2x128xf32>
    %361 = arith.addf %358, %360 : vector<2x128xf32>
    %c0_236 = arith.constant 0 : index
    %c0_237 = arith.constant 0 : index
    %362 = vector.load %arg8[%c0_236, %c0_237] : memref<2x128xf32, #tpu.memory_space<vmem>>, vector<2x128xf32>
    tpu.vector_store %arg8[%c0_236, %c0_237], %361 {strides = array<i32>} : memref<2x128xf32, #tpu.memory_space<vmem>>, vector<2x128xf32>,
    return
  }
  func.func @transform_0(%arg0: i32) -> (i32, i32, i32) {
    %c0_i32 = arith.constant 0 : i32
    %c0_i32_0 = arith.constant 0 : i32
    %c0_i32_1 = arith.constant 0 : i32
    return %c0_i32, %arg0, %c0_i32_0 : i32, i32, i32
  }
  func.func @transform_1(%arg0: i32) -> (i32, i32) {
    %c0_i32 = arith.constant 0 : i32
    %c0_i32_0 = arith.constant 0 : i32
    %c0_i32_1 = arith.constant 0 : i32
    return %c0_i32, %c0_i32_0 : i32, i32
  }
  func.func @transform_2(%arg0: i32) -> (i32, i32) {
    %c0_i32 = arith.constant 0 : i32
    %c0_i32_0 = arith.constant 0 : i32
    %c0_i32_1 = arith.constant 0 : i32
    return %c0_i32, %c0_i32_0 : i32, i32
  }
  func.func @transform_3(%arg0: i32) -> (i32, i32, i32) {
    %c0_i32 = arith.constant 0 : i32
    %c0_i32_0 = arith.constant 0 : i32
    %c0_i32_1 = arith.constant 0 : i32
    %c0_i32_2 = arith.constant 0 : i32
    return %c0_i32, %c0_i32_0, %c0_i32_1 : i32, i32, i32
  }
  func.func @transform_4(%arg0: i32) -> (i32, i32) {
    %c0_i32 = arith.constant 0 : i32
    %c0_i32_0 = arith.constant 0 : i32
    %c0_i32_1 = arith.constant 0 : i32
    return %c0_i32, %c0_i32_0 : i32, i32
  }
  func.func @transform_5(%arg0: i32) -> (i32, i32) {
    %c0_i32 = arith.constant 0 : i32
    %c0_i32_0 = arith.constant 0 : i32
    %c0_i32_1 = arith.constant 0 : i32
    return %c0_i32, %c0_i32_0 : i32, i32
  }
  func.func @transform_6(%arg0: i32) -> (i32, i32) {
    %c0_i32 = arith.constant 0 : i32
    %c0_i32_0 = arith.constant 0 : i32
    %c0_i32_1 = arith.constant 0 : i32
    return %c0_i32, %c0_i32_0 : i32, i32
  }
  func.func @transform_7(%arg0: i32) -> (i32, i32) {
    %c0_i32 = arith.constant 0 : i32
    %c0_i32_0 = arith.constant 0 : i32
    return %arg0, %c0_i32 : i32, i32
  }
}

</mosaic_0001>

<bundles_post_ra>
// kernel: inception_aux_forward.1
= control target key start
LH: loop header
LB: loop body
LE: loop exit
PB: predicated region body
PF: predicated region fallthrough
CT: control target
= control target key end

     0   :  { %12 = vsyncpa [#allocation3], 0  ;;  %s17652_s0 = inlined_call_operand.vmem [shape: bf16[25,2,8], index: 0, kind: input, shape index: {}]   ;;  %s17653_s1 = inlined_call_operand.hbm [shape: bf16[8,128], index: 1, kind: input, shape index: {}]   ;;  %s17654_s2 = inlined_call_operand.hbm [shape: f32[1,128], index: 2, kind: input, shape index: {}]   ;;  %s17655_s3 = inlined_call_operand.hbm [shape: bf16[25,128,768], index: 3, kind: input, shape index: {}]   ;;  %s17656_s4 = inlined_call_operand.hbm [shape: f32[1,768], index: 4, kind: input, shape index: {}]   ;;  %s17657_s5 = inlined_call_operand.hbm [shape: bf16[768,128], index: 5, kind: input, shape index: {}]   ;;  %s17658_s6 = inlined_call_operand.hbm [shape: f32[1,128], index: 6, kind: input, shape index: {}]   ;;  %s17659_s7 = inlined_call_operand.hbm [shape: f32[2,128], index: 7, kind: output, shape index: {}]  }
   0x1   :  { %13 = vsyncpa [#allocation6], 0 }
   0x2   :  { %14 = vsyncpa [#allocation9], 0 }
   0x3   :  { %15 = vsyncpa [#allocation12], 0  ;;  %s35_s26 = sshll.u32 %s17654_s2, 4  ;;  %s36_s26 = int_to_ptr.hbm [resolvable:$true] %s35_s26 }
   0x4   :  { %16 = vsyncpa [#allocation4], 0  ;;  %s16973_s27 = smov [#allocation5]   ;;  %s59_s8 = sshll.u32 %s17656_s4, 4  ;;  %s60_s8 = int_to_ptr.hbm [resolvable:$true] %s59_s8 }
   0x5   :  { %s37_s28 = sshll.u32 %s16973_s27, 4  ;;  %s16974_s9 = smov [#allocation8]   ;;  %s38_s28 = int_to_ptr.vmem [resolvable:$true] %s37_s28 }
   0x6   :  { %40 = dma.hbm_to_vmem [thread:$0]  %s36_s26, 16, %s38_s28, [#allocation6]  }
   0x7   :  { %s61_s10 = sshll.u32 %s16974_s9, 4  ;;  %s24_s13 = sshll.u32 %s17653_s1, 4  ;;  %s62_s10 = int_to_ptr.vmem [resolvable:$true] %s61_s10  ;;  %s25_s13 = int_to_ptr.hbm [resolvable:$true] %s24_s13 }
   0x8   :  { %64 = dma.hbm_to_vmem [thread:$0]  %s60_s8, 96, %s62_s10, [#allocation9]  }
   0x9   :  { %s45_s15 = sshll.u32 %s17655_s3, 4  ;;  %s16975_s16 = smov [#allocation2]   ;;  %s46_s15 = int_to_ptr.hbm [resolvable:$true] %s45_s15 }
   0xa   :  { %s26_s17 = sshll.u32 %s16975_s16, 4  ;;  %s16976_s4 = smov [#allocation7]   ;;  %s27_s17 = int_to_ptr.vmem [resolvable:$true] %s26_s17 }
   0xb   :  { %29 = dma.hbm_to_vmem [thread:$0]  %s25_s13, 64, %s27_s17, [#allocation3]  }
   0xc   :  { %s47_s18 = sshll.u32 %s16976_s4, 4  ;;  %s16977_s19 = smov 384   ;;  %s48_s18 = int_to_ptr.vmem [resolvable:$true] %s47_s18 }
   0xd   :  { %s16978_s20 = smov 24   ;;  %s69_s22 = sshll.u32 %s17657_s5, 4  ;;  %s70_s22 = int_to_ptr.hbm [resolvable:$true] %s69_s22 }
   0xe   :  { %53 = dma.hbm_to_vmem [thread:$0]  %s46_s15, 153600, %s48_s18, [#allocation6], %s16977_s19, %s16977_s19, %s16978_s20  }
   0xf   :  { %s16979_s23 = smov [#allocation10]   ;;  %s83_s26 = sshll.u32 %s17658_s6, 4  ;;  %s84_s26 = int_to_ptr.hbm [resolvable:$true] %s83_s26 }
  0x10   :  { %s71_s24 = sshll.u32 %s16979_s23, 4  ;;  %s16980_s27 = smov 64   ;;  %s72_s24 = int_to_ptr.vmem [resolvable:$true] %s71_s24 }
  0x11   :  { %s16981_s28 = smov 4   ;;  %s16982_s29 = smov [#allocation11]  }
  0x12   :  { %77 = dma.hbm_to_vmem [thread:$0]  %s70_s22, 6144, %s72_s24, [#allocation9], %s16980_s27, %s16980_s27, %s16981_s28  }
  0x13   :  { %s85_s30 = sshll.u32 %s16982_s29, 4  ;;  %s86_s30 = int_to_ptr.vmem [resolvable:$true] %s85_s30 }
  0x14   :  { %88 = dma.hbm_to_vmem [thread:$0]  %s84_s26, 16, %s86_s30, [#allocation12]  }
  0x15   :  { %16963 = dma.done.wait [#allocation3], 64  }
  0x16   :  { %16964 = vsyncadd [#allocation3], 4294967232 }
  0x17   :  { %16965 = dma.done.wait [#allocation6], 153616  }
  0x18   :  { %16966 = vsyncadd [#allocation6], 4294813680 }
  0x19   :  { %16967 = dma.done.wait [#allocation9], 6240  }
  0x1a   :  { %16968 = vsyncadd [#allocation9], 4294961056 }
  0x1b   :  { %16969 = dma.done.wait [#allocation12], 16  }
  0x1c   :  { %16970 = vsyncadd [#allocation12], 4294967280  ;;  %vm144_vm0 = vcmask 1043456   ;;  %v114_v0 = vld [vmem:[#allocation2] sm:$0xf]  ;;  %vm140_vm1 = vcmask 64512  }
  0x1d   :  { %v136_v1 = vld [vmem:[%s17652_s0] sm:$0x1]  ;;  %v10656_v2 = vld [vmem:[#allocation7 + $0x150] sm:$0xf]  ;;  %v17045_v3 = vsel %vm144_vm0, %v114_v0, 0  ;;  %s10472_s26 = sshll.u32 %s17659_s7, 4  ;;  %s10473_s26 = int_to_ptr.hbm [resolvable:$true] %s10472_s26 }
  0x1e   :  { %v15571_v4 = vld [vmem:[#allocation7 + $0x164] sm:$0xf0]  ;;  %v15568_v5 = vld [vmem:[#allocation7 + $0x154] sm:$0xf]  ;;  %155 = vmatpush.bf16.msra.mxu0 %v17045_v3  ;;  %v10658_v7 = vld [vmem:[#allocation7 + $0x168] sm:$0xf0] }
  0x1f   :  { %v10657_v6 = vor.u32 %v15571_v4, %v10656_v2  ;;  %v10632_v8 = vld [vmem:[#allocation7 + $0x120] sm:$0xf]  ;;  %v15565_v9 = vld [vmem:[#allocation7 + $0x134] sm:$0xf0]  ;;  %v10661_v10 = vor.u32 %v15568_v5, %v10658_v7  ;;  %v15562_v11 = vld [vmem:[#allocation7 + $0x124] sm:$0xf] }
  0x20   :  { %v10634_v12 = vld [vmem:[#allocation7 + $0x138] sm:$0xf0]  ;;  %v10633_v13 = vor.u32 %v15565_v9, %v10632_v8  ;;  %v10608_v15 = vld [vmem:[#allocation7 + $0xf0] sm:$0xf]  ;;  %v15559_v16 = vld [vmem:[#allocation7 + $0x104] sm:$0xf0] }
  0x21   :  { %452 = vmatpush.bf16.msra.mxu1 %v10657_v6  ;;  %10485 = vmatmul.msk.bf16.vlgmr.msra.gmra.mxu0 %vm140_vm1, %v136_v1  ;;  %v10637_v14 = vor.u32 %v15562_v11, %v10634_v12  ;;  %v15556_v17 = vld [vmem:[#allocation7 + $0xf4] sm:$0xf]  ;;  %v10610_v18 = vld [vmem:[#allocation7 + $0x108] sm:$0xf0]  ;;  %v10664_v19 = vld [vmem:[#allocation7 + $0x158] sm:$0xf]  ;;  %v10609_v24 = vor.u32 %v15559_v16, %v10608_v15 }
  0x22   :  { %465 = vmatpush.bf16.msra.mxu2 %v10661_v10  ;;  %v15572_v20 = vld [vmem:[#allocation7 + $0x16c] sm:$0xf0]  ;;  %v15569_v22 = vld [vmem:[#allocation7 + $0x15c] sm:$0xf]  ;;  %v10666_v23 = vld [vmem:[#allocation7 + $0x170] sm:$0xf0]  ;;  %v10613_v28 = vor.u32 %v15556_v17, %v10610_v18 }
  0x23   :  { %v10665_v21 = vor.u32 %v15572_v20, %v10664_v19  ;;  %v10584_v25 = vld [vmem:[#allocation7 + $0xc0] sm:$0xf]  ;;  %v15553_v26 = vld [vmem:[#allocation7 + $0xd4] sm:$0xf0]  ;;  %v10669_v27 = vor.u32 %v15569_v22, %v10666_v23  ;;  %v10640_v29 = vld [vmem:[#allocation7 + $0x128] sm:$0xf] }
  0x24   :  { %v15566_v30 = vld [vmem:[#allocation7 + $0x13c] sm:$0xf0]  ;;  %v15563_v31 = vld [vmem:[#allocation7 + $0x12c] sm:$0xf]  ;;  %v15550_v32 = vld [vmem:[#allocation7 + $0xc4] sm:$0xf]  ;;  %v10585_v38 = vor.u32 %v15553_v26, %v10584_v25 }
  0x25   :  { %453 = vmatpush.bf16.msra.mxu1 %v10633_v13  ;;  %478 = vmatpush.bf16.msra.mxu3 %v10665_v21  ;;  %v10586_v33 = vld [vmem:[#allocation7 + $0xd8] sm:$0xf0]  ;;  %v10641_v34 = vor.u32 %v15566_v30, %v10640_v29  ;;  %v10642_v35 = vld [vmem:[#allocation7 + $0x140] sm:$0xf0]  ;;  %v10616_v37 = vld [vmem:[#allocation7 + $0xf8] sm:$0xf] }
  0x26   :  { %466 = vmatpush.bf16.msra.mxu2 %v10637_v14  ;;  %491 = vmatpush.bf16.msrb.mxu0 %v10669_v27  ;;  %v10645_v36 = vor.u32 %v15563_v31, %v10642_v35  ;;  %v15560_v39 = vld [vmem:[#allocation7 + $0x10c] sm:$0xf0]  ;;  %v15557_v40 = vld [vmem:[#allocation7 + $0xfc] sm:$0xf]  ;;  %v10618_v41 = vld [vmem:[#allocation7 + $0x110] sm:$0xf0]  ;;  %v10589_v42 = vor.u32 %v15550_v32, %v10586_v33 }
  0x27   :  { %v10560_v43 = vld [vmem:[#allocation7 + $0x90] sm:$0xf]  ;;  %v15547_v44 = vld [vmem:[#allocation7 + $0xa4] sm:$0xf0]  ;;  %v15544_v45 = vld [vmem:[#allocation7 + $0x94] sm:$0xf]  ;;  %v10617_v46 = vor.u32 %v15560_v39, %v10616_v37  ;;  %v10621_v48 = vor.u32 %v15557_v40, %v10618_v41 }
  0x28   :  { %v10562_v47 = vld [vmem:[#allocation7 + $0xa8] sm:$0xf0]  ;;  %v10592_v49 = vld [vmem:[#allocation7 + $0xc8] sm:$0xf]  ;;  %v15554_v50 = vld [vmem:[#allocation7 + $0xdc] sm:$0xf0]  ;;  %v10561_v53 = vor.u32 %v15547_v44, %v10560_v43 }
  0x29   :  { %454 = vmatpush.bf16.msra.mxu1 %v10609_v24  ;;  %479 = vmatpush.bf16.msra.mxu3 %v10641_v34  ;;  %v15551_v51 = vld [vmem:[#allocation7 + $0xcc] sm:$0xf]  ;;  %v10594_v52 = vld [vmem:[#allocation7 + $0xe0] sm:$0xf0]  ;;  %v10565_v54 = vor.u32 %v15544_v45, %v10562_v47  ;;  %v10536_v55 = vld [vmem:[#allocation7 + $0x60] sm:$0xf]  ;;  %v10593_v58 = vor.u32 %v15554_v50, %v10592_v49 }
  0x2a   :  { %467 = vmatpush.bf16.msra.mxu2 %v10613_v28  ;;  %492 = vmatpush.bf16.msrb.mxu0 %v10645_v36  ;;  %v15541_v56 = vld [vmem:[#allocation7 + $0x74] sm:$0xf0]  ;;  %v15538_v57 = vld [vmem:[#allocation7 + $0x64] sm:$0xf]  ;;  %v10538_v59 = vld [vmem:[#allocation7 + $0x78] sm:$0xf0]  ;;  %v10597_v60 = vor.u32 %v15551_v51, %v10594_v52 }
  0x2b   :  { %v10568_v61 = vld [vmem:[#allocation7 + $0x98] sm:$0xf]  ;;  %v15548_v62 = vld [vmem:[#allocation7 + $0xac] sm:$0xf0]  ;;  %v15545_v63 = vld [vmem:[#allocation7 + $0x9c] sm:$0xf]  ;;  %v10537_v1 = vor.u32 %v15541_v56, %v10536_v55  ;;  %v10541_v4 = vor.u32 %v15538_v57, %v10538_v59 }
  0x2c   :  { %v10570_v0 = vld [vmem:[#allocation7 + $0xb0] sm:$0xf0]  ;;  %v10512_v2 = vld [vmem:[#allocation7 + $0x30] sm:$0xf]  ;;  %v15535_v5 = vld [vmem:[#allocation7 + $0x44] sm:$0xf0]  ;;  %v10569_v8 = vor.u32 %v15548_v62, %v10568_v61 }
  0x2d   :  { %455 = vmatpush.bf16.msra.mxu1 %v10585_v38  ;;  %480 = vmatpush.bf16.msra.mxu3 %v10617_v46  ;;  %v15532_v6 = vld [vmem:[#allocation7 + $0x34] sm:$0xf]  ;;  %v10514_v7 = vld [vmem:[#allocation7 + $0x48] sm:$0xf0]  ;;  %v10573_v9 = vor.u32 %v15545_v63, %v10570_v0  ;;  %v10544_v10 = vld [vmem:[#allocation7 + $0x68] sm:$0xf]  ;;  %v10513_v14 = vor.u32 %v15535_v5, %v10512_v2 }
  0x2e   :  { %468 = vmatpush.bf16.msra.mxu2 %v10589_v42  ;;  %493 = vmatpush.bf16.msrb.mxu0 %v10621_v48  ;;  %v15542_v11 = vld [vmem:[#allocation7 + $0x7c] sm:$0xf0]  ;;  %v15539_v12 = vld [vmem:[#allocation7 + $0x6c] sm:$0xf]  ;;  %v10546_v13 = vld [vmem:[#allocation7 + $0x80] sm:$0xf0]  ;;  %v10517_v15 = vor.u32 %v15532_v6, %v10514_v7 }
  0x2f   :  { %v10488_v16 = vld [vmem:[#allocation7] sm:$0xf]  ;;  %v15529_v17 = vld [vmem:[#allocation7 + $0x14] sm:$0xf0]  ;;  %v15526_v18 = vld [vmem:[#allocation7 + $0x4] sm:$0xf]  ;;  %v10545_v19 = vor.u32 %v15542_v11, %v10544_v10  ;;  %v10549_v23 = vor.u32 %v15539_v12, %v10546_v13 }
  0x30   :  { %v10490_v20 = vld [vmem:[#allocation7 + $0x18] sm:$0xf0]  ;;  %v10672_v21 = vld [vmem:[#allocation7 + $0x160] sm:$0xf]  ;;  %v15573_v22 = vld [vmem:[#allocation7 + $0x174] sm:$0xf0]  ;;  %v10489_v26 = vor.u32 %v15529_v17, %v10488_v16 }
  0x31   :  { %456 = vmatpush.bf16.msra.mxu1 %v10561_v53  ;;  %481 = vmatpush.bf16.msra.mxu3 %v10593_v58  ;;  %v15570_v24 = vld [vmem:[#allocation7 + $0x164] sm:$0xf]  ;;  %v10674_v25 = vld [vmem:[#allocation7 + $0x178] sm:$0xf0]  ;;  %v10493_v27 = vor.u32 %v15526_v18, %v10490_v20  ;;  %v10673_v28 = vor.u32 %v15573_v22, %v10672_v21  ;;  %v10648_v30 = vld [vmem:[#allocation7 + $0x130] sm:$0xf] }
  0x32   :  { %469 = vmatpush.bf16.msra.mxu2 %v10565_v54  ;;  %494 = vmatpush.bf16.msrb.mxu0 %v10597_v60  ;;  %v10677_v29 = vor.u32 %v15570_v24, %v10674_v25  ;;  %v15567_v31 = vld [vmem:[#allocation7 + $0x144] sm:$0xf0]  ;;  %v15564_v32 = vld [vmem:[#allocation7 + $0x134] sm:$0xf]  ;;  %v10650_v33 = vld [vmem:[#allocation7 + $0x148] sm:$0xf0] }
  0x33   :  { %v10649_v34 = vor.u32 %v15567_v31, %v10648_v30  ;;  %v10653_v35 = vor.u32 %v15564_v32, %v10650_v33  ;;  %v10520_v36 = vld [vmem:[#allocation7 + $0x38] sm:$0xf]  ;;  %v15536_v37 = vld [vmem:[#allocation7 + $0x4c] sm:$0xf0]  ;;  %v15533_v38 = vld [vmem:[#allocation7 + $0x3c] sm:$0xf] }
  0x34   :  { %v10521_v39 = vor.u32 %v15536_v37, %v10520_v36  ;;  %v10522_v40 = vld [vmem:[#allocation7 + $0x50] sm:$0xf0]  ;;  %v10624_v41 = vld [vmem:[#allocation7 + $0x100] sm:$0xf]  ;;  %v15561_v42 = vld [vmem:[#allocation7 + $0x114] sm:$0xf0] }
  0x35   :  { %457 = vmatpush.bf16.msra.mxu1 %v10537_v1  ;;  %482 = vmatpush.bf16.msra.mxu3 %v10569_v8  ;;  %v10525_v43 = vor.u32 %v15533_v38, %v10522_v40  ;;  %v10625_v44 = vor.u32 %v15561_v42, %v10624_v41  ;;  %v15558_v45 = vld [vmem:[#allocation7 + $0x104] sm:$0xf]  ;;  %v10626_v46 = vld [vmem:[#allocation7 + $0x118] sm:$0xf0]  ;;  %v10496_v48 = vld [vmem:[#allocation7 + $0x8] sm:$0xf] }
  0x36   :  { %470 = vmatpush.bf16.msra.mxu2 %v10541_v4  ;;  %495 = vmatpush.bf16.msrb.mxu0 %v10573_v9  ;;  %v10629_v47 = vor.u32 %v15558_v45, %v10626_v46  ;;  %v15530_v49 = vld [vmem:[#allocation7 + $0x1c] sm:$0xf0]  ;;  %v15527_v50 = vld [vmem:[#allocation7 + $0xc] sm:$0xf]  ;;  %v10498_v52 = vld [vmem:[#allocation7 + $0x20] sm:$0xf0] }
  0x37   :  { %v10497_v51 = vor.u32 %v15530_v49, %v10496_v48  ;;  %v10600_v53 = vld [vmem:[#allocation7 + $0xd0] sm:$0xf]  ;;  %v15555_v54 = vld [vmem:[#allocation7 + $0xe4] sm:$0xf0]  ;;  %v10501_v55 = vor.u32 %v15527_v50, %v10498_v52  ;;  %v15552_v57 = vld [vmem:[#allocation7 + $0xd4] sm:$0xf] }
  0x38   :  { %v10601_v56 = vor.u32 %v15555_v54, %v10600_v53  ;;  %v10602_v58 = vld [vmem:[#allocation7 + $0xe8] sm:$0xf0]  ;;  %v10576_v60 = vld [vmem:[#allocation7 + $0xa0] sm:$0xf]  ;;  %v15549_v61 = vld [vmem:[#allocation7 + $0xb4] sm:$0xf0] }
  0x39   :  { %458 = vmatpush.bf16.msra.mxu1 %v10513_v14  ;;  %483 = vmatpush.bf16.msra.mxu3 %v10545_v19  ;;  %v10605_v59 = vor.u32 %v15552_v57, %v10602_v58  ;;  %v15546_v62 = vld [vmem:[#allocation7 + $0xa4] sm:$0xf]  ;;  %v10577_v63 = vor.u32 %v15549_v61, %v10576_v60  ;;  %v10578_v0 = vld [vmem:[#allocation7 + $0xb8] sm:$0xf0]  ;;  %v10552_v2 = vld [vmem:[#allocation7 + $0x70] sm:$0xf] }
  0x3a   :  { %471 = vmatpush.bf16.msra.mxu2 %v10517_v15  ;;  %496 = vmatpush.bf16.msrb.mxu0 %v10549_v23  ;;  %v10581_v1 = vor.u32 %v15546_v62, %v10578_v0  ;;  %v15543_v4 = vld [vmem:[#allocation7 + $0x84] sm:$0xf0]  ;;  %v15540_v5 = vld [vmem:[#allocation7 + $0x74] sm:$0xf]  ;;  %v10554_v7 = vld [vmem:[#allocation7 + $0x88] sm:$0xf0] }
  0x3b   :  { %v10553_v6 = vor.u32 %v15543_v4, %v10552_v2  ;;  %v10557_v8 = vor.u32 %v15540_v5, %v10554_v7  ;;  %v10528_v9 = vld [vmem:[#allocation7 + $0x40] sm:$0xf]  ;;  %v15537_v10 = vld [vmem:[#allocation7 + $0x54] sm:$0xf0]  ;;  %v15534_v11 = vld [vmem:[#allocation7 + $0x44] sm:$0xf] }
  0x3c   :  { %v10530_v12 = vld [vmem:[#allocation7 + $0x58] sm:$0xf0]  ;;  %v10529_v13 = vor.u32 %v15537_v10, %v10528_v9  ;;  %v10504_v15 = vld [vmem:[#allocation7 + $0x10] sm:$0xf]  ;;  %v15531_v16 = vld [vmem:[#allocation7 + $0x24] sm:$0xf0] }
  0x3d   :  { %459 = vmatpush.bf16.msra.mxu1 %v10489_v26  ;;  %484 = vmatpush.bf16.msra.mxu3 %v10521_v39  ;;  %v10533_v14 = vor.u32 %v15534_v11, %v10530_v12  ;;  %v15528_v17 = vld [vmem:[#allocation7 + $0x14] sm:$0xf]  ;;  %v10506_v18 = vld [vmem:[#allocation7 + $0x28] sm:$0xf0]  ;;  %v10505_v19 = vor.u32 %v15531_v16, %v10504_v15  ;;  %v10850_v21 = vld [vmem:[#allocation7 + $0x2d0] sm:$0xf] }
  0x3e   :  { %472 = vmatpush.bf16.msra.mxu2 %v10493_v27  ;;  %497 = vmatpush.bf16.msrb.mxu0 %v10525_v43  ;;  %v10509_v20 = vor.u32 %v15528_v17, %v10506_v18  ;;  %v15619_v22 = vld [vmem:[#allocation7 + $0x2e4] sm:$0xf0]  ;;  %v10826_v24 = vld [vmem:[#allocation7 + $0x2a0] sm:$0xf]  ;;  %v15613_v25 = vld [vmem:[#allocation7 + $0x2b4] sm:$0xf0] }
  0x3f   :  { %v10851_v23 = vor.u32 %v15619_v22, %v10850_v21  ;;  %v17050_v26 = vld [vmem:[#allocation5] ss:$0 sm:$0xff]  ;;  %v10827_v27 = vor.u32 %v15613_v25, %v10826_v24  ;;  %v10778_v36 = vld [vmem:[#allocation7 + $0x240] sm:$0xf]  ;;  %v15601_v37 = vld [vmem:[#allocation7 + $0x254] sm:$0xf0] }
  0x40   :  { %v10779_v41 = vor.u32 %v15601_v37, %v10778_v36  ;;  %v15610_v43 = vld [vmem:[#allocation7 + $0x2a4] sm:$0xf]  ;;  %v15604_v46 = vld [vmem:[#allocation7 + $0x274] sm:$0xf]  ;;  %v10780_v50 = vld [vmem:[#allocation7 + $0x258] sm:$0xf0] }
  0x41   :  { %504 = vmatpush.bf16.msrb.mxu1 %v10673_v28  ;;  %485 = vmatpush.bf16.msra.mxu3 %v10497_v51  ;;  %v10802_v28 = vld [vmem:[#allocation7 + $0x270] sm:$0xf]  ;;  %v15598_v49 = vld [vmem:[#allocation7 + $0x244] sm:$0xf]  ;;  %v10678_v52 = vld [vmem:[%s17652_s0 + $0x1] sm:$0x1] }
  0x42   :  { %517 = vmatpush.bf16.msrb.mxu2 %v10677_v29  ;;  %498 = vmatpush.bf16.msrb.mxu0 %v10501_v55  ;;  %v15607_v29 = vld [vmem:[#allocation7 + $0x284] sm:$0xf0]  ;;  %v10783_v51 = vor.u32 %v15598_v49, %v10780_v50  ;;  %v10858_v53 = vld [vmem:[#allocation7 + $0x2d8] sm:$0xf]  ;;  %v15620_v54 = vld [vmem:[#allocation7 + $0x2ec] sm:$0xf0] }
  0x43   :  { %v10803_v32 = vor.u32 %v15607_v29, %v10802_v28  ;;  %v15617_v55 = vld [vmem:[#allocation7 + $0x2dc] sm:$0xf]  ;;  %v10860_v57 = vld [vmem:[#allocation7 + $0x2f0] sm:$0xf0]  ;;  %v15595_v60 = vld [vmem:[#allocation7 + $0x224] sm:$0xf0] }
  0x44   :  { %v10863_v58 = vor.u32 %v15617_v55, %v10860_v57  ;;  %v15592_v61 = vld [vmem:[#allocation7 + $0x214] sm:$0xf]  ;;  %v10834_v0 = vld [vmem:[#allocation7 + $0x2a8] sm:$0xf]  ;;  %v15611_v5 = vld [vmem:[#allocation7 + $0x2ac] sm:$0xf] }
  0x45   :  { %505 = vmatpush.bf16.msrb.mxu1 %v10649_v34  ;;  %548 = vmatpush.bf16.msrb.mxu3 %v17045_v3  ;;  %v15616_v34 = vld [vmem:[#allocation7 + $0x2d4] sm:$0xf]  ;;  %v15589_v9 = vld [vmem:[#allocation7 + $0x1f4] sm:$0xf0]  ;;  %v15586_v10 = vld [vmem:[#allocation7 + $0x1e4] sm:$0xf] }
  0x46   :  { %518 = vmatpush.bf16.msrb.mxu2 %v10653_v35  ;;  %846 = vmatpush.bf16.msra.mxu0 %v10851_v23  ;;  %v10852_v35 = vld [vmem:[#allocation7 + $0x2e8] sm:$0xf0]  ;;  %v10732_v12 = vld [vmem:[#allocation7 + $0x1f8] sm:$0xf0]  ;;  %v15608_v15 = vld [vmem:[#allocation7 + $0x28c] sm:$0xf0] }
  0x47   :  { %v10855_v40 = vor.u32 %v15616_v34, %v10852_v35  ;;  %v15605_v16 = vld [vmem:[#allocation7 + $0x27c] sm:$0xf]  ;;  %v10812_v17 = vld [vmem:[#allocation7 + $0x290] sm:$0xf0]  ;;  %v15583_v21 = vld [vmem:[#allocation7 + $0x1c4] sm:$0xf0] }
  0x48   :  { %v15580_v22 = vld [vmem:[#allocation7 + $0x1b4] sm:$0xf]  ;;  %v10708_v24 = vld [vmem:[#allocation7 + $0x1c8] sm:$0xf0]  ;;  %v10786_v25 = vld [vmem:[#allocation7 + $0x248] sm:$0xf] }
  0x49   :  { %506 = vmatpush.bf16.msrb.mxu1 %v10625_v44  ;;  %v10828_v44 = vld [vmem:[#allocation7 + $0x2b8] sm:$0xf0]  ;;  %v10711_v28 = vor.u32 %v15580_v22, %v10708_v24  ;;  %v15577_v34 = vld [vmem:[#allocation7 + $0x194] sm:$0xf0]  ;;  %v15574_v35 = vld [vmem:[#allocation7 + $0x184] sm:$0xf] }
  0x4a   :  { %519 = vmatpush.bf16.msrb.mxu2 %v10629_v47  ;;  %847 = vmatpush.bf16.msra.mxu0 %v10827_v27  ;;  %v10831_v45 = vor.u32 %v15610_v43, %v10828_v44  ;;  %v10804_v47 = vld [vmem:[#allocation7 + $0x288] sm:$0xf0]  ;;  %v15602_v27 = vld [vmem:[#allocation7 + $0x25c] sm:$0xf0]  ;;  %v10684_v37 = vld [vmem:[#allocation7 + $0x198] sm:$0xf0] }
  0x4b   :  { %v10807_v48 = vor.u32 %v15604_v46, %v10804_v47  ;;  %v10787_v29 = vor.u32 %v15602_v27, %v10786_v25  ;;  %v10764_v43 = vld [vmem:[#allocation7 + $0x230] sm:$0xf0]  ;;  %v15621_v46 = vld [vmem:[#allocation7 + $0x2f4] sm:$0xf0]  ;;  %v15618_v47 = vld [vmem:[#allocation7 + $0x2e4] sm:$0xf] }
  0x4c   :  { %v10868_v49 = vld [vmem:[#allocation7 + $0x2f8] sm:$0xf0]  ;;  %v10738_v50 = vld [vmem:[#allocation7 + $0x1e8] sm:$0xf]  ;;  %v10740_v55 = vld [vmem:[#allocation7 + $0x200] sm:$0xf0] }
  0x4d   :  { %507 = vmatpush.bf16.msrb.mxu1 %v10601_v56  ;;  %v10859_v56 = vor.u32 %v15620_v54, %v10858_v53  ;;  %v15587_v54 = vld [vmem:[#allocation7 + $0x1ec] sm:$0xf]  ;;  %v10770_v24 = vld [vmem:[#allocation7 + $0x220] sm:$0xf]  ;;  %v15597_v25 = vld [vmem:[#allocation7 + $0x234] sm:$0xf0] }
  0x4e   :  { %520 = vmatpush.bf16.msrb.mxu2 %v10605_v59  ;;  %848 = vmatpush.bf16.msra.mxu0 %v10803_v32  ;;  %v10754_v59 = vld [vmem:[#allocation7 + $0x210] sm:$0xf]  ;;  %v10743_v57 = vor.u32 %v15587_v54, %v10740_v55  ;;  %v10796_v22 = vld [vmem:[#allocation7 + $0x268] sm:$0xf0]  ;;  %v15594_v27 = vld [vmem:[#allocation7 + $0x224] sm:$0xf] }
  0x4f   :  { %v10755_v62 = vor.u32 %v15595_v60, %v10754_v59  ;;  %v15612_v59 = vld [vmem:[#allocation7 + $0x2b4] sm:$0xf]  ;;  %v10844_v60 = vld [vmem:[#allocation7 + $0x2c8] sm:$0xf0] }
  0x51   :  { %508 = vmatpush.bf16.msrb.mxu1 %v10577_v63  ;;  %v10756_v63 = vld [vmem:[#allocation7 + $0x228] sm:$0xf0] }
  0x52   :  { %521 = vmatpush.bf16.msrb.mxu2 %v10581_v1  ;;  %849 = vmatpush.bf16.msra.mxu0 %v10779_v41  ;;  %v15614_v1 = vld [vmem:[#allocation7 + $0x2bc] sm:$0xf0]  ;;  %v10759_v2 = vor.u32 %v15592_v61, %v10756_v63  ;;  %v10714_v63 = vld [vmem:[#allocation7 + $0x1b8] sm:$0xf] }
  0x53   :  { %v10835_v4 = vor.u32 %v15614_v1, %v10834_v0  ;;  %v15584_v0 = vld [vmem:[#allocation7 + $0x1cc] sm:$0xf0]  ;;  %v15581_v1 = vld [vmem:[#allocation7 + $0x1bc] sm:$0xf] }
  0x55   :  { %509 = vmatpush.bf16.msrb.mxu1 %v10553_v6  ;;  %v10836_v6 = vld [vmem:[#allocation7 + $0x2c0] sm:$0xf0] }
  0x56   :  { %522 = vmatpush.bf16.msrb.mxu2 %v10557_v8  ;;  %850 = vmatpush.bf16.msra.mxu0 %v10755_v62  ;;  %v10839_v7 = vor.u32 %v15611_v5, %v10836_v6  ;;  %v10730_v8 = vld [vmem:[#allocation7 + $0x1e0] sm:$0xf]  ;;  %v10847_v62 = vor.u32 %v15612_v59, %v10844_v60  ;;  %v15609_v6 = vld [vmem:[#allocation7 + $0x294] sm:$0xf0] }
  0x57   :  { %v10731_v11 = vor.u32 %v15589_v9, %v10730_v8  ;;  %v10818_v5 = vld [vmem:[#allocation7 + $0x280] sm:$0xf]  ;;  %v15606_v9 = vld [vmem:[#allocation7 + $0x284] sm:$0xf] }
  0x58   :  { %v10819_v8 = vor.u32 %v15609_v6, %v10818_v5  ;;  %v15667_v5 = vld [vmem:[#allocation7 + $0x464] sm:$0xf0] }
  0x59   :  { %510 = vmatpush.bf16.msrb.mxu1 %v10529_v13  ;;  %v10810_v13 = vld [vmem:[#allocation7 + $0x278] sm:$0xf] }
  0x5a   :  { %523 = vmatpush.bf16.msrb.mxu2 %v10533_v14  ;;  %v10735_v14 = vor.u32 %v15586_v10, %v10732_v12  ;;  %851 = vmatpush.bf16.msra.mxu0 %v10731_v11  ;;  %v10811_v18 = vor.u32 %v15608_v15, %v10810_v13  ;;  %v10820_v10 = vld [vmem:[#allocation7 + $0x298] sm:$0xf0]  ;;  %v10690_v12 = vld [vmem:[#allocation7 + $0x188] sm:$0xf]  ;;  %v15578_v13 = vld [vmem:[#allocation7 + $0x19c] sm:$0xf0] }
  0x5b   :  { %v10823_v11 = vor.u32 %v15606_v9, %v10820_v10  ;;  %v10691_v15 = vor.u32 %v15578_v13, %v10690_v12  ;;  %v10872_v10 = vld [vmem:[%s17652_s0 + $0x2] sm:$0x1]  ;;  %v15661_v12 = vld [vmem:[#allocation7 + $0x434] sm:$0xf0]  ;;  %v15658_v13 = vld [vmem:[#allocation7 + $0x424] sm:$0xf] }
  0x5d   :  { %511 = vmatpush.bf16.msrb.mxu1 %v10505_v19  ;;  %v10815_v19 = vor.u32 %v15605_v16, %v10812_v17  ;;  %v10692_v16 = vld [vmem:[#allocation7 + $0x1a0] sm:$0xf0]  ;;  %v10794_v17 = vld [vmem:[#allocation7 + $0x250] sm:$0xf] }
  0x5e   :  { %524 = vmatpush.bf16.msrb.mxu2 %v10509_v20  ;;  %v10706_v20 = vld [vmem:[#allocation7 + $0x1b0] sm:$0xf] }
  0x5f   :  { %v10707_v23 = vor.u32 %v15583_v21, %v10706_v20  ;;  %v15600_v21 = vld [vmem:[#allocation7 + $0x254] sm:$0xf] }
  0x61   :  { %852 = vmatpush.bf16.msra.mxu0 %v10707_v23  ;;  %v10799_v23 = vor.u32 %v15600_v21, %v10796_v22  ;;  %v10998_v21 = vld [vmem:[#allocation7 + $0x408] sm:$0xf0] }
  0x9e   :  { %v157_v30 = vpop.f32.mrf.mxu0 }
  0x9f   :  { %v158_v31 = vadd.f32 %v17050_v26, %v157_v30  ;;  %v15599_v30 = vld [vmem:[#allocation7 + $0x24c] sm:$0xf] }
  0xa1   :  { %v161_v33 = vmax.f32 %v158_v31, 0.0  ;;  %v10788_v31 = vld [vmem:[#allocation7 + $0x260] sm:$0xf0] }
  0xa2   :  { %v10791_v32 = vor.u32 %v15599_v30, %v10788_v31  ;;  %v10772_v30 = vld [vmem:[#allocation7 + $0x238] sm:$0xf0] }
  0xa3   :  { %v162_v38 = vmin.f32 %v161_v33, 6.0  ;;  %v10682_v33 = vld [vmem:[#allocation7 + $0x180] sm:$0xf] }
  0xa4   :  { %v10683_v36 = vor.u32 %v15577_v34, %v10682_v33  ;;  %v10746_v33 = vld [vmem:[#allocation7 + $0x1f0] sm:$0xf]  ;;  %v15591_v34 = vld [vmem:[#allocation7 + $0x204] sm:$0xf0] }
  0xa5   :  { %v163_v39 = vpack.c.bf16 %v162_v38, %v162_v38  ;;  %v10762_v38 = vld [vmem:[#allocation7 + $0x218] sm:$0xf] }
  0xa6   :  { %v159_v42 = vpop.f32.mrf.mxu0  ;;  %853 = vmatpush.bf16.msra.mxu0 %v10683_v36  ;;  %v10748_v36 = vld [vmem:[#allocation7 + $0x208] sm:$0xf0] }
  0xa7   :  { %460 = vmatmul.bf16.vlgmr.msra.gmra.mxu1 %v163_v39  ;;  %473 = vmatmul.bf16.vlgmr.msra.gmra.mxu2 %v163_v39  ;;  %v15593_v42 = vld [vmem:[#allocation7 + $0x21c] sm:$0xf] }
  0xa8   :  { %486 = vmatmul.bf16.vlgmr.msra.gmra.mxu3 %v163_v39  ;;  %499 = vmatmul.bf16.vlgmr.msrb.gmra.mxu0 %v163_v39  ;;  %v10767_v44 = vor.u32 %v15593_v42, %v10764_v43  ;;  %v10724_v42 = vld [vmem:[#allocation7 + $0x1d8] sm:$0xf0] }
  0xa9   :  { %859 = vmatpush.bf16.msra.mxu3 %v10855_v40  ;;  %872 = vmatpush.bf16.msra.mxu1 %v10859_v56  ;;  %v10687_v40 = vor.u32 %v15574_v35, %v10684_v37  ;;  %v10842_v56 = vld [vmem:[#allocation7 + $0x2b0] sm:$0xf]  ;;  %v15588_v35 = vld [vmem:[#allocation7 + $0x1f4] sm:$0xf]  ;;  %v10747_v37 = vor.u32 %v15591_v34, %v10746_v33 }
  0xaa   :  { %885 = vmatpush.bf16.msra.mxu2 %v10863_v58  ;;  %v15615_v58 = vld [vmem:[#allocation7 + $0x2c4] sm:$0xf0] }
  0xab   :  { %v10843_v61 = vor.u32 %v15615_v58, %v10842_v56 }
  0xad   :  { %860 = vmatpush.bf16.msra.mxu3 %v10831_v45  ;;  %873 = vmatpush.bf16.msra.mxu1 %v10835_v4  ;;  %v10866_v45 = vld [vmem:[#allocation7 + $0x2e0] sm:$0xf]  ;;  %v10716_v4 = vld [vmem:[#allocation7 + $0x1d0] sm:$0xf0] }
  0xae   :  { %886 = vmatpush.bf16.msra.mxu2 %v10839_v7  ;;  %v10719_v7 = vor.u32 %v15581_v1, %v10716_v4  ;;  %v11044_v4 = vld [vmem:[#allocation7 + $0x450] sm:$0xf] }
  0xaf   :  { %v11045_v6 = vor.u32 %v15667_v5, %v11044_v4  ;;  %v15631_v4 = vld [vmem:[#allocation7 + $0x344] sm:$0xf0]  ;;  %v15628_v5 = vld [vmem:[#allocation7 + $0x334] sm:$0xf] }
  0xb1   :  { %861 = vmatpush.bf16.msra.mxu3 %v10807_v48  ;;  %874 = vmatpush.bf16.msra.mxu1 %v10811_v18  ;;  %v10867_v48 = vor.u32 %v15621_v46, %v10866_v45  ;;  %v15603_v18 = vld [vmem:[#allocation7 + $0x264] sm:$0xf0] }
  0xb2   :  { %887 = vmatpush.bf16.msra.mxu2 %v10815_v19  ;;  %v10795_v20 = vor.u32 %v15603_v18, %v10794_v17  ;;  %v10996_v17 = vld [vmem:[#allocation7 + $0x3f0] sm:$0xf]  ;;  %v15655_v18 = vld [vmem:[#allocation7 + $0x404] sm:$0xf0] }
  0xb3   :  { %898 = vmatpush.bf16.msrb.mxu0 %v10867_v48  ;;  %v10698_v48 = vld [vmem:[#allocation7 + $0x190] sm:$0xf] }
  0xb5   :  { %862 = vmatpush.bf16.msra.mxu3 %v10783_v51  ;;  %875 = vmatpush.bf16.msra.mxu1 %v10787_v29  ;;  %v15590_v51 = vld [vmem:[#allocation7 + $0x1fc] sm:$0xf0]  ;;  %v10771_v29 = vor.u32 %v15597_v25, %v10770_v24  ;;  %v15649_v24 = vld [vmem:[#allocation7 + $0x3d4] sm:$0xf0]  ;;  %v15646_v25 = vld [vmem:[#allocation7 + $0x3c4] sm:$0xf] }
  0xb6   :  { %888 = vmatpush.bf16.msra.mxu2 %v10791_v32  ;;  %v10739_v53 = vor.u32 %v15590_v51, %v10738_v50  ;;  %v10775_v32 = vor.u32 %v15594_v27, %v10772_v30  ;;  %v15576_v51 = vld [vmem:[#allocation7 + $0x194] sm:$0xf]  ;;  %v11052_v30 = vld [vmem:[#allocation7 + $0x458] sm:$0xf] }
  0xb7   :  { %512 = vmatmul.bf16.vlgmr.msrb.gmra.mxu1 %v163_v39  ;;  %525 = vmatmul.bf16.vlgmr.msrb.gmra.mxu2 %v163_v39  ;;  %v15596_v39 = vld [vmem:[#allocation7 + $0x22c] sm:$0xf0] }
  0xb8   :  { %10679 = vmatmul.msk.bf16.vlgmr.msrb.gmra.mxu3 %vm140_vm1, %v10678_v52  ;;  %v10763_v41 = vor.u32 %v15596_v39, %v10762_v38  ;;  %v10871_v52 = vor.u32 %v15618_v47, %v10868_v49  ;;  %899 = vmatpush.bf16.msrb.mxu0 %v10843_v61  ;;  %v10751_v38 = vor.u32 %v15588_v35, %v10748_v36  ;;  %v10722_v39 = vld [vmem:[#allocation7 + $0x1c0] sm:$0xf]  ;;  %v15579_v49 = vld [vmem:[#allocation7 + $0x1a4] sm:$0xf0]  ;;  %v15665_v35 = vld [vmem:[#allocation7 + $0x45c] sm:$0xf] }
  0xb9   :  { %863 = vmatpush.bf16.msra.mxu3 %v10759_v2  ;;  %v10715_v2 = vor.u32 %v15584_v0, %v10714_v63  ;;  %v11054_v36 = vld [vmem:[#allocation7 + $0x470] sm:$0xf0] }
  0xba   :  { %876 = vmatpush.bf16.msra.mxu1 %v10763_v41  ;;  %889 = vmatpush.bf16.msra.mxu2 %v10767_v44  ;;  %v15582_v41 = vld [vmem:[#allocation7 + $0x1c4] sm:$0xf] }
  0xbb   :  { %v10727_v47 = vor.u32 %v15582_v41, %v10724_v42  ;;  %v10950_v41 = vld [vmem:[#allocation7 + $0x3a8] sm:$0xf0] }
  0xbc   :  { %900 = vmatpush.bf16.msrb.mxu0 %v10819_v8  ;;  %v11046_v8 = vld [vmem:[#allocation7 + $0x468] sm:$0xf0] }
  0xbd   :  { %864 = vmatpush.bf16.msra.mxu3 %v10735_v14  ;;  %v15575_v14 = vld [vmem:[#allocation7 + $0x18c] sm:$0xf] }
  0xbe   :  { %877 = vmatpush.bf16.msra.mxu1 %v10739_v53  ;;  %890 = vmatpush.bf16.msra.mxu2 %v10743_v57  ;;  %v10695_v19 = vor.u32 %v15575_v14, %v10692_v16  ;;  %v10699_v53 = vor.u32 %v15579_v49, %v10698_v48  ;;  %v15659_v48 = vld [vmem:[#allocation7 + $0x42c] sm:$0xf] }
  0xc0   :  { %901 = vmatpush.bf16.msrb.mxu0 %v10795_v20  ;;  %v10997_v20 = vor.u32 %v15655_v18, %v10996_v17  ;;  %v15625_v17 = vld [vmem:[#allocation7 + $0x314] sm:$0xf0]  ;;  %v15622_v18 = vld [vmem:[#allocation7 + $0x304] sm:$0xf] }
  0xc1   :  { %865 = vmatpush.bf16.msra.mxu3 %v10711_v28 }
  0xc2   :  { %878 = vmatpush.bf16.msra.mxu1 %v10715_v2  ;;  %891 = vmatpush.bf16.msra.mxu2 %v10719_v7  ;;  %v15664_v7 = vld [vmem:[#allocation7 + $0x454] sm:$0xf] }
  0xc3   :  { %v11049_v9 = vor.u32 %v15664_v7, %v11046_v8 }
  0xc4   :  { %902 = vmatpush.bf16.msrb.mxu0 %v10771_v29  ;;  %v10974_v29 = vld [vmem:[#allocation7 + $0x3d8] sm:$0xf0] }
  0xc5   :  { %866 = vmatpush.bf16.msra.mxu3 %v10687_v40  ;;  %v15585_v40 = vld [vmem:[#allocation7 + $0x1d4] sm:$0xf0]  ;;  %v10977_v33 = vor.u32 %v15646_v25, %v10974_v29  ;;  %v15641_v25 = vld [vmem:[#allocation7 + $0x39c] sm:$0xf]  ;;  %v11060_v29 = vld [vmem:[#allocation7 + $0x460] sm:$0xf] }
  0xc6   :  { %879 = vmatpush.bf16.msra.mxu1 %v10691_v15  ;;  %892 = vmatpush.bf16.msra.mxu2 %v10695_v19  ;;  %v10723_v45 = vor.u32 %v15585_v40, %v10722_v39  ;;  %v11022_v15 = vld [vmem:[#allocation7 + $0x438] sm:$0xf0]  ;;  %v15652_v19 = vld [vmem:[#allocation7 + $0x3f4] sm:$0xf]  ;;  %v15643_v39 = vld [vmem:[#allocation7 + $0x3a4] sm:$0xf0] }
  0xc7   :  { %v11025_v16 = vor.u32 %v15658_v13, %v11022_v15  ;;  %v11001_v22 = vor.u32 %v15652_v19, %v10998_v21  ;;  %v15640_v40 = vld [vmem:[#allocation7 + $0x394] sm:$0xf]  ;;  %v10982_v13 = vld [vmem:[#allocation7 + $0x3e0] sm:$0xf0]  ;;  %v10956_v21 = vld [vmem:[#allocation7 + $0x398] sm:$0xf] }
  0xc8   :  { %903 = vmatpush.bf16.msrb.mxu0 %v10747_v37  ;;  %v10948_v37 = vld [vmem:[#allocation7 + $0x390] sm:$0xf] }
  0xc9   :  { %911 = vmatpush.bf16.msrb.mxu3 %v10871_v52  ;;  %v10700_v52 = vld [vmem:[#allocation7 + $0x1a8] sm:$0xf0]  ;;  %v10949_v42 = vor.u32 %v15643_v39, %v10948_v37  ;;  %v10932_v39 = vld [vmem:[#allocation7 + $0x368] sm:$0xf] }
  0xca   :  { %v10703_v54 = vor.u32 %v15576_v51, %v10700_v52  ;;  %1240 = vmatpush.bf16.msrb.mxu2 %v11045_v6  ;;  %v10924_v52 = vld [vmem:[#allocation7 + $0x360] sm:$0xf]  ;;  %v10902_v6 = vld [vmem:[#allocation7 + $0x348] sm:$0xf0] }
  0xcb   :  { %v10905_v8 = vor.u32 %v15628_v5, %v10902_v6 }
  0xcc   :  { %904 = vmatpush.bf16.msrb.mxu0 %v10723_v45  ;;  %v10953_v45 = vor.u32 %v15640_v40, %v10950_v41  ;;  %v15638_v40 = vld [vmem:[#allocation7 + $0x37c] sm:$0xf0]  ;;  %v15635_v41 = vld [vmem:[#allocation7 + $0x36c] sm:$0xf] }
  0xcd   :  { %912 = vmatpush.bf16.msrb.mxu3 %v10847_v62 }
  0xd0   :  { %905 = vmatpush.bf16.msrb.mxu0 %v10699_v53  ;;  %v15637_v53 = vld [vmem:[#allocation7 + $0x374] sm:$0xf0] }
  0xd1   :  { %913 = vmatpush.bf16.msrb.mxu3 %v10823_v11  ;;  %v11020_v11 = vld [vmem:[#allocation7 + $0x420] sm:$0xf] }
  0xd2   :  { %v11021_v14 = vor.u32 %v15661_v12, %v11020_v11  ;;  %v15647_v11 = vld [vmem:[#allocation7 + $0x3cc] sm:$0xf] }
  0xd3   :  { %v10985_v15 = vor.u32 %v15647_v11, %v10982_v13  ;;  %v15626_v11 = vld [vmem:[#allocation7 + $0x31c] sm:$0xf0] }
  0xd4   :  { %1241 = vmatpush.bf16.msrb.mxu2 %v11021_v14  ;;  %v17075_v14 = vld [vmem:[#allocation8] sm:$0x3f] }
  0xd5   :  { %914 = vmatpush.bf16.msrb.mxu3 %v10799_v23  ;;  %v10972_v23 = vld [vmem:[#allocation7 + $0x3c0] sm:$0xf] }
  0xd6   :  { %v10973_v27 = vor.u32 %v15649_v24, %v10972_v23 }
  0xd8   :  { %1242 = vmatpush.bf16.msrb.mxu2 %v10997_v20  ;;  %v10878_v20 = vld [vmem:[#allocation7 + $0x318] sm:$0xf0] }
  0xd9   :  { %915 = vmatpush.bf16.msrb.mxu3 %v10775_v32  ;;  %v15668_v32 = vld [vmem:[#allocation7 + $0x46c] sm:$0xf0]  ;;  %v10881_v23 = vor.u32 %v15622_v18, %v10878_v20  ;;  %v15651_v18 = vld [vmem:[#allocation7 + $0x3e4] sm:$0xf0] }
  0xda   :  { %v11053_v34 = vor.u32 %v15668_v32, %v11052_v30  ;;  %v15669_v32 = vld [vmem:[#allocation7 + $0x474] sm:$0xf0] }
  0xdb   :  { %v11061_v37 = vor.u32 %v15669_v32, %v11060_v29  ;;  %v10964_v32 = vld [vmem:[#allocation7 + $0x3a0] sm:$0xf] }
  0xdc   :  { %1243 = vmatpush.bf16.msrb.mxu2 %v10973_v27  ;;  %1266 = vmatpush.bf16.msrb.mxu1 %v11053_v34  ;;  %v10958_v27 = vld [vmem:[#allocation7 + $0x3b0] sm:$0xf0]  ;;  %v11062_v34 = vld [vmem:[#allocation7 + $0x478] sm:$0xf0] }
  0xdd   :  { %916 = vmatpush.bf16.msrb.mxu3 %v10751_v38  ;;  %v11057_v38 = vor.u32 %v15665_v35, %v11054_v36  ;;  %v10961_v30 = vor.u32 %v15641_v25, %v10958_v27  ;;  %v118_v35 = vperm.slane %v17075_v14, 0  ;;  %v120_v36 = vperm.slane %v17075_v14, 2 }
  0xe0   :  { %1244 = vmatpush.bf16.msrb.mxu2 %v10949_v42  ;;  %v10933_v42 = vor.u32 %v15638_v40, %v10932_v39  ;;  %v15639_v39 = vld [vmem:[#allocation7 + $0x384] sm:$0xf0]  ;;  %v15636_v40 = vld [vmem:[#allocation7 + $0x374] sm:$0xf] }
  0xe1   :  { %917 = vmatpush.bf16.msrb.mxu3 %v10727_v47  ;;  %v15662_v47 = vld [vmem:[#allocation7 + $0x43c] sm:$0xf0] }
  0xe5   :  { %918 = vmatpush.bf16.msrb.mxu3 %v10703_v54  ;;  %v15634_v54 = vld [vmem:[#allocation7 + $0x364] sm:$0xf] }
 0x124   :  { %v17057_v28 = vpop.f32.mrf.mxu1 }
 0x125   :  { %v17059_v31 = vpop.f32.mrf.mxu0 }
 0x12a   :  { %v17061_v43 = vpop.f32.mrf.mxu2 }
 0x12b   :  { %v17063_v44 = vpop.f32.mrf.mxu3 }
 0x12c   :  { %v463_v46 = vpop.f32.mrf.mxu1 }
 0x12d   :  { %v502_v50 = vpop.f32.mrf.mxu0  ;;  %v11028_v46 = vld [vmem:[#allocation7 + $0x428] sm:$0xf] }
 0x12e   :  { %v11029_v49 = vor.u32 %v15662_v47, %v11028_v46  ;;  %v11030_v50 = vld [vmem:[#allocation7 + $0x440] sm:$0xf0]  ;;  %v11036_v46 = vld [vmem:[#allocation7 + $0x430] sm:$0xf]  ;;  %v15663_v47 = vld [vmem:[#allocation7 + $0x444] sm:$0xf0] }
 0x12f   :  { %v11033_v51 = vor.u32 %v15659_v48, %v11030_v50  ;;  %v15660_v50 = vld [vmem:[#allocation7 + $0x434] sm:$0xf] }
 0x130   :  { %1267 = vmatpush.bf16.msrb.mxu1 %v11029_v49  ;;  %v11037_v49 = vor.u32 %v15663_v47, %v11036_v46  ;;  %v10916_v47 = vld [vmem:[#allocation7 + $0x340] sm:$0xf] }
 0x132   :  { %v476_v55 = vpop.f32.mrf.mxu2 }
 0x133   :  { %v489_v56 = vpop.f32.mrf.mxu3  ;;  %v10925_v55 = vor.u32 %v15637_v53, %v10924_v52  ;;  %v530_v52 = vadd.f32 %v17057_v28, %v118_v35  ;;  %v119_v53 = vperm.slane %v17075_v14, 1  ;;  %v15657_v28 = vld [vmem:[#allocation7 + $0x414] sm:$0xf0] }
 0x134   :  { %v17065_v57 = vpop.f32.mrf.mxu1  ;;  %v10926_v56 = vld [vmem:[#allocation7 + $0x378] sm:$0xf0] }
 0x135   :  { %1245 = vmatpush.bf16.msrb.mxu2 %v10925_v55  ;;  %v532_v55 = vadd.f32 %v17063_v44, %v120_v36  ;;  %v531_v13 = vadd.f32 %v17061_v43, %v119_v53  ;;  %v10966_v36 = vld [vmem:[#allocation7 + $0x3b8] sm:$0xf0] }
 0x13a   :  { %v17067_v58 = vpop.f32.mrf.mxu2 }
 0x13b   :  { %v550_v59 = vpop.f32.mrf.mxu3 }
 0x13c   :  { %v551_v60 = vadd.f32 %v17050_v26, %v550_v59  ;;  %v515_v61 = vpop.f32.mrf.mxu1  ;;  %v11004_v59 = vld [vmem:[#allocation7 + $0x3f8] sm:$0xf] }
 0x13d   :  { %v10929_v61 = vor.u32 %v15634_v54, %v10926_v56 }
 0x13e   :  { %v554_v62 = vmax.f32 %v551_v60, 0.0  ;;  %v15656_v60 = vld [vmem:[#allocation7 + $0x40c] sm:$0xf0] }
 0x140   :  { %v555_v63 = vmin.f32 %v554_v62, 6.0  ;;  %v11005_v62 = vor.u32 %v15656_v60, %v11004_v59  ;;  %v10908_v59 = vld [vmem:[#allocation7 + $0x338] sm:$0xf]  ;;  %v15632_v60 = vld [vmem:[#allocation7 + $0x34c] sm:$0xf0] }
 0x142   :  { %v556_v0 = vpack.c.bf16 %v555_v63, %v555_v63  ;;  %v528_v1 = vpop.f32.mrf.mxu2  ;;  %v15653_v63 = vld [vmem:[#allocation7 + $0x3fc] sm:$0xf]  ;;  %1268 = vmatpush.bf16.msrb.mxu1 %v11005_v62 }
 0x143   :  { %v552_v2 = vpop.f32.mrf.mxu3  ;;  %v10900_v1 = vld [vmem:[#allocation7 + $0x330] sm:$0xf] }
 0x144   :  { %854 = vmatmul.bf16.vlgmr.msra.gmra.mxu0 %v556_v0  ;;  %867 = vmatmul.bf16.vlgmr.msra.gmra.mxu3 %v556_v0  ;;  %v10901_v7 = vor.u32 %v15631_v4, %v10900_v1  ;;  %v10910_v1 = vld [vmem:[#allocation7 + $0x350] sm:$0xf0]  ;;  %v121_v4 = vperm.slane %v17075_v14, 3 }
 0x145   :  { %880 = vmatmul.bf16.vlgmr.msra.gmra.mxu1 %v556_v0  ;;  %893 = vmatmul.bf16.vlgmr.msra.gmra.mxu2 %v556_v0 }
 0x146   :  { %942 = vmatpush.bf16.msra.mxu0 %v17045_v3  ;;  %1279 = vmatpush.bf16.msra.mxu3 %v11057_v38 }
 0x147   :  { %1246 = vmatpush.bf16.msrb.mxu2 %v10901_v7  ;;  %v15654_v7 = vld [vmem:[#allocation7 + $0x404] sm:$0xf] }
 0x14a   :  { %1280 = vmatpush.bf16.msra.mxu3 %v11033_v51  ;;  %v11038_v51 = vld [vmem:[#allocation7 + $0x448] sm:$0xf0] }
 0x14b   :  { %v11041_v54 = vor.u32 %v15660_v50, %v11038_v51  ;;  %v15630_v50 = vld [vmem:[#allocation7 + $0x344] sm:$0xf]  ;;  %v10918_v51 = vld [vmem:[#allocation7 + $0x358] sm:$0xf0] }
 0x154   :  { %906 = vmatmul.bf16.vlgmr.msrb.gmra.mxu0 %v556_v0  ;;  %919 = vmatmul.bf16.vlgmr.msrb.gmra.mxu3 %v556_v0  ;;  %v11006_v0 = vld [vmem:[#allocation7 + $0x410] sm:$0xf0] }
 0x155   :  { %1253 = vmatpush.bf16.msrb.mxu0 %v11049_v9  ;;  %v11009_v2 = vor.u32 %v15653_v63, %v11006_v0  ;;  %v10980_v9 = vld [vmem:[#allocation7 + $0x3c8] sm:$0xf]  ;;  %v10909_v0 = vor.u32 %v15632_v60, %v10908_v59  ;;  %v10921_v60 = vor.u32 %v15630_v50, %v10918_v51 }
 0x157   :  { %1281 = vmatpush.bf16.msra.mxu3 %v11009_v2  ;;  %v11012_v2 = vld [vmem:[#allocation7 + $0x400] sm:$0xf] }
 0x158   :  { %v11013_v44 = vor.u32 %v15657_v28, %v11012_v2 }
 0x159   :  { %1254 = vmatpush.bf16.msrb.mxu0 %v11025_v16  ;;  %v10876_v16 = vld [vmem:[#allocation7 + $0x300] sm:$0xf] }
 0x15a   :  { %v10877_v19 = vor.u32 %v15625_v17, %v10876_v16  ;;  %v10886_v16 = vld [vmem:[#allocation7 + $0x320] sm:$0xf0]  ;;  %v10988_v17 = vld [vmem:[#allocation7 + $0x3d0] sm:$0xf] }
 0x15b   :  { %1282 = vmatpush.bf16.msra.mxu3 %v10985_v15 }
 0x15c   :  { %1247 = vmatpush.bf16.msrb.mxu2 %v10877_v19  ;;  %v533_v19 = vadd.f32 %v17059_v31, %v121_v4 }
 0x15d   :  { %1255 = vmatpush.bf16.msrb.mxu0 %v11001_v22  ;;  %v15644_v22 = vld [vmem:[#allocation7 + $0x3ac] sm:$0xf0] }
 0x15e   :  { %v10957_v24 = vor.u32 %v15644_v22, %v10956_v21  ;;  %v10989_v22 = vor.u32 %v15651_v18, %v10988_v17  ;;  %v15712_v18 = vld [vmem:[#allocation7 + $0x5d4] sm:$0xf] }
 0x15f   :  { %1283 = vmatpush.bf16.msra.mxu3 %v10961_v30 }
 0x160   :  { %1292 = vmatpush.bf16.msra.mxu2 %v11061_v37 }
 0x161   :  { %1256 = vmatpush.bf16.msrb.mxu0 %v10977_v33  ;;  %v15666_v33 = vld [vmem:[#allocation7 + $0x464] sm:$0xf] }
 0x162   :  { %v11065_v38 = vor.u32 %v15666_v33, %v11062_v34  ;;  %v15645_v33 = vld [vmem:[#allocation7 + $0x3b4] sm:$0xf0]  ;;  %v15642_v34 = vld [vmem:[#allocation7 + $0x3a4] sm:$0xf] }
 0x163   :  { %v10965_v35 = vor.u32 %v15645_v33, %v10964_v32  ;;  %v10969_v37 = vor.u32 %v15642_v34, %v10966_v36  ;;  %v15706_v34 = vld [vmem:[#allocation7 + $0x5a4] sm:$0xf] }
 0x164   :  { %10873 = vmatmul.msk.bf16.vlgmr.msra.gmra.mxu0 %vm140_vm1, %v10872_v10  ;;  %v15650_v10 = vld [vmem:[#allocation7 + $0x3dc] sm:$0xf0]  ;;  %1293 = vmatpush.bf16.msra.mxu2 %v11037_v49  ;;  %v15633_v49 = vld [vmem:[#allocation7 + $0x354] sm:$0xf0] }
 0x165   :  { %1257 = vmatpush.bf16.msrb.mxu0 %v10953_v45  ;;  %v10981_v12 = vor.u32 %v15650_v10, %v10980_v9  ;;  %v10934_v45 = vld [vmem:[#allocation7 + $0x380] sm:$0xf0]  ;;  %v10884_v10 = vld [vmem:[#allocation7 + $0x308] sm:$0xf]  ;;  %v10917_v59 = vor.u32 %v15633_v49, %v10916_v47  ;;  %v11192_v49 = vld [vmem:[#allocation7 + $0x588] sm:$0xf0] }
 0x166   :  { %v10937_v48 = vor.u32 %v15635_v41, %v10934_v45  ;;  %v10885_v15 = vor.u32 %v15626_v11, %v10884_v10  ;;  %v122_v41 = vperm.slane %v17075_v14, 4  ;;  %v15709_v10 = vld [vmem:[#allocation7 + $0x5b4] sm:$0xf0] }
 0x167   :  { %1269 = vmatpush.bf16.msrb.mxu1 %v10981_v12  ;;  %v15623_v12 = vld [vmem:[#allocation7 + $0x30c] sm:$0xf] }
 0x168   :  { %1284 = vmatpush.bf16.msra.mxu3 %v10937_v48  ;;  %1294 = vmatpush.bf16.msra.mxu2 %v11013_v44  ;;  %v10889_v21 = vor.u32 %v15623_v12, %v10886_v16  ;;  %v11238_v44 = vld [vmem:[#allocation7 + $0x5d0] sm:$0xf] }
 0x169   :  { %1258 = vmatpush.bf16.msrb.mxu0 %v10929_v61  ;;  %v15629_v61 = vld [vmem:[#allocation7 + $0x33c] sm:$0xf] }
 0x16a   :  { %v10913_v6 = vor.u32 %v15629_v61, %v10910_v1  ;;  %v10892_v61 = vld [vmem:[#allocation7 + $0x310] sm:$0xf]  ;;  %v10894_v1 = vld [vmem:[#allocation7 + $0x328] sm:$0xf0] }
 0x16b   :  { %1270 = vmatpush.bf16.msrb.mxu1 %v10957_v24  ;;  %v10990_v24 = vld [vmem:[#allocation7 + $0x3e8] sm:$0xf0] }
 0x16c   :  { %1285 = vmatpush.bf16.msra.mxu3 %v10913_v6  ;;  %1295 = vmatpush.bf16.msra.mxu2 %v10989_v22  ;;  %v15697_v22 = vld [vmem:[#allocation7 + $0x554] sm:$0xf0] }
 0x16d   :  { %1259 = vmatpush.bf16.msrb.mxu0 %v10905_v8  ;;  %v11014_v8 = vld [vmem:[#allocation7 + $0x418] sm:$0xf0] }
 0x16e   :  { %v11017_v9 = vor.u32 %v15654_v7, %v11014_v8  ;;  %v15715_v7 = vld [vmem:[#allocation7 + $0x5e4] sm:$0xf0] }
 0x16f   :  { %1271 = vmatpush.bf16.msrb.mxu1 %v10933_v42  ;;  %v10942_v42 = vld [vmem:[#allocation7 + $0x388] sm:$0xf0]  ;;  %v11239_v8 = vor.u32 %v15715_v7, %v11238_v44 }
 0x170   :  { %1286 = vmatpush.bf16.msra.mxu3 %v10889_v21  ;;  %1296 = vmatpush.bf16.msra.mxu2 %v10965_v35  ;;  %v10945_v46 = vor.u32 %v15636_v40, %v10942_v42  ;;  %v11166_v21 = vld [vmem:[#allocation7 + $0x540] sm:$0xf]  ;;  %v11222_v40 = vld [vmem:[#allocation7 + $0x5a8] sm:$0xf]  ;;  %v15707_v42 = vld [vmem:[#allocation7 + $0x5ac] sm:$0xf] }
 0x171   :  { %1260 = vmatpush.bf16.msrb.mxu0 %v10881_v23  ;;  %v15648_v23 = vld [vmem:[#allocation7 + $0x3d4] sm:$0xf]  ;;  %v11167_v35 = vor.u32 %v15697_v22, %v11166_v21  ;;  %v11176_v21 = vld [vmem:[#allocation7 + $0x560] sm:$0xf0] }
 0x172   :  { %v10993_v29 = vor.u32 %v15648_v23, %v10990_v24  ;;  %v11246_v23 = vld [vmem:[#allocation7 + $0x5d8] sm:$0xf]  ;;  %v15716_v24 = vld [vmem:[#allocation7 + $0x5ec] sm:$0xf0] }
 0x173   :  { %1272 = vmatpush.bf16.msrb.mxu1 %v10909_v0  ;;  %v15624_v0 = vld [vmem:[#allocation7 + $0x314] sm:$0xf] }
 0x174   :  { %1634 = vmatpush.bf16.msrb.mxu3 %v11239_v8  ;;  %v15701_v8 = vld [vmem:[#allocation7 + $0x57c] sm:$0xf] }
 0x175   :  { %1305 = vmatpush.bf16.msra.mxu0 %v11065_v38  ;;  %v10940_v38 = vld [vmem:[#allocation7 + $0x370] sm:$0xf] }
 0x176   :  { %v10941_v45 = vor.u32 %v15639_v39, %v10940_v38  ;;  %v11142_v38 = vld [vmem:[#allocation7 + $0x510] sm:$0xf]  ;;  %v15691_v39 = vld [vmem:[#allocation7 + $0x524] sm:$0xf0] }
 0x177   :  { %1273 = vmatpush.bf16.msrb.mxu1 %v10885_v15  ;;  %v11143_v47 = vor.u32 %v15691_v39, %v11142_v38  ;;  %v15717_v38 = vld [vmem:[#allocation7 + $0x5f4] sm:$0xf0]  ;;  %v15714_v39 = vld [vmem:[#allocation7 + $0x5e4] sm:$0xf] }
 0x178   :  { %1297 = vmatpush.bf16.msra.mxu2 %v10941_v45  ;;  %v11224_v45 = vld [vmem:[#allocation7 + $0x5c0] sm:$0xf0] }
 0x179   :  { %1306 = vmatpush.bf16.msra.mxu0 %v11041_v54  ;;  %v11227_v51 = vor.u32 %v15707_v42, %v11224_v45  ;;  %v11126_v45 = vld [vmem:[#allocation7 + $0x4e8] sm:$0xf] }
 0x17b   :  { %1336 = vmatpush.bf16.msra.mxu1 %v17045_v3 }
 0x17c   :  { %1298 = vmatpush.bf16.msra.mxu2 %v10917_v59  ;;  %v15688_v59 = vld [vmem:[#allocation7 + $0x514] sm:$0xf] }
 0x17d   :  { %1307 = vmatpush.bf16.msra.mxu0 %v11017_v9  ;;  %v11214_v9 = vld [vmem:[#allocation7 + $0x5a0] sm:$0xf] }
 0x17e   :  { %v11215_v11 = vor.u32 %v15709_v10, %v11214_v9  ;;  %v11200_v9 = vld [vmem:[#allocation7 + $0x590] sm:$0xf0] }
 0x17f   :  { %v11203_v10 = vor.u32 %v15701_v8, %v11200_v9  ;;  %v11078_v8 = vld [vmem:[#allocation7 + $0x488] sm:$0xf]  ;;  %v15674_v9 = vld [vmem:[#allocation7 + $0x49c] sm:$0xf0] }
 0x180   :  { %1635 = vmatpush.bf16.msrb.mxu3 %v11215_v11  ;;  %v11094_v11 = vld [vmem:[#allocation7 + $0x4b0] sm:$0xf] }
 0x181   :  { %1308 = vmatpush.bf16.msra.mxu0 %v10993_v29  ;;  %v15713_v29 = vld [vmem:[#allocation7 + $0x5dc] sm:$0xf] }
 0x185   :  { %1309 = vmatpush.bf16.msra.mxu0 %v10969_v37 }
 0x189   :  { %1310 = vmatpush.bf16.msra.mxu0 %v10945_v46 }
 0x18d   :  { %1311 = vmatpush.bf16.msra.mxu0 %v10921_v60  ;;  %v11144_v60 = vld [vmem:[#allocation7 + $0x528] sm:$0xf0] }
 0x1c1   :  { %v855_v56 = vpop.f32.mrf.mxu0 }
 0x1c2   :  { %v17082_v62 = vadd.f32 %v855_v56, %v530_v52  ;;  %v881_v63 = vpop.f32.mrf.mxu1  ;;  %v534_v52 = vadd.f32 %v17065_v57, %v122_v41  ;;  %v10897_v57 = vor.u32 %v15624_v0, %v10894_v1  ;;  %v15710_v41 = vld [vmem:[#allocation7 + $0x5bc] sm:$0xf0]  ;;  %v15685_v1 = vld [vmem:[#allocation7 + $0x4f4] sm:$0xf0] }
 0x1c3   :  { %v17085_v5 = vadd.f32 %v881_v63, %v532_v55  ;;  %v123_v55 = vperm.slane %v17075_v14, 5  ;;  %v15627_v63 = vld [vmem:[#allocation7 + $0x324] sm:$0xf0]  ;;  %v11223_v50 = vor.u32 %v15710_v41, %v11222_v40  ;;  %v11118_v0 = vld [vmem:[#allocation7 + $0x4e0] sm:$0xf] }
 0x1c4   :  { %v10893_v28 = vor.u32 %v15627_v63, %v10892_v61  ;;  %1312 = vmatpush.bf16.msra.mxu0 %v10897_v57  ;;  %v11066_v61 = vld [vmem:[%s17652_s0 + $0x3] sm:$0x1]  ;;  %v11147_v63 = vor.u32 %v15688_v59, %v11144_v60  ;;  %v11102_v60 = vld [vmem:[#allocation7 + $0x4b8] sm:$0xf] }
 0x1c5   :  { %v535_v2 = vadd.f32 %v17067_v58, %v123_v55  ;;  %v15703_v58 = vld [vmem:[#allocation7 + $0x584] sm:$0xf0]  ;;  %v11120_v57 = vld [vmem:[#allocation7 + $0x4f8] sm:$0xf0] }
 0x1c6   :  { %1299 = vmatpush.bf16.msra.mxu2 %v10893_v28  ;;  %v11119_v28 = vor.u32 %v15685_v1, %v11118_v0  ;;  %v11256_v40 = vld [vmem:[#allocation7 + $0x5f8] sm:$0xf0]  ;;  %v11104_v1 = vld [vmem:[#allocation7 + $0x4d0] sm:$0xf0] }
 0x1c7   :  { %v868_v20 = vpop.f32.mrf.mxu3  ;;  %v11259_v42 = vor.u32 %v15714_v39, %v11256_v40 }
 0x1c8   :  { %v17089_v25 = vadd.f32 %v868_v20, %v531_v13  ;;  %v894_v27 = vpop.f32.mrf.mxu2  ;;  %v11190_v13 = vld [vmem:[#allocation7 + $0x570] sm:$0xf]  ;;  %v11240_v20 = vld [vmem:[#allocation7 + $0x5e8] sm:$0xf0] }
 0x1c9   :  { %v17091_v30 = vadd.f32 %v894_v27, %v533_v19  ;;  %v857_v43 = vpop.f32.mrf.mxu0  ;;  %v11191_v17 = vor.u32 %v15703_v58, %v11190_v13  ;;  %v11243_v33 = vor.u32 %v15712_v18, %v11240_v20  ;;  %v15676_v13 = vld [vmem:[#allocation7 + $0x4b4] sm:$0xf]  ;;  %v15698_v18 = vld [vmem:[#allocation7 + $0x55c] sm:$0xf0] }
 0x1ca   :  { %v883_v31 = vpop.f32.mrf.mxu1  ;;  %v11248_v43 = vld [vmem:[#allocation7 + $0x5f0] sm:$0xf0] }
 0x1cb   :  { %1636 = vmatpush.bf16.msrb.mxu3 %v11191_v17  ;;  %v11216_v31 = vld [vmem:[#allocation7 + $0x5b8] sm:$0xf0]  ;;  %v11251_v37 = vor.u32 %v15713_v29, %v11248_v43  ;;  %v11174_v17 = vld [vmem:[#allocation7 + $0x548] sm:$0xf] }
 0x1cc   :  { %v11219_v46 = vor.u32 %v15706_v34, %v11216_v31  ;;  %v11175_v20 = vor.u32 %v15698_v18, %v11174_v17  ;;  %v11072_v43 = vld [vmem:[#allocation7 + $0x498] sm:$0xf0]  ;;  %v15696_v17 = vld [vmem:[#allocation7 + $0x554] sm:$0xf]  ;;  %v11184_v18 = vld [vmem:[#allocation7 + $0x568] sm:$0xf0] }
 0x1cf   :  { %v870_v48 = vpop.f32.mrf.mxu3  ;;  %1637 = vmatpush.bf16.msrb.mxu3 %v11167_v35  ;;  %v15689_v35 = vld [vmem:[#allocation7 + $0x51c] sm:$0xf] }
 0x1d0   :  { %v896_v53 = vpop.f32.mrf.mxu2  ;;  %v15700_v48 = vld [vmem:[#allocation7 + $0x574] sm:$0xf] }
 0x1d1   :  { %v907_v54 = vpop.f32.mrf.mxu0  ;;  %v15694_v53 = vld [vmem:[#allocation7 + $0x544] sm:$0xf] }
 0x1d2   :  { %v17097_v56 = vadd.f32 %v907_v54, %v534_v52  ;;  %v11195_v52 = vor.u32 %v15700_v48, %v11192_v49  ;;  %v11168_v54 = vld [vmem:[#allocation7 + $0x558] sm:$0xf0]  ;;  %v11128_v49 = vld [vmem:[#allocation7 + $0x500] sm:$0xf0] }
 0x1d3   :  { %1638 = vmatpush.bf16.msrb.mxu3 %v11143_v47  ;;  %v11171_v55 = vor.u32 %v15694_v53, %v11168_v54  ;;  %v15683_v47 = vld [vmem:[#allocation7 + $0x4ec] sm:$0xf]  ;;  %v15708_v54 = vld [vmem:[#allocation7 + $0x5b4] sm:$0xf] }
 0x1d7   :  { %v920_v4 = vpop.f32.mrf.mxu3  ;;  %1639 = vmatpush.bf16.msrb.mxu3 %v11119_v28  ;;  %v15705_v28 = vld [vmem:[#allocation7 + $0x594] sm:$0xf0] }
 0x1d8   :  { %v17100_v6 = vadd.f32 %v920_v4, %v535_v2  ;;  %v15682_v2 = vld [vmem:[#allocation7 + $0x4e4] sm:$0xf]  ;;  %v11198_v4 = vld [vmem:[#allocation7 + $0x578] sm:$0xf] }
 0x1d9   :  { %v909_v14 = vpop.f32.mrf.mxu0  ;;  %v11123_v44 = vor.u32 %v15682_v2, %v11120_v57  ;;  %v11206_v2 = vld [vmem:[#allocation7 + $0x580] sm:$0xf] }
 0x1da   :  { %v15704_v14 = vld [vmem:[#allocation7 + $0x58c] sm:$0xf0] }
 0x1db   :  { %v11199_v7 = vor.u32 %v15704_v14, %v11198_v4  ;;  %v11207_v4 = vor.u32 %v15705_v28, %v11206_v2  ;;  %v15702_v14 = vld [vmem:[#allocation7 + $0x584] sm:$0xf] }
 0x1df   :  { %v922_v12 = vpop.f32.mrf.mxu3 }
 0x1e0   :  { %v15679_v12 = vld [vmem:[#allocation7 + $0x4c4] sm:$0xf0] }
 0x1e1   :  { %v944_v15 = vpop.f32.mrf.mxu0  ;;  %v11095_v58 = vor.u32 %v15679_v12, %v11094_v11  ;;  %v11079_v11 = vor.u32 %v15674_v9, %v11078_v8  ;;  %v11080_v12 = vld [vmem:[#allocation7 + $0x4a0] sm:$0xf0] }
 0x1e2   :  { %v945_v16 = vadd.f32 %v17050_v26, %v944_v15  ;;  %v11247_v26 = vor.u32 %v15716_v24, %v11246_v23  ;;  %v11096_v15 = vld [vmem:[#allocation7 + $0x4c8] sm:$0xf0]  ;;  %v11070_v23 = vld [vmem:[#allocation7 + $0x480] sm:$0xf]  ;;  %v15673_v24 = vld [vmem:[#allocation7 + $0x494] sm:$0xf0] }
 0x1e3   :  { %1640 = vmatpush.bf16.msrb.mxu3 %v11095_v58  ;;  %v11071_v29 = vor.u32 %v15673_v24, %v11070_v23  ;;  %v15699_v58 = vld [vmem:[#allocation7 + $0x564] sm:$0xf0]  ;;  %v11160_v24 = vld [vmem:[#allocation7 + $0x538] sm:$0xf0] }
 0x1e4   :  { %v948_v19 = vmax.f32 %v945_v16, 0.0  ;;  %v11099_v16 = vor.u32 %v15676_v13, %v11096_v15  ;;  %v11182_v13 = vld [vmem:[#allocation7 + $0x550] sm:$0xf] }
 0x1e6   :  { %v949_v27 = vmin.f32 %v948_v19, 6.0  ;;  %v15695_v19 = vld [vmem:[#allocation7 + $0x54c] sm:$0xf] }
 0x1e7   :  { %v11179_v22 = vor.u32 %v15695_v19, %v11176_v21  ;;  %1641 = vmatpush.bf16.msrb.mxu3 %v11071_v29  ;;  %v11187_v19 = vor.u32 %v15696_v17, %v11184_v18  ;;  %v15693_v21 = vld [vmem:[#allocation7 + $0x534] sm:$0xf0]  ;;  %v11134_v29 = vld [vmem:[#allocation7 + $0x4f0] sm:$0xf] }
 0x1e8   :  { %v950_v32 = vpack.c.bf16 %v949_v27, %v949_v27  ;;  %v15670_v27 = vld [vmem:[#allocation7 + $0x484] sm:$0xf] }
 0x1e9   :  { %v946_v36 = vpop.f32.mrf.mxu0  ;;  %v11075_v34 = vor.u32 %v15670_v27, %v11072_v43  ;;  %v15687_v43 = vld [vmem:[#allocation7 + $0x504] sm:$0xf0] }
 0x1ea   :  { %1248 = vmatmul.bf16.vlgmr.msrb.gmra.mxu2 %v950_v32  ;;  %1261 = vmatmul.bf16.vlgmr.msrb.gmra.mxu0 %v950_v32  ;;  %v11152_v36 = vld [vmem:[#allocation7 + $0x530] sm:$0xf0] }
 0x1eb   :  { %1274 = vmatmul.bf16.vlgmr.msrb.gmra.mxu1 %v950_v32  ;;  %1287 = vmatmul.bf16.vlgmr.msra.gmra.mxu3 %v950_v32 }
 0x1ec   :  { %1647 = vmatpush.bf16.msrb.mxu1 %v11243_v33  ;;  %1660 = vmatpush.bf16.msrb.mxu2 %v11247_v26  ;;  %v15692_v33 = vld [vmem:[#allocation7 + $0x52c] sm:$0xf0]  ;;  %v11254_v26 = vld [vmem:[#allocation7 + $0x5e0] sm:$0xf] }
 0x1ed   :  { %1673 = vmatpush.bf16.msrb.mxu0 %v11251_v37  ;;  %v11155_v37 = vor.u32 %v15689_v35, %v11152_v36  ;;  %v11255_v41 = vor.u32 %v15717_v38, %v11254_v26  ;;  %v15681_v35 = vld [vmem:[#allocation7 + $0x4d4] sm:$0xf0]  ;;  %v15678_v26 = vld [vmem:[#allocation7 + $0x4c4] sm:$0xf] }
 0x1ef   :  { %1686 = vmatpush.bf16.msra.mxu3 %v11255_v41 }
 0x1f0   :  { %1648 = vmatpush.bf16.msrb.mxu1 %v11219_v46  ;;  %1661 = vmatpush.bf16.msrb.mxu2 %v11223_v50  ;;  %v15686_v46 = vld [vmem:[#allocation7 + $0x4fc] sm:$0xf0]  ;;  %v11230_v50 = vld [vmem:[#allocation7 + $0x5b0] sm:$0xf] }
 0x1f1   :  { %1674 = vmatpush.bf16.msrb.mxu0 %v11227_v51  ;;  %v11127_v48 = vor.u32 %v15686_v46, %v11126_v45  ;;  %v15711_v51 = vld [vmem:[#allocation7 + $0x5c4] sm:$0xf0]  ;;  %v11086_v45 = vld [vmem:[#allocation7 + $0x490] sm:$0xf] }
 0x1f2   :  { %v11231_v53 = vor.u32 %v15711_v51, %v11230_v50 }
 0x1f4   :  { %1649 = vmatpush.bf16.msrb.mxu1 %v11195_v52  ;;  %1662 = vmatpush.bf16.msrb.mxu2 %v11199_v7  ;;  %v11131_v52 = vor.u32 %v15683_v47, %v11128_v49  ;;  %v15675_v47 = vld [vmem:[#allocation7 + $0x4a4] sm:$0xf0]  ;;  %v11088_v49 = vld [vmem:[#allocation7 + $0x4a8] sm:$0xf0] }
 0x1f5   :  { %1675 = vmatpush.bf16.msrb.mxu0 %v11203_v10  ;;  %1687 = vmatpush.bf16.msra.mxu3 %v11231_v53  ;;  %v15671_v10 = vld [vmem:[#allocation7 + $0x48c] sm:$0xf]  ;;  %v11087_v50 = vor.u32 %v15675_v47, %v11086_v45 }
 0x1f6   :  { %v11083_v15 = vor.u32 %v15671_v10, %v11080_v12  ;;  %v15760_v10 = vld [vmem:[#allocation7 + $0x754] sm:$0xf]  ;;  %v11360_v12 = vld [vmem:[#allocation7 + $0x6c0] sm:$0xf]  ;;  %v11338_v47 = vld [vmem:[#allocation7 + $0x6a8] sm:$0xf0] }
 0x1f8   :  { %1650 = vmatpush.bf16.msrb.mxu1 %v11171_v55  ;;  %1663 = vmatpush.bf16.msrb.mxu2 %v11175_v20  ;;  %v11232_v55 = vld [vmem:[#allocation7 + $0x5c8] sm:$0xf0]  ;;  %v11158_v20 = vld [vmem:[#allocation7 + $0x520] sm:$0xf] }
 0x1f9   :  { %1676 = vmatpush.bf16.msrb.mxu0 %v11179_v22  ;;  %v11235_v59 = vor.u32 %v15708_v54, %v11232_v55  ;;  %1688 = vmatpush.bf16.msra.mxu3 %v11207_v4  ;;  %v15690_v22 = vld [vmem:[#allocation7 + $0x524] sm:$0xf]  ;;  %v11159_v23 = vor.u32 %v15693_v21, %v11158_v20 }
 0x1fa   :  { %1300 = vmatmul.bf16.vlgmr.msra.gmra.mxu2 %v950_v32  ;;  %1313 = vmatmul.bf16.vlgmr.msra.gmra.mxu0 %v950_v32  ;;  %v11150_v32 = vld [vmem:[#allocation7 + $0x518] sm:$0xf]  ;;  %v11163_v27 = vor.u32 %v15690_v22, %v11160_v24  ;;  %v15754_v21 = vld [vmem:[#allocation7 + $0x724] sm:$0xf]  ;;  %v11410_v22 = vld [vmem:[#allocation7 + $0x738] sm:$0xf0] }
 0x1fb   :  { %11067 = vmatmul.msk.bf16.vlgmr.msra.gmra.mxu1 %vm140_vm1, %v11066_v61  ;;  %v11151_v31 = vor.u32 %v15692_v33, %v11150_v32  ;;  %v15680_v61 = vld [vmem:[#allocation7 + $0x4cc] sm:$0xf0]  ;;  %v15684_v32 = vld [vmem:[#allocation7 + $0x4f4] sm:$0xf]  ;;  %v11135_v33 = vor.u32 %v15687_v43, %v11134_v29  ;;  %v15742_v43 = vld [vmem:[#allocation7 + $0x6c4] sm:$0xf] }
 0x1fc   :  { %1651 = vmatpush.bf16.msrb.mxu1 %v11147_v63  ;;  %v15677_v63 = vld [vmem:[#allocation7 + $0x4bc] sm:$0xf]  ;;  %v11103_v0 = vor.u32 %v15680_v61, %v11102_v60  ;;  %v15763_v60 = vld [vmem:[#allocation7 + $0x764] sm:$0xf0]  ;;  %v15748_v24 = vld [vmem:[#allocation7 + $0x6f4] sm:$0xf] }
 0x1fd   :  { %1664 = vmatpush.bf16.msrb.mxu2 %v11151_v31  ;;  %1677 = vmatpush.bf16.msrb.mxu0 %v11155_v37  ;;  %v11107_v57 = vor.u32 %v15677_v63, %v11104_v1  ;;  %v11110_v31 = vld [vmem:[#allocation7 + $0x4c0] sm:$0xf]  ;;  %v11112_v37 = vld [vmem:[#allocation7 + $0x4d8] sm:$0xf0] }
 0x1fe   :  { %v11111_v41 = vor.u32 %v15681_v35, %v11110_v31  ;;  %v11408_v63 = vld [vmem:[#allocation7 + $0x720] sm:$0xf]  ;;  %v11440_v31 = vld [vmem:[#allocation7 + $0x758] sm:$0xf]  ;;  %v15764_v35 = vld [vmem:[#allocation7 + $0x76c] sm:$0xf0] }
 0x200   :  { %1652 = vmatpush.bf16.msrb.mxu1 %v11123_v44  ;;  %v11208_v44 = vld [vmem:[#allocation7 + $0x598] sm:$0xf0] }
 0x201   :  { %1665 = vmatpush.bf16.msrb.mxu2 %v11127_v48  ;;  %1678 = vmatpush.bf16.msrb.mxu0 %v11131_v52  ;;  %v11211_v7 = vor.u32 %v15702_v14, %v11208_v44  ;;  %v15672_v48 = vld [vmem:[#allocation7 + $0x494] sm:$0xf]  ;;  %v17123_v44 = vld [vmem:[#allocation5] ss:$0 sm:$0xff] }
 0x202   :  { %v11091_v51 = vor.u32 %v15672_v48, %v11088_v49  ;;  %v11416_v48 = vld [vmem:[#allocation7 + $0x728] sm:$0xf]  ;;  %v15758_v49 = vld [vmem:[#allocation7 + $0x73c] sm:$0xf0] }
 0x204   :  { %1653 = vmatpush.bf16.msrb.mxu1 %v11099_v16  ;;  %v11183_v16 = vor.u32 %v15699_v58, %v11182_v13  ;;  %v15745_v13 = vld [vmem:[#allocation7 + $0x6d4] sm:$0xf0] }
 0x205   :  { %1666 = vmatpush.bf16.msrb.mxu2 %v11103_v0  ;;  %1679 = vmatpush.bf16.msrb.mxu0 %v11107_v57  ;;  %v15757_v0 = vld [vmem:[#allocation7 + $0x734] sm:$0xf0]  ;;  %v11384_v57 = vld [vmem:[#allocation7 + $0x6f0] sm:$0xf] }
 0x206   :  { %1689 = vmatpush.bf16.msra.mxu3 %v11183_v16  ;;  %v11409_v2 = vor.u32 %v15757_v0, %v11408_v63  ;;  %v11314_v63 = vld [vmem:[#allocation7 + $0x678] sm:$0xf0]  ;;  %v11392_v0 = vld [vmem:[#allocation7 + $0x6f8] sm:$0xf] }
 0x208   :  { %1654 = vmatpush.bf16.msrb.mxu1 %v11075_v34  ;;  %v11136_v34 = vld [vmem:[#allocation7 + $0x508] sm:$0xf0] }
 0x209   :  { %1667 = vmatpush.bf16.msrb.mxu2 %v11079_v11  ;;  %1680 = vmatpush.bf16.msrb.mxu0 %v11083_v15  ;;  %v11139_v36 = vor.u32 %v15684_v32, %v11136_v34  ;;  %v11434_v11 = vld [vmem:[#allocation7 + $0x768] sm:$0xf0]  ;;  %v11362_v32 = vld [vmem:[#allocation7 + $0x6d8] sm:$0xf0] }
 0x20a   :  { %1690 = vmatpush.bf16.msra.mxu3 %v11159_v23  ;;  %v11437_v18 = vor.u32 %v15760_v10, %v11434_v11  ;;  %v11413_v23 = vor.u32 %v15754_v21, %v11410_v22  ;;  %v11260_v34 = vld [vmem:[%s17652_s0 + $0x4] sm:$0x1]  ;;  %v11290_v10 = vld [vmem:[#allocation7 + $0x648] sm:$0xf0]  ;;  %v11368_v11 = vld [vmem:[#allocation7 + $0x6c8] sm:$0xf] }
 0x20b   :  { %v11266_v22 = vld [vmem:[#allocation7 + $0x618] sm:$0xf0] }
 0x20c   :  { %1699 = vmatpush.bf16.msra.mxu1 %v11259_v42  ;;  %v11115_v42 = vor.u32 %v15678_v26, %v11112_v37  ;;  %v11441_v26 = vor.u32 %v15764_v35, %v11440_v31  ;;  %v11442_v37 = vld [vmem:[#allocation7 + $0x770] sm:$0xf0]  ;;  %v15762_v31 = vld [vmem:[#allocation7 + $0x764] sm:$0xf]  ;;  %v11450_v35 = vld [vmem:[#allocation7 + $0x778] sm:$0xf0] }
 0x20d   :  { %1730 = vmatpush.bf16.msra.mxu2 %v17045_v3 }
 0x20e   :  { %1691 = vmatpush.bf16.msra.mxu3 %v11135_v33  ;;  %v11365_v33 = vor.u32 %v15742_v43, %v11362_v32  ;;  %v11346_v43 = vld [vmem:[#allocation7 + $0x6b0] sm:$0xf0]  ;;  %v11448_v32 = vld [vmem:[#allocation7 + $0x760] sm:$0xf] }
 0x210   :  { %1700 = vmatpush.bf16.msra.mxu1 %v11235_v59 }
 0x212   :  { %1692 = vmatpush.bf16.msra.mxu3 %v11111_v41  ;;  %v15739_v41 = vld [vmem:[#allocation7 + $0x6a4] sm:$0xf0] }
 0x214   :  { %1701 = vmatpush.bf16.msra.mxu1 %v11211_v7 }
 0x216   :  { %1693 = vmatpush.bf16.msra.mxu3 %v11087_v50 }
 0x218   :  { %1702 = vmatpush.bf16.msra.mxu1 %v11187_v19  ;;  %v11361_v19 = vor.u32 %v15745_v13, %v11360_v12  ;;  %v15746_v12 = vld [vmem:[#allocation7 + $0x6dc] sm:$0xf0] }
 0x21c   :  { %1703 = vmatpush.bf16.msra.mxu1 %v11163_v27  ;;  %v11386_v27 = vld [vmem:[#allocation7 + $0x708] sm:$0xf0] }
 0x220   :  { %1704 = vmatpush.bf16.msra.mxu1 %v11139_v36  ;;  %v15761_v36 = vld [vmem:[#allocation7 + $0x75c] sm:$0xf] }
 0x224   :  { %1705 = vmatpush.bf16.msra.mxu1 %v11115_v42  ;;  %v15736_v42 = vld [vmem:[#allocation7 + $0x694] sm:$0xf] }
 0x225   :  { %v11341_v50 = vor.u32 %v15736_v42, %v11338_v47  ;;  %v11322_v42 = vld [vmem:[#allocation7 + $0x680] sm:$0xf0]  ;;  %v15759_v47 = vld [vmem:[#allocation7 + $0x744] sm:$0xf0] }
 0x228   :  { %1706 = vmatpush.bf16.msra.mxu1 %v11091_v51  ;;  %v11417_v51 = vor.u32 %v15758_v49, %v11416_v48 }
 0x267   :  { %v1262_v38 = vpop.f32.mrf.mxu0 }
 0x268   :  { %v17109_v39 = vadd.f32 %v1262_v38, %v17089_v25  ;;  %v1275_v40 = vpop.f32.mrf.mxu1  ;;  %v11445_v38 = vor.u32 %v15761_v36, %v11442_v37  ;;  %v11320_v37 = vld [vmem:[#allocation7 + $0x668] sm:$0xf] }
 0x269   :  { %v17112_v46 = vadd.f32 %v1275_v40, %v17085_v5  ;;  %v11432_v5 = vld [vmem:[#allocation7 + $0x750] sm:$0xf] }
 0x26a   :  { %v11433_v61 = vor.u32 %v15763_v60, %v11432_v5  ;;  %v11336_v40 = vld [vmem:[#allocation7 + $0x690] sm:$0xf]  ;;  %v15733_v5 = vld [vmem:[#allocation7 + $0x674] sm:$0xf0]  ;;  %v15730_v60 = vld [vmem:[#allocation7 + $0x664] sm:$0xf] }
 0x26b   :  { %v11337_v45 = vor.u32 %v15739_v41, %v11336_v40  ;;  %v15731_v40 = vld [vmem:[#allocation7 + $0x66c] sm:$0xf] }
 0x26c   :  { %2028 = vmatpush.bf16.msra.mxu0 %v11433_v61  ;;  %v11325_v48 = vor.u32 %v15731_v40, %v11322_v42 }
 0x26d   :  { %v1249_v52 = vpop.f32.mrf.mxu2 }
 0x26e   :  { %v17115_v25 = vadd.f32 %v1249_v52, %v17082_v62  ;;  %v1288_v53 = vpop.f32.mrf.mxu3  ;;  %v15751_v62 = vld [vmem:[#allocation7 + $0x704] sm:$0xf0]  ;;  %v15755_v52 = vld [vmem:[#allocation7 + $0x72c] sm:$0xf] }
 0x26f   :  { %v17118_v54 = vadd.f32 %v1288_v53, %v17091_v30  ;;  %v1264_v55 = vpop.f32.mrf.mxu0  ;;  %v11385_v8 = vor.u32 %v15751_v62, %v11384_v57  ;;  %v11418_v53 = vld [vmem:[#allocation7 + $0x740] sm:$0xf0]  ;;  %v15749_v57 = vld [vmem:[#allocation7 + $0x6fc] sm:$0xf]  ;;  %v11394_v62 = vld [vmem:[#allocation7 + $0x710] sm:$0xf0] }
 0x270   :  { %v1277_v59 = vpop.f32.mrf.mxu1  ;;  %2029 = vmatpush.bf16.msra.mxu0 %v11409_v2  ;;  %v11421_v55 = vor.u32 %v15755_v52, %v11418_v53  ;;  %v11317_v2 = vor.u32 %v15730_v60, %v11314_v63  ;;  %v11296_v53 = vld [vmem:[#allocation7 + $0x638] sm:$0xf]  ;;  %v11298_v60 = vld [vmem:[#allocation7 + $0x650] sm:$0xf0] }
 0x271   :  { %v11312_v59 = vld [vmem:[#allocation7 + $0x660] sm:$0xf]  ;;  %v15753_v63 = vld [vmem:[#allocation7 + $0x714] sm:$0xf0] }
 0x272   :  { %v11313_v61 = vor.u32 %v15733_v5, %v11312_v59  ;;  %v15725_v59 = vld [vmem:[#allocation7 + $0x63c] sm:$0xf] }
 0x274   :  { %2030 = vmatpush.bf16.msra.mxu0 %v11385_v8  ;;  %v15724_v8 = vld [vmem:[#allocation7 + $0x634] sm:$0xf] }
 0x275   :  { %v1251_v1 = vpop.f32.mrf.mxu2  ;;  %v11293_v13 = vor.u32 %v15724_v8, %v11290_v10  ;;  %v11274_v8 = vld [vmem:[#allocation7 + $0x620] sm:$0xf0]  ;;  %v15747_v10 = vld [vmem:[#allocation7 + $0x6e4] sm:$0xf0] }
 0x276   :  { %v1290_v28 = vpop.f32.mrf.mxu3  ;;  %v15752_v1 = vld [vmem:[#allocation7 + $0x70c] sm:$0xf0] }
 0x277   :  { %v1314_v4 = vpop.f32.mrf.mxu0  ;;  %v11393_v28 = vor.u32 %v15752_v1, %v11392_v0  ;;  %v11301_v0 = vor.u32 %v15725_v59, %v11298_v60 }
 0x278   :  { %v17121_v14 = vadd.f32 %v1314_v4, %v17100_v6  ;;  %v1338_v30 = vpop.f32.mrf.mxu1  ;;  %2031 = vmatpush.bf16.msra.mxu0 %v11361_v19  ;;  %v11397_v4 = vor.u32 %v15749_v57, %v11394_v62  ;;  %v15721_v19 = vld [vmem:[#allocation7 + $0x614] sm:$0xf0]  ;;  %v11272_v62 = vld [vmem:[#allocation7 + $0x608] sm:$0xf] }
 0x279   :  { %v1339_v7 = vadd.f32 %v17123_v44, %v1338_v30  ;;  %v11288_v30 = vld [vmem:[#allocation7 + $0x630] sm:$0xf] }
 0x27b   :  { %v1342_v9 = vmax.f32 %v1339_v7, 0.0  ;;  %v15727_v7 = vld [vmem:[#allocation7 + $0x644] sm:$0xf0] }
 0x27c   :  { %2032 = vmatpush.bf16.msra.mxu0 %v11337_v45  ;;  %v11424_v45 = vld [vmem:[#allocation7 + $0x730] sm:$0xf] }
 0x27d   :  { %v1343_v58 = vmin.f32 %v1342_v9, 6.0  ;;  %v1301_v15 = vpop.f32.mrf.mxu2  ;;  %v11289_v9 = vor.u32 %v15727_v7, %v11288_v30  ;;  %v11425_v49 = vor.u32 %v15759_v47, %v11424_v45  ;;  %v15719_v30 = vld [vmem:[#allocation7 + $0x60c] sm:$0xf]  ;;  %v15723_v47 = vld [vmem:[#allocation7 + $0x624] sm:$0xf0] }
 0x27e   :  { %v17127_v16 = vadd.f32 %v1301_v15, %v17097_v56  ;;  %v11389_v56 = vor.u32 %v15748_v24, %v11386_v27  ;;  %v15743_v15 = vld [vmem:[#allocation7 + $0x6cc] sm:$0xf]  ;;  %v15740_v24 = vld [vmem:[#allocation7 + $0x6ac] sm:$0xf0] }
 0x27f   :  { %v1344_v6 = vpack.c.bf16 %v1343_v58, %v1343_v58  ;;  %v1316_v17 = vpop.f32.mrf.mxu0  ;;  %v11369_v58 = vor.u32 %v15746_v12, %v11368_v11  ;;  %v11277_v11 = vor.u32 %v15719_v30, %v11274_v8  ;;  %v15808_v8 = vld [vmem:[#allocation7 + $0x8d4] sm:$0xf] }
 0x280   :  { %v1340_v20 = vpop.f32.mrf.mxu1  ;;  %2033 = vmatpush.bf16.msra.mxu0 %v11313_v61  ;;  %v11400_v61 = vld [vmem:[#allocation7 + $0x700] sm:$0xf] }
 0x281   :  { %1642 = vmatmul.bf16.vlgmr.msrb.gmra.mxu3 %v1344_v6  ;;  %1655 = vmatmul.bf16.vlgmr.msrb.gmra.mxu1 %v1344_v6  ;;  %v15718_v20 = vld [vmem:[#allocation7 + $0x604] sm:$0xf]  ;;  %v11401_v1 = vor.u32 %v15753_v63, %v11400_v61  ;;  %v11602_v61 = vld [vmem:[#allocation7 + $0x8a0] sm:$0xf]  ;;  %v15805_v63 = vld [vmem:[#allocation7 + $0x8b4] sm:$0xf0] }
 0x282   :  { %1668 = vmatmul.bf16.vlgmr.msrb.gmra.mxu2 %v1344_v6  ;;  %1681 = vmatmul.bf16.vlgmr.msrb.gmra.mxu0 %v1344_v6  ;;  %v11269_v27 = vor.u32 %v15718_v20, %v11266_v22 }
 0x283   :  { %2041 = vmatpush.bf16.msrb.mxu2 %v11437_v18  ;;  %2054 = vmatpush.bf16.msrb.mxu3 %v11441_v26  ;;  %v11264_v18 = vld [vmem:[#allocation7 + $0x600] sm:$0xf]  ;;  %v11453_v26 = vor.u32 %v15762_v31, %v11450_v35  ;;  %v15729_v35 = vld [vmem:[#allocation7 + $0x654] sm:$0xf0] }
 0x284   :  { %2067 = vmatpush.bf16.msrb.mxu1 %v11445_v38  ;;  %2034 = vmatpush.bf16.msra.mxu0 %v11289_v9  ;;  %v11265_v21 = vor.u32 %v15721_v19, %v11264_v18  ;;  %v15734_v38 = vld [vmem:[#allocation7 + $0x67c] sm:$0xf0]  ;;  %v11376_v9 = vld [vmem:[#allocation7 + $0x6d0] sm:$0xf]  ;;  %v15738_v18 = vld [vmem:[#allocation7 + $0x6a4] sm:$0xf] }
 0x285   :  { %v1303_v29 = vpop.f32.mrf.mxu2  ;;  %v11321_v41 = vor.u32 %v15734_v38, %v11320_v37  ;;  %v11377_v12 = vor.u32 %v15747_v10, %v11376_v9  ;;  %v11304_v31 = vld [vmem:[#allocation7 + $0x640] sm:$0xf]  ;;  %v11628_v9 = vld [vmem:[#allocation7 + $0x8e8] sm:$0xf0] }
 0x286   :  { %v11305_v40 = vor.u32 %v15729_v35, %v11304_v31  ;;  %v11554_v10 = vld [vmem:[#allocation7 + $0x840] sm:$0xf]  ;;  %v11636_v35 = vld [vmem:[#allocation7 + $0x8f0] sm:$0xf0] }
 0x287   :  { %2042 = vmatpush.bf16.msrb.mxu2 %v11413_v23  ;;  %2055 = vmatpush.bf16.msrb.mxu3 %v11417_v51  ;;  %v11344_v23 = vld [vmem:[#allocation7 + $0x698] sm:$0xf]  ;;  %v11426_v51 = vld [vmem:[#allocation7 + $0x748] sm:$0xf0] }
 0x288   :  { %2068 = vmatpush.bf16.msrb.mxu1 %v11421_v55  ;;  %v11345_v29 = vor.u32 %v15740_v24, %v11344_v23  ;;  %2035 = vmatpush.bf16.msra.mxu0 %v11265_v21  ;;  %v15728_v55 = vld [vmem:[#allocation7 + $0x64c] sm:$0xf0]  ;;  %v11354_v21 = vld [vmem:[#allocation7 + $0x6b8] sm:$0xf0] }
 0x289   :  { %v11297_v5 = vor.u32 %v15728_v55, %v11296_v53  ;;  %v11357_v24 = vor.u32 %v15738_v18, %v11354_v21  ;;  %v11604_v18 = vld [vmem:[#allocation7 + $0x8b8] sm:$0xf0]  ;;  %v11580_v21 = vld [vmem:[#allocation7 + $0x888] sm:$0xf0] }
 0x28b   :  { %2043 = vmatpush.bf16.msrb.mxu2 %v11389_v56  ;;  %2056 = vmatpush.bf16.msrb.mxu3 %v11393_v28  ;;  %v15737_v56 = vld [vmem:[#allocation7 + $0x69c] sm:$0xf] }
 0x28c   :  { %2069 = vmatpush.bf16.msrb.mxu1 %v11397_v4  ;;  %v11402_v28 = vld [vmem:[#allocation7 + $0x718] sm:$0xf0]  ;;  %v15722_v4 = vld [vmem:[#allocation7 + $0x61c] sm:$0xf0] }
 0x28d   :  { %v11273_v7 = vor.u32 %v15722_v4, %v11272_v62 }
 0x28f   :  { %2044 = vmatpush.bf16.msrb.mxu2 %v11365_v33  ;;  %2057 = vmatpush.bf16.msrb.mxu3 %v11369_v58  ;;  %v11349_v33 = vor.u32 %v15737_v56, %v11346_v43  ;;  %v11378_v58 = vld [vmem:[#allocation7 + $0x6e8] sm:$0xf0]  ;;  %v15732_v56 = vld [vmem:[#allocation7 + $0x674] sm:$0xf] }
 0x291   :  { %1694 = vmatmul.bf16.vlgmr.msra.gmra.mxu3 %v1344_v6  ;;  %1707 = vmatmul.bf16.vlgmr.msra.gmra.mxu1 %v1344_v6  ;;  %v11370_v6 = vld [vmem:[#allocation7 + $0x6e0] sm:$0xf0] }
 0x292   :  { %11261 = vmatmul.msk.bf16.vlgmr.msra.gmra.mxu2 %vm140_vm1, %v11260_v34  ;;  %v11373_v17 = vor.u32 %v15743_v15, %v11370_v6  ;;  %v15765_v34 = vld [vmem:[#allocation7 + $0x774] sm:$0xf0]  ;;  %v11352_v6 = vld [vmem:[#allocation7 + $0x6a0] sm:$0xf] }
 0x293   :  { %2045 = vmatpush.bf16.msrb.mxu2 %v11341_v50  ;;  %2058 = vmatpush.bf16.msrb.mxu3 %v11345_v29  ;;  %v11449_v36 = vor.u32 %v15765_v34, %v11448_v32  ;;  %v15756_v50 = vld [vmem:[#allocation7 + $0x734] sm:$0xf]  ;;  %v15735_v29 = vld [vmem:[#allocation7 + $0x684] sm:$0xf0]  ;;  %v11330_v32 = vld [vmem:[#allocation7 + $0x688] sm:$0xf0] }
 0x294   :  { %2070 = vmatpush.bf16.msrb.mxu1 %v11373_v17  ;;  %v11429_v52 = vor.u32 %v15756_v50, %v11426_v51  ;;  %v15741_v17 = vld [vmem:[#allocation7 + $0x6b4] sm:$0xf0]  ;;  %v11333_v34 = vor.u32 %v15732_v56, %v11330_v32  ;;  %v11454_v56 = vld [vmem:[%s17652_s0 + $0x5] sm:$0x1] }
 0x295   :  { %2080 = vmatpush.bf16.msrb.mxu0 %v11449_v36  ;;  %v11353_v20 = vor.u32 %v15741_v17, %v11352_v6  ;;  %v15726_v36 = vld [vmem:[#allocation7 + $0x644] sm:$0xf]  ;;  %v11634_v32 = vld [vmem:[#allocation7 + $0x8d8] sm:$0xf] }
 0x297   :  { %2046 = vmatpush.bf16.msrb.mxu2 %v11317_v2  ;;  %2059 = vmatpush.bf16.msrb.mxu3 %v11321_v41  ;;  %v15750_v2 = vld [vmem:[#allocation7 + $0x704] sm:$0xf] }
 0x298   :  { %2071 = vmatpush.bf16.msrb.mxu1 %v11349_v33  ;;  %v11405_v57 = vor.u32 %v15750_v2, %v11402_v28  ;;  %v15799_v2 = vld [vmem:[#allocation7 + $0x884] sm:$0xf0] }
 0x299   :  { %2081 = vmatpush.bf16.msrb.mxu0 %v11425_v49  ;;  %v11282_v49 = vld [vmem:[#allocation7 + $0x628] sm:$0xf0] }
 0x29b   :  { %2047 = vmatpush.bf16.msrb.mxu2 %v11293_v13  ;;  %2060 = vmatpush.bf16.msrb.mxu3 %v11297_v5  ;;  %v15744_v13 = vld [vmem:[#allocation7 + $0x6d4] sm:$0xf]  ;;  %v11626_v5 = vld [vmem:[#allocation7 + $0x8d0] sm:$0xf] }
 0x29c   :  { %2072 = vmatpush.bf16.msrb.mxu1 %v11325_v48  ;;  %v11381_v15 = vor.u32 %v15744_v13, %v11378_v58  ;;  %v15720_v48 = vld [vmem:[#allocation7 + $0x614] sm:$0xf] }
 0x29d   :  { %2082 = vmatpush.bf16.msrb.mxu0 %v11401_v1  ;;  %v11578_v1 = vld [vmem:[#allocation7 + $0x870] sm:$0xf] }
 0x29f   :  { %2048 = vmatpush.bf16.msrb.mxu2 %v11269_v27  ;;  %2061 = vmatpush.bf16.msrb.mxu3 %v11273_v7  ;;  %v11328_v27 = vld [vmem:[#allocation7 + $0x670] sm:$0xf] }
 0x2a0   :  { %2073 = vmatpush.bf16.msrb.mxu1 %v11301_v0  ;;  %v11329_v33 = vor.u32 %v15735_v29, %v11328_v27  ;;  %v11603_v0 = vor.u32 %v15805_v63, %v11602_v61  ;;  %v11556_v27 = vld [vmem:[#allocation7 + $0x858] sm:$0xf0] }
 0x2a1   :  { %2083 = vmatpush.bf16.msrb.mxu0 %v11377_v12 }
 0x2a3   :  { %2093 = vmatpush.bf16.msra.mxu2 %v11453_v26  ;;  %2124 = vmatpush.bf16.msra.mxu3 %v17045_v3  ;;  %v11306_v26 = vld [vmem:[#allocation7 + $0x658] sm:$0xf0] }
 0x2a4   :  { %2074 = vmatpush.bf16.msrb.mxu1 %v11277_v11  ;;  %v11309_v41 = vor.u32 %v15726_v36, %v11306_v26  ;;  %v15793_v11 = vld [vmem:[#allocation7 + $0x854] sm:$0xf0]  ;;  %v11530_v26 = vld [vmem:[#allocation7 + $0x810] sm:$0xf] }
 0x2a5   :  { %2084 = vmatpush.bf16.msrb.mxu0 %v11353_v20  ;;  %v11555_v6 = vor.u32 %v15793_v11, %v11554_v10  ;;  %v15796_v20 = vld [vmem:[#allocation7 + $0x874] sm:$0xf]  ;;  %v15791_v11 = vld [vmem:[#allocation7 + $0x84c] sm:$0xf] }
 0x2a7   :  { %2094 = vmatpush.bf16.msra.mxu2 %v11429_v52  ;;  %v11285_v52 = vor.u32 %v15720_v48, %v11282_v49  ;;  %v15803_v49 = vld [vmem:[#allocation7 + $0x8ac] sm:$0xf] }
 0x2a9   :  { %2085 = vmatpush.bf16.msrb.mxu0 %v11329_v33  ;;  %v15812_v33 = vld [vmem:[#allocation7 + $0x8ec] sm:$0xf0] }
 0x2aa   :  { %v11635_v31 = vor.u32 %v15812_v33, %v11634_v32  ;;  %v15810_v32 = vld [vmem:[#allocation7 + $0x8e4] sm:$0xf]  ;;  %v11644_v33 = vld [vmem:[#allocation7 + $0x8f8] sm:$0xf0] }
 0x2ab   :  { %2095 = vmatpush.bf16.msra.mxu2 %v11405_v57 }
 0x2ad   :  { %2086 = vmatpush.bf16.msrb.mxu0 %v11305_v40 }
 0x2af   :  { %2096 = vmatpush.bf16.msra.mxu2 %v11381_v15  ;;  %v11631_v15 = vor.u32 %v15808_v8, %v11628_v9  ;;  %v15794_v8 = vld [vmem:[#allocation7 + $0x85c] sm:$0xf0] }
 0x2b3   :  { %2097 = vmatpush.bf16.msra.mxu2 %v11357_v24  ;;  %v15790_v24 = vld [vmem:[#allocation7 + $0x844] sm:$0xf] }
 0x2b4   :  { %v11559_v29 = vor.u32 %v15790_v24, %v11556_v27  ;;  %v11540_v24 = vld [vmem:[#allocation7 + $0x830] sm:$0xf0]  ;;  %v11642_v27 = vld [vmem:[#allocation7 + $0x8e0] sm:$0xf] }
 0x2b7   :  { %2098 = vmatpush.bf16.msra.mxu2 %v11333_v34  ;;  %v15809_v34 = vld [vmem:[#allocation7 + $0x8dc] sm:$0xf] }
 0x2b8   :  { %v11639_v36 = vor.u32 %v15809_v34, %v11636_v35  ;;  %v11514_v35 = vld [vmem:[#allocation7 + $0x7e8] sm:$0xf] }
 0x2bb   :  { %2099 = vmatpush.bf16.msra.mxu2 %v11309_v41  ;;  %v11532_v41 = vld [vmem:[#allocation7 + $0x828] sm:$0xf0] }
 0x2bf   :  { %2100 = vmatpush.bf16.msra.mxu2 %v11285_v52  ;;  %v11506_v52 = vld [vmem:[#allocation7 + $0x7e0] sm:$0xf] }
 0x2fe   :  { %v1656_v19 = vpop.f32.mrf.mxu1 }
 0x2ff   :  { %v17135_v22 = vadd.f32 %v1656_v19, %v17109_v39  ;;  %v1682_v23 = vpop.f32.mrf.mxu0 }
 0x300   :  { %v17138_v43 = vadd.f32 %v1682_v23, %v17118_v54  ;;  %v11280_v54 = vld [vmem:[#allocation7 + $0x610] sm:$0xf]  ;;  %v11583_v23 = vor.u32 %v15796_v20, %v11580_v21 }
 0x301   :  { %v11281_v51 = vor.u32 %v15723_v47, %v11280_v54  ;;  %v11610_v54 = vld [vmem:[#allocation7 + $0x8a8] sm:$0xf] }
 0x303   :  { %2087 = vmatpush.bf16.msrb.mxu0 %v11281_v51 }
 0x304   :  { %v1643_v37 = vpop.f32.mrf.mxu3 }
 0x305   :  { %v17141_v39 = vadd.f32 %v1643_v37, %v17115_v25  ;;  %v1669_v38 = vpop.f32.mrf.mxu2  ;;  %v15787_v37 = vld [vmem:[#allocation7 + $0x824] sm:$0xf0] }
 0x306   :  { %v17144_v42 = vadd.f32 %v1669_v38, %v17112_v46  ;;  %v1658_v45 = vpop.f32.mrf.mxu1  ;;  %v15811_v46 = vld [vmem:[#allocation7 + $0x8e4] sm:$0xf0]  ;;  %v15784_v38 = vld [vmem:[#allocation7 + $0x814] sm:$0xf]  ;;  %v11531_v40 = vor.u32 %v15787_v37, %v11530_v26  ;;  %v15779_v26 = vld [vmem:[#allocation7 + $0x7ec] sm:$0xf] }
 0x307   :  { %v1684_v50 = vpop.f32.mrf.mxu0  ;;  %v11627_v60 = vor.u32 %v15811_v46, %v11626_v5  ;;  %v15806_v45 = vld [vmem:[#allocation7 + $0x8bc] sm:$0xf0]  ;;  %v11535_v47 = vor.u32 %v15784_v38, %v11532_v41  ;;  %v11508_v5 = vld [vmem:[#allocation7 + $0x7f8] sm:$0xf0]  ;;  %v11586_v46 = vld [vmem:[#allocation7 + $0x878] sm:$0xf] }
 0x308   :  { %v11611_v48 = vor.u32 %v15806_v45, %v11610_v54  ;;  %v11612_v50 = vld [vmem:[#allocation7 + $0x8c0] sm:$0xf0]  ;;  %v15807_v41 = vld [vmem:[#allocation7 + $0x8c4] sm:$0xf0] }
 0x309   :  { %2422 = vmatpush.bf16.msra.mxu1 %v11627_v60  ;;  %v11615_v51 = vor.u32 %v15803_v49, %v11612_v50  ;;  %v15800_v60 = vld [vmem:[#allocation7 + $0x88c] sm:$0xf0]  ;;  %v11516_v38 = vld [vmem:[#allocation7 + $0x800] sm:$0xf0]  ;;  %v11490_v50 = vld [vmem:[#allocation7 + $0x7b8] sm:$0xf] }
 0x30a   :  { %v11587_v63 = vor.u32 %v15800_v60, %v11586_v46  ;;  %v11519_v54 = vor.u32 %v15779_v26, %v11516_v38 }
 0x30c   :  { %v1645_v25 = vpop.f32.mrf.mxu3 }
 0x30d   :  { %v1671_v53 = vpop.f32.mrf.mxu2  ;;  %2423 = vmatpush.bf16.msra.mxu1 %v11603_v0  ;;  %v15781_v25 = vld [vmem:[#allocation7 + $0x7f4] sm:$0xf0]  ;;  %v15797_v0 = vld [vmem:[#allocation7 + $0x87c] sm:$0xf] }
 0x30e   :  { %v1708_v55 = vpop.f32.mrf.mxu1  ;;  %v15778_v53 = vld [vmem:[#allocation7 + $0x7e4] sm:$0xf] }
 0x30f   :  { %v17147_v59 = vadd.f32 %v1708_v55, %v17121_v14  ;;  %v11579_v14 = vor.u32 %v15799_v2, %v11578_v1  ;;  %v11507_v55 = vor.u32 %v15781_v25, %v11506_v52  ;;  %v11511_v61 = vor.u32 %v15778_v53, %v11508_v5  ;;  %v11588_v1 = vld [vmem:[#allocation7 + $0x890] sm:$0xf0]  ;;  %v15773_v52 = vld [vmem:[#allocation7 + $0x7bc] sm:$0xf]  ;;  %v15801_v5 = vld [vmem:[#allocation7 + $0x894] sm:$0xf0] }
 0x310   :  { %v11591_v2 = vor.u32 %v15797_v0, %v11588_v1  ;;  %v11492_v53 = vld [vmem:[#allocation7 + $0x7d0] sm:$0xf0]  ;;  %v11466_v1 = vld [vmem:[#allocation7 + $0x788] sm:$0xf] }
 0x311   :  { %2424 = vmatpush.bf16.msra.mxu1 %v11579_v14  ;;  %v11484_v14 = vld [vmem:[#allocation7 + $0x7c8] sm:$0xf0]  ;;  %v11495_v46 = vor.u32 %v15773_v52, %v11492_v53 }
 0x314   :  { %v1695_v28 = vpop.f32.mrf.mxu3 }
 0x315   :  { %v17150_v57 = vadd.f32 %v1695_v28, %v17127_v16  ;;  %v1732_v62 = vpop.f32.mrf.mxu2  ;;  %v15802_v16 = vld [vmem:[#allocation7 + $0x8a4] sm:$0xf]  ;;  %2425 = vmatpush.bf16.msra.mxu1 %v11555_v6  ;;  %v11482_v28 = vld [vmem:[#allocation7 + $0x7b0] sm:$0xf] }
 0x316   :  { %v1733_v4 = vadd.f32 %v17123_v44, %v1732_v62  ;;  %v1710_v30 = vpop.f32.mrf.mxu1  ;;  %v11607_v19 = vor.u32 %v15802_v16, %v11604_v18  ;;  %v15775_v62 = vld [vmem:[#allocation7 + $0x7c4] sm:$0xf0]  ;;  %v15766_v6 = vld [vmem:[#allocation7 + $0x784] sm:$0xf]  ;;  %v11460_v16 = vld [vmem:[#allocation7 + $0x798] sm:$0xf0] }
 0x317   :  { %v11483_v30 = vor.u32 %v15775_v62, %v11482_v28  ;;  %v11538_v18 = vld [vmem:[#allocation7 + $0x818] sm:$0xf]  ;;  %v11463_v20 = vor.u32 %v15766_v6, %v11460_v16  ;;  %v15767_v28 = vld [vmem:[#allocation7 + $0x78c] sm:$0xf] }
 0x318   :  { %v1736_v7 = vmax.f32 %v1733_v4, 0.0  ;;  %v15772_v4 = vld [vmem:[#allocation7 + $0x7b4] sm:$0xf] }
 0x319   :  { %2426 = vmatpush.bf16.msra.mxu1 %v11531_v40  ;;  %v11487_v9 = vor.u32 %v15772_v4, %v11484_v14  ;;  %v11618_v40 = vld [vmem:[#allocation7 + $0x8b0] sm:$0xf]  ;;  %v11468_v4 = vld [vmem:[#allocation7 + $0x7a0] sm:$0xf0]  ;;  %v15795_v14 = vld [vmem:[#allocation7 + $0x864] sm:$0xf0] }
 0x31a   :  { %v1737_v12 = vmin.f32 %v1736_v7, 6.0  ;;  %v11562_v7 = vld [vmem:[#allocation7 + $0x848] sm:$0xf]  ;;  %v11619_v45 = vor.u32 %v15807_v41, %v11618_v40 }
 0x31b   :  { %v11563_v10 = vor.u32 %v15794_v8, %v11562_v7  ;;  %v11471_v7 = vor.u32 %v15767_v28, %v11468_v4  ;;  %v15771_v41 = vld [vmem:[#allocation7 + $0x7a4] sm:$0xf0] }
 0x31c   :  { %v1738_v13 = vpack.c.bf16 %v1737_v12, %v1737_v12  ;;  %v1697_v58 = vpop.f32.mrf.mxu3  ;;  %v11564_v12 = vld [vmem:[#allocation7 + $0x860] sm:$0xf0] }
 0x31d   :  { %v1734_v17 = vpop.f32.mrf.mxu2  ;;  %2427 = vmatpush.bf16.msra.mxu1 %v11507_v55  ;;  %v11458_v58 = vld [vmem:[#allocation7 + $0x780] sm:$0xf] }
 0x31e   :  { %2036 = vmatmul.bf16.vlgmr.msra.gmra.mxu0 %v1738_v13  ;;  %2049 = vmatmul.bf16.vlgmr.msrb.gmra.mxu2 %v1738_v13  ;;  %v11594_v55 = vld [vmem:[#allocation7 + $0x880] sm:$0xf] }
 0x31f   :  { %2062 = vmatmul.bf16.vlgmr.msrb.gmra.mxu3 %v1738_v13  ;;  %2075 = vmatmul.bf16.vlgmr.msrb.gmra.mxu1 %v1738_v13  ;;  %v11595_v60 = vor.u32 %v15801_v5, %v11594_v55  ;;  %v11796_v55 = vld [vmem:[#allocation7 + $0xa20] sm:$0xf]  ;;  %v15853_v5 = vld [vmem:[#allocation7 + $0xa34] sm:$0xf0] }
 0x320   :  { %2435 = vmatpush.bf16.msrb.mxu3 %v11631_v15  ;;  %2448 = vmatpush.bf16.msra.mxu0 %v11635_v31  ;;  %v15769_v15 = vld [vmem:[#allocation7 + $0x794] sm:$0xf0]  ;;  %v11647_v31 = vor.u32 %v15810_v32, %v11644_v33  ;;  %v11498_v32 = vld [vmem:[#allocation7 + $0x7c0] sm:$0xf] }
 0x321   :  { %2461 = vmatpush.bf16.msrb.mxu2 %v11639_v36  ;;  %2428 = vmatpush.bf16.msra.mxu1 %v11483_v30  ;;  %v11459_v17 = vor.u32 %v15769_v15, %v11458_v58  ;;  %v15782_v36 = vld [vmem:[#allocation7 + $0x7fc] sm:$0xf0]  ;;  %v11570_v30 = vld [vmem:[#allocation7 + $0x850] sm:$0xf]  ;;  %v15786_v58 = vld [vmem:[#allocation7 + $0x824] sm:$0xf] }
 0x322   :  { %v11515_v37 = vor.u32 %v15782_v36, %v11514_v35  ;;  %v11571_v8 = vor.u32 %v15795_v14, %v11570_v30  ;;  %v15777_v33 = vld [vmem:[#allocation7 + $0x7d4] sm:$0xf0]  ;;  %v11822_v30 = vld [vmem:[#allocation7 + $0xa68] sm:$0xf0]  ;;  %v11748_v14 = vld [vmem:[#allocation7 + $0x9c0] sm:$0xf] }
 0x323   :  { %v11499_v26 = vor.u32 %v15777_v33, %v11498_v32 }
 0x324   :  { %2436 = vmatpush.bf16.msrb.mxu3 %v11607_v19  ;;  %2449 = vmatpush.bf16.msra.mxu0 %v11611_v48  ;;  %v15788_v19 = vld [vmem:[#allocation7 + $0x82c] sm:$0xf0]  ;;  %v11620_v48 = vld [vmem:[#allocation7 + $0x8c8] sm:$0xf0] }
 0x325   :  { %2462 = vmatpush.bf16.msrb.mxu2 %v11615_v51  ;;  %v11539_v21 = vor.u32 %v15788_v19, %v11538_v18  ;;  %2429 = vmatpush.bf16.msra.mxu1 %v11459_v17  ;;  %v15776_v51 = vld [vmem:[#allocation7 + $0x7cc] sm:$0xf0]  ;;  %v11548_v17 = vld [vmem:[#allocation7 + $0x838] sm:$0xf0] }
 0x326   :  { %v11491_v25 = vor.u32 %v15776_v51, %v11490_v50  ;;  %v11551_v19 = vor.u32 %v15786_v58, %v11548_v17 }
 0x328   :  { %2437 = vmatpush.bf16.msrb.mxu3 %v11583_v23  ;;  %2450 = vmatpush.bf16.msra.mxu0 %v11587_v63  ;;  %v15785_v23 = vld [vmem:[#allocation7 + $0x81c] sm:$0xf] }
 0x329   :  { %2463 = vmatpush.bf16.msrb.mxu2 %v11591_v2  ;;  %v11596_v63 = vld [vmem:[#allocation7 + $0x898] sm:$0xf0]  ;;  %v15770_v2 = vld [vmem:[#allocation7 + $0x79c] sm:$0xf0] }
 0x32a   :  { %v11467_v62 = vor.u32 %v15770_v2, %v11466_v1 }
 0x32c   :  { %2438 = vmatpush.bf16.msrb.mxu3 %v11559_v29  ;;  %2451 = vmatpush.bf16.msra.mxu0 %v11563_v10  ;;  %v11543_v29 = vor.u32 %v15785_v23, %v11540_v24  ;;  %v11572_v10 = vld [vmem:[#allocation7 + $0x868] sm:$0xf0]  ;;  %v15780_v23 = vld [vmem:[#allocation7 + $0x7f4] sm:$0xf] }
 0x32e   :  { %2088 = vmatmul.bf16.vlgmr.msrb.gmra.mxu0 %v1738_v13  ;;  %2101 = vmatmul.bf16.vlgmr.msra.gmra.mxu2 %v1738_v13  ;;  %v11567_v13 = vor.u32 %v15791_v11, %v11564_v12  ;;  %v11546_v12 = vld [vmem:[#allocation7 + $0x820] sm:$0xf] }
 0x32f   :  { %11455 = vmatmul.msk.bf16.vlgmr.msra.gmra.mxu3 %vm140_vm1, %v11454_v56  ;;  %v15813_v56 = vld [vmem:[#allocation7 + $0x8f4] sm:$0xf0] }
 0x330   :  { %2439 = vmatpush.bf16.msrb.mxu3 %v11535_v47  ;;  %2464 = vmatpush.bf16.msrb.mxu2 %v11567_v13  ;;  %v11643_v34 = vor.u32 %v15813_v56, %v11642_v27  ;;  %v15804_v47 = vld [vmem:[#allocation7 + $0x8b4] sm:$0xf]  ;;  %v15789_v13 = vld [vmem:[#allocation7 + $0x834] sm:$0xf0]  ;;  %v11524_v27 = vld [vmem:[#allocation7 + $0x808] sm:$0xf0] }
 0x331   :  { %2452 = vmatpush.bf16.msra.mxu0 %v11539_v21  ;;  %v11623_v49 = vor.u32 %v15804_v47, %v11620_v48  ;;  %v11547_v6 = vor.u32 %v15789_v13, %v11546_v12  ;;  %v15783_v21 = vld [vmem:[#allocation7 + $0x804] sm:$0xf0]  ;;  %v11527_v56 = vor.u32 %v15780_v23, %v11524_v27  ;;  %v11830_v12 = vld [vmem:[#allocation7 + $0xa70] sm:$0xf0]  ;;  %v15854_v27 = vld [vmem:[#allocation7 + $0xa3c] sm:$0xf0] }
 0x332   :  { %2474 = vmatpush.bf16.msrb.mxu1 %v11643_v34  ;;  %v15774_v34 = vld [vmem:[#allocation7 + $0x7c4] sm:$0xf]  ;;  %v11804_v23 = vld [vmem:[#allocation7 + $0xa28] sm:$0xf] }
 0x334   :  { %2440 = vmatpush.bf16.msrb.mxu3 %v11511_v61  ;;  %2465 = vmatpush.bf16.msrb.mxu2 %v11543_v29  ;;  %v15798_v61 = vld [vmem:[#allocation7 + $0x884] sm:$0xf] }
 0x335   :  { %2453 = vmatpush.bf16.msra.mxu0 %v11515_v37  ;;  %v11599_v0 = vor.u32 %v15798_v61, %v11596_v63  ;;  %v15847_v61 = vld [vmem:[#allocation7 + $0xa04] sm:$0xf0] }
 0x336   :  { %2475 = vmatpush.bf16.msrb.mxu1 %v11619_v45  ;;  %v11476_v45 = vld [vmem:[#allocation7 + $0x7a8] sm:$0xf0] }
 0x338   :  { %2441 = vmatpush.bf16.msrb.mxu3 %v11487_v9  ;;  %2466 = vmatpush.bf16.msrb.mxu2 %v11519_v54  ;;  %v15792_v9 = vld [vmem:[#allocation7 + $0x854] sm:$0xf] }
 0x339   :  { %2454 = vmatpush.bf16.msra.mxu0 %v11491_v25  ;;  %v11575_v11 = vor.u32 %v15792_v9, %v11572_v10  ;;  %v15768_v54 = vld [vmem:[#allocation7 + $0x794] sm:$0xf]  ;;  %v11820_v25 = vld [vmem:[#allocation7 + $0xa50] sm:$0xf] }
 0x33a   :  { %2476 = vmatpush.bf16.msrb.mxu1 %v11595_v60  ;;  %v11772_v60 = vld [vmem:[#allocation7 + $0x9f0] sm:$0xf] }
 0x33b   :  { %v15860_v9 = vld [vmem:[#allocation7 + $0xa6c] sm:$0xf0] }
 0x33c   :  { %2442 = vmatpush.bf16.msrb.mxu3 %v11463_v20  ;;  %2467 = vmatpush.bf16.msrb.mxu2 %v11495_v46  ;;  %v11522_v20 = vld [vmem:[#allocation7 + $0x7f0] sm:$0xf]  ;;  %v11797_v46 = vor.u32 %v15853_v5, %v11796_v55  ;;  %v15845_v5 = vld [vmem:[#allocation7 + $0x9fc] sm:$0xf] }
 0x33d   :  { %2455 = vmatpush.bf16.msra.mxu0 %v11467_v62  ;;  %v11523_v29 = vor.u32 %v15783_v21, %v11522_v20  ;;  %v15856_v62 = vld [vmem:[#allocation7 + $0xa54] sm:$0xf]  ;;  %v11724_v20 = vld [vmem:[#allocation7 + $0x990] sm:$0xf]  ;;  %v15835_v21 = vld [vmem:[#allocation7 + $0x9a4] sm:$0xf0] }
 0x33e   :  { %2477 = vmatpush.bf16.msrb.mxu1 %v11571_v8  ;;  %v11828_v8 = vld [vmem:[#allocation7 + $0xa58] sm:$0xf]  ;;  %v11825_v58 = vor.u32 %v15856_v62, %v11822_v30  ;;  %v11725_v33 = vor.u32 %v15835_v21, %v11724_v20  ;;  %v11756_v62 = vld [vmem:[#allocation7 + $0x9c8] sm:$0xf]  ;;  %v15839_v30 = vld [vmem:[#allocation7 + $0x9cc] sm:$0xf] }
 0x33f   :  { %v15861_v20 = vld [vmem:[#allocation7 + $0xa74] sm:$0xf0]  ;;  %v15858_v21 = vld [vmem:[#allocation7 + $0xa64] sm:$0xf] }
 0x340   :  { %2487 = vmatpush.bf16.msra.mxu3 %v11647_v31  ;;  %2468 = vmatpush.bf16.msrb.mxu2 %v11471_v7  ;;  %v11500_v31 = vld [vmem:[#allocation7 + $0x7d8] sm:$0xf0]  ;;  %v15841_v7 = vld [vmem:[#allocation7 + $0x9d4] sm:$0xf0] }
 0x341   :  { %2518 = vmatpush.bf16.msrb.mxu0 %v17045_v3  ;;  %v11503_v37 = vor.u32 %v15774_v34, %v11500_v31  ;;  %v15844_v34 = vld [vmem:[#allocation7 + $0x9f4] sm:$0xf]  ;;  %v11774_v31 = vld [vmem:[#allocation7 + $0xa08] sm:$0xf0] }
 0x342   :  { %2478 = vmatpush.bf16.msrb.mxu1 %v11547_v6  ;;  %v11798_v6 = vld [vmem:[#allocation7 + $0xa38] sm:$0xf0] }
 0x344   :  { %2488 = vmatpush.bf16.msra.mxu3 %v11623_v49  ;;  %v11479_v49 = vor.u32 %v15768_v54, %v11476_v45  ;;  %v11726_v54 = vld [vmem:[#allocation7 + $0x9a8] sm:$0xf0]  ;;  %v11648_v45 = vld [vmem:[%s17652_s0 + $0x6] sm:$0x1] }
 0x346   :  { %2479 = vmatpush.bf16.msrb.mxu1 %v11523_v29  ;;  %v15851_v29 = vld [vmem:[#allocation7 + $0xa2c] sm:$0xf] }
 0x348   :  { %2489 = vmatpush.bf16.msra.mxu3 %v11599_v0 }
 0x34a   :  { %2480 = vmatpush.bf16.msrb.mxu1 %v11499_v26  ;;  %v11777_v26 = vor.u32 %v15844_v34, %v11774_v31  ;;  %v11710_v31 = vld [vmem:[#allocation7 + $0x980] sm:$0xf0] }
 0x34c   :  { %2490 = vmatpush.bf16.msra.mxu3 %v11575_v11  ;;  %v15857_v11 = vld [vmem:[#allocation7 + $0xa5c] sm:$0xf] }
 0x350   :  { %2491 = vmatpush.bf16.msra.mxu3 %v11551_v19  ;;  %v11833_v19 = vor.u32 %v15857_v11, %v11830_v12  ;;  %v15814_v11 = vld [vmem:[#allocation7 + $0x904] sm:$0xf] }
 0x354   :  { %2492 = vmatpush.bf16.msra.mxu3 %v11527_v56  ;;  %v11806_v56 = vld [vmem:[#allocation7 + $0xa40] sm:$0xf0] }
 0x358   :  { %2493 = vmatpush.bf16.msra.mxu3 %v11503_v37  ;;  %v15838_v37 = vld [vmem:[#allocation7 + $0x9c4] sm:$0xf] }
 0x35c   :  { %2494 = vmatpush.bf16.msra.mxu3 %v11479_v49  ;;  %v15829_v49 = vld [vmem:[#allocation7 + $0x974] sm:$0xf0] }
 0x39b   :  { %v2037_v15 = vpop.f32.mrf.mxu0 }
 0x39c   :  { %v17159_v16 = vadd.f32 %v2037_v15, %v17141_v39  ;;  %v2076_v18 = vpop.f32.mrf.mxu1  ;;  %v15850_v15 = vld [vmem:[#allocation7 + $0xa24] sm:$0xf] }
 0x39d   :  { %v17162_v24 = vadd.f32 %v2076_v18, %v17138_v43  ;;  %v11474_v43 = vld [vmem:[#allocation7 + $0x790] sm:$0xf]  ;;  %v11829_v18 = vor.u32 %v15860_v9, %v11828_v8  ;;  %v11801_v32 = vor.u32 %v15850_v15, %v11798_v6  ;;  %v11652_v9 = vld [vmem:[#allocation7 + $0x900] sm:$0xf] }
 0x39e   :  { %v11475_v48 = vor.u32 %v15771_v41, %v11474_v43  ;;  %v11750_v43 = vld [vmem:[#allocation7 + $0x9d8] sm:$0xf0]  ;;  %v15832_v41 = vld [vmem:[#allocation7 + $0x994] sm:$0xf] }
 0x3a0   :  { %2481 = vmatpush.bf16.msrb.mxu1 %v11475_v48  ;;  %v11700_v48 = vld [vmem:[#allocation7 + $0x960] sm:$0xf] }
 0x3a1   :  { %v2050_v35 = vpop.f32.mrf.mxu2 }
 0x3a2   :  { %v17165_v39 = vadd.f32 %v2050_v35, %v17135_v22  ;;  %v2063_v36 = vpop.f32.mrf.mxu3  ;;  %v11805_v35 = vor.u32 %v15854_v27, %v11804_v23  ;;  %v11838_v23 = vld [vmem:[#allocation7 + $0xa78] sm:$0xf0] }
 0x3a3   :  { %v17168_v38 = vadd.f32 %v2063_v36, %v17144_v42  ;;  %v2039_v40 = vpop.f32.mrf.mxu0  ;;  %v15859_v42 = vld [vmem:[#allocation7 + $0xa64] sm:$0xf0]  ;;  %v11809_v36 = vor.u32 %v15851_v29, %v11806_v56  ;;  %v11841_v29 = vor.u32 %v15858_v21, %v11838_v23 }
 0x3a4   :  { %v2078_v47 = vpop.f32.mrf.mxu1  ;;  %v11821_v53 = vor.u32 %v15859_v42, %v11820_v25  ;;  %v11753_v40 = vor.u32 %v15838_v37, %v11750_v43  ;;  %v11780_v25 = vld [vmem:[#allocation7 + $0x9f8] sm:$0xf]  ;;  %v15848_v42 = vld [vmem:[#allocation7 + $0xa0c] sm:$0xf0]  ;;  %v11708_v56 = vld [vmem:[#allocation7 + $0x968] sm:$0xf] }
 0x3a5   :  { %v11729_v47 = vor.u32 %v15832_v41, %v11726_v54  ;;  %v11781_v55 = vor.u32 %v15848_v42, %v11780_v25  ;;  %v15852_v43 = vld [vmem:[#allocation7 + $0xa34] sm:$0xf]  ;;  %v11684_v54 = vld [vmem:[#allocation7 + $0x938] sm:$0xf]  ;;  %v15846_v42 = vld [vmem:[#allocation7 + $0xa04] sm:$0xf] }
 0x3a6   :  { %2816 = vmatpush.bf16.msra.mxu2 %v11821_v53 }
 0x3a9   :  { %v2052_v22 = vpop.f32.mrf.mxu2 }
 0x3aa   :  { %v2065_v50 = vpop.f32.mrf.mxu3  ;;  %2817 = vmatpush.bf16.msra.mxu2 %v11797_v46  ;;  %v15826_v22 = vld [vmem:[#allocation7 + $0x964] sm:$0xf]  ;;  %v11782_v46 = vld [vmem:[#allocation7 + $0xa10] sm:$0xf0] }
 0x3ab   :  { %v2089_v51 = vpop.f32.mrf.mxu0  ;;  %v11701_v50 = vor.u32 %v15829_v49, %v11700_v48  ;;  %v11686_v49 = vld [vmem:[#allocation7 + $0x950] sm:$0xf0] }
 0x3ac   :  { %v17171_v52 = vadd.f32 %v2089_v51, %v17150_v57  ;;  %v11773_v57 = vor.u32 %v15847_v61, %v11772_v60  ;;  %v11702_v51 = vld [vmem:[#allocation7 + $0x978] sm:$0xf0]  ;;  %v11785_v60 = vor.u32 %v15845_v5, %v11782_v46  ;;  %v11676_v61 = vld [vmem:[#allocation7 + $0x930] sm:$0xf]  ;;  %v11660_v5 = vld [vmem:[#allocation7 + $0x908] sm:$0xf] }
 0x3ad   :  { %v11705_v53 = vor.u32 %v15826_v22, %v11702_v51  ;;  %v11788_v22 = vld [vmem:[#allocation7 + $0xa00] sm:$0xf] }
 0x3ae   :  { %2818 = vmatpush.bf16.msra.mxu2 %v11773_v57  ;;  %v15818_v46 = vld [vmem:[#allocation7 + $0x91c] sm:$0xf0] }
 0x3b1   :  { %v2102_v63 = vpop.f32.mrf.mxu2 }
 0x3b2   :  { %v17174_v0 = vadd.f32 %v2102_v63, %v17147_v59  ;;  %v2126_v1 = vpop.f32.mrf.mxu3  ;;  %v15823_v63 = vld [vmem:[#allocation7 + $0x944] sm:$0xf0] }
 0x3b3   :  { %v2127_v2 = vadd.f32 %v17123_v44, %v2126_v1  ;;  %v2091_v28 = vpop.f32.mrf.mxu0  ;;  %v11749_v44 = vor.u32 %v15841_v7, %v11748_v14  ;;  %v15820_v1 = vld [vmem:[#allocation7 + $0x934] sm:$0xf]  ;;  %v11758_v7 = vld [vmem:[#allocation7 + $0x9e0] sm:$0xf0] }
 0x3b4   :  { %v11678_v28 = vld [vmem:[#allocation7 + $0x948] sm:$0xf0]  ;;  %v11761_v8 = vor.u32 %v15839_v30, %v11758_v7  ;;  %v15837_v7 = vld [vmem:[#allocation7 + $0x9b4] sm:$0xf0] }
 0x3b5   :  { %v2130_v4 = vmax.f32 %v2127_v2, 0.0  ;;  %2819 = vmatpush.bf16.msra.mxu2 %v11749_v44  ;;  %v11677_v2 = vor.u32 %v15823_v63, %v11676_v61  ;;  %v11681_v57 = vor.u32 %v15820_v1, %v11678_v28  ;;  %v15833_v44 = vld [vmem:[#allocation7 + $0x99c] sm:$0xf]  ;;  %v11661_v61 = vor.u32 %v15818_v46, %v11660_v5  ;;  %v11662_v63 = vld [vmem:[#allocation7 + $0x920] sm:$0xf0] }
 0x3b6   :  { %v11764_v1 = vld [vmem:[#allocation7 + $0x9d0] sm:$0xf]  ;;  %v15904_v46 = vld [vmem:[#allocation7 + $0xbd4] sm:$0xf] }
 0x3b7   :  { %v2131_v10 = vmin.f32 %v2130_v4, 6.0  ;;  %v15842_v4 = vld [vmem:[#allocation7 + $0x9dc] sm:$0xf0] }
 0x3b8   :  { %v11757_v14 = vor.u32 %v15842_v4, %v11756_v62  ;;  %v15840_v62 = vld [vmem:[#allocation7 + $0x9d4] sm:$0xf]  ;;  %v11766_v4 = vld [vmem:[#allocation7 + $0x9e8] sm:$0xf0] }
 0x3b9   :  { %v2132_v13 = vpack.c.bf16 %v2131_v10, %v2131_v10  ;;  %v2104_v59 = vpop.f32.mrf.mxu2  ;;  %2820 = vmatpush.bf16.msra.mxu2 %v11725_v33  ;;  %v15817_v10 = vld [vmem:[#allocation7 + $0x914] sm:$0xf0]  ;;  %v15827_v33 = vld [vmem:[#allocation7 + $0x96c] sm:$0xf]  ;;  %v11769_v30 = vor.u32 %v15840_v62, %v11766_v4  ;;  %v15905_v4 = vld [vmem:[#allocation7 + $0xbdc] sm:$0xf] }
 0x3ba   :  { %v2128_v17 = vpop.f32.mrf.mxu3  ;;  %v11653_v12 = vor.u32 %v15817_v10, %v11652_v9  ;;  %v11732_v59 = vld [vmem:[#allocation7 + $0x998] sm:$0xf]  ;;  %v11742_v10 = vld [vmem:[#allocation7 + $0x9b8] sm:$0xf0] }
 0x3bb   :  { %2430 = vmatmul.bf16.vlgmr.msra.gmra.mxu1 %v2132_v13  ;;  %2443 = vmatmul.bf16.vlgmr.msrb.gmra.mxu3 %v2132_v13  ;;  %v11734_v17 = vld [vmem:[#allocation7 + $0x9b0] sm:$0xf0] }
 0x3bc   :  { %2456 = vmatmul.bf16.vlgmr.msra.gmra.mxu0 %v2132_v13  ;;  %2469 = vmatmul.bf16.vlgmr.msrb.gmra.mxu2 %v2132_v13 }
 0x3bd   :  { %2829 = vmatpush.bf16.msra.mxu0 %v11825_v58  ;;  %2842 = vmatpush.bf16.msra.mxu1 %v11829_v18  ;;  %v15836_v58 = vld [vmem:[#allocation7 + $0x9ac] sm:$0xf0]  ;;  %v11836_v18 = vld [vmem:[#allocation7 + $0xa60] sm:$0xf] }
 0x3be   :  { %2855 = vmatpush.bf16.msrb.mxu3 %v11833_v19  ;;  %2821 = vmatpush.bf16.msra.mxu2 %v11701_v50  ;;  %v11733_v6 = vor.u32 %v15836_v58, %v11732_v59  ;;  %v11737_v19 = vor.u32 %v15833_v44, %v11734_v17  ;;  %v11837_v27 = vor.u32 %v15861_v20, %v11836_v18  ;;  %v15849_v50 = vld [vmem:[#allocation7 + $0xa14] sm:$0xf0]  ;;  %v15828_v59 = vld [vmem:[#allocation7 + $0x974] sm:$0xf]  ;;  %v15822_v18 = vld [vmem:[#allocation7 + $0x944] sm:$0xf] }
 0x3bf   :  { %v11789_v25 = vor.u32 %v15849_v50, %v11788_v22  ;;  %v15825_v44 = vld [vmem:[#allocation7 + $0x954] sm:$0xf0] }
 0x3c1   :  { %2830 = vmatpush.bf16.msra.mxu0 %v11801_v32  ;;  %2843 = vmatpush.bf16.msra.mxu1 %v11805_v35  ;;  %v15830_v32 = vld [vmem:[#allocation7 + $0x97c] sm:$0xf0]  ;;  %v11812_v35 = vld [vmem:[#allocation7 + $0xa30] sm:$0xf] }
 0x3c2   :  { %2856 = vmatpush.bf16.msrb.mxu3 %v11809_v36  ;;  %2822 = vmatpush.bf16.msra.mxu2 %v11677_v2  ;;  %v11709_v34 = vor.u32 %v15830_v32, %v11708_v56  ;;  %v15855_v36 = vld [vmem:[#allocation7 + $0xa44] sm:$0xf0]  ;;  %v11668_v56 = vld [vmem:[#allocation7 + $0x910] sm:$0xf] }
 0x3c3   :  { %v11813_v37 = vor.u32 %v15855_v36, %v11812_v35  ;;  %v15843_v2 = vld [vmem:[#allocation7 + $0x9e4] sm:$0xf0] }
 0x3c5   :  { %2831 = vmatpush.bf16.msra.mxu0 %v11777_v26  ;;  %2844 = vmatpush.bf16.msra.mxu1 %v11781_v55  ;;  %v11713_v26 = vor.u32 %v15827_v33, %v11710_v31  ;;  %v15819_v33 = vld [vmem:[#allocation7 + $0x924] sm:$0xf0]  ;;  %v11670_v31 = vld [vmem:[#allocation7 + $0x928] sm:$0xf0] }
 0x3c6   :  { %2857 = vmatpush.bf16.msrb.mxu3 %v11785_v60  ;;  %2823 = vmatpush.bf16.msra.mxu2 %v11653_v12  ;;  %v15815_v60 = vld [vmem:[#allocation7 + $0x90c] sm:$0xf]  ;;  %v11716_v12 = vld [vmem:[#allocation7 + $0x970] sm:$0xf]  ;;  %v11669_v35 = vor.u32 %v15819_v33, %v11668_v56 }
 0x3c7   :  { %v11665_v28 = vor.u32 %v15815_v60, %v11662_v63  ;;  %v11942_v63 = vld [vmem:[#allocation7 + $0xb40] sm:$0xf] }
 0x3c9   :  { %2832 = vmatpush.bf16.msra.mxu0 %v11753_v40  ;;  %2845 = vmatpush.bf16.msra.mxu1 %v11757_v14  ;;  %v11814_v40 = vld [vmem:[#allocation7 + $0xa48] sm:$0xf0]  ;;  %v11740_v14 = vld [vmem:[#allocation7 + $0x9a0] sm:$0xf] }
 0x3ca   :  { %2858 = vmatpush.bf16.msrb.mxu3 %v11761_v8  ;;  %2868 = vmatpush.bf16.msrb.mxu2 %v11837_v27  ;;  %v11817_v41 = vor.u32 %v15852_v43, %v11814_v40  ;;  %v15834_v8 = vld [vmem:[#allocation7 + $0x9a4] sm:$0xf]  ;;  %v11741_v9 = vor.u32 %v15837_v7, %v11740_v14 }
 0x3cb   :  { %2482 = vmatmul.bf16.vlgmr.msrb.gmra.mxu1 %v2132_v13  ;;  %2495 = vmatmul.bf16.vlgmr.msra.gmra.mxu3 %v2132_v13  ;;  %v11654_v13 = vld [vmem:[#allocation7 + $0x918] sm:$0xf0] }
 0x3cc   :  { %11649 = vmatmul.msk.bf16.vlgmr.msrb.gmra.mxu0 %vm140_vm1, %v11648_v45  ;;  %v11657_v15 = vor.u32 %v15814_v11, %v11654_v13  ;;  %v15824_v45 = vld [vmem:[#allocation7 + $0x94c] sm:$0xf0]  ;;  %v11745_v11 = vor.u32 %v15834_v8, %v11742_v10  ;;  %v15831_v13 = vld [vmem:[#allocation7 + $0x984] sm:$0xf0]  ;;  %v11992_v10 = vld [vmem:[#allocation7 + $0xbb8] sm:$0xf0] }
 0x3cd   :  { %2833 = vmatpush.bf16.msra.mxu0 %v11729_v47  ;;  %2846 = vmatpush.bf16.msra.mxu1 %v11733_v6  ;;  %v15821_v47 = vld [vmem:[#allocation7 + $0x93c] sm:$0xf]  ;;  %v11685_v48 = vor.u32 %v15824_v45, %v11684_v54  ;;  %v11717_v58 = vor.u32 %v15831_v13, %v11716_v12  ;;  %v11692_v6 = vld [vmem:[#allocation7 + $0x940] sm:$0xf]  ;;  %v15907_v54 = vld [vmem:[#allocation7 + $0xbe4] sm:$0xf0] }
 0x3ce   :  { %2859 = vmatpush.bf16.msrb.mxu3 %v11737_v19  ;;  %2869 = vmatpush.bf16.msrb.mxu2 %v11813_v37  ;;  %v11689_v51 = vor.u32 %v15821_v47, %v11686_v49  ;;  %v11694_v19 = vld [vmem:[#allocation7 + $0x958] sm:$0xf0]  ;;  %v11693_v27 = vor.u32 %v15825_v44, %v11692_v6  ;;  %v11990_v47 = vld [vmem:[#allocation7 + $0xba0] sm:$0xf]  ;;  %v11998_v6 = vld [vmem:[#allocation7 + $0xba8] sm:$0xf] }
 0x3cf   :  { %v15902_v44 = vld [vmem:[#allocation7 + $0xbbc] sm:$0xf0] }
 0x3d1   :  { %2834 = vmatpush.bf16.msra.mxu0 %v11705_v53  ;;  %2847 = vmatpush.bf16.msra.mxu1 %v11709_v34  ;;  %v11790_v53 = vld [vmem:[#allocation7 + $0xa18] sm:$0xf0]  ;;  %v15816_v34 = vld [vmem:[#allocation7 + $0x914] sm:$0xf] }
 0x3d2   :  { %2860 = vmatpush.bf16.msrb.mxu3 %v11713_v26  ;;  %v11793_v55 = vor.u32 %v15846_v42, %v11790_v53  ;;  %2870 = vmatpush.bf16.msrb.mxu2 %v11789_v25  ;;  %v11673_v36 = vor.u32 %v15816_v34, %v11670_v31  ;;  %v17197_v53 = vld [vmem:[#allocation5] ss:$0 sm:$0xff]  ;;  %v15886_v34 = vld [vmem:[#allocation7 + $0xb44] sm:$0xf] }
 0x3d3   :  { %v11944_v31 = vld [vmem:[#allocation7 + $0xb58] sm:$0xf0] }
 0x3d5   :  { %2835 = vmatpush.bf16.msra.mxu0 %v11681_v57  ;;  %2848 = vmatpush.bf16.msra.mxu1 %v11685_v48  ;;  %v11765_v57 = vor.u32 %v15843_v2, %v11764_v1  ;;  %v15901_v48 = vld [vmem:[#allocation7 + $0xbb4] sm:$0xf0] }
 0x3d6   :  { %2861 = vmatpush.bf16.msrb.mxu3 %v11689_v51  ;;  %v11991_v22 = vor.u32 %v15901_v48, %v11990_v47  ;;  %v11966_v51 = vld [vmem:[#allocation7 + $0xb70] sm:$0xf]  ;;  %v15889_v1 = vld [vmem:[#allocation7 + $0xb54] sm:$0xf0]  ;;  %v11896_v47 = vld [vmem:[#allocation7 + $0xaf8] sm:$0xf0] }
 0x3d7   :  { %2871 = vmatpush.bf16.msrb.mxu2 %v11765_v57  ;;  %v12022_v2 = vld [vmem:[#allocation7 + $0xbd8] sm:$0xf] }
 0x3d8   :  { %v11974_v48 = vld [vmem:[#allocation7 + $0xb78] sm:$0xf] }
 0x3d9   :  { %2836 = vmatpush.bf16.msra.mxu0 %v11657_v15  ;;  %2849 = vmatpush.bf16.msra.mxu1 %v11661_v61  ;;  %v11718_v15 = vld [vmem:[#allocation7 + $0x988] sm:$0xf0] }
 0x3da   :  { %2862 = vmatpush.bf16.msrb.mxu3 %v11665_v28  ;;  %v11721_v17 = vor.u32 %v15828_v59, %v11718_v15  ;;  %v12016_v61 = vld [vmem:[#allocation7 + $0xbe8] sm:$0xf0]  ;;  %v15908_v28 = vld [vmem:[#allocation7 + $0xbec] sm:$0xf0]  ;;  %v15883_v15 = vld [vmem:[#allocation7 + $0xb24] sm:$0xf0] }
 0x3db   :  { %2872 = vmatpush.bf16.msrb.mxu2 %v11741_v9  ;;  %v12019_v8 = vor.u32 %v15904_v46, %v12016_v61  ;;  %v15898_v9 = vld [vmem:[#allocation7 + $0xba4] sm:$0xf]  ;;  %v12023_v13 = vor.u32 %v15908_v28, %v12022_v2  ;;  %v15887_v2 = vld [vmem:[#allocation7 + $0xb4c] sm:$0xf] }
 0x3dd   :  { %2881 = vmatpush.bf16.msrb.mxu0 %v11841_v29  ;;  %2912 = vmatpush.bf16.msrb.mxu1 %v17045_v3  ;;  %v11697_v29 = vor.u32 %v15822_v18, %v11694_v19  ;;  %v12000_v18 = vld [vmem:[#allocation7 + $0xbc0] sm:$0xf0] }
 0x3df   :  { %2873 = vmatpush.bf16.msrb.mxu2 %v11717_v58  ;;  %v11918_v58 = vld [vmem:[#allocation7 + $0xb10] sm:$0xf] }
 0x3e0   :  { %v11919_v19 = vor.u32 %v15883_v15, %v11918_v58  ;;  %v12030_v58 = vld [vmem:[#allocation7 + $0xbe0] sm:$0xf] }
 0x3e1   :  { %2882 = vmatpush.bf16.msrb.mxu0 %v11817_v41 }
 0x3e3   :  { %2874 = vmatpush.bf16.msrb.mxu2 %v11693_v27  ;;  %v11999_v27 = vor.u32 %v15902_v44, %v11998_v6  ;;  %v15909_v6 = vld [vmem:[#allocation7 + $0xbf4] sm:$0xf0]  ;;  %v15906_v44 = vld [vmem:[#allocation7 + $0xbe4] sm:$0xf] }
 0x3e5   :  { %2883 = vmatpush.bf16.msrb.mxu0 %v11793_v55 }
 0x3e7   :  { %2875 = vmatpush.bf16.msrb.mxu2 %v11669_v35  ;;  %v11947_v35 = vor.u32 %v15886_v34, %v11944_v31 }
 0x3e9   :  { %2884 = vmatpush.bf16.msrb.mxu0 %v11769_v30 }
 0x3ed   :  { %2885 = vmatpush.bf16.msrb.mxu0 %v11745_v11  ;;  %v11943_v11 = vor.u32 %v15889_v1, %v11942_v63  ;;  %v11950_v63 = vld [vmem:[#allocation7 + $0xb48] sm:$0xf]  ;;  %v15890_v1 = vld [vmem:[#allocation7 + $0xb5c] sm:$0xf0] }
 0x3ee   :  { %v11951_v28 = vor.u32 %v15890_v1, %v11950_v63  ;;  %v15888_v1 = vld [vmem:[#allocation7 + $0xb54] sm:$0xf] }
 0x3f1   :  { %2886 = vmatpush.bf16.msrb.mxu0 %v11721_v17  ;;  %v15899_v17 = vld [vmem:[#allocation7 + $0xbac] sm:$0xf] }
 0x3f5   :  { %2887 = vmatpush.bf16.msrb.mxu0 %v11697_v29  ;;  %v12003_v29 = vor.u32 %v15899_v17, %v12000_v18  ;;  %v12032_v17 = vld [vmem:[#allocation7 + $0xbf8] sm:$0xf0]  ;;  %v12031_v18 = vor.u32 %v15909_v6, %v12030_v58 }
 0x3f6   :  { %v11888_v6 = vld [vmem:[#allocation7 + $0xad8] sm:$0xf0] }
 0x3f9   :  { %2888 = vmatpush.bf16.msrb.mxu0 %v11673_v36  ;;  %v15880_v36 = vld [vmem:[#allocation7 + $0xb14] sm:$0xf] }
 0x438   :  { %v2431_v20 = vpop.f32.mrf.mxu1 }
 0x439   :  { %v17183_v21 = vadd.f32 %v2431_v20, %v17159_v16  ;;  %v2457_v23 = vpop.f32.mrf.mxu0  ;;  %v15892_v20 = vld [vmem:[#allocation7 + $0xb74] sm:$0xf] }
 0x43a   :  { %v17186_v32 = vadd.f32 %v2457_v23, %v17168_v38  ;;  %v12014_v38 = vld [vmem:[#allocation7 + $0xbd0] sm:$0xf]  ;;  %v11968_v23 = vld [vmem:[#allocation7 + $0xb88] sm:$0xf0] }
 0x43b   :  { %v12015_v45 = vor.u32 %v15907_v54, %v12014_v38  ;;  %v11971_v33 = vor.u32 %v15892_v20, %v11968_v23  ;;  %v15877_v38 = vld [vmem:[#allocation7 + $0xaf4] sm:$0xf0]  ;;  %v15874_v54 = vld [vmem:[#allocation7 + $0xae4] sm:$0xf]  ;;  %v15878_v20 = vld [vmem:[#allocation7 + $0xafc] sm:$0xf0] }
 0x43c   :  { %v15875_v23 = vld [vmem:[#allocation7 + $0xaec] sm:$0xf] }
 0x43d   :  { %3210 = vmatpush.bf16.msra.mxu3 %v12015_v45 }
 0x43e   :  { %v2444_v26 = vpop.f32.mrf.mxu3 }
 0x43f   :  { %v17189_v16 = vadd.f32 %v2444_v26, %v17165_v39  ;;  %v2470_v37 = vpop.f32.mrf.mxu2  ;;  %v15895_v39 = vld [vmem:[#allocation7 + $0xb84] sm:$0xf0]  ;;  %v11920_v26 = vld [vmem:[#allocation7 + $0xb28] sm:$0xf0] }
 0x440   :  { %v17192_v43 = vadd.f32 %v2470_v37, %v17162_v24  ;;  %v2433_v40 = vpop.f32.mrf.mxu1  ;;  %v11967_v5 = vor.u32 %v15895_v39, %v11966_v51  ;;  %v11842_v37 = vld [vmem:[%s17652_s0 + $0x7] sm:$0x1]  ;;  %v15893_v51 = vld [vmem:[#allocation7 + $0xb7c] sm:$0xf]  ;;  %v11976_v39 = vld [vmem:[#allocation7 + $0xb90] sm:$0xf0] }
 0x441   :  { %v2459_v41 = vpop.f32.mrf.mxu0  ;;  %3211 = vmatpush.bf16.msra.mxu3 %v11991_v22  ;;  %v11923_v40 = vor.u32 %v15880_v36, %v11920_v26  ;;  %v11899_v22 = vor.u32 %v15874_v54, %v11896_v47  ;;  %v12008_v36 = vld [vmem:[#allocation7 + $0xbc8] sm:$0xf0]  ;;  %v11880_v54 = vld [vmem:[#allocation7 + $0xad0] sm:$0xf0]  ;;  %v15897_v47 = vld [vmem:[#allocation7 + $0xb94] sm:$0xf0] }
 0x442   :  { %v11894_v41 = vld [vmem:[#allocation7 + $0xae0] sm:$0xf] }
 0x443   :  { %v11895_v45 = vor.u32 %v15877_v38, %v11894_v41  ;;  %v15869_v41 = vld [vmem:[#allocation7 + $0xabc] sm:$0xf] }
 0x445   :  { %3212 = vmatpush.bf16.msra.mxu3 %v11967_v5  ;;  %v15868_v5 = vld [vmem:[#allocation7 + $0xab4] sm:$0xf] }
 0x446   :  { %v2446_v49 = vpop.f32.mrf.mxu3 }
 0x447   :  { %v2472_v50 = vpop.f32.mrf.mxu2  ;;  %v15896_v49 = vld [vmem:[#allocation7 + $0xb8c] sm:$0xf0] }
 0x448   :  { %v2483_v25 = vpop.f32.mrf.mxu1  ;;  %v11975_v50 = vor.u32 %v15896_v49, %v11974_v48  ;;  %v11883_v48 = vor.u32 %v15869_v41, %v11880_v54  ;;  %v15949_v54 = vld [vmem:[#allocation7 + $0xd34] sm:$0xf0] }
 0x449   :  { %v17195_v42 = vadd.f32 %v2483_v25, %v17171_v52  ;;  %v2520_v24 = vpop.f32.mrf.mxu0  ;;  %v12024_v52 = vld [vmem:[#allocation7 + $0xbf0] sm:$0xf0]  ;;  %3213 = vmatpush.bf16.msra.mxu3 %v11943_v11  ;;  %v11979_v25 = vor.u32 %v15893_v51, %v11976_v39  ;;  %v11854_v39 = vld [vmem:[#allocation7 + $0xa88] sm:$0xf] }
 0x44a   :  { %v2521_v55 = vadd.f32 %v17197_v53, %v2520_v24  ;;  %v12027_v59 = vor.u32 %v15905_v4, %v12024_v52  ;;  %v11870_v24 = vld [vmem:[#allocation7 + $0xab0] sm:$0xf]  ;;  %v11846_v4 = vld [vmem:[#allocation7 + $0xa80] sm:$0xf]  ;;  %v15865_v52 = vld [vmem:[#allocation7 + $0xa94] sm:$0xf0] }
 0x44c   :  { %v2524_v60 = vmax.f32 %v2521_v55, 0.0  ;;  %v15871_v55 = vld [vmem:[#allocation7 + $0xac4] sm:$0xf0] }
 0x44d   :  { %3214 = vmatpush.bf16.msra.mxu3 %v11919_v19  ;;  %v11871_v46 = vor.u32 %v15871_v55, %v11870_v24  ;;  %v11902_v19 = vld [vmem:[#allocation7 + $0xae8] sm:$0xf]  ;;  %v15863_v24 = vld [vmem:[#allocation7 + $0xa8c] sm:$0xf] }
 0x44e   :  { %v2525_v57 = vmin.f32 %v2524_v60, 6.0  ;;  %v2496_v62 = vpop.f32.mrf.mxu3  ;;  %v11872_v60 = vld [vmem:[#allocation7 + $0xac8] sm:$0xf0] }
 0x44f   :  { %v17201_v30 = vadd.f32 %v2496_v62, %v17174_v0  ;;  %v11995_v0 = vor.u32 %v15898_v9, %v11992_v10  ;;  %v11875_v61 = vor.u32 %v15868_v5, %v11872_v60  ;;  %v11926_v9 = vld [vmem:[#allocation7 + $0xb18] sm:$0xf]  ;;  %v15884_v10 = vld [vmem:[#allocation7 + $0xb2c] sm:$0xf0]  ;;  %v11856_v5 = vld [vmem:[#allocation7 + $0xaa0] sm:$0xf0] }
 0x450   :  { %v2526_v14 = vpack.c.bf16 %v2525_v57, %v2525_v57  ;;  %v2485_v7 = vpop.f32.mrf.mxu1  ;;  %v11952_v57 = vld [vmem:[#allocation7 + $0xb60] sm:$0xf0]  ;;  %v15891_v60 = vld [vmem:[#allocation7 + $0xb64] sm:$0xf0] }
 0x451   :  { %v2522_v12 = vpop.f32.mrf.mxu0  ;;  %3215 = vmatpush.bf16.msra.mxu3 %v11895_v45  ;;  %v11955_v62 = vor.u32 %v15887_v2, %v11952_v57  ;;  %v11847_v7 = vor.u32 %v15865_v52, %v11846_v4  ;;  %v11982_v45 = vld [vmem:[#allocation7 + $0xb80] sm:$0xf]  ;;  %v11960_v2 = vld [vmem:[#allocation7 + $0xb68] sm:$0xf0]  ;;  %v15882_v4 = vld [vmem:[#allocation7 + $0xb24] sm:$0xf] }
 0x452   :  { %2824 = vmatmul.bf16.vlgmr.msra.gmra.mxu2 %v2526_v14  ;;  %2837 = vmatmul.bf16.vlgmr.msra.gmra.mxu0 %v2526_v14  ;;  %v11927_v12 = vor.u32 %v15884_v10, %v11926_v9  ;;  %v11983_v49 = vor.u32 %v15897_v47, %v11982_v45  ;;  %v11934_v57 = vld [vmem:[#allocation7 + $0xb20] sm:$0xf]  ;;  %v15879_v9 = vld [vmem:[#allocation7 + $0xb04] sm:$0xf0]  ;;  %v15876_v10 = vld [vmem:[#allocation7 + $0xaf4] sm:$0xf] }
 0x453   :  { %2850 = vmatmul.bf16.vlgmr.msra.gmra.mxu1 %v2526_v14  ;;  %2863 = vmatmul.bf16.vlgmr.msrb.gmra.mxu3 %v2526_v14 }
 0x454   :  { %3223 = vmatpush.bf16.msra.mxu1 %v12019_v8  ;;  %3236 = vmatpush.bf16.msra.mxu2 %v12023_v13  ;;  %v11848_v8 = vld [vmem:[#allocation7 + $0xa98] sm:$0xf0] }
 0x455   :  { %3249 = vmatpush.bf16.msra.mxu0 %v12027_v59  ;;  %3216 = vmatpush.bf16.msra.mxu3 %v11871_v46  ;;  %v15881_v13 = vld [vmem:[#allocation7 + $0xb1c] sm:$0xf]  ;;  %v11928_v59 = vld [vmem:[#allocation7 + $0xb30] sm:$0xf0]  ;;  %v11958_v46 = vld [vmem:[#allocation7 + $0xb50] sm:$0xf] }
 0x456   :  { %v2498_v56 = vpop.f32.mrf.mxu3  ;;  %v11931_v15 = vor.u32 %v15881_v13, %v11928_v59  ;;  %v11959_v63 = vor.u32 %v15891_v60, %v11958_v46  ;;  %v11886_v13 = vld [vmem:[#allocation7 + $0xac0] sm:$0xf]  ;;  %v15873_v59 = vld [vmem:[#allocation7 + $0xad4] sm:$0xf0] }
 0x457   :  { %v12006_v56 = vld [vmem:[#allocation7 + $0xbb0] sm:$0xf]  ;;  %v15937_v46 = vld [vmem:[#allocation7 + $0xcd4] sm:$0xf0] }
 0x458   :  { %3224 = vmatpush.bf16.msra.mxu1 %v11995_v0  ;;  %3237 = vmatpush.bf16.msra.mxu2 %v11999_v27  ;;  %v12035_v0 = vor.u32 %v15906_v44, %v12032_v17  ;;  %v11903_v27 = vor.u32 %v15878_v20, %v11902_v19  ;;  %v11862_v20 = vld [vmem:[#allocation7 + $0xa90] sm:$0xf] }
 0x459   :  { %3250 = vmatpush.bf16.msra.mxu0 %v12003_v29  ;;  %3217 = vmatpush.bf16.msra.mxu3 %v11847_v7  ;;  %v11904_v29 = vld [vmem:[#allocation7 + $0xb00] sm:$0xf0] }
 0x45a   :  { %v11907_v34 = vor.u32 %v15875_v23, %v11904_v29  ;;  %v15864_v29 = vld [vmem:[#allocation7 + $0xa94] sm:$0xf] }
 0x45c   :  { %3225 = vmatpush.bf16.msra.mxu1 %v11971_v33  ;;  %3238 = vmatpush.bf16.msra.mxu2 %v11975_v50  ;;  %v15903_v33 = vld [vmem:[#allocation7 + $0xbc4] sm:$0xf0]  ;;  %v11984_v50 = vld [vmem:[#allocation7 + $0xb98] sm:$0xf0] }
 0x45d   :  { %3251 = vmatpush.bf16.msra.mxu0 %v11979_v25  ;;  %3262 = vmatpush.bf16.msrb.mxu3 %v12031_v18  ;;  %v12007_v31 = vor.u32 %v15903_v33, %v12006_v56  ;;  %v15866_v25 = vld [vmem:[#allocation7 + $0xa9c] sm:$0xf0]  ;;  %v11864_v56 = vld [vmem:[#allocation7 + $0xaa8] sm:$0xf0] }
 0x45e   :  { %v11855_v55 = vor.u32 %v15866_v25, %v11854_v39 }
 0x460   :  { %3226 = vmatpush.bf16.msra.mxu1 %v11947_v35  ;;  %3239 = vmatpush.bf16.msra.mxu2 %v11951_v28  ;;  %v15900_v35 = vld [vmem:[#allocation7 + $0xbb4] sm:$0xf]  ;;  %v11963_v28 = vor.u32 %v15888_v1, %v11960_v2 }
 0x461   :  { %3252 = vmatpush.bf16.msra.mxu0 %v11955_v62  ;;  %v12011_v26 = vor.u32 %v15900_v35, %v12008_v36  ;;  %3263 = vmatpush.bf16.msrb.mxu3 %v12007_v31  ;;  %v15885_v62 = vld [vmem:[#allocation7 + $0xb34] sm:$0xf0] }
 0x462   :  { %2876 = vmatmul.bf16.vlgmr.msrb.gmra.mxu2 %v2526_v14  ;;  %2889 = vmatmul.bf16.vlgmr.msrb.gmra.mxu0 %v2526_v14  ;;  %v15862_v14 = vld [vmem:[#allocation7 + $0xa84] sm:$0xf]  ;;  %v11935_v52 = vor.u32 %v15885_v62, %v11934_v57 }
 0x463   :  { %11843 = vmatmul.msk.bf16.vlgmr.msrb.gmra.mxu1 %vm140_vm1, %v11842_v37  ;;  %v11851_v11 = vor.u32 %v15862_v14, %v11848_v8  ;;  %v11878_v37 = vld [vmem:[#allocation7 + $0xab8] sm:$0xf]  ;;  %v11936_v14 = vld [vmem:[#allocation7 + $0xb38] sm:$0xf0]  ;;  %v11910_v8 = vld [vmem:[#allocation7 + $0xaf0] sm:$0xf] }
 0x464   :  { %3227 = vmatpush.bf16.msra.mxu1 %v11923_v40  ;;  %3240 = vmatpush.bf16.msra.mxu2 %v11927_v12  ;;  %v15872_v40 = vld [vmem:[#allocation7 + $0xacc] sm:$0xf0]  ;;  %v11939_v7 = vor.u32 %v15882_v4, %v11936_v14  ;;  %v11912_v12 = vld [vmem:[#allocation7 + $0xb08] sm:$0xf0]  ;;  %v15946_v62 = vld [vmem:[#allocation7 + $0xd24] sm:$0xf] }
 0x465   :  { %3253 = vmatpush.bf16.msra.mxu0 %v11931_v15  ;;  %v11879_v38 = vor.u32 %v15872_v40, %v11878_v37  ;;  %3264 = vmatpush.bf16.msrb.mxu3 %v11983_v49  ;;  %v11915_v58 = vor.u32 %v15876_v10, %v11912_v12  ;;  %v15870_v15 = vld [vmem:[#allocation7 + $0xac4] sm:$0xf]  ;;  %v15955_v40 = vld [vmem:[#allocation7 + $0xd64] sm:$0xf0]  ;;  %v12160_v49 = vld [vmem:[#allocation7 + $0xcf0] sm:$0xf] }
 0x466   :  { %v11891_v19 = vor.u32 %v15870_v15, %v11888_v6  ;;  %v12186_v4 = vld [vmem:[#allocation7 + $0xd38] sm:$0xf0]  ;;  %v15940_v14 = vld [vmem:[#allocation7 + $0xcf4] sm:$0xf]  ;;  %v12036_v12 = vld [vmem:[%s17652_s0 + $0x8] sm:$0x1] }
 0x467   :  { %v12138_v10 = vld [vmem:[#allocation7 + $0xcd8] sm:$0xf0]  ;;  %v12218_v6 = vld [vmem:[#allocation7 + $0xd70] sm:$0xf0] }
 0x468   :  { %3228 = vmatpush.bf16.msra.mxu1 %v11899_v22  ;;  %3241 = vmatpush.bf16.msra.mxu2 %v11903_v27  ;;  %v15894_v22 = vld [vmem:[#allocation7 + $0xb84] sm:$0xf]  ;;  %v15867_v27 = vld [vmem:[#allocation7 + $0xaa4] sm:$0xf0] }
 0x469   :  { %3254 = vmatpush.bf16.msra.mxu0 %v11907_v34  ;;  %v11987_v51 = vor.u32 %v15894_v22, %v11984_v50  ;;  %3265 = vmatpush.bf16.msrb.mxu3 %v11959_v63  ;;  %v11863_v33 = vor.u32 %v15867_v27, %v11862_v20  ;;  %v11867_v34 = vor.u32 %v15864_v29, %v11864_v56  ;;  %v12114_v27 = vld [vmem:[#allocation7 + $0xca8] sm:$0xf0]  ;;  %v12192_v29 = vld [vmem:[#allocation7 + $0xd28] sm:$0xf]  ;;  %v15950_v56 = vld [vmem:[#allocation7 + $0xd3c] sm:$0xf0] }
 0x46c   :  { %3229 = vmatpush.bf16.msra.mxu1 %v11875_v61  ;;  %3242 = vmatpush.bf16.msra.mxu2 %v11879_v38  ;;  %v11859_v61 = vor.u32 %v15863_v24, %v11856_v5  ;;  %v12184_v38 = vld [vmem:[#allocation7 + $0xd20] sm:$0xf]  ;;  %v15952_v24 = vld [vmem:[#allocation7 + $0xd54] sm:$0xf] }
 0x46d   :  { %3255 = vmatpush.bf16.msra.mxu0 %v11883_v48  ;;  %3266 = vmatpush.bf16.msrb.mxu3 %v11935_v52  ;;  %v12185_v47 = vor.u32 %v15949_v54, %v12184_v38  ;;  %v12136_v5 = vld [vmem:[#allocation7 + $0xcc0] sm:$0xf]  ;;  %v12189_v52 = vor.u32 %v15946_v62, %v12186_v4  ;;  %v12090_v38 = vld [vmem:[#allocation7 + $0xc78] sm:$0xf0]  ;;  %v12168_v54 = vld [vmem:[#allocation7 + $0xcf8] sm:$0xf] }
 0x46e   :  { %v12042_v4 = vld [vmem:[#allocation7 + $0xc18] sm:$0xf0] }
 0x470   :  { %3230 = vmatpush.bf16.msra.mxu1 %v11851_v11  ;;  %3243 = vmatpush.bf16.msra.mxu2 %v11855_v55  ;;  %v11911_v11 = vor.u32 %v15879_v9, %v11910_v8  ;;  %v12210_v55 = vld [vmem:[#allocation7 + $0xd68] sm:$0xf0]  ;;  %v15934_v9 = vld [vmem:[#allocation7 + $0xcc4] sm:$0xf] }
 0x471   :  { %3256 = vmatpush.bf16.msra.mxu0 %v11859_v61 }
 0x472   :  { %3267 = vmatpush.bf16.msrb.mxu3 %v11911_v11  ;;  %v12141_v11 = vor.u32 %v15934_v9, %v12138_v10  ;;  %v12122_v9 = vld [vmem:[#allocation7 + $0xcb0] sm:$0xf0]  ;;  %v12224_v10 = vld [vmem:[#allocation7 + $0xd60] sm:$0xf] }
 0x474   :  { %3275 = vmatpush.bf16.msrb.mxu1 %v12035_v0  ;;  %3306 = vmatpush.bf16.msrb.mxu2 %v17045_v3  ;;  %v11887_v0 = vor.u32 %v15873_v59, %v11886_v13  ;;  %v12216_v13 = vld [vmem:[#allocation7 + $0xd58] sm:$0xf]  ;;  %v15956_v59 = vld [vmem:[#allocation7 + $0xd6c] sm:$0xf0] }
 0x475   :  { %v12217_v15 = vor.u32 %v15956_v59, %v12216_v13  ;;  %v15954_v13 = vld [vmem:[#allocation7 + $0xd64] sm:$0xf]  ;;  %v12226_v59 = vld [vmem:[#allocation7 + $0xd78] sm:$0xf0] }
 0x476   :  { %3268 = vmatpush.bf16.msrb.mxu3 %v11887_v0  ;;  %v15931_v0 = vld [vmem:[#allocation7 + $0xca4] sm:$0xf0] }
 0x478   :  { %3276 = vmatpush.bf16.msrb.mxu1 %v12011_v26 }
 0x47a   :  { %3269 = vmatpush.bf16.msrb.mxu3 %v11863_v33 }
 0x47c   :  { %3277 = vmatpush.bf16.msrb.mxu1 %v11987_v51 }
 0x480   :  { %3278 = vmatpush.bf16.msrb.mxu1 %v11963_v28  ;;  %v12137_v28 = vor.u32 %v15937_v46, %v12136_v5  ;;  %v15938_v5 = vld [vmem:[#allocation7 + $0xcdc] sm:$0xf0] }
 0x484   :  { %3279 = vmatpush.bf16.msrb.mxu1 %v11939_v7  ;;  %v12162_v7 = vld [vmem:[#allocation7 + $0xd08] sm:$0xf0] }
 0x488   :  { %3280 = vmatpush.bf16.msrb.mxu1 %v11915_v58  ;;  %v15953_v58 = vld [vmem:[#allocation7 + $0xd5c] sm:$0xf] }
 0x48c   :  { %3281 = vmatpush.bf16.msrb.mxu1 %v11891_v19  ;;  %v15928_v19 = vld [vmem:[#allocation7 + $0xc94] sm:$0xf] }
 0x48d   :  { %v12117_v33 = vor.u32 %v15928_v19, %v12114_v27  ;;  %v12098_v19 = vld [vmem:[#allocation7 + $0xc80] sm:$0xf0]  ;;  %v15951_v27 = vld [vmem:[#allocation7 + $0xd44] sm:$0xf0] }
 0x490   :  { %3282 = vmatpush.bf16.msrb.mxu1 %v11867_v34  ;;  %v12193_v34 = vor.u32 %v15950_v56, %v12192_v29 }
 0x4cf   :  { %v2838_v44 = vpop.f32.mrf.mxu0 }
 0x4d0   :  { %v17209_v17 = vadd.f32 %v2838_v44, %v17189_v16  ;;  %v2851_v18 = vpop.f32.mrf.mxu1  ;;  %v12221_v44 = vor.u32 %v15953_v58, %v12218_v6  ;;  %v12096_v6 = vld [vmem:[#allocation7 + $0xc68] sm:$0xf] }
 0x4d1   :  { %v17212_v23 = vadd.f32 %v2851_v18, %v17186_v32  ;;  %v12208_v32 = vld [vmem:[#allocation7 + $0xd50] sm:$0xf] }
 0x4d2   :  { %v12209_v41 = vor.u32 %v15955_v40, %v12208_v32  ;;  %v12112_v18 = vld [vmem:[#allocation7 + $0xc90] sm:$0xf]  ;;  %v15925_v32 = vld [vmem:[#allocation7 + $0xc74] sm:$0xf0]  ;;  %v15922_v40 = vld [vmem:[#allocation7 + $0xc64] sm:$0xf] }
 0x4d3   :  { %v12113_v20 = vor.u32 %v15931_v0, %v12112_v18  ;;  %v15923_v18 = vld [vmem:[#allocation7 + $0xc6c] sm:$0xf] }
 0x4d4   :  { %3604 = vmatpush.bf16.msrb.mxu0 %v12209_v41  ;;  %v12101_v29 = vor.u32 %v15923_v18, %v12098_v19 }
 0x4d5   :  { %v2825_v31 = vpop.f32.mrf.mxu2 }
 0x4d6   :  { %v17215_v16 = vadd.f32 %v2825_v31, %v17183_v21  ;;  %v2864_v35 = vpop.f32.mrf.mxu3  ;;  %v15943_v21 = vld [vmem:[#allocation7 + $0xd04] sm:$0xf0]  ;;  %v15947_v31 = vld [vmem:[#allocation7 + $0xd2c] sm:$0xf] }
 0x4d7   :  { %v17218_v36 = vadd.f32 %v2864_v35, %v17192_v43  ;;  %v2840_v26 = vpop.f32.mrf.mxu0  ;;  %v12161_v39 = vor.u32 %v15943_v21, %v12160_v49  ;;  %v12194_v35 = vld [vmem:[#allocation7 + $0xd40] sm:$0xf0]  ;;  %v15941_v49 = vld [vmem:[#allocation7 + $0xcfc] sm:$0xf]  ;;  %v12170_v21 = vld [vmem:[#allocation7 + $0xd10] sm:$0xf0] }
 0x4d8   :  { %v2853_v37 = vpop.f32.mrf.mxu1  ;;  %3605 = vmatpush.bf16.msrb.mxu0 %v12185_v47  ;;  %v12197_v26 = vor.u32 %v15947_v31, %v12194_v35  ;;  %v12093_v47 = vor.u32 %v15922_v40, %v12090_v38  ;;  %v12072_v35 = vld [vmem:[#allocation7 + $0xc38] sm:$0xf]  ;;  %v12074_v40 = vld [vmem:[#allocation7 + $0xc50] sm:$0xf0] }
 0x4d9   :  { %v12088_v37 = vld [vmem:[#allocation7 + $0xc60] sm:$0xf]  ;;  %v15945_v38 = vld [vmem:[#allocation7 + $0xd14] sm:$0xf0] }
 0x4da   :  { %v12089_v41 = vor.u32 %v15925_v32, %v12088_v37  ;;  %v15917_v37 = vld [vmem:[#allocation7 + $0xc3c] sm:$0xf] }
 0x4dc   :  { %3606 = vmatpush.bf16.msrb.mxu0 %v12161_v39  ;;  %v15916_v39 = vld [vmem:[#allocation7 + $0xc34] sm:$0xf] }
 0x4dd   :  { %v2827_v45 = vpop.f32.mrf.mxu2 }
 0x4de   :  { %v2866_v48 = vpop.f32.mrf.mxu3  ;;  %v15944_v45 = vld [vmem:[#allocation7 + $0xd0c] sm:$0xf0] }
 0x4df   :  { %v2890_v22 = vpop.f32.mrf.mxu0  ;;  %v12169_v48 = vor.u32 %v15944_v45, %v12168_v54  ;;  %v12077_v54 = vor.u32 %v15917_v37, %v12074_v40 }
 0x4e0   :  { %v17221_v50 = vadd.f32 %v2890_v22, %v17201_v30  ;;  %v2914_v43 = vpop.f32.mrf.mxu1  ;;  %v12213_v30 = vor.u32 %v15952_v24, %v12210_v55  ;;  %3607 = vmatpush.bf16.msrb.mxu0 %v12137_v28  ;;  %v12173_v22 = vor.u32 %v15941_v49, %v12170_v21  ;;  %v12066_v24 = vld [vmem:[#allocation7 + $0xc48] sm:$0xf0]  ;;  %v12144_v55 = vld [vmem:[#allocation7 + $0xcc8] sm:$0xf]  ;;  %v15913_v28 = vld [vmem:[#allocation7 + $0xc14] sm:$0xf0] }
 0x4e1   :  { %v2915_v51 = vadd.f32 %v17197_v53, %v2914_v43  ;;  %v12064_v43 = vld [vmem:[#allocation7 + $0xc30] sm:$0xf]  ;;  %v12069_v46 = vor.u32 %v15916_v39, %v12066_v24  ;;  %v12048_v21 = vld [vmem:[#allocation7 + $0xc08] sm:$0xf]  ;;  %v12050_v39 = vld [vmem:[#allocation7 + $0xc20] sm:$0xf0] }
 0x4e2   :  { %v15939_v24 = vld [vmem:[#allocation7 + $0xce4] sm:$0xf0] }
 0x4e3   :  { %v2918_v25 = vmax.f32 %v2915_v51, 0.0  ;;  %v15919_v51 = vld [vmem:[#allocation7 + $0xc44] sm:$0xf0] }
 0x4e4   :  { %3608 = vmatpush.bf16.msrb.mxu0 %v12113_v20  ;;  %v12200_v20 = vld [vmem:[#allocation7 + $0xd30] sm:$0xf] }
 0x4e5   :  { %v2919_v60 = vmin.f32 %v2918_v25, 6.0  ;;  %v2877_v61 = vpop.f32.mrf.mxu2  ;;  %v12065_v25 = vor.u32 %v15919_v51, %v12064_v43  ;;  %v12201_v56 = vor.u32 %v15951_v27, %v12200_v20  ;;  %v15911_v43 = vld [vmem:[#allocation7 + $0xc0c] sm:$0xf]  ;;  %v15915_v27 = vld [vmem:[#allocation7 + $0xc24] sm:$0xf0] }
 0x4e6   :  { %v17225_v63 = vadd.f32 %v2877_v61, %v17195_v42  ;;  %v12165_v42 = vor.u32 %v15940_v14, %v12162_v7  ;;  %v15935_v61 = vld [vmem:[#allocation7 + $0xccc] sm:$0xf]  ;;  %v15932_v14 = vld [vmem:[#allocation7 + $0xcac] sm:$0xf0] }
 0x4e7   :  { %v2920_v1 = vpack.c.bf16 %v2919_v60, %v2919_v60  ;;  %v2892_v2 = vpop.f32.mrf.mxu0  ;;  %v12145_v60 = vor.u32 %v15938_v5, %v12144_v55  ;;  %v12053_v55 = vor.u32 %v15911_v43, %v12050_v39  ;;  %v16000_v39 = vld [vmem:[#allocation7 + $0xed4] sm:$0xf] }
 0x4e8   :  { %v2916_v57 = vpop.f32.mrf.mxu1  ;;  %3609 = vmatpush.bf16.msrb.mxu0 %v12089_v41  ;;  %v12176_v41 = vld [vmem:[#allocation7 + $0xd00] sm:$0xf] }
 0x4e9   :  { %3218 = vmatmul.bf16.vlgmr.msra.gmra.mxu3 %v2920_v1  ;;  %3231 = vmatmul.bf16.vlgmr.msra.gmra.mxu1 %v2920_v1  ;;  %v15910_v57 = vld [vmem:[#allocation7 + $0xc04] sm:$0xf]  ;;  %v12177_v45 = vor.u32 %v15945_v38, %v12176_v41  ;;  %v12378_v41 = vld [vmem:[#allocation7 + $0xea0] sm:$0xf]  ;;  %v15997_v38 = vld [vmem:[#allocation7 + $0xeb4] sm:$0xf0] }
 0x4ea   :  { %3244 = vmatmul.bf16.vlgmr.msra.gmra.mxu2 %v2920_v1  ;;  %3257 = vmatmul.bf16.vlgmr.msra.gmra.mxu0 %v2920_v1  ;;  %v12045_v7 = vor.u32 %v15910_v57, %v12042_v4 }
 0x4eb   :  { %3617 = vmatpush.bf16.msra.mxu2 %v12213_v30  ;;  %3630 = vmatpush.bf16.msra.mxu3 %v12217_v15  ;;  %v12040_v30 = vld [vmem:[#allocation7 + $0xc00] sm:$0xf]  ;;  %v12229_v15 = vor.u32 %v15954_v13, %v12226_v59  ;;  %v15921_v59 = vld [vmem:[#allocation7 + $0xc54] sm:$0xf0] }
 0x4ec   :  { %3643 = vmatpush.bf16.msra.mxu1 %v12221_v44  ;;  %3610 = vmatpush.bf16.msrb.mxu0 %v12065_v25  ;;  %v12041_v62 = vor.u32 %v15913_v28, %v12040_v30  ;;  %v15926_v44 = vld [vmem:[#allocation7 + $0xc7c] sm:$0xf0]  ;;  %v12152_v25 = vld [vmem:[#allocation7 + $0xcd0] sm:$0xf]  ;;  %v15930_v30 = vld [vmem:[#allocation7 + $0xca4] sm:$0xf] }
 0x4ed   :  { %v2879_v8 = vpop.f32.mrf.mxu2  ;;  %v12097_v0 = vor.u32 %v15926_v44, %v12096_v6  ;;  %v12153_v5 = vor.u32 %v15939_v24, %v12152_v25  ;;  %v12080_v13 = vld [vmem:[#allocation7 + $0xc40] sm:$0xf]  ;;  %v12404_v25 = vld [vmem:[#allocation7 + $0xee8] sm:$0xf0] }
 0x4ee   :  { %v12081_v18 = vor.u32 %v15921_v59, %v12080_v13  ;;  %v12330_v24 = vld [vmem:[#allocation7 + $0xe40] sm:$0xf]  ;;  %v12412_v13 = vld [vmem:[#allocation7 + $0xef0] sm:$0xf0] }
 0x4ef   :  { %3618 = vmatpush.bf16.msra.mxu2 %v12189_v52  ;;  %3631 = vmatpush.bf16.msra.mxu3 %v12193_v34  ;;  %v12120_v52 = vld [vmem:[#allocation7 + $0xc98] sm:$0xf]  ;;  %v12202_v34 = vld [vmem:[#allocation7 + $0xd48] sm:$0xf0] }
 0x4f0   :  { %3644 = vmatpush.bf16.msra.mxu1 %v12197_v26  ;;  %v12121_v8 = vor.u32 %v15932_v14, %v12120_v52  ;;  %3611 = vmatpush.bf16.msrb.mxu0 %v12041_v62  ;;  %v15920_v26 = vld [vmem:[#allocation7 + $0xc4c] sm:$0xf0]  ;;  %v12130_v62 = vld [vmem:[#allocation7 + $0xcb8] sm:$0xf0] }
 0x4f1   :  { %v12073_v32 = vor.u32 %v15920_v26, %v12072_v35  ;;  %v12133_v14 = vor.u32 %v15930_v30, %v12130_v62  ;;  %v12380_v30 = vld [vmem:[#allocation7 + $0xeb8] sm:$0xf0] }
 0x4f3   :  { %3619 = vmatpush.bf16.msra.mxu2 %v12165_v42  ;;  %3632 = vmatpush.bf16.msra.mxu3 %v12169_v48  ;;  %v15929_v42 = vld [vmem:[#allocation7 + $0xc9c] sm:$0xf] }
 0x4f4   :  { %3645 = vmatpush.bf16.msra.mxu1 %v12173_v22  ;;  %v12178_v48 = vld [vmem:[#allocation7 + $0xd18] sm:$0xf0]  ;;  %v15914_v22 = vld [vmem:[#allocation7 + $0xc1c] sm:$0xf0] }
 0x4f5   :  { %v12049_v51 = vor.u32 %v15914_v22, %v12048_v21 }
 0x4f7   :  { %3620 = vmatpush.bf16.msra.mxu2 %v12141_v11  ;;  %3633 = vmatpush.bf16.msra.mxu3 %v12145_v60  ;;  %v12125_v11 = vor.u32 %v15929_v42, %v12122_v9  ;;  %v12154_v60 = vld [vmem:[#allocation7 + $0xce8] sm:$0xf0]  ;;  %v15924_v42 = vld [vmem:[#allocation7 + $0xc74] sm:$0xf] }
 0x4f9   :  { %3270 = vmatmul.bf16.vlgmr.msrb.gmra.mxu3 %v2920_v1  ;;  %3283 = vmatmul.bf16.vlgmr.msrb.gmra.mxu1 %v2920_v1  ;;  %v12146_v1 = vld [vmem:[#allocation7 + $0xce0] sm:$0xf0] }
 0x4fa   :  { %12037 = vmatmul.msk.bf16.vlgmr.msrb.gmra.mxu2 %vm140_vm1, %v12036_v12  ;;  %v12149_v2 = vor.u32 %v15935_v61, %v12146_v1  ;;  %v15957_v12 = vld [vmem:[#allocation7 + $0xd74] sm:$0xf0]  ;;  %v12128_v1 = vld [vmem:[#allocation7 + $0xca0] sm:$0xf] }
 0x4fb   :  { %3621 = vmatpush.bf16.msra.mxu2 %v12117_v33  ;;  %3634 = vmatpush.bf16.msra.mxu3 %v12121_v8  ;;  %v12225_v58 = vor.u32 %v15957_v12, %v12224_v10  ;;  %v15948_v33 = vld [vmem:[#allocation7 + $0xd34] sm:$0xf]  ;;  %v15927_v8 = vld [vmem:[#allocation7 + $0xc84] sm:$0xf0]  ;;  %v12106_v10 = vld [vmem:[#allocation7 + $0xc88] sm:$0xf0] }
 0x4fc   :  { %3646 = vmatpush.bf16.msra.mxu1 %v12149_v2  ;;  %v12205_v31 = vor.u32 %v15948_v33, %v12202_v34  ;;  %v15933_v2 = vld [vmem:[#allocation7 + $0xcb4] sm:$0xf0]  ;;  %v12109_v12 = vor.u32 %v15924_v42, %v12106_v10  ;;  %v16004_v10 = vld [vmem:[#allocation7 + $0xeec] sm:$0xf0] }
 0x4fd   :  { %3656 = vmatpush.bf16.msra.mxu0 %v12225_v58  ;;  %v12129_v57 = vor.u32 %v15933_v2, %v12128_v1  ;;  %v15918_v58 = vld [vmem:[#allocation7 + $0xc44] sm:$0xf]  ;;  %v12410_v42 = vld [vmem:[#allocation7 + $0xed8] sm:$0xf] }
 0x4ff   :  { %3622 = vmatpush.bf16.msra.mxu2 %v12093_v47  ;;  %3635 = vmatpush.bf16.msra.mxu3 %v12097_v0  ;;  %v15942_v47 = vld [vmem:[#allocation7 + $0xd04] sm:$0xf] }
 0x500   :  { %3647 = vmatpush.bf16.msra.mxu1 %v12125_v11  ;;  %v12181_v49 = vor.u32 %v15942_v47, %v12178_v48  ;;  %v15991_v47 = vld [vmem:[#allocation7 + $0xe84] sm:$0xf0] }
 0x501   :  { %3657 = vmatpush.bf16.msra.mxu0 %v12201_v56  ;;  %v12058_v56 = vld [vmem:[#allocation7 + $0xc28] sm:$0xf0] }
 0x503   :  { %3623 = vmatpush.bf16.msra.mxu2 %v12069_v46  ;;  %3636 = vmatpush.bf16.msra.mxu3 %v12073_v32  ;;  %v15936_v46 = vld [vmem:[#allocation7 + $0xcd4] sm:$0xf]  ;;  %v12402_v32 = vld [vmem:[#allocation7 + $0xed0] sm:$0xf] }
 0x504   :  { %3648 = vmatpush.bf16.msra.mxu1 %v12101_v29  ;;  %v12157_v61 = vor.u32 %v15936_v46, %v12154_v60  ;;  %v15912_v29 = vld [vmem:[#allocation7 + $0xc14] sm:$0xf] }
 0x505   :  { %3658 = vmatpush.bf16.msra.mxu0 %v12177_v45  ;;  %v12354_v45 = vld [vmem:[#allocation7 + $0xe70] sm:$0xf] }
 0x507   :  { %3624 = vmatpush.bf16.msra.mxu2 %v12045_v7  ;;  %3637 = vmatpush.bf16.msra.mxu3 %v12049_v51  ;;  %v12104_v7 = vld [vmem:[#allocation7 + $0xc70] sm:$0xf] }
 0x508   :  { %3649 = vmatpush.bf16.msra.mxu1 %v12077_v54  ;;  %v12105_v11 = vor.u32 %v15927_v8, %v12104_v7  ;;  %v12379_v54 = vor.u32 %v15997_v38, %v12378_v41  ;;  %v12230_v8 = vld [vmem:[%s17652_s0 + $0x9] sm:$0x1]  ;;  %v15989_v38 = vld [vmem:[#allocation7 + $0xe7c] sm:$0xf] }
 0x509   :  { %3659 = vmatpush.bf16.msra.mxu0 %v12153_v5 }
 0x50b   :  { %3669 = vmatpush.bf16.msrb.mxu2 %v12229_v15  ;;  %3700 = vmatpush.bf16.msrb.mxu3 %v17045_v3  ;;  %v12082_v15 = vld [vmem:[#allocation7 + $0xc58] sm:$0xf0] }
 0x50c   :  { %3650 = vmatpush.bf16.msra.mxu1 %v12053_v55  ;;  %v12085_v0 = vor.u32 %v15918_v58, %v12082_v15  ;;  %v15985_v55 = vld [vmem:[#allocation7 + $0xe54] sm:$0xf0]  ;;  %v12306_v58 = vld [vmem:[#allocation7 + $0xe10] sm:$0xf]  ;;  %v15979_v15 = vld [vmem:[#allocation7 + $0xe24] sm:$0xf0] }
 0x50d   :  { %3660 = vmatpush.bf16.msra.mxu0 %v12129_v57  ;;  %v12331_v1 = vor.u32 %v15985_v55, %v12330_v24  ;;  %v12356_v57 = vld [vmem:[#allocation7 + $0xe88] sm:$0xf0]  ;;  %v12340_v55 = vld [vmem:[#allocation7 + $0xe60] sm:$0xf0] }
 0x50e   :  { %v15983_v24 = vld [vmem:[#allocation7 + $0xe4c] sm:$0xf] }
 0x50f   :  { %3670 = vmatpush.bf16.msrb.mxu2 %v12205_v31  ;;  %v12061_v31 = vor.u32 %v15912_v29, %v12058_v56  ;;  %v15995_v29 = vld [vmem:[#allocation7 + $0xeac] sm:$0xf]  ;;  %v12388_v56 = vld [vmem:[#allocation7 + $0xec0] sm:$0xf0] }
 0x511   :  { %3661 = vmatpush.bf16.msra.mxu0 %v12105_v11  ;;  %v16001_v11 = vld [vmem:[#allocation7 + $0xedc] sm:$0xf] }
 0x512   :  { %v12415_v59 = vor.u32 %v16001_v11, %v12412_v13  ;;  %v15974_v13 = vld [vmem:[#allocation7 + $0xdfc] sm:$0xf0] }
 0x513   :  { %3671 = vmatpush.bf16.msrb.mxu2 %v12181_v49 }
 0x515   :  { %3662 = vmatpush.bf16.msra.mxu0 %v12081_v18  ;;  %v12308_v18 = vld [vmem:[#allocation7 + $0xe28] sm:$0xf0] }
 0x517   :  { %3672 = vmatpush.bf16.msrb.mxu2 %v12157_v61  ;;  %v12407_v61 = vor.u32 %v16000_v39, %v12404_v25 }
 0x51b   :  { %3673 = vmatpush.bf16.msrb.mxu2 %v12133_v14  ;;  %v12332_v14 = vld [vmem:[#allocation7 + $0xe58] sm:$0xf0] }
 0x51f   :  { %3674 = vmatpush.bf16.msrb.mxu2 %v12109_v12  ;;  %v12411_v12 = vor.u32 %v16004_v10, %v12410_v42  ;;  %v12420_v42 = vld [vmem:[#allocation7 + $0xef8] sm:$0xf0] }
 0x523   :  { %3675 = vmatpush.bf16.msrb.mxu2 %v12085_v0  ;;  %v12386_v0 = vld [vmem:[#allocation7 + $0xea8] sm:$0xf] }
 0x527   :  { %3676 = vmatpush.bf16.msrb.mxu2 %v12061_v31  ;;  %v15973_v31 = vld [vmem:[#allocation7 + $0xdf4] sm:$0xf0] }
 0x566   :  { %v3232_v28 = vpop.f32.mrf.mxu1 }
 0x567   :  { %v17233_v4 = vadd.f32 %v3232_v28, %v17209_v17  ;;  %v3258_v52 = vpop.f32.mrf.mxu0  ;;  %v15988_v28 = vld [vmem:[#allocation7 + $0xe74] sm:$0xf] }
 0x568   :  { %v17236_v9 = vadd.f32 %v3258_v52, %v17218_v36  ;;  %v12056_v36 = vld [vmem:[#allocation7 + $0xc10] sm:$0xf]  ;;  %v12359_v62 = vor.u32 %v15988_v28, %v12356_v57  ;;  %v15982_v52 = vld [vmem:[#allocation7 + $0xe44] sm:$0xf]  ;;  %v15977_v57 = vld [vmem:[#allocation7 + $0xe1c] sm:$0xf] }
 0x569   :  { %v12057_v34 = vor.u32 %v15915_v27, %v12056_v36  ;;  %v12335_v7 = vor.u32 %v15982_v52, %v12332_v14  ;;  %v15998_v36 = vld [vmem:[#allocation7 + $0xebc] sm:$0xf0] }
 0x56a   :  { %v12387_v27 = vor.u32 %v15998_v36, %v12386_v0  ;;  %v12418_v52 = vld [vmem:[#allocation7 + $0xee0] sm:$0xf]  ;;  %v15996_v36 = vld [vmem:[#allocation7 + $0xeb4] sm:$0xf] }
 0x56b   :  { %3663 = vmatpush.bf16.msra.mxu0 %v12057_v34  ;;  %v12282_v34 = vld [vmem:[#allocation7 + $0xde0] sm:$0xf] }
 0x56c   :  { %v3219_v6 = vpop.f32.mrf.mxu3 }
 0x56d   :  { %v17239_v17 = vadd.f32 %v3219_v6, %v17215_v16  ;;  %v3245_v44 = vpop.f32.mrf.mxu2  ;;  %v15976_v6 = vld [vmem:[#allocation7 + $0xe14] sm:$0xf] }
 0x56e   :  { %v17242_v19 = vadd.f32 %v3245_v44, %v17212_v23  ;;  %v3234_v20 = vpop.f32.mrf.mxu1  ;;  %v16003_v23 = vld [vmem:[#allocation7 + $0xee4] sm:$0xf0]  ;;  %v12307_v44 = vor.u32 %v15979_v15, %v12306_v58  ;;  %v12292_v15 = vld [vmem:[#allocation7 + $0xe00] sm:$0xf0] }
 0x56f   :  { %v3260_v33 = vpop.f32.mrf.mxu0  ;;  %v12403_v40 = vor.u32 %v16003_v23, %v12402_v32  ;;  %v12311_v20 = vor.u32 %v15976_v6, %v12308_v18  ;;  %v12362_v32 = vld [vmem:[#allocation7 + $0xe78] sm:$0xf]  ;;  %v15992_v23 = vld [vmem:[#allocation7 + $0xe8c] sm:$0xf0] }
 0x570   :  { %v12391_v33 = vor.u32 %v15995_v29, %v12388_v56  ;;  %v12363_v41 = vor.u32 %v15992_v23, %v12362_v32  ;;  %v12394_v6 = vld [vmem:[#allocation7 + $0xeb0] sm:$0xf]  ;;  %v12266_v29 = vld [vmem:[#allocation7 + $0xdb8] sm:$0xf]  ;;  %v15990_v23 = vld [vmem:[#allocation7 + $0xe84] sm:$0xf] }
 0x571   :  { %3998 = vmatpush.bf16.msrb.mxu1 %v12403_v40  ;;  %v15968_v56 = vld [vmem:[#allocation7 + $0xdcc] sm:$0xf0] }
 0x574   :  { %v3221_v16 = vpop.f32.mrf.mxu3 }
 0x575   :  { %v3247_v35 = vpop.f32.mrf.mxu2  ;;  %3999 = vmatpush.bf16.msrb.mxu1 %v12379_v54  ;;  %v15970_v16 = vld [vmem:[#allocation7 + $0xde4] sm:$0xf]  ;;  %v12364_v54 = vld [vmem:[#allocation7 + $0xe90] sm:$0xf0] }
 0x576   :  { %v3284_v26 = vpop.f32.mrf.mxu1  ;;  %v12283_v35 = vor.u32 %v15973_v31, %v12282_v34  ;;  %v12267_v34 = vor.u32 %v15968_v56, %v12266_v29  ;;  %v12268_v31 = vld [vmem:[#allocation7 + $0xdd0] sm:$0xf0] }
 0x577   :  { %v17245_v37 = vadd.f32 %v3284_v26, %v17221_v50  ;;  %v12355_v50 = vor.u32 %v15991_v47, %v12354_v45  ;;  %v12284_v26 = vld [vmem:[#allocation7 + $0xdf8] sm:$0xf0]  ;;  %v12367_v45 = vor.u32 %v15989_v38, %v12364_v54  ;;  %v12258_v47 = vld [vmem:[#allocation7 + $0xdb0] sm:$0xf]  ;;  %v12242_v38 = vld [vmem:[#allocation7 + $0xd88] sm:$0xf] }
 0x578   :  { %v12287_v40 = vor.u32 %v15970_v16, %v12284_v26  ;;  %v12370_v16 = vld [vmem:[#allocation7 + $0xe80] sm:$0xf] }
 0x579   :  { %4000 = vmatpush.bf16.msrb.mxu1 %v12355_v50  ;;  %v12338_v50 = vld [vmem:[#allocation7 + $0xe48] sm:$0xf]  ;;  %v15962_v54 = vld [vmem:[#allocation7 + $0xd9c] sm:$0xf0] }
 0x57c   :  { %v3271_v48 = vpop.f32.mrf.mxu3 }
 0x57d   :  { %v17248_v49 = vadd.f32 %v3271_v48, %v17225_v63  ;;  %v3308_v21 = vpop.f32.mrf.mxu2  ;;  %v15994_v63 = vld [vmem:[#allocation7 + $0xea4] sm:$0xf]  ;;  %4001 = vmatpush.bf16.msrb.mxu1 %v12331_v1  ;;  %v15967_v48 = vld [vmem:[#allocation7 + $0xdc4] sm:$0xf0] }
 0x57e   :  { %v3309_v22 = vadd.f32 %v17197_v53, %v3308_v21  ;;  %v3286_v43 = vpop.f32.mrf.mxu1  ;;  %v12383_v53 = vor.u32 %v15994_v63, %v12380_v30  ;;  %v15964_v21 = vld [vmem:[#allocation7 + $0xdb4] sm:$0xf]  ;;  %v12314_v63 = vld [vmem:[#allocation7 + $0xe18] sm:$0xf]  ;;  %v15980_v30 = vld [vmem:[#allocation7 + $0xe2c] sm:$0xf0] }
 0x57f   :  { %v12260_v43 = vld [vmem:[#allocation7 + $0xdc8] sm:$0xf0]  ;;  %v12315_v28 = vor.u32 %v15980_v30, %v12314_v63  ;;  %v12298_v30 = vld [vmem:[#allocation7 + $0xdf0] sm:$0xf] }
 0x580   :  { %v3312_v51 = vmax.f32 %v3309_v22, 0.0  ;;  %v12259_v22 = vor.u32 %v15967_v48, %v12258_v47  ;;  %v12263_v39 = vor.u32 %v15964_v21, %v12260_v43  ;;  %v12243_v47 = vor.u32 %v15962_v54, %v12242_v38  ;;  %v12244_v48 = vld [vmem:[#allocation7 + $0xda0] sm:$0xf0]  ;;  %v12346_v21 = vld [vmem:[#allocation7 + $0xe50] sm:$0xf] }
 0x581   :  { %4002 = vmatpush.bf16.msrb.mxu1 %v12307_v44  ;;  %v15999_v44 = vld [vmem:[#allocation7 + $0xec4] sm:$0xf0]  ;;  %v17274_v38 = vld [vmem:[#allocation5] ss:$0 sm:$0xff] }
 0x582   :  { %v3313_v5 = vmin.f32 %v3312_v51, 6.0  ;;  %v15986_v51 = vld [vmem:[#allocation7 + $0xe5c] sm:$0xf0]  ;;  %v12395_v0 = vor.u32 %v15999_v44, %v12394_v6  ;;  %v15963_v6 = vld [vmem:[#allocation7 + $0xda4] sm:$0xf0] }
 0x583   :  { %v12339_v25 = vor.u32 %v15986_v51, %v12338_v50  ;;  %v15984_v51 = vld [vmem:[#allocation7 + $0xe54] sm:$0xf] }
 0x584   :  { %v3314_v46 = vpack.c.bf16 %v3313_v5, %v3313_v5  ;;  %v3273_v60 = vpop.f32.mrf.mxu3  ;;  %v12343_v5 = vor.u32 %v15983_v24, %v12340_v55  ;;  %v12322_v24 = vld [vmem:[#allocation7 + $0xe20] sm:$0xf]  ;;  %v15981_v55 = vld [vmem:[#allocation7 + $0xe34] sm:$0xf0]  ;;  %v15960_v44 = vld [vmem:[#allocation7 + $0xd94] sm:$0xf] }
 0x585   :  { %v3310_v2 = vpop.f32.mrf.mxu2  ;;  %4003 = vmatpush.bf16.msrb.mxu1 %v12283_v35  ;;  %v15961_v60 = vld [vmem:[#allocation7 + $0xd94] sm:$0xf0] }
 0x586   :  { %3612 = vmatmul.bf16.vlgmr.msrb.gmra.mxu0 %v3314_v46  ;;  %3625 = vmatmul.bf16.vlgmr.msra.gmra.mxu2 %v3314_v46  ;;  %v12236_v2 = vld [vmem:[#allocation7 + $0xd98] sm:$0xf0]  ;;  %v15993_v35 = vld [vmem:[#allocation7 + $0xe94] sm:$0xf0] }
 0x587   :  { %3638 = vmatmul.bf16.vlgmr.msra.gmra.mxu3 %v3314_v46  ;;  %3651 = vmatmul.bf16.vlgmr.msra.gmra.mxu1 %v3314_v46  ;;  %v12371_v32 = vor.u32 %v15993_v35, %v12370_v16  ;;  %v16045_v16 = vld [vmem:[#allocation7 + $0x1034] sm:$0xf0] }
 0x588   :  { %4011 = vmatpush.bf16.msra.mxu3 %v12407_v61  ;;  %4024 = vmatpush.bf16.msrb.mxu0 %v12411_v12  ;;  %v15958_v61 = vld [vmem:[#allocation7 + $0xd84] sm:$0xf]  ;;  %v12290_v12 = vld [vmem:[#allocation7 + $0xde8] sm:$0xf] }
 0x589   :  { %4037 = vmatpush.bf16.msra.mxu2 %v12415_v59  ;;  %4004 = vmatpush.bf16.msrb.mxu1 %v12259_v22  ;;  %v15971_v59 = vld [vmem:[#allocation7 + $0xdec] sm:$0xf]  ;;  %v12291_v58 = vor.u32 %v15974_v13, %v12290_v12  ;;  %v15987_v22 = vld [vmem:[#allocation7 + $0xe64] sm:$0xf0] }
 0x58a   :  { %v12295_v18 = vor.u32 %v15971_v59, %v12292_v15  ;;  %v12347_v50 = vor.u32 %v15987_v22, %v12346_v21  ;;  %v12598_v21 = vld [vmem:[#allocation7 + $0x1068] sm:$0xf0]  ;;  %v12524_v22 = vld [vmem:[#allocation7 + $0xfc0] sm:$0xf] }
 0x58c   :  { %4012 = vmatpush.bf16.msra.mxu3 %v12383_v53  ;;  %4025 = vmatpush.bf16.msrb.mxu0 %v12387_v27  ;;  %v12239_v53 = vor.u32 %v15958_v61, %v12236_v2  ;;  %v12324_v61 = vld [vmem:[#allocation7 + $0xe38] sm:$0xf0] }
 0x58d   :  { %4038 = vmatpush.bf16.msra.mxu2 %v12391_v33  ;;  %v15965_v33 = vld [vmem:[#allocation7 + $0xdbc] sm:$0xf] }
 0x58e   :  { %v12271_v26 = vor.u32 %v15965_v33, %v12268_v31  ;;  %v12596_v33 = vld [vmem:[#allocation7 + $0x1050] sm:$0xf]  ;;  %v12572_v31 = vld [vmem:[#allocation7 + $0x1020] sm:$0xf] }
 0x58f   :  { %v12573_v35 = vor.u32 %v16045_v16, %v12572_v31 }
 0x590   :  { %4013 = vmatpush.bf16.msra.mxu3 %v12359_v62  ;;  %4026 = vmatpush.bf16.msrb.mxu0 %v12363_v41  ;;  %v12316_v62 = vld [vmem:[#allocation7 + $0xe30] sm:$0xf0] }
 0x591   :  { %4039 = vmatpush.bf16.msra.mxu2 %v12367_v45  ;;  %v12319_v14 = vor.u32 %v15977_v57, %v12316_v62  ;;  %v15959_v45 = vld [vmem:[#allocation7 + $0xd8c] sm:$0xf] }
 0x592   :  { %v12247_v43 = vor.u32 %v15959_v45, %v12244_v48  ;;  %v12300_v62 = vld [vmem:[#allocation7 + $0xe08] sm:$0xf0] }
 0x594   :  { %4014 = vmatpush.bf16.msra.mxu3 %v12335_v7  ;;  %4027 = vmatpush.bf16.msrb.mxu0 %v12339_v25  ;;  %v16005_v7 = vld [vmem:[#allocation7 + $0xef4] sm:$0xf0] }
 0x595   :  { %4040 = vmatpush.bf16.msra.mxu2 %v12343_v5  ;;  %v12419_v10 = vor.u32 %v16005_v7, %v12418_v52  ;;  %v15978_v5 = vld [vmem:[#allocation7 + $0xe24] sm:$0xf]  ;;  %v12274_v7 = vld [vmem:[#allocation7 + $0xdc0] sm:$0xf] }
 0x596   :  { %3664 = vmatmul.bf16.vlgmr.msra.gmra.mxu0 %v3314_v46  ;;  %3677 = vmatmul.bf16.vlgmr.msrb.gmra.mxu2 %v3314_v46  ;;  %v12234_v46 = vld [vmem:[#allocation7 + $0xd80] sm:$0xf]  ;;  %v12327_v63 = vor.u32 %v15978_v5, %v12324_v61 }
 0x597   :  { %12231 = vmatmul.msk.bf16.vlgmr.msrb.gmra.mxu3 %vm140_vm1, %v12230_v8  ;;  %v12235_v1 = vor.u32 %v15961_v60, %v12234_v46  ;;  %v16002_v8 = vld [vmem:[#allocation7 + $0xee4] sm:$0xf]  ;;  %v12323_v60 = vor.u32 %v15981_v55, %v12322_v24 }
 0x598   :  { %4015 = vmatpush.bf16.msra.mxu3 %v12311_v20  ;;  %4028 = vmatpush.bf16.msrb.mxu0 %v12315_v28  ;;  %v12423_v11 = vor.u32 %v16002_v8, %v12420_v42  ;;  %v12396_v20 = vld [vmem:[#allocation7 + $0xec8] sm:$0xf0]  ;;  %v15972_v28 = vld [vmem:[#allocation7 + $0xdf4] sm:$0xf]  ;;  %v15969_v8 = vld [vmem:[#allocation7 + $0xdd4] sm:$0xf0] }
 0x599   :  { %4005 = vmatpush.bf16.msrb.mxu1 %v12235_v1  ;;  %4041 = vmatpush.bf16.msra.mxu2 %v12319_v14  ;;  %v12399_v27 = vor.u32 %v15996_v36, %v12396_v20  ;;  %v12303_v14 = vor.u32 %v15972_v28, %v12300_v62  ;;  %v15966_v42 = vld [vmem:[#allocation7 + $0xdc4] sm:$0xf]  ;;  %v12275_v13 = vor.u32 %v15969_v8, %v12274_v7  ;;  %v16027_v28 = vld [vmem:[#allocation7 + $0xfa4] sm:$0xf0] }
 0x59a   :  { %v12580_v62 = vld [vmem:[#allocation7 + $0x1028] sm:$0xf]  ;;  %v12582_v7 = vld [vmem:[#allocation7 + $0x1040] sm:$0xf0] }
 0x59c   :  { %4016 = vmatpush.bf16.msra.mxu3 %v12287_v40  ;;  %4029 = vmatpush.bf16.msrb.mxu0 %v12291_v58  ;;  %v12372_v40 = vld [vmem:[#allocation7 + $0xe98] sm:$0xf0] }
 0x59d   :  { %4050 = vmatpush.bf16.msra.mxu1 %v12419_v10  ;;  %4042 = vmatpush.bf16.msra.mxu2 %v12295_v18  ;;  %v12375_v41 = vor.u32 %v15990_v23, %v12372_v40  ;;  %v12276_v10 = vld [vmem:[#allocation7 + $0xdd8] sm:$0xf0]  ;;  %v12252_v18 = vld [vmem:[#allocation7 + $0xda8] sm:$0xf0] }
 0x59e   :  { %v12279_v59 = vor.u32 %v15966_v42, %v12276_v10  ;;  %v12255_v20 = vor.u32 %v15960_v44, %v12252_v18  ;;  %v16036_v10 = vld [vmem:[#allocation7 + $0xff4] sm:$0xf]  ;;  %v12502_v18 = vld [vmem:[#allocation7 + $0xfa8] sm:$0xf0] }
 0x59f   :  { %v16024_v44 = vld [vmem:[#allocation7 + $0xf94] sm:$0xf] }
 0x5a0   :  { %4017 = vmatpush.bf16.msra.mxu3 %v12263_v39  ;;  %4030 = vmatpush.bf16.msrb.mxu0 %v12267_v34  ;;  %v12348_v39 = vld [vmem:[#allocation7 + $0xe68] sm:$0xf0] }
 0x5a1   :  { %4051 = vmatpush.bf16.msra.mxu1 %v12395_v0  ;;  %4043 = vmatpush.bf16.msra.mxu2 %v12271_v26  ;;  %v12351_v25 = vor.u32 %v15984_v51, %v12348_v39  ;;  %v12548_v26 = vld [vmem:[#allocation7 + $0xff0] sm:$0xf] }
 0x5a2   :  { %v16052_v51 = vld [vmem:[#allocation7 + $0x106c] sm:$0xf0] }
 0x5a4   :  { %4018 = vmatpush.bf16.msra.mxu3 %v12239_v53  ;;  %4031 = vmatpush.bf16.msrb.mxu0 %v12243_v47  ;;  %v15975_v53 = vld [vmem:[#allocation7 + $0xe04] sm:$0xf0]  ;;  %v16048_v47 = vld [vmem:[#allocation7 + $0x1054] sm:$0xf] }
 0x5a5   :  { %4052 = vmatpush.bf16.msra.mxu1 %v12371_v32  ;;  %4044 = vmatpush.bf16.msra.mxu2 %v12247_v43  ;;  %v12299_v52 = vor.u32 %v15975_v53, %v12298_v30  ;;  %v16039_v32 = vld [vmem:[#allocation7 + $0x1004] sm:$0xf0]  ;;  %v16033_v43 = vld [vmem:[#allocation7 + $0xfd4] sm:$0xf0]  ;;  %v12601_v5 = vor.u32 %v16048_v47, %v12598_v21  ;;  %v12500_v53 = vld [vmem:[#allocation7 + $0xf90] sm:$0xf] }
 0x5a6   :  { %v12549_v45 = vor.u32 %v16039_v32, %v12548_v26  ;;  %v12525_v61 = vor.u32 %v16033_v43, %v12524_v22  ;;  %v12501_v42 = vor.u32 %v16027_v28, %v12500_v53  ;;  %v12558_v26 = vld [vmem:[#allocation7 + $0x1010] sm:$0xf0]  ;;  %v16034_v21 = vld [vmem:[#allocation7 + $0xfdc] sm:$0xf0]  ;;  %v16031_v22 = vld [vmem:[#allocation7 + $0xfcc] sm:$0xf] }
 0x5a7   :  { %v16053_v28 = vld [vmem:[#allocation7 + $0x1074] sm:$0xf0] }
 0x5a8   :  { %4063 = vmatpush.bf16.msrb.mxu3 %v12423_v11  ;;  %4094 = vmatpush.bf16.msra.mxu0 %v17045_v3 }
 0x5a9   :  { %4053 = vmatpush.bf16.msra.mxu1 %v12347_v50  ;;  %v12604_v50 = vld [vmem:[#allocation7 + $0x1058] sm:$0xf] }
 0x5ac   :  { %4064 = vmatpush.bf16.msrb.mxu3 %v12399_v27 }
 0x5ad   :  { %4054 = vmatpush.bf16.msra.mxu1 %v12323_v60  ;;  %v12574_v60 = vld [vmem:[#allocation7 + $0x1038] sm:$0xf0] }
 0x5b0   :  { %4065 = vmatpush.bf16.msrb.mxu3 %v12375_v41 }
 0x5b1   :  { %4055 = vmatpush.bf16.msra.mxu1 %v12299_v52  ;;  %v16046_v52 = vld [vmem:[#allocation7 + $0x103c] sm:$0xf0] }
 0x5b4   :  { %4066 = vmatpush.bf16.msrb.mxu3 %v12351_v25  ;;  %v16049_v25 = vld [vmem:[#allocation7 + $0x105c] sm:$0xf] }
 0x5b5   :  { %4056 = vmatpush.bf16.msra.mxu1 %v12275_v13 }
 0x5b8   :  { %4067 = vmatpush.bf16.msrb.mxu3 %v12327_v63  ;;  %v12605_v63 = vor.u32 %v16052_v51, %v12604_v50  ;;  %v12534_v50 = vld [vmem:[#allocation7 + $0xfe0] sm:$0xf0] }
 0x5b9   :  { %v12537_v51 = vor.u32 %v16031_v22, %v12534_v50  ;;  %v12542_v22 = vld [vmem:[#allocation7 + $0xfe8] sm:$0xf0]  ;;  %v12516_v50 = vld [vmem:[#allocation7 + $0xfa0] sm:$0xf] }
 0x5bc   :  { %4068 = vmatpush.bf16.msrb.mxu3 %v12303_v14  ;;  %v16043_v14 = vld [vmem:[#allocation7 + $0x102c] sm:$0xf] }
 0x5bd   :  { %v12585_v13 = vor.u32 %v16043_v14, %v12582_v7 }
 0x5c0   :  { %4069 = vmatpush.bf16.msrb.mxu3 %v12279_v59 }
 0x5c4   :  { %4070 = vmatpush.bf16.msrb.mxu3 %v12255_v20  ;;  %v12476_v20 = vld [vmem:[#allocation7 + $0xf60] sm:$0xf] }
 0x603   :  { %v3613_v46 = vpop.f32.mrf.mxu0 }
 0x604   :  { %v17257_v1 = vadd.f32 %v3613_v46, %v17239_v17  ;;  %v3652_v2 = vpop.f32.mrf.mxu1  ;;  %v16042_v46 = vld [vmem:[#allocation7 + $0x1024] sm:$0xf] }
 0x605   :  { %v17260_v57 = vadd.f32 %v3652_v2, %v17236_v9  ;;  %v12250_v9 = vld [vmem:[#allocation7 + $0xd90] sm:$0xf]  ;;  %v12577_v8 = vor.u32 %v16042_v46, %v12574_v60 }
 0x606   :  { %v12251_v36 = vor.u32 %v15963_v6, %v12250_v9  ;;  %v16030_v9 = vld [vmem:[#allocation7 + $0xfc4] sm:$0xf]  ;;  %v16028_v46 = vld [vmem:[#allocation7 + $0xfac] sm:$0xf0] }
 0x608   :  { %4057 = vmatpush.bf16.msra.mxu1 %v12251_v36  ;;  %v12505_v36 = vor.u32 %v16024_v44, %v12502_v18  ;;  %v12590_v44 = vld [vmem:[#allocation7 + $0x1048] sm:$0xf0] }
 0x609   :  { %v3626_v11 = vpop.f32.mrf.mxu2 }
 0x60a   :  { %v17263_v17 = vadd.f32 %v3626_v11, %v17233_v4  ;;  %v3639_v12 = vpop.f32.mrf.mxu3  ;;  %v12550_v11 = vld [vmem:[#allocation7 + $0x1008] sm:$0xf0] }
 0x60b   :  { %v17266_v58 = vadd.f32 %v3639_v12, %v17242_v19  ;;  %v3615_v15 = vpop.f32.mrf.mxu0  ;;  %v16051_v19 = vld [vmem:[#allocation7 + $0x1064] sm:$0xf0]  ;;  %v12581_v12 = vor.u32 %v16046_v52, %v12580_v62  ;;  %v12553_v59 = vor.u32 %v16036_v10, %v12550_v11  ;;  %v16050_v62 = vld [vmem:[#allocation7 + $0x1064] sm:$0xf]  ;;  %v12614_v52 = vld [vmem:[#allocation7 + $0x1078] sm:$0xf0] }
 0x60c   :  { %v3654_v0 = vpop.f32.mrf.mxu1  ;;  %v12597_v34 = vor.u32 %v16051_v19, %v12596_v33  ;;  %v12526_v15 = vld [vmem:[#allocation7 + $0xfd8] sm:$0xf0]  ;;  %v12556_v19 = vld [vmem:[#allocation7 + $0xff8] sm:$0xf]  ;;  %v12617_v7 = vor.u32 %v16050_v62, %v12614_v52  ;;  %v16019_v10 = vld [vmem:[#allocation7 + $0xf6c] sm:$0xf] }
 0x60d   :  { %v12529_v6 = vor.u32 %v16030_v9, %v12526_v15  ;;  %v12424_v0 = vld [vmem:[%s17652_s0 + $0xa] sm:$0x1]  ;;  %v12478_v33 = vld [vmem:[#allocation7 + $0xf78] sm:$0xf0] }
 0x60e   :  { %4392 = vmatpush.bf16.msrb.mxu2 %v12597_v34  ;;  %v16040_v34 = vld [vmem:[#allocation7 + $0x100c] sm:$0xf0] }
 0x60f   :  { %v12557_v16 = vor.u32 %v16040_v34, %v12556_v19 }
 0x611   :  { %v3628_v4 = vpop.f32.mrf.mxu2 }
 0x612   :  { %v3641_v27 = vpop.f32.mrf.mxu3  ;;  %4393 = vmatpush.bf16.msrb.mxu2 %v12573_v35  ;;  %v16021_v4 = vld [vmem:[#allocation7 + $0xf74] sm:$0xf0]  ;;  %v16037_v35 = vld [vmem:[#allocation7 + $0xffc] sm:$0xf] }
 0x613   :  { %v3665_v29 = vpop.f32.mrf.mxu0  ;;  %v16018_v27 = vld [vmem:[#allocation7 + $0xf64] sm:$0xf]  ;;  %v12561_v32 = vor.u32 %v16037_v35, %v12558_v26  ;;  %v12436_v26 = vld [vmem:[#allocation7 + $0xf08] sm:$0xf] }
 0x614   :  { %v17269_v56 = vadd.f32 %v3665_v29, %v17248_v49  ;;  %v12477_v29 = vor.u32 %v16021_v4, %v12476_v20  ;;  %v12481_v31 = vor.u32 %v16018_v27, %v12478_v33  ;;  %v16013_v20 = vld [vmem:[#allocation7 + $0xf3c] sm:$0xf]  ;;  %v12462_v27 = vld [vmem:[#allocation7 + $0xf50] sm:$0xf0]  ;;  %v16041_v33 = vld [vmem:[#allocation7 + $0x1014] sm:$0xf0] }
 0x615   :  { %v12465_v19 = vor.u32 %v16013_v20, %v12462_v27  ;;  %v16093_v27 = vld [vmem:[#allocation7 + $0x11b4] sm:$0xf0] }
 0x616   :  { %4394 = vmatpush.bf16.msrb.mxu2 %v12549_v45  ;;  %v12454_v45 = vld [vmem:[#allocation7 + $0xf48] sm:$0xf0] }
 0x619   :  { %v3678_v23 = vpop.f32.mrf.mxu2 }
 0x61a   :  { %v17272_v40 = vadd.f32 %v3678_v23, %v17245_v37  ;;  %v3702_v41 = vpop.f32.mrf.mxu3  ;;  %v12606_v37 = vld [vmem:[#allocation7 + $0x1070] sm:$0xf0]  ;;  %4395 = vmatpush.bf16.msrb.mxu2 %v12525_v61  ;;  %v12452_v23 = vld [vmem:[#allocation7 + $0xf30] sm:$0xf] }
 0x61b   :  { %v3703_v54 = vadd.f32 %v17274_v38, %v3702_v41  ;;  %v3667_v49 = vpop.f32.mrf.mxu0  ;;  %v12609_v30 = vor.u32 %v16049_v25, %v12606_v37  ;;  %v16015_v41 = vld [vmem:[#allocation7 + $0xf44] sm:$0xf0]  ;;  %v16009_v25 = vld [vmem:[#allocation7 + $0xf14] sm:$0xf0]  ;;  %v16006_v37 = vld [vmem:[#allocation7 + $0xf04] sm:$0xf] }
 0x61c   :  { %v12453_v49 = vor.u32 %v16015_v41, %v12452_v23  ;;  %v16007_v23 = vld [vmem:[#allocation7 + $0xf0c] sm:$0xf] }
 0x61d   :  { %v3706_v48 = vmax.f32 %v3703_v54, 0.0  ;;  %v16012_v54 = vld [vmem:[#allocation7 + $0xf34] sm:$0xf] }
 0x61e   :  { %4396 = vmatpush.bf16.msrb.mxu2 %v12501_v42  ;;  %v12457_v47 = vor.u32 %v16012_v54, %v12454_v45  ;;  %v16022_v42 = vld [vmem:[#allocation7 + $0xf7c] sm:$0xf0]  ;;  %v12438_v54 = vld [vmem:[#allocation7 + $0xf20] sm:$0xf0]  ;;  %v16035_v45 = vld [vmem:[#allocation7 + $0xfe4] sm:$0xf0] }
 0x61f   :  { %v3707_v39 = vmin.f32 %v3706_v48, 6.0  ;;  %v12532_v48 = vld [vmem:[#allocation7 + $0xfc8] sm:$0xf] }
 0x620   :  { %v12533_v43 = vor.u32 %v16034_v21, %v12532_v48  ;;  %v16032_v21 = vld [vmem:[#allocation7 + $0xfd4] sm:$0xf] }
 0x621   :  { %v3708_v24 = vpack.c.bf16 %v3707_v39, %v3707_v39  ;;  %v3680_v55 = vpop.f32.mrf.mxu2  ;;  %v12428_v39 = vld [vmem:[#allocation7 + $0xf00] sm:$0xf] }
 0x622   :  { %v3704_v2 = vpop.f32.mrf.mxu3  ;;  %4397 = vmatpush.bf16.msrb.mxu2 %v12477_v29  ;;  %v12430_v55 = vld [vmem:[#allocation7 + $0xf18] sm:$0xf0]  ;;  %v12564_v29 = vld [vmem:[#allocation7 + $0x1000] sm:$0xf] }
 0x623   :  { %4006 = vmatmul.bf16.vlgmr.msrb.gmra.mxu1 %v3708_v24  ;;  %4019 = vmatmul.bf16.vlgmr.msra.gmra.mxu3 %v3708_v24  ;;  %v12433_v60 = vor.u32 %v16006_v37, %v12430_v55  ;;  %v16025_v2 = vld [vmem:[#allocation7 + $0xf9c] sm:$0xf]  ;;  %v12565_v34 = vor.u32 %v16041_v33, %v12564_v29  ;;  %v12492_v55 = vld [vmem:[#allocation7 + $0xf70] sm:$0xf] }
 0x624   :  { %4032 = vmatmul.bf16.vlgmr.msrb.gmra.mxu0 %v3708_v24  ;;  %4045 = vmatmul.bf16.vlgmr.msra.gmra.mxu2 %v3708_v24  ;;  %v12518_v37 = vld [vmem:[#allocation7 + $0xfb8] sm:$0xf0] }
 0x625   :  { %4405 = vmatpush.bf16.msrb.mxu0 %v12601_v5  ;;  %4418 = vmatpush.bf16.msrb.mxu1 %v12605_v63  ;;  %v12508_v5 = vld [vmem:[#allocation7 + $0xf98] sm:$0xf]  ;;  %v12510_v63 = vld [vmem:[#allocation7 + $0xfb0] sm:$0xf0] }
 0x626   :  { %4431 = vmatpush.bf16.msra.mxu3 %v12609_v30  ;;  %4398 = vmatpush.bf16.msrb.mxu2 %v12453_v49  ;;  %v12509_v61 = vor.u32 %v16028_v46, %v12508_v5  ;;  %v12612_v30 = vld [vmem:[#allocation7 + $0x1060] sm:$0xf]  ;;  %v12513_v53 = vor.u32 %v16025_v2, %v12510_v63  ;;  %v12540_v49 = vld [vmem:[#allocation7 + $0xfd0] sm:$0xf]  ;;  %v16023_v5 = vld [vmem:[#allocation7 + $0xf84] sm:$0xf0] }
 0x627   :  { %v12613_v14 = vor.u32 %v16053_v28, %v12612_v30  ;;  %v12541_v48 = vor.u32 %v16035_v45, %v12540_v49  ;;  %v16020_v46 = vld [vmem:[#allocation7 + $0xf74] sm:$0xf]  ;;  %v12468_v2 = vld [vmem:[#allocation7 + $0xf40] sm:$0xf]  ;;  %v16017_v63 = vld [vmem:[#allocation7 + $0xf54] sm:$0xf0] }
 0x628   :  { %v12470_v28 = vld [vmem:[#allocation7 + $0xf58] sm:$0xf0]  ;;  %v16081_v49 = vld [vmem:[#allocation7 + $0x1154] sm:$0xf0] }
 0x629   :  { %4406 = vmatpush.bf16.msrb.mxu0 %v12577_v8  ;;  %4419 = vmatpush.bf16.msrb.mxu1 %v12581_v12  ;;  %v12484_v8 = vld [vmem:[#allocation7 + $0xf68] sm:$0xf]  ;;  %v12486_v12 = vld [vmem:[#allocation7 + $0xf80] sm:$0xf0]  ;;  %v12798_v45 = vld [vmem:[#allocation7 + $0x11d8] sm:$0xf] }
 0x62a   :  { %4432 = vmatpush.bf16.msra.mxu3 %v12585_v13  ;;  %v12485_v11 = vor.u32 %v16022_v42, %v12484_v8  ;;  %v12588_v13 = vld [vmem:[#allocation7 + $0x1030] sm:$0xf]  ;;  %v12489_v9 = vor.u32 %v16019_v10, %v12486_v12  ;;  %v16008_v12 = vld [vmem:[#allocation7 + $0xf14] sm:$0xf] }
 0x62b   :  { %v12444_v42 = vld [vmem:[#allocation7 + $0xf10] sm:$0xf] }
 0x62d   :  { %4407 = vmatpush.bf16.msrb.mxu0 %v12553_v59  ;;  %4420 = vmatpush.bf16.msrb.mxu1 %v12557_v16  ;;  %v16047_v59 = vld [vmem:[#allocation7 + $0x1044] sm:$0xf0]  ;;  %v12566_v16 = vld [vmem:[#allocation7 + $0x1018] sm:$0xf0] }
 0x62e   :  { %4433 = vmatpush.bf16.msra.mxu3 %v12561_v32  ;;  %v12589_v15 = vor.u32 %v16047_v59, %v12588_v13  ;;  %v16010_v32 = vld [vmem:[#allocation7 + $0xf1c] sm:$0xf0]  ;;  %v12446_v13 = vld [vmem:[#allocation7 + $0xf28] sm:$0xf0] }
 0x62f   :  { %v12437_v41 = vor.u32 %v16010_v32, %v12436_v26  ;;  %v16096_v32 = vld [vmem:[#allocation7 + $0x11d4] sm:$0xf] }
 0x631   :  { %4408 = vmatpush.bf16.msrb.mxu0 %v12529_v6  ;;  %4421 = vmatpush.bf16.msrb.mxu1 %v12533_v43  ;;  %v16044_v6 = vld [vmem:[#allocation7 + $0x1034] sm:$0xf]  ;;  %v12545_v43 = vor.u32 %v16032_v21, %v12542_v22  ;;  %v16097_v22 = vld [vmem:[#allocation7 + $0x11dc] sm:$0xf] }
 0x632   :  { %4434 = vmatpush.bf16.msra.mxu3 %v12537_v51  ;;  %v12593_v18 = vor.u32 %v16044_v6, %v12590_v44  ;;  %v16029_v51 = vld [vmem:[#allocation7 + $0xfb4] sm:$0xf0] }
 0x633   :  { %4058 = vmatmul.bf16.vlgmr.msra.gmra.mxu1 %v3708_v24  ;;  %4071 = vmatmul.bf16.vlgmr.msrb.gmra.mxu3 %v3708_v24  ;;  %v12429_v24 = vor.u32 %v16009_v25, %v12428_v39  ;;  %v16026_v39 = vld [vmem:[#allocation7 + $0xfa4] sm:$0xf]  ;;  %v12517_v25 = vor.u32 %v16029_v51, %v12516_v50 }
 0x634   :  { %12425 = vmatmul.msk.bf16.vlgmr.msra.gmra.mxu0 %vm140_vm1, %v12424_v0  ;;  %v12460_v0 = vld [vmem:[#allocation7 + $0xf38] sm:$0xf] }
 0x635   :  { %4409 = vmatpush.bf16.msrb.mxu0 %v12505_v36  ;;  %4399 = vmatpush.bf16.msrb.mxu2 %v12429_v24  ;;  %v16016_v36 = vld [vmem:[#allocation7 + $0xf4c] sm:$0xf0]  ;;  %v12521_v24 = vor.u32 %v16026_v39, %v12518_v37  ;;  %v12768_v37 = vld [vmem:[#allocation7 + $0x11b8] sm:$0xf0] }
 0x636   :  { %4422 = vmatpush.bf16.msrb.mxu1 %v12509_v61  ;;  %4435 = vmatpush.bf16.msra.mxu3 %v12513_v53  ;;  %v12461_v4 = vor.u32 %v16016_v36, %v12460_v0  ;;  %v12494_v61 = vld [vmem:[#allocation7 + $0xf88] sm:$0xf0]  ;;  %v16014_v53 = vld [vmem:[#allocation7 + $0xf44] sm:$0xf]  ;;  %v16099_v36 = vld [vmem:[#allocation7 + $0x11e4] sm:$0xf0] }
 0x637   :  { %v12497_v30 = vor.u32 %v16020_v46, %v12494_v61  ;;  %v12473_v8 = vor.u32 %v16014_v53, %v12470_v28  ;;  %v16075_v61 = vld [vmem:[#allocation7 + $0x1124] sm:$0xf0]  ;;  %v12776_v53 = vld [vmem:[#allocation7 + $0x11c0] sm:$0xf0] }
 0x639   :  { %4410 = vmatpush.bf16.msrb.mxu0 %v12481_v31  ;;  %4444 = vmatpush.bf16.msra.mxu2 %v12613_v14  ;;  %v16038_v31 = vld [vmem:[#allocation7 + $0x1004] sm:$0xf] }
 0x63a   :  { %4423 = vmatpush.bf16.msrb.mxu1 %v12485_v11  ;;  %4436 = vmatpush.bf16.msra.mxu3 %v12489_v9  ;;  %v12569_v35 = vor.u32 %v16038_v31, %v12566_v16  ;;  %v16011_v11 = vld [vmem:[#allocation7 + $0xf24] sm:$0xf0]  ;;  %v12449_v9 = vor.u32 %v16008_v12, %v12446_v13  ;;  %v16078_v12 = vld [vmem:[#allocation7 + $0x1144] sm:$0xf]  ;;  %v12720_v13 = vld [vmem:[#allocation7 + $0x1158] sm:$0xf0] }
 0x63b   :  { %v12445_v59 = vor.u32 %v16011_v11, %v12444_v42 }
 0x63d   :  { %4411 = vmatpush.bf16.msrb.mxu0 %v12457_v47  ;;  %4445 = vmatpush.bf16.msra.mxu2 %v12589_v15  ;;  %v12441_v47 = vor.u32 %v16007_v23, %v12438_v54  ;;  %v12718_v54 = vld [vmem:[#allocation7 + $0x1140] sm:$0xf] }
 0x63e   :  { %4424 = vmatpush.bf16.msrb.mxu1 %v12461_v4  ;;  %4437 = vmatpush.bf16.msra.mxu3 %v12465_v19  ;;  %v12766_v4 = vld [vmem:[#allocation7 + $0x11a0] sm:$0xf] }
 0x63f   :  { %v12767_v33 = vor.u32 %v16093_v27, %v12766_v4  ;;  %v12672_v4 = vld [vmem:[#allocation7 + $0x10f8] sm:$0xf0]  ;;  %v12750_v27 = vld [vmem:[#allocation7 + $0x1178] sm:$0xf] }
 0x641   :  { %4412 = vmatpush.bf16.msrb.mxu0 %v12433_v60  ;;  %4446 = vmatpush.bf16.msra.mxu2 %v12565_v34  ;;  %v12493_v60 = vor.u32 %v16023_v5, %v12492_v55  ;;  %v12742_v34 = vld [vmem:[#allocation7 + $0x1170] sm:$0xf] }
 0x642   :  { %4425 = vmatpush.bf16.msrb.mxu1 %v12437_v41  ;;  %4438 = vmatpush.bf16.msra.mxu3 %v12441_v47  ;;  %v12792_v41 = vld [vmem:[#allocation7 + $0x11e8] sm:$0xf0]  ;;  %v16100_v47 = vld [vmem:[#allocation7 + $0x11ec] sm:$0xf0] }
 0x643   :  { %v12795_v39 = vor.u32 %v16096_v32, %v12792_v41  ;;  %v12799_v5 = vor.u32 %v16100_v47, %v12798_v45  ;;  %v16079_v45 = vld [vmem:[#allocation7 + $0x114c] sm:$0xf] }
 0x645   :  { %4457 = vmatpush.bf16.msra.mxu0 %v12617_v7  ;;  %4447 = vmatpush.bf16.msra.mxu2 %v12541_v48  ;;  %v12469_v7 = vor.u32 %v16017_v63, %v12468_v2  ;;  %v12774_v2 = vld [vmem:[#allocation7 + $0x11a8] sm:$0xf]  ;;  %v16094_v63 = vld [vmem:[#allocation7 + $0x11bc] sm:$0xf0] }
 0x646   :  { %4488 = vmatpush.bf16.msra.mxu1 %v17045_v3 }
 0x649   :  { %4458 = vmatpush.bf16.msra.mxu0 %v12593_v18  ;;  %4448 = vmatpush.bf16.msra.mxu2 %v12517_v25  ;;  %v16090_v25 = vld [vmem:[#allocation7 + $0x11a4] sm:$0xf] }
 0x64d   :  { %4459 = vmatpush.bf16.msra.mxu0 %v12569_v35  ;;  %4449 = vmatpush.bf16.msra.mxu2 %v12493_v60  ;;  %v12694_v60 = vld [vmem:[#allocation7 + $0x1110] sm:$0xf] }
 0x64e   :  { %v12695_v28 = vor.u32 %v16075_v61, %v12694_v60  ;;  %v12806_v60 = vld [vmem:[#allocation7 + $0x11e0] sm:$0xf] }
 0x651   :  { %4460 = vmatpush.bf16.msra.mxu0 %v12545_v43  ;;  %4450 = vmatpush.bf16.msra.mxu2 %v12469_v7  ;;  %v12800_v43 = vld [vmem:[#allocation7 + $0x11f0] sm:$0xf0]  ;;  %v12775_v7 = vor.u32 %v16094_v63, %v12774_v2  ;;  %v16101_v2 = vld [vmem:[#allocation7 + $0x11f4] sm:$0xf0]  ;;  %v16098_v63 = vld [vmem:[#allocation7 + $0x11e4] sm:$0xf] }
 0x652   :  { %v12803_v46 = vor.u32 %v16097_v22, %v12800_v43  ;;  %v12622_v22 = vld [vmem:[#allocation7 + $0x1080] sm:$0xf]  ;;  %v16057_v43 = vld [vmem:[#allocation7 + $0x1094] sm:$0xf0] }
 0x655   :  { %4461 = vmatpush.bf16.msra.mxu0 %v12521_v24  ;;  %4451 = vmatpush.bf16.msra.mxu2 %v12445_v59  ;;  %v12719_v24 = vor.u32 %v16081_v49, %v12718_v54  ;;  %v12723_v59 = vor.u32 %v16078_v12, %v12720_v13  ;;  %v12726_v54 = vld [vmem:[#allocation7 + $0x1148] sm:$0xf]  ;;  %v16082_v49 = vld [vmem:[#allocation7 + $0x115c] sm:$0xf0] }
 0x656   :  { %v12727_v47 = vor.u32 %v16082_v49, %v12726_v54  ;;  %v16080_v49 = vld [vmem:[#allocation7 + $0x1154] sm:$0xf] }
 0x659   :  { %4462 = vmatpush.bf16.msra.mxu0 %v12497_v30  ;;  %v16091_v30 = vld [vmem:[#allocation7 + $0x11ac] sm:$0xf] }
 0x65d   :  { %4463 = vmatpush.bf16.msra.mxu0 %v12473_v8  ;;  %v12779_v8 = vor.u32 %v16091_v30, %v12776_v53  ;;  %v12808_v30 = vld [vmem:[#allocation7 + $0x11f8] sm:$0xf0]  ;;  %v12807_v53 = vor.u32 %v16101_v2, %v12806_v60 }
 0x65e   :  { %v12664_v2 = vld [vmem:[#allocation7 + $0x10d8] sm:$0xf0] }
 0x661   :  { %4464 = vmatpush.bf16.msra.mxu0 %v12449_v9  ;;  %v16072_v9 = vld [vmem:[#allocation7 + $0x1114] sm:$0xf] }
 0x6a0   :  { %v4007_v62 = vpop.f32.mrf.mxu1 }
 0x6a1   :  { %v17283_v52 = vadd.f32 %v4007_v62, %v17257_v1  ;;  %v4033_v14 = vpop.f32.mrf.mxu0  ;;  %v16084_v62 = vld [vmem:[#allocation7 + $0x1174] sm:$0xf] }
 0x6a2   :  { %v17286_v10 = vadd.f32 %v4033_v14, %v17266_v58  ;;  %v12790_v58 = vld [vmem:[#allocation7 + $0x11d0] sm:$0xf]  ;;  %v12744_v14 = vld [vmem:[#allocation7 + $0x1188] sm:$0xf0] }
 0x6a3   :  { %v12791_v20 = vor.u32 %v16099_v36, %v12790_v58  ;;  %v12747_v11 = vor.u32 %v16084_v62, %v12744_v14  ;;  %v16069_v58 = vld [vmem:[#allocation7 + $0x10f4] sm:$0xf0]  ;;  %v16066_v36 = vld [vmem:[#allocation7 + $0x10e4] sm:$0xf]  ;;  %v16070_v62 = vld [vmem:[#allocation7 + $0x10fc] sm:$0xf0] }
 0x6a4   :  { %v16067_v14 = vld [vmem:[#allocation7 + $0x10ec] sm:$0xf] }
 0x6a5   :  { %4786 = vmatpush.bf16.msrb.mxu3 %v12791_v20 }
 0x6a6   :  { %v4020_v15 = vpop.f32.mrf.mxu3 }
 0x6a7   :  { %v17289_v1 = vadd.f32 %v4020_v15, %v17263_v17  ;;  %v4046_v6 = vpop.f32.mrf.mxu2  ;;  %v16087_v17 = vld [vmem:[#allocation7 + $0x1184] sm:$0xf0]  ;;  %v12696_v15 = vld [vmem:[#allocation7 + $0x1128] sm:$0xf0] }
 0x6a8   :  { %v17292_v44 = vadd.f32 %v4046_v6, %v17260_v57  ;;  %v4009_v18 = vpop.f32.mrf.mxu1  ;;  %v12743_v26 = vor.u32 %v16087_v17, %v12742_v34  ;;  %v12618_v6 = vld [vmem:[%s17652_s0 + $0xb] sm:$0x1]  ;;  %v16085_v34 = vld [vmem:[#allocation7 + $0x117c] sm:$0xf]  ;;  %v12752_v17 = vld [vmem:[#allocation7 + $0x1190] sm:$0xf0] }
 0x6a9   :  { %v4035_v0 = vpop.f32.mrf.mxu0  ;;  %4787 = vmatpush.bf16.msrb.mxu3 %v12767_v33  ;;  %v12699_v18 = vor.u32 %v16072_v9, %v12696_v15  ;;  %v12675_v33 = vor.u32 %v16066_v36, %v12672_v4  ;;  %v12784_v9 = vld [vmem:[#allocation7 + $0x11c8] sm:$0xf0]  ;;  %v12656_v36 = vld [vmem:[#allocation7 + $0x10d0] sm:$0xf0]  ;;  %v16089_v4 = vld [vmem:[#allocation7 + $0x1194] sm:$0xf0] }
 0x6aa   :  { %v12670_v0 = vld [vmem:[#allocation7 + $0x10e0] sm:$0xf] }
 0x6ab   :  { %v12671_v20 = vor.u32 %v16069_v58, %v12670_v0  ;;  %v16061_v0 = vld [vmem:[#allocation7 + $0x10bc] sm:$0xf] }
 0x6ad   :  { %4788 = vmatpush.bf16.msrb.mxu3 %v12743_v26  ;;  %v16060_v26 = vld [vmem:[#allocation7 + $0x10b4] sm:$0xf] }
 0x6ae   :  { %v4022_v29 = vpop.f32.mrf.mxu3 }
 0x6af   :  { %v4048_v19 = vpop.f32.mrf.mxu2  ;;  %v16088_v29 = vld [vmem:[#allocation7 + $0x118c] sm:$0xf0] }
 0x6b0   :  { %v4059_v31 = vpop.f32.mrf.mxu1  ;;  %v12751_v19 = vor.u32 %v16088_v29, %v12750_v27  ;;  %v12659_v27 = vor.u32 %v16061_v0, %v12656_v36  ;;  %v16141_v36 = vld [vmem:[#allocation7 + $0x1334] sm:$0xf0] }
 0x6b1   :  { %v17295_v16 = vadd.f32 %v4059_v31, %v17269_v56  ;;  %v4096_v57 = vpop.f32.mrf.mxu0  ;;  %4789 = vmatpush.bf16.msrb.mxu3 %v12719_v24  ;;  %v12755_v31 = vor.u32 %v16085_v34, %v12752_v17  ;;  %v12630_v17 = vld [vmem:[#allocation7 + $0x1088] sm:$0xf] }
 0x6b2   :  { %v4097_v35 = vadd.f32 %v17274_v38, %v4096_v57  ;;  %v12646_v57 = vld [vmem:[#allocation7 + $0x10b0] sm:$0xf] }
 0x6b4   :  { %v4100_v23 = vmax.f32 %v4097_v35, 0.0  ;;  %v16063_v35 = vld [vmem:[#allocation7 + $0x10c4] sm:$0xf0] }
 0x6b5   :  { %4790 = vmatpush.bf16.msrb.mxu3 %v12695_v28  ;;  %v12647_v32 = vor.u32 %v16063_v35, %v12646_v57  ;;  %v12678_v28 = vld [vmem:[#allocation7 + $0x10e8] sm:$0xf]  ;;  %v16055_v57 = vld [vmem:[#allocation7 + $0x108c] sm:$0xf] }
 0x6b6   :  { %v4101_v48 = vmin.f32 %v4100_v23, 6.0  ;;  %v4072_v21 = vpop.f32.mrf.mxu3  ;;  %v12648_v23 = vld [vmem:[#allocation7 + $0x10c8] sm:$0xf0] }
 0x6b7   :  { %v17299_v56 = vadd.f32 %v4072_v21, %v17272_v40  ;;  %v12771_v40 = vor.u32 %v16090_v25, %v12768_v37  ;;  %v12651_v41 = vor.u32 %v16060_v26, %v12648_v23  ;;  %v12702_v25 = vld [vmem:[#allocation7 + $0x1118] sm:$0xf]  ;;  %v16076_v37 = vld [vmem:[#allocation7 + $0x112c] sm:$0xf0]  ;;  %v12632_v26 = vld [vmem:[#allocation7 + $0x10a0] sm:$0xf0] }
 0x6b8   :  { %v4102_v50 = vpack.c.bf16 %v4101_v48, %v4101_v48  ;;  %v4061_v51 = vpop.f32.mrf.mxu1  ;;  %v12728_v48 = vld [vmem:[#allocation7 + $0x1160] sm:$0xf0]  ;;  %v16083_v23 = vld [vmem:[#allocation7 + $0x1164] sm:$0xf0] }
 0x6b9   :  { %v4098_v55 = vpop.f32.mrf.mxu0  ;;  %4791 = vmatpush.bf16.msrb.mxu3 %v12671_v20  ;;  %v12731_v21 = vor.u32 %v16079_v45, %v12728_v48  ;;  %v12623_v51 = vor.u32 %v16057_v43, %v12622_v22  ;;  %v12758_v20 = vld [vmem:[#allocation7 + $0x1180] sm:$0xf]  ;;  %v12736_v45 = vld [vmem:[#allocation7 + $0x1168] sm:$0xf0]  ;;  %v16074_v22 = vld [vmem:[#allocation7 + $0x1124] sm:$0xf] }
 0x6ba   :  { %4400 = vmatmul.bf16.vlgmr.msrb.gmra.mxu2 %v4102_v50  ;;  %4413 = vmatmul.bf16.vlgmr.msrb.gmra.mxu0 %v4102_v50  ;;  %v12703_v55 = vor.u32 %v16076_v37, %v12702_v25  ;;  %v12759_v29 = vor.u32 %v16089_v4, %v12758_v20  ;;  %v12710_v48 = vld [vmem:[#allocation7 + $0x1120] sm:$0xf]  ;;  %v16071_v25 = vld [vmem:[#allocation7 + $0x1104] sm:$0xf0]  ;;  %v16068_v37 = vld [vmem:[#allocation7 + $0x10f4] sm:$0xf] }
 0x6bb   :  { %4426 = vmatmul.bf16.vlgmr.msrb.gmra.mxu1 %v4102_v50  ;;  %4439 = vmatmul.bf16.vlgmr.msra.gmra.mxu3 %v4102_v50 }
 0x6bc   :  { %4799 = vmatpush.bf16.msrb.mxu1 %v12795_v39  ;;  %4812 = vmatpush.bf16.msrb.mxu2 %v12799_v5  ;;  %v12624_v39 = vld [vmem:[#allocation7 + $0x1098] sm:$0xf0] }
 0x6bd   :  { %4825 = vmatpush.bf16.msrb.mxu0 %v12803_v46  ;;  %4792 = vmatpush.bf16.msrb.mxu3 %v12647_v32  ;;  %v16073_v5 = vld [vmem:[#allocation7 + $0x111c] sm:$0xf]  ;;  %v12704_v46 = vld [vmem:[#allocation7 + $0x1130] sm:$0xf0]  ;;  %v12734_v32 = vld [vmem:[#allocation7 + $0x1150] sm:$0xf] }
 0x6be   :  { %v4074_v42 = vpop.f32.mrf.mxu3  ;;  %v12707_v61 = vor.u32 %v16073_v5, %v12704_v46  ;;  %v12735_v54 = vor.u32 %v16083_v23, %v12734_v32  ;;  %v12662_v5 = vld [vmem:[#allocation7 + $0x10c0] sm:$0xf]  ;;  %v16065_v46 = vld [vmem:[#allocation7 + $0x10d4] sm:$0xf0] }
 0x6bf   :  { %v12782_v42 = vld [vmem:[#allocation7 + $0x11b0] sm:$0xf]  ;;  %v16129_v32 = vld [vmem:[#allocation7 + $0x12d4] sm:$0xf0] }
 0x6c0   :  { %4800 = vmatpush.bf16.msrb.mxu1 %v12771_v40  ;;  %4813 = vmatpush.bf16.msrb.mxu2 %v12775_v7  ;;  %v12811_v40 = vor.u32 %v16098_v63, %v12808_v30  ;;  %v12679_v7 = vor.u32 %v16070_v62, %v12678_v28  ;;  %v12638_v62 = vld [vmem:[#allocation7 + $0x1090] sm:$0xf] }
 0x6c1   :  { %4826 = vmatpush.bf16.msrb.mxu0 %v12779_v8  ;;  %4793 = vmatpush.bf16.msrb.mxu3 %v12623_v51  ;;  %v12680_v8 = vld [vmem:[#allocation7 + $0x1100] sm:$0xf0] }
 0x6c2   :  { %v12683_v12 = vor.u32 %v16067_v14, %v12680_v8  ;;  %v16056_v8 = vld [vmem:[#allocation7 + $0x1094] sm:$0xf] }
 0x6c4   :  { %4801 = vmatpush.bf16.msrb.mxu1 %v12747_v11  ;;  %4814 = vmatpush.bf16.msrb.mxu2 %v12751_v19  ;;  %v16095_v11 = vld [vmem:[#allocation7 + $0x11c4] sm:$0xf0]  ;;  %v12760_v19 = vld [vmem:[#allocation7 + $0x1198] sm:$0xf0] }
 0x6c5   :  { %4827 = vmatpush.bf16.msrb.mxu0 %v12755_v31  ;;  %4838 = vmatpush.bf16.msra.mxu3 %v12807_v53  ;;  %v12783_v13 = vor.u32 %v16095_v11, %v12782_v42  ;;  %v16058_v31 = vld [vmem:[#allocation7 + $0x109c] sm:$0xf0]  ;;  %v12640_v42 = vld [vmem:[#allocation7 + $0x10a8] sm:$0xf0] }
 0x6c6   :  { %v12631_v35 = vor.u32 %v16058_v31, %v12630_v17 }
 0x6c8   :  { %4802 = vmatpush.bf16.msrb.mxu1 %v12723_v59  ;;  %4815 = vmatpush.bf16.msrb.mxu2 %v12727_v47  ;;  %v16092_v59 = vld [vmem:[#allocation7 + $0x11b4] sm:$0xf]  ;;  %v12739_v47 = vor.u32 %v16080_v49, %v12736_v45 }
 0x6c9   :  { %4828 = vmatpush.bf16.msrb.mxu0 %v12731_v21  ;;  %v12787_v15 = vor.u32 %v16092_v59, %v12784_v9  ;;  %4839 = vmatpush.bf16.msra.mxu3 %v12783_v13  ;;  %v16077_v21 = vld [vmem:[#allocation7 + $0x1134] sm:$0xf0] }
 0x6ca   :  { %4452 = vmatmul.bf16.vlgmr.msra.gmra.mxu2 %v4102_v50  ;;  %4465 = vmatmul.bf16.vlgmr.msra.gmra.mxu0 %v4102_v50  ;;  %v16054_v50 = vld [vmem:[#allocation7 + $0x1084] sm:$0xf]  ;;  %v12711_v43 = vor.u32 %v16077_v21, %v12710_v48 }
 0x6cb   :  { %12619 = vmatmul.msk.bf16.vlgmr.msra.gmra.mxu1 %vm140_vm1, %v12618_v6  ;;  %v12627_v24 = vor.u32 %v16054_v50, %v12624_v39  ;;  %v12654_v6 = vld [vmem:[#allocation7 + $0x10b8] sm:$0xf]  ;;  %v12712_v50 = vld [vmem:[#allocation7 + $0x1138] sm:$0xf0]  ;;  %v12686_v39 = vld [vmem:[#allocation7 + $0x10f0] sm:$0xf] }
 0x6cc   :  { %4803 = vmatpush.bf16.msrb.mxu1 %v12699_v18  ;;  %4816 = vmatpush.bf16.msrb.mxu2 %v12703_v55  ;;  %v16064_v18 = vld [vmem:[#allocation7 + $0x10cc] sm:$0xf0]  ;;  %v12715_v51 = vor.u32 %v16074_v22, %v12712_v50  ;;  %v12688_v55 = vld [vmem:[#allocation7 + $0x1108] sm:$0xf0]  ;;  %v16138_v21 = vld [vmem:[#allocation7 + $0x1324] sm:$0xf] }
 0x6cd   :  { %4829 = vmatpush.bf16.msrb.mxu0 %v12707_v61  ;;  %v12655_v58 = vor.u32 %v16064_v18, %v12654_v6  ;;  %4840 = vmatpush.bf16.msra.mxu3 %v12759_v29  ;;  %v12691_v60 = vor.u32 %v16068_v37, %v12688_v55  ;;  %v16062_v61 = vld [vmem:[#allocation7 + $0x10c4] sm:$0xf]  ;;  %v16147_v18 = vld [vmem:[#allocation7 + $0x1364] sm:$0xf0]  ;;  %v12936_v29 = vld [vmem:[#allocation7 + $0x12f0] sm:$0xf] }
 0x6ce   :  { %v12667_v28 = vor.u32 %v16062_v61, %v12664_v2  ;;  %v12938_v50 = vld [vmem:[#allocation7 + $0x1308] sm:$0xf0]  ;;  %v12992_v55 = vld [vmem:[#allocation7 + $0x1358] sm:$0xf]  ;;  %v12994_v61 = vld [vmem:[#allocation7 + $0x1370] sm:$0xf0] }
 0x6d0   :  { %4804 = vmatpush.bf16.msrb.mxu1 %v12675_v33  ;;  %4817 = vmatpush.bf16.msrb.mxu2 %v12679_v7  ;;  %v16086_v33 = vld [vmem:[#allocation7 + $0x1184] sm:$0xf]  ;;  %v16059_v7 = vld [vmem:[#allocation7 + $0x10a4] sm:$0xf0] }
 0x6d1   :  { %4830 = vmatpush.bf16.msrb.mxu0 %v12683_v12  ;;  %v12763_v34 = vor.u32 %v16086_v33, %v12760_v19  ;;  %4841 = vmatpush.bf16.msra.mxu3 %v12735_v54  ;;  %v12639_v11 = vor.u32 %v16059_v7, %v12638_v62  ;;  %v12643_v12 = vor.u32 %v16056_v8, %v12640_v42  ;;  %v12890_v62 = vld [vmem:[#allocation7 + $0x12a8] sm:$0xf0]  ;;  %v12968_v7 = vld [vmem:[#allocation7 + $0x1328] sm:$0xf]  ;;  %v16142_v8 = vld [vmem:[#allocation7 + $0x133c] sm:$0xf0] }
 0x6d4   :  { %4805 = vmatpush.bf16.msrb.mxu1 %v12651_v41  ;;  %4818 = vmatpush.bf16.msrb.mxu2 %v12655_v58  ;;  %v12635_v41 = vor.u32 %v16055_v57, %v12632_v26  ;;  %v12960_v58 = vld [vmem:[#allocation7 + $0x1320] sm:$0xf]  ;;  %v16144_v57 = vld [vmem:[#allocation7 + $0x1354] sm:$0xf] }
 0x6d5   :  { %4831 = vmatpush.bf16.msrb.mxu0 %v12659_v27  ;;  %4842 = vmatpush.bf16.msra.mxu3 %v12711_v43  ;;  %v12961_v4 = vor.u32 %v16141_v36, %v12960_v58  ;;  %v12912_v26 = vld [vmem:[#allocation7 + $0x12c0] sm:$0xf]  ;;  %v16132_v43 = vld [vmem:[#allocation7 + $0x12f4] sm:$0xf]  ;;  %v12944_v58 = vld [vmem:[#allocation7 + $0x12f8] sm:$0xf] }
 0x6d6   :  { %v16136_v36 = vld [vmem:[#allocation7 + $0x130c] sm:$0xf0] }
 0x6d8   :  { %4806 = vmatpush.bf16.msrb.mxu1 %v12627_v24  ;;  %4819 = vmatpush.bf16.msrb.mxu2 %v12631_v35  ;;  %v12687_v24 = vor.u32 %v16071_v25, %v12686_v39  ;;  %v12986_v35 = vld [vmem:[#allocation7 + $0x1368] sm:$0xf0]  ;;  %v16126_v39 = vld [vmem:[#allocation7 + $0x12c4] sm:$0xf]  ;;  %v12914_v25 = vld [vmem:[#allocation7 + $0x12d8] sm:$0xf0] }
 0x6d9   :  { %4832 = vmatpush.bf16.msrb.mxu0 %v12635_v41  ;;  %v12917_v37 = vor.u32 %v16126_v39, %v12914_v25  ;;  %v13000_v39 = vld [vmem:[#allocation7 + $0x1360] sm:$0xf] }
 0x6da   :  { %4843 = vmatpush.bf16.msra.mxu3 %v12687_v24  ;;  %v12812_v24 = vld [vmem:[%s17652_s0 + $0xc] sm:$0x1] }
 0x6dc   :  { %4851 = vmatpush.bf16.msra.mxu1 %v12811_v40  ;;  %4882 = vmatpush.bf16.msra.mxu2 %v17045_v3  ;;  %v12663_v40 = vor.u32 %v16065_v46, %v12662_v5  ;;  %v16148_v5 = vld [vmem:[#allocation7 + $0x136c] sm:$0xf0]  ;;  %v16145_v46 = vld [vmem:[#allocation7 + $0x135c] sm:$0xf] }
 0x6dd   :  { %v12997_v2 = vor.u32 %v16145_v46, %v12994_v61  ;;  %v16118_v61 = vld [vmem:[#allocation7 + $0x127c] sm:$0xf0] }
 0x6de   :  { %4844 = vmatpush.bf16.msra.mxu3 %v12663_v40  ;;  %v16120_v40 = vld [vmem:[#allocation7 + $0x1294] sm:$0xf] }
 0x6df   :  { %v12893_v42 = vor.u32 %v16120_v40, %v12890_v62  ;;  %v12976_v40 = vld [vmem:[#allocation7 + $0x1330] sm:$0xf] }
 0x6e0   :  { %4852 = vmatpush.bf16.msra.mxu1 %v12787_v15 }
 0x6e2   :  { %4845 = vmatpush.bf16.msra.mxu3 %v12639_v11  ;;  %v12969_v11 = vor.u32 %v16142_v8, %v12968_v7  ;;  %v16140_v8 = vld [vmem:[#allocation7 + $0x1334] sm:$0xf] }
 0x6e4   :  { %4853 = vmatpush.bf16.msra.mxu1 %v12763_v34 }
 0x6e8   :  { %4854 = vmatpush.bf16.msra.mxu1 %v12739_v47  ;;  %v12913_v47 = vor.u32 %v16129_v32, %v12912_v26 }
 0x6ec   :  { %4855 = vmatpush.bf16.msra.mxu1 %v12715_v51 }
 0x6f0   :  { %4856 = vmatpush.bf16.msra.mxu1 %v12691_v60  ;;  %v12993_v60 = vor.u32 %v16148_v5, %v12992_v55  ;;  %v13002_v55 = vld [vmem:[#allocation7 + $0x1378] sm:$0xf0] }
 0x6f4   :  { %4857 = vmatpush.bf16.msra.mxu1 %v12667_v28 }
 0x6f8   :  { %4858 = vmatpush.bf16.msra.mxu1 %v12643_v12  ;;  %v16139_v12 = vld [vmem:[#allocation7 + $0x132c] sm:$0xf] }
 0x737   :  { %v4414_v63 = vpop.f32.mrf.mxu0 }
 0x738   :  { %v17307_v30 = vadd.f32 %v4414_v63, %v17289_v1  ;;  %v4427_v53 = vpop.f32.mrf.mxu1  ;;  %v12888_v63 = vld [vmem:[#allocation7 + $0x1290] sm:$0xf] }
 0x739   :  { %v17310_v14 = vadd.f32 %v4427_v53, %v17286_v10  ;;  %v12984_v10 = vld [vmem:[#allocation7 + $0x1350] sm:$0xf]  ;;  %v16123_v53 = vld [vmem:[#allocation7 + $0x12a4] sm:$0xf0] }
 0x73a   :  { %v12985_v0 = vor.u32 %v16147_v18, %v12984_v10  ;;  %v12889_v28 = vor.u32 %v16123_v53, %v12888_v63  ;;  %v16114_v10 = vld [vmem:[#allocation7 + $0x1264] sm:$0xf] }
 0x73b   :  { %v12874_v53 = vld [vmem:[#allocation7 + $0x1280] sm:$0xf0] }
 0x73c   :  { %5180 = vmatpush.bf16.msra.mxu0 %v12985_v0  ;;  %v12866_v0 = vld [vmem:[#allocation7 + $0x1278] sm:$0xf0] }
 0x73d   :  { %v4401_v13 = vpop.f32.mrf.mxu2 }
 0x73e   :  { %v17313_v1 = vadd.f32 %v4401_v13, %v17283_v52  ;;  %v4440_v59 = vpop.f32.mrf.mxu3  ;;  %v16135_v52 = vld [vmem:[#allocation7 + $0x1304] sm:$0xf0]  ;;  %v12970_v13 = vld [vmem:[#allocation7 + $0x1340] sm:$0xf0] }
 0x73f   :  { %v17316_v9 = vadd.f32 %v4440_v59, %v17292_v44  ;;  %v4416_v15 = vpop.f32.mrf.mxu0  ;;  %v12937_v17 = vor.u32 %v16135_v52, %v12936_v29  ;;  %v12973_v59 = vor.u32 %v16139_v12, %v12970_v13  ;;  %v12946_v29 = vld [vmem:[#allocation7 + $0x1310] sm:$0xf0]  ;;  %v12848_v12 = vld [vmem:[#allocation7 + $0x1238] sm:$0xf]  ;;  %v16112_v13 = vld [vmem:[#allocation7 + $0x124c] sm:$0xf0] }
 0x740   :  { %v4429_v6 = vpop.f32.mrf.mxu1  ;;  %5181 = vmatpush.bf16.msra.mxu0 %v12961_v4  ;;  %v12864_v15 = vld [vmem:[#allocation7 + $0x1260] sm:$0xf]  ;;  %v12945_v4 = vor.u32 %v16136_v36, %v12944_v58  ;;  %v16134_v36 = vld [vmem:[#allocation7 + $0x1304] sm:$0xf] }
 0x741   :  { %v16117_v6 = vld [vmem:[#allocation7 + $0x1274] sm:$0xf0] }
 0x742   :  { %v12865_v18 = vor.u32 %v16117_v6, %v12864_v15  ;;  %v12849_v15 = vor.u32 %v16112_v13, %v12848_v12  ;;  %v12850_v6 = vld [vmem:[#allocation7 + $0x1250] sm:$0xf0] }
 0x744   :  { %5182 = vmatpush.bf16.msra.mxu0 %v12937_v17 }
 0x745   :  { %v4403_v20 = vpop.f32.mrf.mxu2 }
 0x746   :  { %v4442_v27 = vpop.f32.mrf.mxu3  ;;  %v12869_v20 = vor.u32 %v16114_v10, %v12866_v0  ;;  %v12952_v10 = vld [vmem:[#allocation7 + $0x1300] sm:$0xf] }
 0x747   :  { %v4466_v33 = vpop.f32.mrf.mxu0  ;;  %v16133_v27 = vld [vmem:[#allocation7 + $0x12fc] sm:$0xf] }
 0x748   :  { %v17319_v19 = vadd.f32 %v4466_v33, %v17299_v56  ;;  %v4490_v44 = vpop.f32.mrf.mxu1  ;;  %v12989_v56 = vor.u32 %v16144_v57, %v12986_v35  ;;  %5183 = vmatpush.bf16.msra.mxu0 %v12913_v47  ;;  %v12949_v52 = vor.u32 %v16133_v27, %v12946_v29  ;;  %v12840_v33 = vld [vmem:[#allocation7 + $0x1230] sm:$0xf]  ;;  %v12920_v57 = vld [vmem:[#allocation7 + $0x12c8] sm:$0xf]  ;;  %v16130_v35 = vld [vmem:[#allocation7 + $0x12dc] sm:$0xf0] }
 0x749   :  { %v4491_v34 = vadd.f32 %v17274_v38, %v4490_v44  ;;  %v12962_v38 = vld [vmem:[#allocation7 + $0x1338] sm:$0xf0]  ;;  %v16111_v44 = vld [vmem:[#allocation7 + $0x1244] sm:$0xf0]  ;;  %v12921_v32 = vor.u32 %v16130_v35, %v12920_v57  ;;  %v16102_v47 = vld [vmem:[#allocation7 + $0x1204] sm:$0xf] }
 0x74a   :  { %v12965_v22 = vor.u32 %v16138_v21, %v12962_v38  ;;  %v12841_v17 = vor.u32 %v16111_v44, %v12840_v33  ;;  %v12818_v21 = vld [vmem:[#allocation7 + $0x1218] sm:$0xf0]  ;;  %v12896_v38 = vld [vmem:[#allocation7 + $0x1298] sm:$0xf]  ;;  %v12824_v27 = vld [vmem:[#allocation7 + $0x1208] sm:$0xf] }
 0x74b   :  { %v4494_v31 = vmax.f32 %v4491_v34, 0.0  ;;  %v16108_v34 = vld [vmem:[#allocation7 + $0x1234] sm:$0xf]  ;;  %v16106_v29 = vld [vmem:[#allocation7 + $0x121c] sm:$0xf0] }
 0x74c   :  { %5184 = vmatpush.bf16.msra.mxu0 %v12889_v28  ;;  %v16143_v28 = vld [vmem:[#allocation7 + $0x1344] sm:$0xf0]  ;;  %v12825_v33 = vor.u32 %v16106_v29, %v12824_v27  ;;  %v12826_v44 = vld [vmem:[#allocation7 + $0x1220] sm:$0xf0]  ;;  %v16128_v35 = vld [vmem:[#allocation7 + $0x12d4] sm:$0xf] }
 0x74d   :  { %v4495_v23 = vmin.f32 %v4494_v31, 6.0  ;;  %v4453_v41 = vpop.f32.mrf.mxu2  ;;  %v12842_v31 = vld [vmem:[#allocation7 + $0x1248] sm:$0xf0]  ;;  %v12977_v7 = vor.u32 %v16143_v28, %v12976_v40  ;;  %v16107_v40 = vld [vmem:[#allocation7 + $0x1224] sm:$0xf0] }
 0x74e   :  { %v17323_v54 = vadd.f32 %v4453_v41, %v17295_v16  ;;  %v12941_v16 = vor.u32 %v16132_v43, %v12938_v50  ;;  %v12845_v26 = vor.u32 %v16108_v34, %v12842_v31  ;;  %v12922_v41 = vld [vmem:[#allocation7 + $0x12e0] sm:$0xf0]  ;;  %v12821_v43 = vor.u32 %v16102_v47, %v12818_v21  ;;  %v12928_v34 = vld [vmem:[#allocation7 + $0x12d0] sm:$0xf]  ;;  %v12906_v47 = vld [vmem:[#allocation7 + $0x12b8] sm:$0xf0] }
 0x74f   :  { %v4496_v49 = vpack.c.bf16 %v4495_v23, %v4495_v23  ;;  %v4468_v45 = vpop.f32.mrf.mxu0  ;;  %v16127_v23 = vld [vmem:[#allocation7 + $0x12cc] sm:$0xf]  ;;  %v16104_v28 = vld [vmem:[#allocation7 + $0x1214] sm:$0xf]  ;;  %v17348_v27 = vld [vmem:[#allocation5] ss:$0 sm:$0xff] }
 0x750   :  { %v4492_v48 = vpop.f32.mrf.mxu1  ;;  %5185 = vmatpush.bf16.msra.mxu0 %v12865_v18  ;;  %v12816_v45 = vld [vmem:[#allocation7 + $0x1200] sm:$0xf]  ;;  %v16137_v18 = vld [vmem:[#allocation7 + $0x1314] sm:$0xf0] }
 0x751   :  { %4794 = vmatmul.bf16.vlgmr.msrb.gmra.mxu3 %v4496_v49  ;;  %4807 = vmatmul.bf16.vlgmr.msrb.gmra.mxu1 %v4496_v49  ;;  %v12953_v58 = vor.u32 %v16137_v18, %v12952_v10  ;;  %v16189_v10 = vld [vmem:[#allocation7 + $0x14b4] sm:$0xf0] }
 0x752   :  { %4820 = vmatmul.bf16.vlgmr.msrb.gmra.mxu2 %v4496_v49  ;;  %4833 = vmatmul.bf16.vlgmr.msrb.gmra.mxu0 %v4496_v49 }
 0x753   :  { %5193 = vmatpush.bf16.msrb.mxu2 %v12989_v56  ;;  %5206 = vmatpush.bf16.msrb.mxu3 %v12993_v60  ;;  %v16105_v56 = vld [vmem:[#allocation7 + $0x1214] sm:$0xf0]  ;;  %v12872_v60 = vld [vmem:[#allocation7 + $0x1268] sm:$0xf] }
 0x754   :  { %5219 = vmatpush.bf16.msrb.mxu1 %v12997_v2  ;;  %5186 = vmatpush.bf16.msra.mxu0 %v12841_v17  ;;  %v12817_v48 = vor.u32 %v16105_v56, %v12816_v45  ;;  %v16115_v2 = vld [vmem:[#allocation7 + $0x126c] sm:$0xf]  ;;  %v12873_v63 = vor.u32 %v16118_v61, %v12872_v60  ;;  %v16131_v17 = vld [vmem:[#allocation7 + $0x12e4] sm:$0xf0] }
 0x755   :  { %v4455_v51 = vpop.f32.mrf.mxu2  ;;  %v12877_v62 = vor.u32 %v16115_v2, %v12874_v53  ;;  %v12929_v57 = vor.u32 %v16131_v17, %v12928_v34  ;;  %v13180_v34 = vld [vmem:[#allocation7 + $0x14e8] sm:$0xf0]  ;;  %v13106_v17 = vld [vmem:[#allocation7 + $0x1440] sm:$0xf] }
 0x756   :  { %v16121_v51 = vld [vmem:[#allocation7 + $0x129c] sm:$0xf] }
 0x757   :  { %5194 = vmatpush.bf16.msrb.mxu2 %v12965_v22  ;;  %5207 = vmatpush.bf16.msrb.mxu3 %v12969_v11  ;;  %v16124_v22 = vld [vmem:[#allocation7 + $0x12ac] sm:$0xf0] }
 0x758   :  { %5220 = vmatpush.bf16.msrb.mxu1 %v12973_v59  ;;  %v12897_v50 = vor.u32 %v16124_v22, %v12896_v38  ;;  %5187 = vmatpush.bf16.msra.mxu0 %v12817_v48  ;;  %v16109_v59 = vld [vmem:[#allocation7 + $0x123c] sm:$0xf]  ;;  %v12880_v22 = vld [vmem:[#allocation7 + $0x1270] sm:$0xf] }
 0x759   :  { %v12853_v0 = vor.u32 %v16109_v59, %v12850_v6  ;;  %v13178_v59 = vld [vmem:[#allocation7 + $0x14d0] sm:$0xf]  ;;  %v13154_v6 = vld [vmem:[#allocation7 + $0x14a0] sm:$0xf] }
 0x75a   :  { %v13155_v18 = vor.u32 %v16189_v10, %v13154_v6 }
 0x75b   :  { %5195 = vmatpush.bf16.msrb.mxu2 %v12941_v16  ;;  %5208 = vmatpush.bf16.msrb.mxu3 %v12945_v4  ;;  %v12898_v16 = vld [vmem:[#allocation7 + $0x12b0] sm:$0xf0] }
 0x75c   :  { %5221 = vmatpush.bf16.msrb.mxu1 %v12949_v52  ;;  %v12901_v25 = vor.u32 %v16121_v51, %v12898_v16  ;;  %v16103_v52 = vld [vmem:[#allocation7 + $0x120c] sm:$0xf] }
 0x75d   :  { %v12829_v31 = vor.u32 %v16103_v52, %v12826_v44  ;;  %v12882_v16 = vld [vmem:[#allocation7 + $0x1288] sm:$0xf0]  ;;  %v16192_v44 = vld [vmem:[#allocation7 + $0x14d4] sm:$0xf] }
 0x75f   :  { %5196 = vmatpush.bf16.msrb.mxu2 %v12917_v37  ;;  %5209 = vmatpush.bf16.msrb.mxu3 %v12921_v32  ;;  %v16149_v37 = vld [vmem:[#allocation7 + $0x1374] sm:$0xf0] }
 0x760   :  { %v13001_v5 = vor.u32 %v16149_v37, %v13000_v39  ;;  %v12856_v37 = vld [vmem:[#allocation7 + $0x1240] sm:$0xf] }
 0x761   :  { %4846 = vmatmul.bf16.vlgmr.msra.gmra.mxu3 %v4496_v49  ;;  %4859 = vmatmul.bf16.vlgmr.msra.gmra.mxu1 %v4496_v49  ;;  %v12925_v49 = vor.u32 %v16127_v23, %v12922_v41  ;;  %v12904_v23 = vld [vmem:[#allocation7 + $0x12a0] sm:$0xf]  ;;  %v16125_v41 = vld [vmem:[#allocation7 + $0x12b4] sm:$0xf0] }
 0x762   :  { %12813 = vmatmul.msk.bf16.vlgmr.msra.gmra.mxu2 %vm140_vm1, %v12812_v24  ;;  %v16146_v24 = vld [vmem:[#allocation7 + $0x1364] sm:$0xf]  ;;  %5232 = vmatpush.bf16.msrb.mxu0 %v13001_v5  ;;  %v12905_v56 = vor.u32 %v16125_v41, %v12904_v23  ;;  %v12858_v5 = vld [vmem:[#allocation7 + $0x1258] sm:$0xf0] }
 0x763   :  { %5197 = vmatpush.bf16.msrb.mxu2 %v12893_v42  ;;  %5222 = vmatpush.bf16.msrb.mxu1 %v12925_v49  ;;  %v13005_v46 = vor.u32 %v16146_v24, %v13002_v55  ;;  %v12978_v42 = vld [vmem:[#allocation7 + $0x1348] sm:$0xf0]  ;;  %v16122_v49 = vld [vmem:[#allocation7 + $0x12a4] sm:$0xf]  ;;  %v16113_v24 = vld [vmem:[#allocation7 + $0x1254] sm:$0xf0] }
 0x764   :  { %5210 = vmatpush.bf16.msrb.mxu3 %v12897_v50  ;;  %v12981_v11 = vor.u32 %v16140_v8, %v12978_v42  ;;  %v12909_v38 = vor.u32 %v16122_v49, %v12906_v47  ;;  %v16116_v50 = vld [vmem:[#allocation7 + $0x1274] sm:$0xf]  ;;  %v16110_v55 = vld [vmem:[#allocation7 + $0x1244] sm:$0xf]  ;;  %v12857_v61 = vor.u32 %v16113_v24, %v12856_v37  ;;  %v13156_v49 = vld [vmem:[#allocation7 + $0x14b8] sm:$0xf0] }
 0x765   :  { %v12861_v2 = vor.u32 %v16110_v55, %v12858_v5  ;;  %v16186_v41 = vld [vmem:[#allocation7 + $0x14a4] sm:$0xf]  ;;  %v13132_v47 = vld [vmem:[#allocation7 + $0x1488] sm:$0xf0]  ;;  %v13188_v24 = vld [vmem:[#allocation7 + $0x14f0] sm:$0xf0] }
 0x766   :  { %5233 = vmatpush.bf16.msrb.mxu0 %v12977_v7  ;;  %v13082_v5 = vld [vmem:[#allocation7 + $0x1410] sm:$0xf] }
 0x767   :  { %5198 = vmatpush.bf16.msrb.mxu2 %v12869_v20  ;;  %5223 = vmatpush.bf16.msrb.mxu1 %v12901_v25  ;;  %v12954_v20 = vld [vmem:[#allocation7 + $0x1318] sm:$0xf0]  ;;  %v12885_v25 = vor.u32 %v16116_v50, %v12882_v16  ;;  %v13006_v50 = vld [vmem:[%s17652_s0 + $0xd] sm:$0x1]  ;;  %v13186_v16 = vld [vmem:[#allocation7 + $0x14d8] sm:$0xf] }
 0x768   :  { %5211 = vmatpush.bf16.msrb.mxu3 %v12873_v63  ;;  %v12957_v4 = vor.u32 %v16134_v36, %v12954_v20 }
 0x76a   :  { %5234 = vmatpush.bf16.msrb.mxu0 %v12953_v58  ;;  %v16183_v58 = vld [vmem:[#allocation7 + $0x1484] sm:$0xf0] }
 0x76b   :  { %5199 = vmatpush.bf16.msrb.mxu2 %v12845_v26  ;;  %5224 = vmatpush.bf16.msrb.mxu1 %v12877_v62  ;;  %v12930_v26 = vld [vmem:[#allocation7 + $0x12e8] sm:$0xf0] }
 0x76c   :  { %5212 = vmatpush.bf16.msrb.mxu3 %v12849_v15  ;;  %v12933_v32 = vor.u32 %v16128_v35, %v12930_v26  ;;  %v12834_v62 = vld [vmem:[#allocation7 + $0x1228] sm:$0xf0] }
 0x76d   :  { %v12837_v42 = vor.u32 %v16104_v28, %v12834_v62  ;;  %v16187_v62 = vld [vmem:[#allocation7 + $0x14ac] sm:$0xf] }
 0x76e   :  { %5235 = vmatpush.bf16.msrb.mxu0 %v12929_v57 }
 0x76f   :  { %5200 = vmatpush.bf16.msrb.mxu2 %v12821_v43  ;;  %5225 = vmatpush.bf16.msrb.mxu1 %v12853_v0  ;;  %v16119_v43 = vld [vmem:[#allocation7 + $0x1284] sm:$0xf0]  ;;  %v13130_v0 = vld [vmem:[#allocation7 + $0x1470] sm:$0xf] }
 0x770   :  { %5213 = vmatpush.bf16.msrb.mxu3 %v12825_v33  ;;  %v12881_v39 = vor.u32 %v16119_v43, %v12880_v22  ;;  %v13131_v52 = vor.u32 %v16183_v58, %v13130_v0  ;;  %v13108_v22 = vld [vmem:[#allocation7 + $0x1458] sm:$0xf0]  ;;  %v13140_v0 = vld [vmem:[#allocation7 + $0x1490] sm:$0xf0] }
 0x772   :  { %5236 = vmatpush.bf16.msrb.mxu0 %v12905_v56  ;;  %v16180_v56 = vld [vmem:[#allocation7 + $0x1474] sm:$0xf] }
 0x773   :  { %5245 = vmatpush.bf16.msra.mxu2 %v13005_v46  ;;  %5226 = vmatpush.bf16.msrb.mxu1 %v12829_v31  ;;  %v16177_v31 = vld [vmem:[#allocation7 + $0x1454] sm:$0xf0] }
 0x774   :  { %5276 = vmatpush.bf16.msra.mxu3 %v17045_v3 }
 0x776   :  { %5237 = vmatpush.bf16.msrb.mxu0 %v12881_v39  ;;  %v16196_v39 = vld [vmem:[#allocation7 + $0x14ec] sm:$0xf0] }
 0x777   :  { %5246 = vmatpush.bf16.msra.mxu2 %v12981_v11  ;;  %v13187_v37 = vor.u32 %v16196_v39, %v13186_v16  ;;  %v16194_v16 = vld [vmem:[#allocation7 + $0x14e4] sm:$0xf]  ;;  %v13196_v39 = vld [vmem:[#allocation7 + $0x14f8] sm:$0xf0] }
 0x77a   :  { %5238 = vmatpush.bf16.msrb.mxu0 %v12857_v61 }
 0x77b   :  { %5247 = vmatpush.bf16.msra.mxu2 %v12957_v4 }
 0x77f   :  { %5248 = vmatpush.bf16.msra.mxu2 %v12933_v32  ;;  %v13183_v32 = vor.u32 %v16192_v44, %v13180_v34  ;;  %v16178_v44 = vld [vmem:[#allocation7 + $0x145c] sm:$0xf0] }
 0x783   :  { %5249 = vmatpush.bf16.msra.mxu2 %v12909_v38  ;;  %v16174_v38 = vld [vmem:[#allocation7 + $0x1444] sm:$0xf] }
 0x784   :  { %v13111_v43 = vor.u32 %v16174_v38, %v13108_v22  ;;  %v13092_v38 = vld [vmem:[#allocation7 + $0x1430] sm:$0xf0]  ;;  %v13194_v22 = vld [vmem:[#allocation7 + $0x14e0] sm:$0xf] }
 0x787   :  { %5250 = vmatpush.bf16.msra.mxu2 %v12885_v25  ;;  %v16193_v25 = vld [vmem:[#allocation7 + $0x14dc] sm:$0xf] }
 0x788   :  { %v13191_v55 = vor.u32 %v16193_v25, %v13188_v24  ;;  %v13066_v24 = vld [vmem:[#allocation7 + $0x13e8] sm:$0xf] }
 0x78b   :  { %5251 = vmatpush.bf16.msra.mxu2 %v12861_v2  ;;  %v13084_v2 = vld [vmem:[#allocation7 + $0x1428] sm:$0xf0] }
 0x78f   :  { %5252 = vmatpush.bf16.msra.mxu2 %v12837_v42  ;;  %v13058_v42 = vld [vmem:[#allocation7 + $0x13e0] sm:$0xf] }
 0x7ce   :  { %v4808_v45 = vpop.f32.mrf.mxu1 }
 0x7cf   :  { %v17331_v48 = vadd.f32 %v4808_v45, %v17307_v30  ;;  %v4834_v21 = vpop.f32.mrf.mxu0  ;;  %v13159_v45 = vor.u32 %v16186_v41, %v13156_v49  ;;  %v13012_v41 = vld [vmem:[#allocation7 + $0x1398] sm:$0xf0]  ;;  %v13090_v49 = vld [vmem:[#allocation7 + $0x1418] sm:$0xf] }
 0x7d0   :  { %v17334_v51 = vadd.f32 %v4834_v21, %v17316_v9  ;;  %v12832_v9 = vld [vmem:[#allocation7 + $0x1210] sm:$0xf]  ;;  %v13135_v21 = vor.u32 %v16180_v56, %v13132_v47 }
 0x7d1   :  { %v12833_v8 = vor.u32 %v16107_v40, %v12832_v9  ;;  %v13162_v9 = vld [vmem:[#allocation7 + $0x14a8] sm:$0xf] }
 0x7d3   :  { %5239 = vmatpush.bf16.msrb.mxu0 %v12833_v8 }
 0x7d4   :  { %v4795_v46 = vpop.f32.mrf.mxu3 }
 0x7d5   :  { %v17337_v30 = vadd.f32 %v4795_v46, %v17313_v1  ;;  %v4821_v60 = vpop.f32.mrf.mxu2  ;;  %v16171_v46 = vld [vmem:[#allocation7 + $0x1424] sm:$0xf0] }
 0x7d6   :  { %v17340_v63 = vadd.f32 %v4821_v60, %v17310_v14  ;;  %v4810_v53 = vpop.f32.mrf.mxu1  ;;  %v16195_v14 = vld [vmem:[#allocation7 + $0x14e4] sm:$0xf0]  ;;  %v16168_v60 = vld [vmem:[#allocation7 + $0x1414] sm:$0xf]  ;;  %v13083_v61 = vor.u32 %v16171_v46, %v13082_v5  ;;  %v16163_v5 = vld [vmem:[#allocation7 + $0x13ec] sm:$0xf] }
 0x7d7   :  { %v4836_v7 = vpop.f32.mrf.mxu0  ;;  %v13179_v15 = vor.u32 %v16195_v14, %v13178_v59  ;;  %v16190_v53 = vld [vmem:[#allocation7 + $0x14bc] sm:$0xf0]  ;;  %v13087_v40 = vor.u32 %v16168_v60, %v13084_v2  ;;  %v13060_v59 = vld [vmem:[#allocation7 + $0x13f8] sm:$0xf0]  ;;  %v13138_v14 = vld [vmem:[#allocation7 + $0x1478] sm:$0xf] }
 0x7d8   :  { %v13163_v28 = vor.u32 %v16190_v53, %v13162_v9  ;;  %v13164_v7 = vld [vmem:[#allocation7 + $0x14c0] sm:$0xf0]  ;;  %v16191_v2 = vld [vmem:[#allocation7 + $0x14c4] sm:$0xf0] }
 0x7d9   :  { %5574 = vmatpush.bf16.msra.mxu1 %v13179_v15  ;;  %v13167_v8 = vor.u32 %v16187_v62, %v13164_v7  ;;  %v16184_v15 = vld [vmem:[#allocation7 + $0x148c] sm:$0xf0]  ;;  %v13068_v60 = vld [vmem:[#allocation7 + $0x1400] sm:$0xf0]  ;;  %v13042_v7 = vld [vmem:[#allocation7 + $0x13b8] sm:$0xf] }
 0x7da   :  { %v13139_v10 = vor.u32 %v16184_v15, %v13138_v14  ;;  %v13071_v9 = vor.u32 %v16163_v5, %v13068_v60 }
 0x7dc   :  { %v4797_v1 = vpop.f32.mrf.mxu3 }
 0x7dd   :  { %v4823_v11 = vpop.f32.mrf.mxu2  ;;  %5575 = vmatpush.bf16.msra.mxu1 %v13155_v18  ;;  %v16165_v1 = vld [vmem:[#allocation7 + $0x13f4] sm:$0xf0]  ;;  %v16181_v18 = vld [vmem:[#allocation7 + $0x147c] sm:$0xf] }
 0x7de   :  { %v4860_v12 = vpop.f32.mrf.mxu1  ;;  %v16162_v11 = vld [vmem:[#allocation7 + $0x13e4] sm:$0xf]  ;;  %v13143_v58 = vor.u32 %v16181_v18, %v13140_v0  ;;  %v13018_v0 = vld [vmem:[#allocation7 + $0x1388] sm:$0xf] }
 0x7df   :  { %v17343_v13 = vadd.f32 %v4860_v12, %v17319_v19  ;;  %v13059_v12 = vor.u32 %v16165_v1, %v13058_v42  ;;  %v13063_v6 = vor.u32 %v16162_v11, %v13060_v59  ;;  %v16157_v42 = vld [vmem:[#allocation7 + $0x13bc] sm:$0xf]  ;;  %v13044_v11 = vld [vmem:[#allocation7 + $0x13d0] sm:$0xf0]  ;;  %v16185_v59 = vld [vmem:[#allocation7 + $0x1494] sm:$0xf0] }
 0x7e0   :  { %v13047_v14 = vor.u32 %v16157_v42, %v13044_v11 }
 0x7e1   :  { %5576 = vmatpush.bf16.msra.mxu1 %v13131_v52  ;;  %v13036_v52 = vld [vmem:[#allocation7 + $0x13c8] sm:$0xf0] }
 0x7e4   :  { %v4847_v36 = vpop.f32.mrf.mxu3 }
 0x7e5   :  { %v17346_v20 = vadd.f32 %v4847_v36, %v17323_v54  ;;  %v4884_v4 = vpop.f32.mrf.mxu2  ;;  %v13107_v54 = vor.u32 %v16177_v31, %v13106_v17  ;;  %v13034_v36 = vld [vmem:[#allocation7 + $0x13b0] sm:$0xf]  ;;  %v16175_v31 = vld [vmem:[#allocation7 + $0x144c] sm:$0xf] }
 0x7e6   :  { %v4885_v29 = vadd.f32 %v17348_v27, %v4884_v4  ;;  %v4862_v19 = vpop.f32.mrf.mxu1  ;;  %v16159_v4 = vld [vmem:[#allocation7 + $0x13c4] sm:$0xf0] }
 0x7e7   :  { %5577 = vmatpush.bf16.msra.mxu1 %v13107_v54  ;;  %v13035_v19 = vor.u32 %v16159_v4, %v13034_v36  ;;  %v16150_v54 = vld [vmem:[#allocation7 + $0x1384] sm:$0xf]  ;;  %v16151_v36 = vld [vmem:[#allocation7 + $0x138c] sm:$0xf] }
 0x7e8   :  { %v4888_v33 = vmax.f32 %v4885_v29, 0.0  ;;  %v16156_v29 = vld [vmem:[#allocation7 + $0x13b4] sm:$0xf]  ;;  %v13015_v56 = vor.u32 %v16150_v54, %v13012_v41 }
 0x7e9   :  { %v13039_v34 = vor.u32 %v16156_v29, %v13036_v52  ;;  %v13020_v29 = vld [vmem:[#allocation7 + $0x13a0] sm:$0xf0]  ;;  %v16179_v52 = vld [vmem:[#allocation7 + $0x1464] sm:$0xf0] }
 0x7ea   :  { %v4889_v57 = vmin.f32 %v4888_v33, 6.0  ;;  %v13114_v33 = vld [vmem:[#allocation7 + $0x1448] sm:$0xf] }
 0x7eb   :  { %5578 = vmatpush.bf16.msra.mxu1 %v13083_v61  ;;  %v13115_v17 = vor.u32 %v16178_v44, %v13114_v33  ;;  %v13170_v61 = vld [vmem:[#allocation7 + $0x14b0] sm:$0xf]  ;;  %v13023_v33 = vor.u32 %v16151_v36, %v13020_v29 }
 0x7ec   :  { %v4890_v35 = vpack.c.bf16 %v4889_v57, %v4889_v57  ;;  %v4849_v26 = vpop.f32.mrf.mxu3  ;;  %v13116_v57 = vld [vmem:[#allocation7 + $0x1460] sm:$0xf0]  ;;  %v13171_v53 = vor.u32 %v16191_v2, %v13170_v61  ;;  %v16155_v2 = vld [vmem:[#allocation7 + $0x13a4] sm:$0xf0] }
 0x7ed   :  { %v4886_v23 = vpop.f32.mrf.mxu2  ;;  %v13010_v26 = vld [vmem:[#allocation7 + $0x1380] sm:$0xf] }
 0x7ee   :  { %5188 = vmatmul.bf16.vlgmr.msra.gmra.mxu0 %v4890_v35  ;;  %5201 = vmatmul.bf16.vlgmr.msrb.gmra.mxu2 %v4890_v35 }
 0x7ef   :  { %5214 = vmatmul.bf16.vlgmr.msrb.gmra.mxu3 %v4890_v35  ;;  %5227 = vmatmul.bf16.vlgmr.msrb.gmra.mxu1 %v4890_v35 }
 0x7f0   :  { %5587 = vmatpush.bf16.msrb.mxu3 %v13183_v32  ;;  %5600 = vmatpush.bf16.msra.mxu0 %v13187_v37  ;;  %v16153_v32 = vld [vmem:[#allocation7 + $0x1394] sm:$0xf0]  ;;  %v13199_v37 = vor.u32 %v16194_v16, %v13196_v39  ;;  %v13050_v16 = vld [vmem:[#allocation7 + $0x13c0] sm:$0xf] }
 0x7f1   :  { %5613 = vmatpush.bf16.msrb.mxu2 %v13191_v55  ;;  %5579 = vmatpush.bf16.msra.mxu1 %v13059_v12  ;;  %v13011_v23 = vor.u32 %v16153_v32, %v13010_v26  ;;  %v16166_v55 = vld [vmem:[#allocation7 + $0x13fc] sm:$0xf0]  ;;  %v16170_v26 = vld [vmem:[#allocation7 + $0x1424] sm:$0xf]  ;;  %v16161_v39 = vld [vmem:[#allocation7 + $0x13d4] sm:$0xf0] }
 0x7f2   :  { %v13067_v46 = vor.u32 %v16166_v55, %v13066_v24  ;;  %v13146_v12 = vld [vmem:[#allocation7 + $0x1480] sm:$0xf]  ;;  %v13051_v5 = vor.u32 %v16161_v39, %v13050_v16  ;;  %v13358_v16 = vld [vmem:[#allocation7 + $0x1640] sm:$0xf0] }
 0x7f3   :  { %v13147_v15 = vor.u32 %v16185_v59, %v13146_v12  ;;  %v13348_v12 = vld [vmem:[#allocation7 + $0x1620] sm:$0xf]  ;;  %v16237_v59 = vld [vmem:[#allocation7 + $0x1634] sm:$0xf0] }
 0x7f4   :  { %5588 = vmatpush.bf16.msrb.mxu3 %v13159_v45  ;;  %5601 = vmatpush.bf16.msra.mxu0 %v13163_v28  ;;  %v16172_v45 = vld [vmem:[#allocation7 + $0x142c] sm:$0xf0]  ;;  %v13172_v28 = vld [vmem:[#allocation7 + $0x14c8] sm:$0xf0] }
 0x7f5   :  { %5614 = vmatpush.bf16.msrb.mxu2 %v13167_v8  ;;  %5580 = vmatpush.bf16.msra.mxu1 %v13035_v19  ;;  %v13091_v47 = vor.u32 %v16172_v45, %v13090_v49  ;;  %v16160_v8 = vld [vmem:[#allocation7 + $0x13cc] sm:$0xf0] }
 0x7f6   :  { %v13043_v1 = vor.u32 %v16160_v8, %v13042_v7  ;;  %v13122_v19 = vld [vmem:[#allocation7 + $0x1450] sm:$0xf] }
 0x7f7   :  { %v13123_v44 = vor.u32 %v16179_v52, %v13122_v19  ;;  %v13374_v19 = vld [vmem:[#allocation7 + $0x1668] sm:$0xf0]  ;;  %v13300_v52 = vld [vmem:[#allocation7 + $0x15c0] sm:$0xf] }
 0x7f8   :  { %5589 = vmatpush.bf16.msrb.mxu3 %v13135_v21  ;;  %5602 = vmatpush.bf16.msra.mxu0 %v13139_v10  ;;  %v16169_v21 = vld [vmem:[#allocation7 + $0x141c] sm:$0xf] }
 0x7f9   :  { %5615 = vmatpush.bf16.msrb.mxu2 %v13143_v58  ;;  %5581 = vmatpush.bf16.msra.mxu1 %v13011_v23  ;;  %v13148_v10 = vld [vmem:[#allocation7 + $0x1498] sm:$0xf0]  ;;  %v16154_v58 = vld [vmem:[#allocation7 + $0x139c] sm:$0xf0] }
 0x7fa   :  { %v13019_v4 = vor.u32 %v16154_v58, %v13018_v0  ;;  %v13100_v23 = vld [vmem:[#allocation7 + $0x1438] sm:$0xf0] }
 0x7fb   :  { %v13103_v45 = vor.u32 %v16170_v26, %v13100_v23 }
 0x7fc   :  { %5590 = vmatpush.bf16.msrb.mxu3 %v13111_v43  ;;  %5603 = vmatpush.bf16.msra.mxu0 %v13115_v17  ;;  %v13095_v43 = vor.u32 %v16169_v21, %v13092_v38  ;;  %v13124_v17 = vld [vmem:[#allocation7 + $0x1468] sm:$0xf0]  ;;  %v16164_v21 = vld [vmem:[#allocation7 + $0x13f4] sm:$0xf] }
 0x7fe   :  { %5240 = vmatmul.bf16.vlgmr.msrb.gmra.mxu0 %v4890_v35  ;;  %5253 = vmatmul.bf16.vlgmr.msra.gmra.mxu2 %v4890_v35  ;;  %v13119_v35 = vor.u32 %v16175_v31, %v13116_v57  ;;  %v13098_v57 = vld [vmem:[#allocation7 + $0x1420] sm:$0xf] }
 0x7ff   :  { %13007 = vmatmul.msk.bf16.vlgmr.msra.gmra.mxu3 %vm140_vm1, %v13006_v50  ;;  %v16197_v50 = vld [vmem:[#allocation7 + $0x14f4] sm:$0xf0] }
 0x800   :  { %5591 = vmatpush.bf16.msrb.mxu3 %v13087_v40  ;;  %5616 = vmatpush.bf16.msrb.mxu2 %v13119_v35  ;;  %v13195_v25 = vor.u32 %v16197_v50, %v13194_v22  ;;  %v16188_v40 = vld [vmem:[#allocation7 + $0x14b4] sm:$0xf]  ;;  %v16173_v35 = vld [vmem:[#allocation7 + $0x1434] sm:$0xf0]  ;;  %v13076_v22 = vld [vmem:[#allocation7 + $0x1408] sm:$0xf0] }
 0x801   :  { %5604 = vmatpush.bf16.msra.mxu0 %v13091_v47  ;;  %v13175_v62 = vor.u32 %v16188_v40, %v13172_v28  ;;  %v13099_v54 = vor.u32 %v16173_v35, %v13098_v57  ;;  %v16167_v47 = vld [vmem:[#allocation7 + $0x1404] sm:$0xf0]  ;;  %v13079_v50 = vor.u32 %v16164_v21, %v13076_v22  ;;  %v13382_v57 = vld [vmem:[#allocation7 + $0x1670] sm:$0xf0] }
 0x802   :  { %5626 = vmatpush.bf16.msrb.mxu1 %v13195_v25  ;;  %v16158_v25 = vld [vmem:[#allocation7 + $0x13c4] sm:$0xf]  ;;  %v16219_v21 = vld [vmem:[#allocation7 + $0x15a4] sm:$0xf0] }
 0x803   :  { %v13356_v22 = vld [vmem:[#allocation7 + $0x1628] sm:$0xf] }
 0x804   :  { %5592 = vmatpush.bf16.msrb.mxu3 %v13063_v6  ;;  %5617 = vmatpush.bf16.msrb.mxu2 %v13095_v43  ;;  %v16182_v6 = vld [vmem:[#allocation7 + $0x1484] sm:$0xf] }
 0x805   :  { %5605 = vmatpush.bf16.msra.mxu0 %v13067_v46  ;;  %v13151_v18 = vor.u32 %v16182_v6, %v13148_v10  ;;  %v16231_v6 = vld [vmem:[#allocation7 + $0x1604] sm:$0xf0] }
 0x806   :  { %5627 = vmatpush.bf16.msrb.mxu1 %v13171_v53  ;;  %v13028_v53 = vld [vmem:[#allocation7 + $0x13a8] sm:$0xf0] }
 0x808   :  { %5593 = vmatpush.bf16.msrb.mxu3 %v13039_v34  ;;  %5618 = vmatpush.bf16.msrb.mxu2 %v13071_v9  ;;  %v16176_v34 = vld [vmem:[#allocation7 + $0x1454] sm:$0xf] }
 0x809   :  { %5606 = vmatpush.bf16.msra.mxu0 %v13043_v1  ;;  %v13127_v31 = vor.u32 %v16176_v34, %v13124_v17  ;;  %v16152_v9 = vld [vmem:[#allocation7 + $0x1394] sm:$0xf]  ;;  %v13372_v1 = vld [vmem:[#allocation7 + $0x1650] sm:$0xf] }
 0x80a   :  { %5628 = vmatpush.bf16.msrb.mxu1 %v13147_v15  ;;  %v13324_v15 = vld [vmem:[#allocation7 + $0x15f0] sm:$0xf] }
 0x80b   :  { %v16244_v34 = vld [vmem:[#allocation7 + $0x166c] sm:$0xf0] }
 0x80c   :  { %5594 = vmatpush.bf16.msrb.mxu3 %v13015_v56  ;;  %5619 = vmatpush.bf16.msrb.mxu2 %v13047_v14  ;;  %v13074_v56 = vld [vmem:[#allocation7 + $0x13f0] sm:$0xf]  ;;  %v13349_v14 = vor.u32 %v16237_v59, %v13348_v12 }
 0x80d   :  { %5607 = vmatpush.bf16.msra.mxu0 %v13019_v4  ;;  %v13075_v43 = vor.u32 %v16167_v47, %v13074_v56  ;;  %v16240_v4 = vld [vmem:[#allocation7 + $0x1654] sm:$0xf]  ;;  %v13276_v47 = vld [vmem:[#allocation7 + $0x1590] sm:$0xf] }
 0x80e   :  { %5629 = vmatpush.bf16.msrb.mxu1 %v13123_v44  ;;  %v13380_v44 = vld [vmem:[#allocation7 + $0x1658] sm:$0xf]  ;;  %v13377_v26 = vor.u32 %v16240_v4, %v13374_v19  ;;  %v16226_v19 = vld [vmem:[#allocation7 + $0x15dc] sm:$0xf0] }
 0x810   :  { %5639 = vmatpush.bf16.msra.mxu3 %v13199_v37  ;;  %5620 = vmatpush.bf16.msrb.mxu2 %v13023_v33  ;;  %v13052_v37 = vld [vmem:[#allocation7 + $0x13d8] sm:$0xf0]  ;;  %v16225_v33 = vld [vmem:[#allocation7 + $0x15d4] sm:$0xf0] }
 0x811   :  { %5670 = vmatpush.bf16.msrb.mxu0 %v17045_v3  ;;  %v13055_v46 = vor.u32 %v16158_v25, %v13052_v37  ;;  %v13301_v23 = vor.u32 %v16225_v33, %v13300_v52  ;;  %v13277_v25 = vor.u32 %v16219_v21, %v13276_v47  ;;  %v16228_v37 = vld [vmem:[#allocation7 + $0x15f4] sm:$0xf]  ;;  %v16223_v52 = vld [vmem:[#allocation7 + $0x15cc] sm:$0xf]  ;;  %v16245_v21 = vld [vmem:[#allocation7 + $0x1674] sm:$0xf0] }
 0x812   :  { %5630 = vmatpush.bf16.msrb.mxu1 %v13099_v54  ;;  %v13350_v54 = vld [vmem:[#allocation7 + $0x1638] sm:$0xf0] }
 0x814   :  { %5640 = vmatpush.bf16.msra.mxu3 %v13175_v62  ;;  %v13031_v62 = vor.u32 %v16152_v9, %v13028_v53  ;;  %v16216_v9 = vld [vmem:[#allocation7 + $0x1594] sm:$0xf]  ;;  %v13278_v53 = vld [vmem:[#allocation7 + $0x15a8] sm:$0xf0] }
 0x816   :  { %5631 = vmatpush.bf16.msrb.mxu1 %v13075_v43  ;;  %v16238_v43 = vld [vmem:[#allocation7 + $0x163c] sm:$0xf0] }
 0x818   :  { %5641 = vmatpush.bf16.msra.mxu3 %v13151_v18 }
 0x81a   :  { %5632 = vmatpush.bf16.msrb.mxu1 %v13051_v5 }
 0x81c   :  { %5642 = vmatpush.bf16.msra.mxu3 %v13127_v31  ;;  %v16241_v31 = vld [vmem:[#allocation7 + $0x165c] sm:$0xf] }
 0x81d   :  { %v13385_v56 = vor.u32 %v16241_v31, %v13382_v57  ;;  %v16201_v31 = vld [vmem:[#allocation7 + $0x1514] sm:$0xf0]  ;;  %v16198_v57 = vld [vmem:[#allocation7 + $0x1504] sm:$0xf] }
 0x820   :  { %5643 = vmatpush.bf16.msra.mxu3 %v13103_v45  ;;  %v13381_v45 = vor.u32 %v16244_v34, %v13380_v44  ;;  %v13310_v44 = vld [vmem:[#allocation7 + $0x15e0] sm:$0xf0] }
 0x821   :  { %v13313_v34 = vor.u32 %v16223_v52, %v13310_v44  ;;  %v13318_v52 = vld [vmem:[#allocation7 + $0x15e8] sm:$0xf0]  ;;  %v13292_v44 = vld [vmem:[#allocation7 + $0x15a0] sm:$0xf] }
 0x824   :  { %5644 = vmatpush.bf16.msra.mxu3 %v13079_v50  ;;  %v16235_v50 = vld [vmem:[#allocation7 + $0x162c] sm:$0xf] }
 0x825   :  { %v13361_v5 = vor.u32 %v16235_v50, %v13358_v16 }
 0x828   :  { %5645 = vmatpush.bf16.msra.mxu3 %v13055_v46 }
 0x82c   :  { %5646 = vmatpush.bf16.msra.mxu3 %v13031_v62  ;;  %v13252_v62 = vld [vmem:[#allocation7 + $0x1560] sm:$0xf] }
 0x86b   :  { %v5189_v32 = vpop.f32.mrf.mxu0 }
 0x86c   :  { %v17357_v41 = vadd.f32 %v5189_v32, %v17337_v30  ;;  %v5228_v49 = vpop.f32.mrf.mxu1  ;;  %v16234_v32 = vld [vmem:[#allocation7 + $0x1624] sm:$0xf] }
 0x86d   :  { %v17360_v38 = vadd.f32 %v5228_v49, %v17334_v51  ;;  %v13026_v51 = vld [vmem:[#allocation7 + $0x1390] sm:$0xf]  ;;  %v13353_v39 = vor.u32 %v16234_v32, %v13350_v54 }
 0x86e   :  { %v13027_v28 = vor.u32 %v16155_v2, %v13026_v51  ;;  %v16222_v51 = vld [vmem:[#allocation7 + $0x15c4] sm:$0xf]  ;;  %v16220_v32 = vld [vmem:[#allocation7 + $0x15ac] sm:$0xf0] }
 0x870   :  { %5633 = vmatpush.bf16.msrb.mxu1 %v13027_v28  ;;  %v13281_v28 = vor.u32 %v16216_v9, %v13278_v53  ;;  %v13366_v9 = vld [vmem:[#allocation7 + $0x1648] sm:$0xf0] }
 0x871   :  { %v5202_v24 = vpop.f32.mrf.mxu2 }
 0x872   :  { %v17363_v30 = vadd.f32 %v5202_v24, %v17331_v48  ;;  %v5215_v55 = vpop.f32.mrf.mxu3  ;;  %v13326_v24 = vld [vmem:[#allocation7 + $0x1608] sm:$0xf0] }
 0x873   :  { %v17366_v60 = vadd.f32 %v5215_v55, %v17340_v63  ;;  %v5191_v61 = vpop.f32.mrf.mxu0  ;;  %v16243_v63 = vld [vmem:[#allocation7 + $0x1664] sm:$0xf0]  ;;  %v13357_v55 = vor.u32 %v16238_v43, %v13356_v22  ;;  %v13329_v46 = vor.u32 %v16228_v37, %v13326_v24  ;;  %v16242_v22 = vld [vmem:[#allocation7 + $0x1664] sm:$0xf]  ;;  %v13390_v43 = vld [vmem:[#allocation7 + $0x1678] sm:$0xf0] }
 0x874   :  { %v5230_v40 = vpop.f32.mrf.mxu1  ;;  %v13373_v11 = vor.u32 %v16243_v63, %v13372_v1  ;;  %v13302_v61 = vld [vmem:[#allocation7 + $0x15d8] sm:$0xf0]  ;;  %v13332_v63 = vld [vmem:[#allocation7 + $0x15f8] sm:$0xf]  ;;  %v13393_v16 = vor.u32 %v16242_v22, %v13390_v43  ;;  %v16211_v37 = vld [vmem:[#allocation7 + $0x156c] sm:$0xf] }
 0x875   :  { %v13305_v2 = vor.u32 %v16222_v51, %v13302_v61  ;;  %v13200_v40 = vld [vmem:[%s17652_s0 + $0xe] sm:$0x1]  ;;  %v13254_v1 = vld [vmem:[#allocation7 + $0x1578] sm:$0xf0] }
 0x876   :  { %5968 = vmatpush.bf16.msra.mxu2 %v13373_v11  ;;  %v16232_v11 = vld [vmem:[#allocation7 + $0x160c] sm:$0xf0] }
 0x877   :  { %v13333_v59 = vor.u32 %v16232_v11, %v13332_v63 }
 0x879   :  { %v5204_v48 = vpop.f32.mrf.mxu2 }
 0x87a   :  { %v5217_v7 = vpop.f32.mrf.mxu3  ;;  %5969 = vmatpush.bf16.msra.mxu2 %v13349_v14  ;;  %v16213_v48 = vld [vmem:[#allocation7 + $0x1574] sm:$0xf0]  ;;  %v16229_v14 = vld [vmem:[#allocation7 + $0x15fc] sm:$0xf] }
 0x87b   :  { %v5241_v8 = vpop.f32.mrf.mxu0  ;;  %v16210_v7 = vld [vmem:[#allocation7 + $0x1564] sm:$0xf] }
 0x87c   :  { %v17369_v42 = vadd.f32 %v5241_v8, %v17346_v20  ;;  %v13325_v20 = vor.u32 %v16231_v6, %v13324_v15  ;;  %v13253_v8 = vor.u32 %v16213_v48, %v13252_v62  ;;  %v13257_v12 = vor.u32 %v16210_v7, %v13254_v1  ;;  %v13334_v15 = vld [vmem:[#allocation7 + $0x1610] sm:$0xf0]  ;;  %v16205_v62 = vld [vmem:[#allocation7 + $0x153c] sm:$0xf]  ;;  %v16233_v1 = vld [vmem:[#allocation7 + $0x1614] sm:$0xf0] }
 0x87d   :  { %v13337_v6 = vor.u32 %v16229_v14, %v13334_v15  ;;  %v13238_v7 = vld [vmem:[#allocation7 + $0x1550] sm:$0xf0]  ;;  %v13212_v15 = vld [vmem:[#allocation7 + $0x1508] sm:$0xf] }
 0x87e   :  { %5970 = vmatpush.bf16.msra.mxu2 %v13325_v20  ;;  %v13230_v20 = vld [vmem:[#allocation7 + $0x1548] sm:$0xf0]  ;;  %v13241_v63 = vor.u32 %v16205_v62, %v13238_v7  ;;  %v16285_v7 = vld [vmem:[#allocation7 + $0x17b4] sm:$0xf0] }
 0x881   :  { %v5254_v10 = vpop.f32.mrf.mxu2 }
 0x882   :  { %v17372_v18 = vadd.f32 %v5254_v10, %v17343_v13  ;;  %v5278_v0 = vpop.f32.mrf.mxu3  ;;  %5971 = vmatpush.bf16.msra.mxu2 %v13301_v23  ;;  %v13228_v10 = vld [vmem:[#allocation7 + $0x1530] sm:$0xf] }
 0x883   :  { %v5279_v58 = vadd.f32 %v17348_v27, %v5278_v0  ;;  %v5243_v36 = vpop.f32.mrf.mxu0  ;;  %v16207_v0 = vld [vmem:[#allocation7 + $0x1544] sm:$0xf0] }
 0x884   :  { %v13229_v36 = vor.u32 %v16207_v0, %v13228_v10  ;;  %v16199_v10 = vld [vmem:[#allocation7 + $0x150c] sm:$0xf] }
 0x885   :  { %v5282_v29 = vmax.f32 %v5279_v58, 0.0  ;;  %v16204_v58 = vld [vmem:[#allocation7 + $0x1534] sm:$0xf] }
 0x886   :  { %5972 = vmatpush.bf16.msra.mxu2 %v13277_v25  ;;  %v13233_v4 = vor.u32 %v16204_v58, %v13230_v20  ;;  %v16214_v25 = vld [vmem:[#allocation7 + $0x157c] sm:$0xf0]  ;;  %v13214_v58 = vld [vmem:[#allocation7 + $0x1520] sm:$0xf0]  ;;  %v16227_v20 = vld [vmem:[#allocation7 + $0x15e4] sm:$0xf0] }
 0x887   :  { %v5283_v17 = vmin.f32 %v5282_v29, 6.0  ;;  %v13308_v29 = vld [vmem:[#allocation7 + $0x15c8] sm:$0xf] }
 0x888   :  { %v13309_v33 = vor.u32 %v16226_v19, %v13308_v29  ;;  %v16224_v19 = vld [vmem:[#allocation7 + $0x15d4] sm:$0xf] }
 0x889   :  { %v5284_v35 = vpack.c.bf16 %v5283_v17, %v5283_v17  ;;  %v5256_v13 = vpop.f32.mrf.mxu2  ;;  %v13204_v17 = vld [vmem:[#allocation7 + $0x1500] sm:$0xf] }
 0x88a   :  { %v5280_v49 = vpop.f32.mrf.mxu3  ;;  %5973 = vmatpush.bf16.msra.mxu2 %v13253_v8  ;;  %v13206_v13 = vld [vmem:[#allocation7 + $0x1518] sm:$0xf0]  ;;  %v13340_v8 = vld [vmem:[#allocation7 + $0x1600] sm:$0xf] }
 0x88b   :  { %5582 = vmatmul.bf16.vlgmr.msra.gmra.mxu1 %v5284_v35  ;;  %5595 = vmatmul.bf16.vlgmr.msrb.gmra.mxu3 %v5284_v35  ;;  %v13209_v54 = vor.u32 %v16198_v57, %v13206_v13  ;;  %v16217_v49 = vld [vmem:[#allocation7 + $0x159c] sm:$0xf]  ;;  %v13341_v11 = vor.u32 %v16233_v1, %v13340_v8  ;;  %v13268_v13 = vld [vmem:[#allocation7 + $0x1570] sm:$0xf] }
 0x88c   :  { %5608 = vmatmul.bf16.vlgmr.msra.gmra.mxu0 %v5284_v35  ;;  %5621 = vmatmul.bf16.vlgmr.msrb.gmra.mxu2 %v5284_v35  ;;  %v13294_v57 = vld [vmem:[#allocation7 + $0x15b8] sm:$0xf0] }
 0x88d   :  { %5981 = vmatpush.bf16.msra.mxu0 %v13377_v26  ;;  %5994 = vmatpush.bf16.msra.mxu1 %v13381_v45  ;;  %v13284_v26 = vld [vmem:[#allocation7 + $0x1598] sm:$0xf]  ;;  %v13286_v45 = vld [vmem:[#allocation7 + $0x15b0] sm:$0xf0] }
 0x88e   :  { %6007 = vmatpush.bf16.msrb.mxu3 %v13385_v56  ;;  %5974 = vmatpush.bf16.msra.mxu2 %v13229_v36  ;;  %v13285_v23 = vor.u32 %v16220_v32, %v13284_v26  ;;  %v13388_v56 = vld [vmem:[#allocation7 + $0x1660] sm:$0xf]  ;;  %v13289_v47 = vor.u32 %v16217_v49, %v13286_v45  ;;  %v13316_v36 = vld [vmem:[#allocation7 + $0x15d0] sm:$0xf]  ;;  %v16215_v26 = vld [vmem:[#allocation7 + $0x1584] sm:$0xf0] }
 0x88f   :  { %v13389_v50 = vor.u32 %v16245_v21, %v13388_v56  ;;  %v13317_v29 = vor.u32 %v16227_v20, %v13316_v36  ;;  %v16212_v32 = vld [vmem:[#allocation7 + $0x1574] sm:$0xf]  ;;  %v13244_v49 = vld [vmem:[#allocation7 + $0x1540] sm:$0xf]  ;;  %v16209_v45 = vld [vmem:[#allocation7 + $0x1554] sm:$0xf0] }
 0x890   :  { %v13246_v21 = vld [vmem:[#allocation7 + $0x1558] sm:$0xf0]  ;;  %v16273_v36 = vld [vmem:[#allocation7 + $0x1754] sm:$0xf0] }
 0x891   :  { %5982 = vmatpush.bf16.msra.mxu0 %v13353_v39  ;;  %5995 = vmatpush.bf16.msra.mxu1 %v13357_v55  ;;  %v13260_v39 = vld [vmem:[#allocation7 + $0x1568] sm:$0xf]  ;;  %v13262_v55 = vld [vmem:[#allocation7 + $0x1580] sm:$0xf0]  ;;  %v13574_v20 = vld [vmem:[#allocation7 + $0x17d8] sm:$0xf] }
 0x892   :  { %6008 = vmatpush.bf16.msrb.mxu3 %v13361_v5  ;;  %v13261_v24 = vor.u32 %v16214_v25, %v13260_v39  ;;  %v13364_v5 = vld [vmem:[#allocation7 + $0x1630] sm:$0xf]  ;;  %v13265_v51 = vor.u32 %v16211_v37, %v13262_v55  ;;  %v16200_v55 = vld [vmem:[#allocation7 + $0x1514] sm:$0xf] }
 0x893   :  { %v13220_v25 = vld [vmem:[#allocation7 + $0x1510] sm:$0xf] }
 0x895   :  { %5983 = vmatpush.bf16.msra.mxu0 %v13329_v46  ;;  %5996 = vmatpush.bf16.msra.mxu1 %v13333_v59  ;;  %v16239_v46 = vld [vmem:[#allocation7 + $0x1644] sm:$0xf0]  ;;  %v13342_v59 = vld [vmem:[#allocation7 + $0x1618] sm:$0xf0] }
 0x896   :  { %6009 = vmatpush.bf16.msrb.mxu3 %v13337_v6  ;;  %v13365_v61 = vor.u32 %v16239_v46, %v13364_v5  ;;  %v16202_v6 = vld [vmem:[#allocation7 + $0x151c] sm:$0xf0]  ;;  %v13222_v5 = vld [vmem:[#allocation7 + $0x1528] sm:$0xf0] }
 0x897   :  { %v13213_v0 = vor.u32 %v16202_v6, %v13212_v15  ;;  %v16288_v6 = vld [vmem:[#allocation7 + $0x17d4] sm:$0xf] }
 0x899   :  { %5984 = vmatpush.bf16.msra.mxu0 %v13305_v2  ;;  %5997 = vmatpush.bf16.msra.mxu1 %v13309_v33  ;;  %v16236_v2 = vld [vmem:[#allocation7 + $0x1634] sm:$0xf]  ;;  %v13321_v33 = vor.u32 %v16224_v19, %v13318_v52  ;;  %v16289_v52 = vld [vmem:[#allocation7 + $0x17dc] sm:$0xf] }
 0x89a   :  { %6010 = vmatpush.bf16.msrb.mxu3 %v13313_v34  ;;  %v13369_v53 = vor.u32 %v16236_v2, %v13366_v9  ;;  %v16221_v34 = vld [vmem:[#allocation7 + $0x15b4] sm:$0xf0] }
 0x89b   :  { %5634 = vmatmul.bf16.vlgmr.msrb.gmra.mxu1 %v5284_v35  ;;  %5647 = vmatmul.bf16.vlgmr.msra.gmra.mxu3 %v5284_v35  ;;  %v13205_v35 = vor.u32 %v16201_v31, %v13204_v17  ;;  %v16218_v17 = vld [vmem:[#allocation7 + $0x15a4] sm:$0xf]  ;;  %v13293_v31 = vor.u32 %v16221_v34, %v13292_v44 }
 0x89c   :  { %13201 = vmatmul.msk.bf16.vlgmr.msrb.gmra.mxu0 %vm140_vm1, %v13200_v40  ;;  %v13236_v40 = vld [vmem:[#allocation7 + $0x1538] sm:$0xf] }
 0x89d   :  { %5985 = vmatpush.bf16.msra.mxu0 %v13281_v28  ;;  %5975 = vmatpush.bf16.msra.mxu2 %v13205_v35  ;;  %v16208_v28 = vld [vmem:[#allocation7 + $0x154c] sm:$0xf0]  ;;  %v13297_v35 = vor.u32 %v16218_v17, %v13294_v57  ;;  %v16282_v17 = vld [vmem:[#allocation7 + $0x17a4] sm:$0xf] }
 0x89e   :  { %5998 = vmatpush.bf16.msra.mxu1 %v13285_v23  ;;  %6011 = vmatpush.bf16.msrb.mxu3 %v13289_v47  ;;  %v13237_v48 = vor.u32 %v16208_v28, %v13236_v40  ;;  %v13270_v23 = vld [vmem:[#allocation7 + $0x1588] sm:$0xf0]  ;;  %v16206_v47 = vld [vmem:[#allocation7 + $0x1544] sm:$0xf]  ;;  %v16291_v28 = vld [vmem:[#allocation7 + $0x17e4] sm:$0xf0] }
 0x89f   :  { %v13273_v56 = vor.u32 %v16212_v32, %v13270_v23  ;;  %v13249_v39 = vor.u32 %v16206_v47, %v13246_v21  ;;  %v13470_v32 = vld [vmem:[#allocation7 + $0x1710] sm:$0xf]  ;;  %v13550_v23 = vld [vmem:[#allocation7 + $0x17a8] sm:$0xf]  ;;  %v16276_v21 = vld [vmem:[#allocation7 + $0x1774] sm:$0xf] }
 0x8a1   :  { %5986 = vmatpush.bf16.msra.mxu0 %v13257_v12  ;;  %6020 = vmatpush.bf16.msrb.mxu2 %v13389_v50  ;;  %v16230_v12 = vld [vmem:[#allocation7 + $0x1604] sm:$0xf] }
 0x8a2   :  { %5999 = vmatpush.bf16.msra.mxu1 %v13261_v24  ;;  %6012 = vmatpush.bf16.msrb.mxu3 %v13265_v51  ;;  %v13345_v14 = vor.u32 %v16230_v12, %v13342_v59  ;;  %v16203_v24 = vld [vmem:[#allocation7 + $0x1524] sm:$0xf0]  ;;  %v13225_v51 = vor.u32 %v16200_v55, %v13222_v5  ;;  %v13496_v55 = vld [vmem:[#allocation7 + $0x1758] sm:$0xf0] }
 0x8a3   :  { %v13221_v46 = vor.u32 %v16203_v24, %v13220_v25  ;;  %v16270_v24 = vld [vmem:[#allocation7 + $0x1744] sm:$0xf] }
 0x8a4   :  { %v13499_v5 = vor.u32 %v16270_v24, %v13496_v55  ;;  %v16284_v55 = vld [vmem:[#allocation7 + $0x17b4] sm:$0xf] }
 0x8a5   :  { %5987 = vmatpush.bf16.msra.mxu0 %v13233_v4  ;;  %6021 = vmatpush.bf16.msrb.mxu2 %v13365_v61  ;;  %v13217_v4 = vor.u32 %v16199_v10, %v13214_v58  ;;  %v13494_v58 = vld [vmem:[#allocation7 + $0x1740] sm:$0xf] }
 0x8a6   :  { %6000 = vmatpush.bf16.msra.mxu1 %v13237_v48  ;;  %6013 = vmatpush.bf16.msrb.mxu3 %v13241_v63  ;;  %v13542_v48 = vld [vmem:[#allocation7 + $0x17a0] sm:$0xf]  ;;  %v13495_v57 = vor.u32 %v16273_v36, %v13494_v58  ;;  %v16271_v36 = vld [vmem:[#allocation7 + $0x174c] sm:$0xf] }
 0x8a7   :  { %v13543_v1 = vor.u32 %v16285_v7, %v13542_v48  ;;  %v13526_v48 = vld [vmem:[#allocation7 + $0x1778] sm:$0xf]  ;;  %v16280_v7 = vld [vmem:[#allocation7 + $0x178c] sm:$0xf0]  ;;  %v16274_v58 = vld [vmem:[#allocation7 + $0x175c] sm:$0xf0] }
 0x8a9   :  { %5988 = vmatpush.bf16.msra.mxu0 %v13209_v54  ;;  %6022 = vmatpush.bf16.msrb.mxu2 %v13341_v11  ;;  %v13269_v54 = vor.u32 %v16215_v26, %v13268_v13  ;;  %v13518_v11 = vld [vmem:[#allocation7 + $0x1770] sm:$0xf] }
 0x8aa   :  { %6001 = vmatpush.bf16.msra.mxu1 %v13213_v0  ;;  %6014 = vmatpush.bf16.msrb.mxu3 %v13217_v4  ;;  %v13568_v0 = vld [vmem:[#allocation7 + $0x17e8] sm:$0xf0]  ;;  %v16292_v4 = vld [vmem:[#allocation7 + $0x17ec] sm:$0xf0] }
 0x8ab   :  { %v13575_v13 = vor.u32 %v16292_v4, %v13574_v20  ;;  %v13504_v4 = vld [vmem:[#allocation7 + $0x1760] sm:$0xf0] }
 0x8ad   :  { %6033 = vmatpush.bf16.msrb.mxu0 %v13393_v16  ;;  %6023 = vmatpush.bf16.msrb.mxu2 %v13317_v29  ;;  %v13245_v16 = vor.u32 %v16209_v45, %v13244_v49  ;;  %v16286_v49 = vld [vmem:[#allocation7 + $0x17bc] sm:$0xf0]  ;;  %v16283_v45 = vld [vmem:[#allocation7 + $0x17ac] sm:$0xf] }
 0x8ae   :  { %6064 = vmatpush.bf16.msrb.mxu1 %v17045_v3 }
 0x8b1   :  { %6034 = vmatpush.bf16.msrb.mxu0 %v13369_v53  ;;  %6024 = vmatpush.bf16.msrb.mxu2 %v13293_v31  ;;  %v13544_v31 = vld [vmem:[#allocation7 + $0x17b8] sm:$0xf0] }
 0x8b5   :  { %6035 = vmatpush.bf16.msrb.mxu0 %v13345_v14  ;;  %6025 = vmatpush.bf16.msrb.mxu2 %v13269_v54  ;;  %v16267_v54 = vld [vmem:[#allocation7 + $0x1724] sm:$0xf0] }
 0x8b6   :  { %v13471_v47 = vor.u32 %v16267_v54, %v13470_v32  ;;  %v16293_v54 = vld [vmem:[#allocation7 + $0x17f4] sm:$0xf0] }
 0x8b9   :  { %6036 = vmatpush.bf16.msrb.mxu0 %v13321_v33  ;;  %6026 = vmatpush.bf16.msrb.mxu2 %v13245_v16  ;;  %v13576_v33 = vld [vmem:[#allocation7 + $0x17f0] sm:$0xf0] }
 0x8ba   :  { %v13579_v26 = vor.u32 %v16289_v52, %v13576_v33  ;;  %v16249_v52 = vld [vmem:[#allocation7 + $0x1694] sm:$0xf0]  ;;  %v16246_v33 = vld [vmem:[#allocation7 + $0x1684] sm:$0xf] }
 0x8bd   :  { %6037 = vmatpush.bf16.msrb.mxu0 %v13297_v35  ;;  %6027 = vmatpush.bf16.msrb.mxu2 %v13221_v46  ;;  %v16264_v46 = vld [vmem:[#allocation7 + $0x1714] sm:$0xf] }
 0x8c1   :  { %6038 = vmatpush.bf16.msrb.mxu0 %v13273_v56  ;;  %v13552_v56 = vld [vmem:[#allocation7 + $0x17c0] sm:$0xf0] }
 0x8c2   :  { %v13555_v16 = vor.u32 %v16283_v45, %v13552_v56 }
 0x8c5   :  { %6039 = vmatpush.bf16.msrb.mxu0 %v13249_v39 }
 0x8c9   :  { %6040 = vmatpush.bf16.msrb.mxu0 %v13225_v51  ;;  %v13472_v51 = vld [vmem:[#allocation7 + $0x1728] sm:$0xf0] }
 0x908   :  { %v5583_v22 = vpop.f32.mrf.mxu1 }
 0x909   :  { %v17381_v43 = vadd.f32 %v5583_v22, %v17357_v41  ;;  %v5609_v50 = vpop.f32.mrf.mxu0  ;;  %v13520_v22 = vld [vmem:[#allocation7 + $0x1788] sm:$0xf0] }
 0x90a   :  { %v17384_v37 = vadd.f32 %v5609_v50, %v17366_v60  ;;  %v13566_v60 = vld [vmem:[#allocation7 + $0x17d0] sm:$0xf]  ;;  %v13551_v50 = vor.u32 %v16286_v49, %v13550_v23  ;;  %v13523_v25 = vor.u32 %v16276_v21, %v13520_v22  ;;  %v16290_v23 = vld [vmem:[#allocation7 + $0x17e4] sm:$0xf]  ;;  %v13584_v49 = vld [vmem:[#allocation7 + $0x17f8] sm:$0xf0] }
 0x90b   :  { %v13567_v62 = vor.u32 %v16291_v28, %v13566_v60  ;;  %v16258_v60 = vld [vmem:[#allocation7 + $0x16e4] sm:$0xf]  ;;  %v13587_v56 = vor.u32 %v16290_v23, %v13584_v49  ;;  %v16259_v21 = vld [vmem:[#allocation7 + $0x16ec] sm:$0xf] }
 0x90d   :  { %6362 = vmatpush.bf16.msra.mxu3 %v13567_v62  ;;  %v13448_v62 = vld [vmem:[#allocation7 + $0x16f8] sm:$0xf0] }
 0x90e   :  { %v5596_v61 = vpop.f32.mrf.mxu3 }
 0x90f   :  { %v17387_v41 = vadd.f32 %v5596_v61, %v17363_v30  ;;  %v5622_v2 = vpop.f32.mrf.mxu2  ;;  %v16279_v30 = vld [vmem:[#allocation7 + $0x1784] sm:$0xf0] }
 0x910   :  { %v17390_v9 = vadd.f32 %v5622_v2, %v17360_v38  ;;  %v5585_v53 = vpop.f32.mrf.mxu1  ;;  %v13519_v15 = vor.u32 %v16279_v30, %v13518_v11  ;;  %v13394_v61 = vld [vmem:[%s17652_s0 + $0xf] sm:$0x1]  ;;  %v13475_v2 = vor.u32 %v16264_v46, %v13472_v51  ;;  %v13528_v11 = vld [vmem:[#allocation7 + $0x1790] sm:$0xf0]  ;;  %v13430_v51 = vld [vmem:[#allocation7 + $0x16b8] sm:$0xf] }
 0x911   :  { %v5611_v40 = vpop.f32.mrf.mxu0  ;;  %6363 = vmatpush.bf16.msra.mxu3 %v13543_v1  ;;  %v13446_v53 = vld [vmem:[#allocation7 + $0x16e0] sm:$0xf]  ;;  %v13527_v1 = vor.u32 %v16280_v7, %v13526_v48  ;;  %v16278_v7 = vld [vmem:[#allocation7 + $0x1784] sm:$0xf] }
 0x912   :  { %v16261_v40 = vld [vmem:[#allocation7 + $0x16f4] sm:$0xf0] }
 0x913   :  { %v13447_v28 = vor.u32 %v16261_v40, %v13446_v53  ;;  %v13432_v40 = vld [vmem:[#allocation7 + $0x16d0] sm:$0xf0] }
 0x915   :  { %6364 = vmatpush.bf16.msra.mxu3 %v13519_v15 }
 0x916   :  { %v5598_v8 = vpop.f32.mrf.mxu3 }
 0x917   :  { %v5624_v63 = vpop.f32.mrf.mxu2  ;;  %v13451_v8 = vor.u32 %v16258_v60, %v13448_v62  ;;  %v13534_v60 = vld [vmem:[#allocation7 + $0x1780] sm:$0xf] }
 0x918   :  { %v5635_v12 = vpop.f32.mrf.mxu1  ;;  %v16277_v63 = vld [vmem:[#allocation7 + $0x177c] sm:$0xf] }
 0x919   :  { %v17393_v59 = vadd.f32 %v5635_v12, %v17369_v42  ;;  %v5672_v38 = vpop.f32.mrf.mxu0  ;;  %6365 = vmatpush.bf16.msra.mxu3 %v13495_v57  ;;  %v13531_v30 = vor.u32 %v16277_v63, %v13528_v11  ;;  %v13422_v12 = vld [vmem:[#allocation7 + $0x16b0] sm:$0xf]  ;;  %v13406_v63 = vld [vmem:[#allocation7 + $0x1688] sm:$0xf]  ;;  %v16250_v11 = vld [vmem:[#allocation7 + $0x169c] sm:$0xf0] }
 0x91a   :  { %v5673_v14 = vadd.f32 %v17348_v27, %v5672_v38  ;;  %v13571_v27 = vor.u32 %v16288_v6, %v13568_v0  ;;  %v16255_v38 = vld [vmem:[#allocation7 + $0x16c4] sm:$0xf0]  ;;  %v13424_v6 = vld [vmem:[#allocation7 + $0x16c8] sm:$0xf0] }
 0x91b   :  { %v13423_v15 = vor.u32 %v16255_v38, %v13422_v12  ;;  %v13502_v0 = vld [vmem:[#allocation7 + $0x1748] sm:$0xf]  ;;  %v13407_v12 = vor.u32 %v16250_v11, %v13406_v63  ;;  %v13408_v38 = vld [vmem:[#allocation7 + $0x16a0] sm:$0xf0] }
 0x91c   :  { %v5676_v10 = vmax.f32 %v5673_v14, 0.0  ;;  %v16252_v14 = vld [vmem:[#allocation7 + $0x16b4] sm:$0xf]  ;;  %v13503_v20 = vor.u32 %v16274_v58, %v13502_v0  ;;  %v13512_v58 = vld [vmem:[#allocation7 + $0x1768] sm:$0xf0] }
 0x91d   :  { %6366 = vmatpush.bf16.msra.mxu3 %v13471_v47  ;;  %v16262_v47 = vld [vmem:[#allocation7 + $0x16fc] sm:$0xf0]  ;;  %v16272_v0 = vld [vmem:[#allocation7 + $0x1754] sm:$0xf] }
 0x91e   :  { %v5677_v29 = vmin.f32 %v5676_v10, 6.0  ;;  %v5648_v19 = vpop.f32.mrf.mxu3  ;;  %v13427_v10 = vor.u32 %v16252_v14, %v13424_v6  ;;  %v13510_v14 = vld [vmem:[#allocation7 + $0x1750] sm:$0xf] }
 0x91f   :  { %v17397_v42 = vadd.f32 %v5648_v19, %v17372_v18  ;;  %v13547_v18 = vor.u32 %v16282_v17, %v13544_v31  ;;  %v13398_v19 = vld [vmem:[#allocation7 + $0x1680] sm:$0xf]  ;;  %v16268_v17 = vld [vmem:[#allocation7 + $0x172c] sm:$0xf0] }
 0x920   :  { %v5678_v44 = vpack.c.bf16 %v5677_v29, %v5677_v29  ;;  %v5637_v34 = vpop.f32.mrf.mxu1  ;;  %v13507_v29 = vor.u32 %v16271_v36, %v13504_v4  ;;  %v13515_v36 = vor.u32 %v16272_v0, %v13512_v58  ;;  %v16269_v4 = vld [vmem:[#allocation7 + $0x1734] sm:$0xf0] }
 0x921   :  { %v5674_v35 = vpop.f32.mrf.mxu0  ;;  %6367 = vmatpush.bf16.msra.mxu3 %v13447_v28  ;;  %v13400_v34 = vld [vmem:[#allocation7 + $0x1698] sm:$0xf0]  ;;  %v16281_v28 = vld [vmem:[#allocation7 + $0x1794] sm:$0xf0] }
 0x922   :  { %5976 = vmatmul.bf16.vlgmr.msra.gmra.mxu2 %v5678_v44  ;;  %5989 = vmatmul.bf16.vlgmr.msra.gmra.mxu0 %v5678_v44  ;;  %v13403_v31 = vor.u32 %v16246_v33, %v13400_v34  ;;  %v16265_v35 = vld [vmem:[#allocation7 + $0x171c] sm:$0xf]  ;;  %v13535_v48 = vor.u32 %v16281_v28, %v13534_v60  ;;  %v16263_v34 = vld [vmem:[#allocation7 + $0x1704] sm:$0xf0] }
 0x923   :  { %6002 = vmatmul.bf16.vlgmr.msra.gmra.mxu1 %v5678_v44  ;;  %6015 = vmatmul.bf16.vlgmr.msrb.gmra.mxu3 %v5678_v44 }
 0x924   :  { %6375 = vmatpush.bf16.msra.mxu1 %v13571_v27  ;;  %6388 = vmatpush.bf16.msra.mxu2 %v13575_v13  ;;  %v13478_v27 = vld [vmem:[#allocation7 + $0x1718] sm:$0xf]  ;;  %v13480_v13 = vld [vmem:[#allocation7 + $0x1730] sm:$0xf0] }
 0x925   :  { %6401 = vmatpush.bf16.msra.mxu0 %v13579_v26  ;;  %6368 = vmatpush.bf16.msra.mxu3 %v13423_v15  ;;  %v13479_v57 = vor.u32 %v16268_v17, %v13478_v27  ;;  %v13582_v26 = vld [vmem:[#allocation7 + $0x17e0] sm:$0xf]  ;;  %v13483_v32 = vor.u32 %v16265_v35, %v13480_v13  ;;  %v16275_v15 = vld [vmem:[#allocation7 + $0x1764] sm:$0xf0]  ;;  %v16260_v27 = vld [vmem:[#allocation7 + $0x16f4] sm:$0xf] }
 0x926   :  { %v5650_v39 = vpop.f32.mrf.mxu3  ;;  %v13583_v45 = vor.u32 %v16293_v54, %v13582_v26  ;;  %v16257_v35 = vld [vmem:[#allocation7 + $0x16d4] sm:$0xf0]  ;;  %v16254_v26 = vld [vmem:[#allocation7 + $0x16c4] sm:$0xf] }
 0x927   :  { %v16287_v39 = vld [vmem:[#allocation7 + $0x17c4] sm:$0xf0] }
 0x928   :  { %6376 = vmatpush.bf16.msra.mxu1 %v13547_v18  ;;  %6389 = vmatpush.bf16.msra.mxu2 %v13551_v50  ;;  %v13454_v18 = vld [vmem:[#allocation7 + $0x16e8] sm:$0xf]  ;;  %v13456_v50 = vld [vmem:[#allocation7 + $0x1700] sm:$0xf0] }
 0x929   :  { %6402 = vmatpush.bf16.msra.mxu0 %v13555_v16  ;;  %v13455_v22 = vor.u32 %v16262_v47, %v13454_v18  ;;  %v13558_v16 = vld [vmem:[#allocation7 + $0x17b0] sm:$0xf] }
 0x92a   :  { %v13559_v24 = vor.u32 %v16287_v39, %v13558_v16  ;;  %v13414_v18 = vld [vmem:[#allocation7 + $0x1690] sm:$0xf] }
 0x92c   :  { %6377 = vmatpush.bf16.msra.mxu1 %v13523_v25  ;;  %6390 = vmatpush.bf16.msra.mxu2 %v13527_v1  ;;  %v13459_v25 = vor.u32 %v16259_v21, %v13456_v50  ;;  %v16251_v21 = vld [vmem:[#allocation7 + $0x16a4] sm:$0xf0]  ;;  %v13416_v50 = vld [vmem:[#allocation7 + $0x16a8] sm:$0xf0] }
 0x92d   :  { %6403 = vmatpush.bf16.msra.mxu0 %v13531_v30  ;;  %v16247_v30 = vld [vmem:[#allocation7 + $0x168c] sm:$0xf]  ;;  %v13415_v16 = vor.u32 %v16251_v21, %v13414_v18 }
 0x92e   :  { %v13411_v6 = vor.u32 %v16247_v30, %v13408_v38  ;;  %v16336_v30 = vld [vmem:[#allocation7 + $0x1954] sm:$0xf]  ;;  %v13688_v38 = vld [vmem:[#allocation7 + $0x18c0] sm:$0xf]  ;;  %v13666_v21 = vld [vmem:[#allocation7 + $0x18a8] sm:$0xf0] }
 0x930   :  { %6378 = vmatpush.bf16.msra.mxu1 %v13499_v5  ;;  %6391 = vmatpush.bf16.msra.mxu2 %v13503_v20  ;;  %v13560_v5 = vld [vmem:[#allocation7 + $0x17c8] sm:$0xf0]  ;;  %v13486_v20 = vld [vmem:[#allocation7 + $0x1720] sm:$0xf] }
 0x931   :  { %6404 = vmatpush.bf16.msra.mxu0 %v13507_v29  ;;  %v13563_v46 = vor.u32 %v16284_v55, %v13560_v5  ;;  %v16266_v29 = vld [vmem:[#allocation7 + $0x1724] sm:$0xf] }
 0x932   :  { %6028 = vmatmul.bf16.vlgmr.msrb.gmra.mxu2 %v5678_v44  ;;  %6041 = vmatmul.bf16.vlgmr.msrb.gmra.mxu0 %v5678_v44  ;;  %v13399_v44 = vor.u32 %v16249_v52, %v13398_v19  ;;  %v13487_v19 = vor.u32 %v16269_v4, %v13486_v20  ;;  %v13488_v52 = vld [vmem:[#allocation7 + $0x1738] sm:$0xf0]  ;;  %v16330_v4 = vld [vmem:[#allocation7 + $0x1924] sm:$0xf] }
 0x933   :  { %13395 = vmatmul.msk.bf16.vlgmr.msrb.gmra.mxu1 %vm140_vm1, %v13394_v61  ;;  %v16256_v61 = vld [vmem:[#allocation7 + $0x16cc] sm:$0xf0]  ;;  %v13491_v33 = vor.u32 %v16266_v29, %v13488_v52  ;;  %v13738_v29 = vld [vmem:[#allocation7 + $0x1938] sm:$0xf0]  ;;  %v16324_v52 = vld [vmem:[#allocation7 + $0x18f4] sm:$0xf] }
 0x934   :  { %6379 = vmatpush.bf16.msra.mxu1 %v13475_v2  ;;  %6369 = vmatpush.bf16.msra.mxu3 %v13399_v44  ;;  %v16253_v2 = vld [vmem:[#allocation7 + $0x16bc] sm:$0xf]  ;;  %v13431_v53 = vor.u32 %v16256_v61, %v13430_v51  ;;  %v13462_v44 = vld [vmem:[#allocation7 + $0x16f0] sm:$0xf]  ;;  %v16339_v51 = vld [vmem:[#allocation7 + $0x1964] sm:$0xf0] }
 0x935   :  { %6392 = vmatpush.bf16.msra.mxu2 %v13479_v57  ;;  %6405 = vmatpush.bf16.msra.mxu0 %v13483_v32  ;;  %v13435_v62 = vor.u32 %v16253_v2, %v13432_v40  ;;  %v13463_v17 = vor.u32 %v16263_v34, %v13462_v44  ;;  %v13438_v57 = vld [vmem:[#allocation7 + $0x16c0] sm:$0xf]  ;;  %v13440_v32 = vld [vmem:[#allocation7 + $0x16d8] sm:$0xf0]  ;;  %v16318_v34 = vld [vmem:[#allocation7 + $0x18c4] sm:$0xf] }
 0x936   :  { %v13736_v2 = vld [vmem:[#allocation7 + $0x1920] sm:$0xf] }
 0x938   :  { %6380 = vmatpush.bf16.msra.mxu1 %v13451_v8  ;;  %6414 = vmatpush.bf16.msrb.mxu3 %v13583_v45  ;;  %v13536_v8 = vld [vmem:[#allocation7 + $0x1798] sm:$0xf0]  ;;  %v13439_v45 = vor.u32 %v16257_v35, %v13438_v57  ;;  %v13768_v57 = vld [vmem:[#allocation7 + $0x1958] sm:$0xf]  ;;  %v16340_v35 = vld [vmem:[#allocation7 + $0x196c] sm:$0xf0] }
 0x939   :  { %6393 = vmatpush.bf16.msra.mxu2 %v13455_v22  ;;  %6406 = vmatpush.bf16.msra.mxu0 %v13459_v25  ;;  %v13539_v1 = vor.u32 %v16278_v7, %v13536_v8  ;;  %v16248_v22 = vld [vmem:[#allocation7 + $0x1694] sm:$0xf]  ;;  %v17419_v8 = vld [vmem:[#allocation5] ss:$0 sm:$0xff] }
 0x93a   :  { %v13419_v39 = vor.u32 %v16248_v22, %v13416_v50  ;;  %v13744_v22 = vld [vmem:[#allocation7 + $0x1928] sm:$0xf]  ;;  %v16334_v50 = vld [vmem:[#allocation7 + $0x193c] sm:$0xf0] }
 0x93c   :  { %6381 = vmatpush.bf16.msra.mxu1 %v13427_v10  ;;  %6415 = vmatpush.bf16.msrb.mxu3 %v13559_v24  ;;  %v13511_v10 = vor.u32 %v16275_v15, %v13510_v14  ;;  %v16321_v14 = vld [vmem:[#allocation7 + $0x18d4] sm:$0xf0] }
 0x93d   :  { %6394 = vmatpush.bf16.msra.mxu2 %v13431_v53  ;;  %6407 = vmatpush.bf16.msra.mxu0 %v13435_v62  ;;  %v16333_v53 = vld [vmem:[#allocation7 + $0x1934] sm:$0xf0]  ;;  %v13712_v62 = vld [vmem:[#allocation7 + $0x18f0] sm:$0xf] }
 0x93e   :  { %v13737_v60 = vor.u32 %v16333_v53, %v13736_v2  ;;  %v13642_v2 = vld [vmem:[#allocation7 + $0x1878] sm:$0xf0]  ;;  %v13720_v53 = vld [vmem:[#allocation7 + $0x18f8] sm:$0xf] }
 0x940   :  { %6382 = vmatpush.bf16.msra.mxu1 %v13403_v31  ;;  %6416 = vmatpush.bf16.msrb.mxu3 %v13535_v48  ;;  %v13464_v31 = vld [vmem:[#allocation7 + $0x1708] sm:$0xf0] }
 0x941   :  { %6395 = vmatpush.bf16.msra.mxu2 %v13407_v12  ;;  %6408 = vmatpush.bf16.msra.mxu0 %v13411_v6  ;;  %v13467_v13 = vor.u32 %v16260_v27, %v13464_v31  ;;  %v13762_v12 = vld [vmem:[#allocation7 + $0x1968] sm:$0xf0]  ;;  %v13690_v27 = vld [vmem:[#allocation7 + $0x18d8] sm:$0xf0]  ;;  %v13588_v31 = vld [vmem:[%s17652_s0 + $0x10] sm:$0x1] }
 0x942   :  { %v13765_v58 = vor.u32 %v16336_v30, %v13762_v12  ;;  %v13618_v30 = vld [vmem:[#allocation7 + $0x1848] sm:$0xf0]  ;;  %v13696_v12 = vld [vmem:[#allocation7 + $0x18c8] sm:$0xf] }
 0x944   :  { %6427 = vmatpush.bf16.msrb.mxu1 %v13587_v56  ;;  %6417 = vmatpush.bf16.msrb.mxu3 %v13511_v10  ;;  %v13443_v56 = vor.u32 %v16254_v26, %v13440_v32  ;;  %v13769_v26 = vor.u32 %v16340_v35, %v13768_v57  ;;  %v13770_v32 = vld [vmem:[#allocation7 + $0x1970] sm:$0xf0]  ;;  %v16338_v57 = vld [vmem:[#allocation7 + $0x1964] sm:$0xf]  ;;  %v13778_v35 = vld [vmem:[#allocation7 + $0x1978] sm:$0xf0] }
 0x945   :  { %6458 = vmatpush.bf16.msrb.mxu2 %v17045_v3 }
 0x948   :  { %6428 = vmatpush.bf16.msrb.mxu1 %v13563_v46  ;;  %6418 = vmatpush.bf16.msrb.mxu3 %v13487_v19  ;;  %v13741_v19 = vor.u32 %v16330_v4, %v13738_v29  ;;  %v13594_v29 = vld [vmem:[#allocation7 + $0x1818] sm:$0xf0] }
 0x94c   :  { %6429 = vmatpush.bf16.msrb.mxu1 %v13539_v1  ;;  %6419 = vmatpush.bf16.msrb.mxu3 %v13463_v17  ;;  %v13693_v17 = vor.u32 %v16318_v34, %v13690_v27  ;;  %v13674_v34 = vld [vmem:[#allocation7 + $0x18b0] sm:$0xf0]  ;;  %v13776_v27 = vld [vmem:[#allocation7 + $0x1960] sm:$0xf] }
 0x950   :  { %6430 = vmatpush.bf16.msrb.mxu1 %v13515_v36  ;;  %6420 = vmatpush.bf16.msrb.mxu3 %v13439_v45  ;;  %v13689_v36 = vor.u32 %v16321_v14, %v13688_v38  ;;  %v16315_v45 = vld [vmem:[#allocation7 + $0x18a4] sm:$0xf0]  ;;  %v16322_v38 = vld [vmem:[#allocation7 + $0x18dc] sm:$0xf0] }
 0x954   :  { %6431 = vmatpush.bf16.msrb.mxu1 %v13491_v33  ;;  %6421 = vmatpush.bf16.msrb.mxu3 %v13415_v16  ;;  %v13714_v33 = vld [vmem:[#allocation7 + $0x1908] sm:$0xf0] }
 0x958   :  { %6432 = vmatpush.bf16.msrb.mxu1 %v13467_v13  ;;  %v16337_v13 = vld [vmem:[#allocation7 + $0x195c] sm:$0xf] }
 0x95c   :  { %6433 = vmatpush.bf16.msrb.mxu1 %v13443_v56  ;;  %v16312_v56 = vld [vmem:[#allocation7 + $0x1894] sm:$0xf] }
 0x95d   :  { %v13669_v16 = vor.u32 %v16312_v56, %v13666_v21  ;;  %v13650_v56 = vld [vmem:[#allocation7 + $0x1880] sm:$0xf0]  ;;  %v16335_v21 = vld [vmem:[#allocation7 + $0x1944] sm:$0xf0] }
 0x960   :  { %6434 = vmatpush.bf16.msrb.mxu1 %v13419_v39  ;;  %v13745_v39 = vor.u32 %v16334_v50, %v13744_v22 }
 0x99f   :  { %v5990_v54 = vpop.f32.mrf.mxu0 }
 0x9a0   :  { %v17405_v23 = vadd.f32 %v5990_v54, %v17387_v41  ;;  %v6003_v49 = vpop.f32.mrf.mxu1  ;;  %v13773_v54 = vor.u32 %v16337_v13, %v13770_v32  ;;  %v13648_v32 = vld [vmem:[#allocation7 + $0x1868] sm:$0xf] }
 0x9a1   :  { %v17408_v47 = vadd.f32 %v6003_v49, %v17384_v37  ;;  %v13760_v37 = vld [vmem:[#allocation7 + $0x1950] sm:$0xf] }
 0x9a2   :  { %v13761_v61 = vor.u32 %v16339_v51, %v13760_v37  ;;  %v13664_v49 = vld [vmem:[#allocation7 + $0x1890] sm:$0xf]  ;;  %v16309_v37 = vld [vmem:[#allocation7 + $0x1874] sm:$0xf0]  ;;  %v16306_v51 = vld [vmem:[#allocation7 + $0x1864] sm:$0xf] }
 0x9a3   :  { %v13665_v18 = vor.u32 %v16315_v45, %v13664_v49  ;;  %v16307_v49 = vld [vmem:[#allocation7 + $0x186c] sm:$0xf] }
 0x9a4   :  { %6756 = vmatpush.bf16.msrb.mxu0 %v13761_v61  ;;  %v13653_v22 = vor.u32 %v16307_v49, %v13650_v56 }
 0x9a5   :  { %v5977_v25 = vpop.f32.mrf.mxu2 }
 0x9a6   :  { %v17411_v41 = vadd.f32 %v5977_v25, %v17381_v43  ;;  %v6016_v24 = vpop.f32.mrf.mxu3  ;;  %v16327_v43 = vld [vmem:[#allocation7 + $0x1904] sm:$0xf0]  ;;  %v16331_v25 = vld [vmem:[#allocation7 + $0x192c] sm:$0xf] }
 0x9a7   :  { %v17414_v55 = vadd.f32 %v6016_v24, %v17390_v9  ;;  %v5992_v5 = vpop.f32.mrf.mxu0  ;;  %v13713_v63 = vor.u32 %v16327_v43, %v13712_v62  ;;  %v13746_v24 = vld [vmem:[#allocation7 + $0x1940] sm:$0xf0]  ;;  %v16325_v62 = vld [vmem:[#allocation7 + $0x18fc] sm:$0xf]  ;;  %v13722_v43 = vld [vmem:[#allocation7 + $0x1910] sm:$0xf0] }
 0x9a8   :  { %v6005_v46 = vpop.f32.mrf.mxu1  ;;  %6757 = vmatpush.bf16.msrb.mxu0 %v13737_v60  ;;  %v13749_v5 = vor.u32 %v16331_v25, %v13746_v24  ;;  %v13645_v60 = vor.u32 %v16306_v51, %v13642_v2  ;;  %v13624_v24 = vld [vmem:[#allocation7 + $0x1838] sm:$0xf]  ;;  %v13626_v51 = vld [vmem:[#allocation7 + $0x1850] sm:$0xf0] }
 0x9a9   :  { %v13640_v46 = vld [vmem:[#allocation7 + $0x1860] sm:$0xf]  ;;  %v16329_v2 = vld [vmem:[#allocation7 + $0x1914] sm:$0xf0] }
 0x9aa   :  { %v13641_v61 = vor.u32 %v16309_v37, %v13640_v46  ;;  %v16301_v46 = vld [vmem:[#allocation7 + $0x183c] sm:$0xf] }
 0x9ac   :  { %6758 = vmatpush.bf16.msrb.mxu0 %v13713_v63  ;;  %v16300_v63 = vld [vmem:[#allocation7 + $0x1834] sm:$0xf] }
 0x9ad   :  { %v5979_v40 = vpop.f32.mrf.mxu2  ;;  %v13621_v14 = vor.u32 %v16300_v63, %v13618_v30  ;;  %v13602_v63 = vld [vmem:[#allocation7 + $0x1820] sm:$0xf0]  ;;  %v16323_v30 = vld [vmem:[#allocation7 + $0x18e4] sm:$0xf0] }
 0x9ae   :  { %v6018_v28 = vpop.f32.mrf.mxu3  ;;  %v16328_v40 = vld [vmem:[#allocation7 + $0x190c] sm:$0xf0] }
 0x9af   :  { %v6042_v48 = vpop.f32.mrf.mxu0  ;;  %v13721_v28 = vor.u32 %v16328_v40, %v13720_v53  ;;  %v13629_v53 = vor.u32 %v16301_v46, %v13626_v51 }
 0x9b0   :  { %v17417_v7 = vadd.f32 %v6042_v48, %v17397_v42  ;;  %v6066_v9 = vpop.f32.mrf.mxu1  ;;  %6759 = vmatpush.bf16.msrb.mxu0 %v13689_v36  ;;  %v13725_v48 = vor.u32 %v16325_v62, %v13722_v43  ;;  %v16297_v36 = vld [vmem:[#allocation7 + $0x1814] sm:$0xf0]  ;;  %v13600_v43 = vld [vmem:[#allocation7 + $0x1808] sm:$0xf] }
 0x9b1   :  { %v6067_v1 = vadd.f32 %v17419_v8, %v6066_v9  ;;  %v13616_v9 = vld [vmem:[#allocation7 + $0x1830] sm:$0xf] }
 0x9b3   :  { %v6070_v11 = vmax.f32 %v6067_v1, 0.0  ;;  %v16303_v1 = vld [vmem:[#allocation7 + $0x1844] sm:$0xf0] }
 0x9b4   :  { %6760 = vmatpush.bf16.msrb.mxu0 %v13665_v18  ;;  %v13752_v18 = vld [vmem:[#allocation7 + $0x1930] sm:$0xf] }
 0x9b5   :  { %v6071_v15 = vmin.f32 %v6070_v11, 6.0  ;;  %v6029_v6 = vpop.f32.mrf.mxu2  ;;  %v13617_v11 = vor.u32 %v16303_v1, %v13616_v9  ;;  %v13753_v50 = vor.u32 %v16335_v21, %v13752_v18  ;;  %v16295_v9 = vld [vmem:[#allocation7 + $0x180c] sm:$0xf]  ;;  %v16299_v21 = vld [vmem:[#allocation7 + $0x1824] sm:$0xf0] }
 0x9b6   :  { %v17423_v10 = vadd.f32 %v6029_v6, %v17393_v59  ;;  %v13717_v59 = vor.u32 %v16324_v52, %v13714_v33  ;;  %v16319_v6 = vld [vmem:[#allocation7 + $0x18cc] sm:$0xf]  ;;  %v16316_v52 = vld [vmem:[#allocation7 + $0x18ac] sm:$0xf0] }
 0x9b7   :  { %v6072_v42 = vpack.c.bf16 %v6071_v15, %v6071_v15  ;;  %v6044_v0 = vpop.f32.mrf.mxu0  ;;  %v13697_v15 = vor.u32 %v16322_v38, %v13696_v12  ;;  %v13605_v12 = vor.u32 %v16295_v9, %v13602_v63  ;;  %v16384_v63 = vld [vmem:[#allocation7 + $0x1ad4] sm:$0xf] }
 0x9b8   :  { %v6068_v20 = vpop.f32.mrf.mxu1  ;;  %6761 = vmatpush.bf16.msrb.mxu0 %v13641_v61  ;;  %v13728_v61 = vld [vmem:[#allocation7 + $0x1900] sm:$0xf] }
 0x9b9   :  { %6370 = vmatmul.bf16.vlgmr.msra.gmra.mxu3 %v6072_v42  ;;  %6383 = vmatmul.bf16.vlgmr.msra.gmra.mxu1 %v6072_v42  ;;  %v16294_v20 = vld [vmem:[#allocation7 + $0x1804] sm:$0xf]  ;;  %v13729_v40 = vor.u32 %v16329_v2, %v13728_v61  ;;  %v13930_v61 = vld [vmem:[#allocation7 + $0x1aa0] sm:$0xf]  ;;  %v16381_v2 = vld [vmem:[#allocation7 + $0x1ab4] sm:$0xf0] }
 0x9ba   :  { %6396 = vmatmul.bf16.vlgmr.msra.gmra.mxu2 %v6072_v42  ;;  %6409 = vmatmul.bf16.vlgmr.msra.gmra.mxu0 %v6072_v42  ;;  %v13597_v33 = vor.u32 %v16294_v20, %v13594_v29 }
 0x9bb   :  { %6769 = vmatpush.bf16.msra.mxu2 %v13765_v58  ;;  %6782 = vmatpush.bf16.msra.mxu3 %v13769_v26  ;;  %v13592_v58 = vld [vmem:[#allocation7 + $0x1800] sm:$0xf]  ;;  %v13781_v26 = vor.u32 %v16338_v57, %v13778_v35  ;;  %v16305_v35 = vld [vmem:[#allocation7 + $0x1854] sm:$0xf0] }
 0x9bc   :  { %6795 = vmatpush.bf16.msra.mxu1 %v13773_v54  ;;  %6762 = vmatpush.bf16.msrb.mxu0 %v13617_v11  ;;  %v13593_v4 = vor.u32 %v16297_v36, %v13592_v58  ;;  %v16310_v54 = vld [vmem:[#allocation7 + $0x187c] sm:$0xf0]  ;;  %v13704_v11 = vld [vmem:[#allocation7 + $0x18d0] sm:$0xf]  ;;  %v16314_v58 = vld [vmem:[#allocation7 + $0x18a4] sm:$0xf] }
 0x9bd   :  { %v6031_v44 = vpop.f32.mrf.mxu2  ;;  %v13649_v45 = vor.u32 %v16310_v54, %v13648_v32  ;;  %v13705_v38 = vor.u32 %v16323_v30, %v13704_v11  ;;  %v13632_v57 = vld [vmem:[#allocation7 + $0x1840] sm:$0xf]  ;;  %v13956_v11 = vld [vmem:[#allocation7 + $0x1ae8] sm:$0xf0] }
 0x9be   :  { %v13633_v49 = vor.u32 %v16305_v35, %v13632_v57  ;;  %v13882_v30 = vld [vmem:[#allocation7 + $0x1a40] sm:$0xf]  ;;  %v13964_v35 = vld [vmem:[#allocation7 + $0x1af0] sm:$0xf0] }
 0x9bf   :  { %6770 = vmatpush.bf16.msra.mxu2 %v13741_v19  ;;  %6783 = vmatpush.bf16.msra.mxu3 %v13745_v39  ;;  %v13672_v19 = vld [vmem:[#allocation7 + $0x1898] sm:$0xf]  ;;  %v13754_v39 = vld [vmem:[#allocation7 + $0x1948] sm:$0xf0] }
 0x9c0   :  { %6796 = vmatpush.bf16.msra.mxu1 %v13749_v5  ;;  %v13673_v44 = vor.u32 %v16316_v52, %v13672_v19  ;;  %6763 = vmatpush.bf16.msrb.mxu0 %v13593_v4  ;;  %v16304_v5 = vld [vmem:[#allocation7 + $0x184c] sm:$0xf0]  ;;  %v13682_v4 = vld [vmem:[#allocation7 + $0x18b8] sm:$0xf0] }
 0x9c1   :  { %v13625_v37 = vor.u32 %v16304_v5, %v13624_v24  ;;  %v13685_v52 = vor.u32 %v16314_v58, %v13682_v4  ;;  %v13932_v58 = vld [vmem:[#allocation7 + $0x1ab8] sm:$0xf0]  ;;  %v13908_v4 = vld [vmem:[#allocation7 + $0x1a88] sm:$0xf0] }
 0x9c3   :  { %6771 = vmatpush.bf16.msra.mxu2 %v13717_v59  ;;  %6784 = vmatpush.bf16.msra.mxu3 %v13721_v28  ;;  %v16313_v59 = vld [vmem:[#allocation7 + $0x189c] sm:$0xf] }
 0x9c4   :  { %6797 = vmatpush.bf16.msra.mxu1 %v13725_v48  ;;  %v13730_v28 = vld [vmem:[#allocation7 + $0x1918] sm:$0xf0]  ;;  %v16298_v48 = vld [vmem:[#allocation7 + $0x181c] sm:$0xf0] }
 0x9c5   :  { %v13601_v1 = vor.u32 %v16298_v48, %v13600_v43 }
 0x9c7   :  { %6772 = vmatpush.bf16.msra.mxu2 %v13693_v17  ;;  %6785 = vmatpush.bf16.msra.mxu3 %v13697_v15  ;;  %v13677_v17 = vor.u32 %v16313_v59, %v13674_v34  ;;  %v13706_v15 = vld [vmem:[#allocation7 + $0x18e8] sm:$0xf0]  ;;  %v16308_v59 = vld [vmem:[#allocation7 + $0x1874] sm:$0xf] }
 0x9c9   :  { %6422 = vmatmul.bf16.vlgmr.msrb.gmra.mxu3 %v6072_v42  ;;  %6435 = vmatmul.bf16.vlgmr.msrb.gmra.mxu1 %v6072_v42  ;;  %v13698_v42 = vld [vmem:[#allocation7 + $0x18e0] sm:$0xf0] }
 0x9ca   :  { %13589 = vmatmul.msk.bf16.vlgmr.msrb.gmra.mxu2 %vm140_vm1, %v13588_v31  ;;  %v13701_v0 = vor.u32 %v16319_v6, %v13698_v42  ;;  %v16341_v31 = vld [vmem:[#allocation7 + $0x1974] sm:$0xf0]  ;;  %v13680_v42 = vld [vmem:[#allocation7 + $0x18a0] sm:$0xf] }
 0x9cb   :  { %6773 = vmatpush.bf16.msra.mxu2 %v13669_v16  ;;  %6786 = vmatpush.bf16.msra.mxu3 %v13673_v44  ;;  %v13777_v13 = vor.u32 %v16341_v31, %v13776_v27  ;;  %v16332_v16 = vld [vmem:[#allocation7 + $0x1934] sm:$0xf]  ;;  %v16311_v44 = vld [vmem:[#allocation7 + $0x1884] sm:$0xf0]  ;;  %v13658_v27 = vld [vmem:[#allocation7 + $0x1888] sm:$0xf0] }
 0x9cc   :  { %6798 = vmatpush.bf16.msra.mxu1 %v13701_v0  ;;  %v13757_v25 = vor.u32 %v16332_v16, %v13754_v39  ;;  %v16317_v0 = vld [vmem:[#allocation7 + $0x18b4] sm:$0xf0]  ;;  %v13661_v31 = vor.u32 %v16308_v59, %v13658_v27  ;;  %v13782_v59 = vld [vmem:[%s17652_s0 + $0x11] sm:$0x1] }
 0x9cd   :  { %6808 = vmatpush.bf16.msra.mxu0 %v13777_v13  ;;  %v13681_v20 = vor.u32 %v16317_v0, %v13680_v42  ;;  %v16302_v13 = vld [vmem:[#allocation7 + $0x1844] sm:$0xf]  ;;  %v13962_v27 = vld [vmem:[#allocation7 + $0x1ad8] sm:$0xf] }
 0x9cf   :  { %6774 = vmatpush.bf16.msra.mxu2 %v13645_v60  ;;  %6787 = vmatpush.bf16.msra.mxu3 %v13649_v45  ;;  %v16326_v60 = vld [vmem:[#allocation7 + $0x1904] sm:$0xf] }
 0x9d0   :  { %6799 = vmatpush.bf16.msra.mxu1 %v13677_v17  ;;  %v13733_v62 = vor.u32 %v16326_v60, %v13730_v28  ;;  %v16375_v60 = vld [vmem:[#allocation7 + $0x1a84] sm:$0xf0] }
 0x9d1   :  { %6809 = vmatpush.bf16.msra.mxu0 %v13753_v50  ;;  %v13610_v50 = vld [vmem:[#allocation7 + $0x1828] sm:$0xf0] }
 0x9d3   :  { %6775 = vmatpush.bf16.msra.mxu2 %v13621_v14  ;;  %6788 = vmatpush.bf16.msra.mxu3 %v13625_v37  ;;  %v16320_v14 = vld [vmem:[#allocation7 + $0x18d4] sm:$0xf]  ;;  %v13954_v37 = vld [vmem:[#allocation7 + $0x1ad0] sm:$0xf] }
 0x9d4   :  { %6800 = vmatpush.bf16.msra.mxu1 %v13653_v22  ;;  %v13709_v6 = vor.u32 %v16320_v14, %v13706_v15  ;;  %v16296_v22 = vld [vmem:[#allocation7 + $0x1814] sm:$0xf] }
 0x9d5   :  { %6810 = vmatpush.bf16.msra.mxu0 %v13729_v40  ;;  %v13906_v40 = vld [vmem:[#allocation7 + $0x1a70] sm:$0xf] }
 0x9d7   :  { %6776 = vmatpush.bf16.msra.mxu2 %v13597_v33  ;;  %6789 = vmatpush.bf16.msra.mxu3 %v13601_v1  ;;  %v13656_v33 = vld [vmem:[#allocation7 + $0x1870] sm:$0xf] }
 0x9d8   :  { %6801 = vmatpush.bf16.msra.mxu1 %v13629_v53  ;;  %v13657_v17 = vor.u32 %v16311_v44, %v13656_v33  ;;  %v13931_v53 = vor.u32 %v16381_v2, %v13930_v61  ;;  %v13884_v33 = vld [vmem:[#allocation7 + $0x1a58] sm:$0xf0] }
 0x9d9   :  { %6811 = vmatpush.bf16.msra.mxu0 %v13705_v38 }
 0x9db   :  { %6821 = vmatpush.bf16.msrb.mxu2 %v13781_v26  ;;  %6852 = vmatpush.bf16.msrb.mxu3 %v17045_v3  ;;  %v13634_v26 = vld [vmem:[#allocation7 + $0x1858] sm:$0xf0] }
 0x9dc   :  { %6802 = vmatpush.bf16.msra.mxu1 %v13605_v12  ;;  %v13637_v45 = vor.u32 %v16302_v13, %v13634_v26  ;;  %v16369_v12 = vld [vmem:[#allocation7 + $0x1a54] sm:$0xf0]  ;;  %v13858_v26 = vld [vmem:[#allocation7 + $0x1a10] sm:$0xf] }
 0x9dd   :  { %6812 = vmatpush.bf16.msra.mxu0 %v13681_v20  ;;  %v13883_v42 = vor.u32 %v16369_v12, %v13882_v30  ;;  %v16372_v20 = vld [vmem:[#allocation7 + $0x1a74] sm:$0xf]  ;;  %v16367_v12 = vld [vmem:[#allocation7 + $0x1a4c] sm:$0xf] }
 0x9df   :  { %6822 = vmatpush.bf16.msrb.mxu2 %v13757_v25  ;;  %v13613_v25 = vor.u32 %v16296_v22, %v13610_v50  ;;  %v16379_v50 = vld [vmem:[#allocation7 + $0x1aac] sm:$0xf] }
 0x9e1   :  { %6813 = vmatpush.bf16.msra.mxu0 %v13657_v17  ;;  %v16388_v17 = vld [vmem:[#allocation7 + $0x1aec] sm:$0xf0] }
 0x9e2   :  { %v13963_v57 = vor.u32 %v16388_v17, %v13962_v27  ;;  %v16386_v27 = vld [vmem:[#allocation7 + $0x1ae4] sm:$0xf]  ;;  %v13972_v17 = vld [vmem:[#allocation7 + $0x1af8] sm:$0xf0] }
 0x9e3   :  { %6823 = vmatpush.bf16.msrb.mxu2 %v13733_v62 }
 0x9e5   :  { %6814 = vmatpush.bf16.msra.mxu0 %v13633_v49 }
 0x9e7   :  { %6824 = vmatpush.bf16.msrb.mxu2 %v13709_v6  ;;  %v13959_v6 = vor.u32 %v16384_v63, %v13956_v11  ;;  %v16370_v63 = vld [vmem:[#allocation7 + $0x1a5c] sm:$0xf0] }
 0x9eb   :  { %6825 = vmatpush.bf16.msrb.mxu2 %v13685_v52  ;;  %v16366_v52 = vld [vmem:[#allocation7 + $0x1a44] sm:$0xf] }
 0x9ec   :  { %v13887_v44 = vor.u32 %v16366_v52, %v13884_v33  ;;  %v13868_v52 = vld [vmem:[#allocation7 + $0x1a30] sm:$0xf0]  ;;  %v13970_v33 = vld [vmem:[#allocation7 + $0x1ae0] sm:$0xf] }
 0x9ef   :  { %6826 = vmatpush.bf16.msrb.mxu2 %v13661_v31  ;;  %v16385_v31 = vld [vmem:[#allocation7 + $0x1adc] sm:$0xf] }
 0x9f0   :  { %v13967_v13 = vor.u32 %v16385_v31, %v13964_v35  ;;  %v13842_v35 = vld [vmem:[#allocation7 + $0x19e8] sm:$0xf] }
 0x9f3   :  { %6827 = vmatpush.bf16.msrb.mxu2 %v13637_v45  ;;  %v13860_v45 = vld [vmem:[#allocation7 + $0x1a28] sm:$0xf0] }
 0x9f7   :  { %6828 = vmatpush.bf16.msrb.mxu2 %v13613_v25  ;;  %v13834_v25 = vld [vmem:[#allocation7 + $0x19e0] sm:$0xf] }
 0xa36   :  { %v6384_v36 = vpop.f32.mrf.mxu1 }
 0xa37   :  { %v17431_v29 = vadd.f32 %v6384_v36, %v17405_v23  ;;  %v6410_v19 = vpop.f32.mrf.mxu0 }
 0xa38   :  { %v17434_v34 = vadd.f32 %v6410_v19, %v17414_v55  ;;  %v13608_v55 = vld [vmem:[#allocation7 + $0x1810] sm:$0xf]  ;;  %v13911_v19 = vor.u32 %v16372_v20, %v13908_v4 }
 0xa39   :  { %v13609_v39 = vor.u32 %v16299_v21, %v13608_v55  ;;  %v13938_v55 = vld [vmem:[#allocation7 + $0x1aa8] sm:$0xf] }
 0xa3b   :  { %6815 = vmatpush.bf16.msra.mxu0 %v13609_v39 }
 0xa3c   :  { %v6371_v32 = vpop.f32.mrf.mxu3 }
 0xa3d   :  { %v17437_v23 = vadd.f32 %v6371_v32, %v17411_v41  ;;  %v6397_v54 = vpop.f32.mrf.mxu2  ;;  %v16363_v32 = vld [vmem:[#allocation7 + $0x1a24] sm:$0xf0] }
 0xa3e   :  { %v17440_v56 = vadd.f32 %v6397_v54, %v17408_v47  ;;  %v6386_v18 = vpop.f32.mrf.mxu1  ;;  %v16387_v47 = vld [vmem:[#allocation7 + $0x1ae4] sm:$0xf0]  ;;  %v16360_v54 = vld [vmem:[#allocation7 + $0x1a14] sm:$0xf]  ;;  %v13859_v49 = vor.u32 %v16363_v32, %v13858_v26  ;;  %v16355_v26 = vld [vmem:[#allocation7 + $0x19ec] sm:$0xf] }
 0xa3f   :  { %v6412_v16 = vpop.f32.mrf.mxu0  ;;  %v13955_v51 = vor.u32 %v16387_v47, %v13954_v37  ;;  %v16382_v18 = vld [vmem:[#allocation7 + $0x1abc] sm:$0xf0]  ;;  %v13863_v21 = vor.u32 %v16360_v54, %v13860_v45  ;;  %v13836_v37 = vld [vmem:[#allocation7 + $0x19f8] sm:$0xf0]  ;;  %v13914_v47 = vld [vmem:[#allocation7 + $0x1a78] sm:$0xf] }
 0xa40   :  { %v13939_v22 = vor.u32 %v16382_v18, %v13938_v55  ;;  %v13940_v16 = vld [vmem:[#allocation7 + $0x1ac0] sm:$0xf0]  ;;  %v16383_v45 = vld [vmem:[#allocation7 + $0x1ac4] sm:$0xf0] }
 0xa41   :  { %7150 = vmatpush.bf16.msrb.mxu1 %v13955_v51  ;;  %v13943_v39 = vor.u32 %v16379_v50, %v13940_v16  ;;  %v16376_v51 = vld [vmem:[#allocation7 + $0x1a8c] sm:$0xf0]  ;;  %v13844_v54 = vld [vmem:[#allocation7 + $0x1a00] sm:$0xf0]  ;;  %v13818_v16 = vld [vmem:[#allocation7 + $0x19b8] sm:$0xf] }
 0xa42   :  { %v13915_v2 = vor.u32 %v16376_v51, %v13914_v47  ;;  %v13847_v55 = vor.u32 %v16355_v26, %v13844_v54 }
 0xa44   :  { %v6373_v41 = vpop.f32.mrf.mxu3 }
 0xa45   :  { %v6399_v24 = vpop.f32.mrf.mxu2  ;;  %7151 = vmatpush.bf16.msrb.mxu1 %v13931_v53  ;;  %v16357_v41 = vld [vmem:[#allocation7 + $0x19f4] sm:$0xf0]  ;;  %v16373_v53 = vld [vmem:[#allocation7 + $0x1a7c] sm:$0xf] }
 0xa46   :  { %v6436_v5 = vpop.f32.mrf.mxu1  ;;  %v16354_v24 = vld [vmem:[#allocation7 + $0x19e4] sm:$0xf] }
 0xa47   :  { %v17443_v46 = vadd.f32 %v6436_v5, %v17417_v7  ;;  %v13907_v7 = vor.u32 %v16375_v60, %v13906_v40  ;;  %v13835_v5 = vor.u32 %v16357_v41, %v13834_v25  ;;  %v13839_v61 = vor.u32 %v16354_v24, %v13836_v37  ;;  %v13916_v40 = vld [vmem:[#allocation7 + $0x1a90] sm:$0xf0]  ;;  %v16349_v25 = vld [vmem:[#allocation7 + $0x19bc] sm:$0xf]  ;;  %v16377_v37 = vld [vmem:[#allocation7 + $0x1a94] sm:$0xf0] }
 0xa48   :  { %v13919_v60 = vor.u32 %v16373_v53, %v13916_v40  ;;  %v13820_v24 = vld [vmem:[#allocation7 + $0x19d0] sm:$0xf0]  ;;  %v13794_v40 = vld [vmem:[#allocation7 + $0x1988] sm:$0xf] }
 0xa49   :  { %7152 = vmatpush.bf16.msrb.mxu1 %v13907_v7  ;;  %v13812_v7 = vld [vmem:[#allocation7 + $0x19c8] sm:$0xf0]  ;;  %v13823_v47 = vor.u32 %v16349_v25, %v13820_v24 }
 0xa4c   :  { %v6423_v28 = vpop.f32.mrf.mxu3 }
 0xa4d   :  { %v17446_v62 = vadd.f32 %v6423_v28, %v17423_v10  ;;  %v6460_v43 = vpop.f32.mrf.mxu2  ;;  %v16378_v10 = vld [vmem:[#allocation7 + $0x1aa4] sm:$0xf]  ;;  %7153 = vmatpush.bf16.msrb.mxu1 %v13883_v42  ;;  %v13810_v28 = vld [vmem:[#allocation7 + $0x19b0] sm:$0xf] }
 0xa4e   :  { %v6461_v48 = vadd.f32 %v17419_v8, %v6460_v43  ;;  %v6438_v9 = vpop.f32.mrf.mxu1  ;;  %v13935_v36 = vor.u32 %v16378_v10, %v13932_v58  ;;  %v16351_v43 = vld [vmem:[#allocation7 + $0x19c4] sm:$0xf0]  ;;  %v16342_v42 = vld [vmem:[#allocation7 + $0x1984] sm:$0xf]  ;;  %v13788_v10 = vld [vmem:[#allocation7 + $0x1998] sm:$0xf0] }
 0xa4f   :  { %v13811_v9 = vor.u32 %v16351_v43, %v13810_v28  ;;  %v13866_v58 = vld [vmem:[#allocation7 + $0x1a18] sm:$0xf]  ;;  %v13791_v20 = vor.u32 %v16342_v42, %v13788_v10  ;;  %v16343_v28 = vld [vmem:[#allocation7 + $0x198c] sm:$0xf] }
 0xa50   :  { %v6464_v1 = vmax.f32 %v6461_v48, 0.0  ;;  %v16348_v48 = vld [vmem:[#allocation7 + $0x19b4] sm:$0xf] }
 0xa51   :  { %7154 = vmatpush.bf16.msrb.mxu1 %v13859_v49  ;;  %v13815_v11 = vor.u32 %v16348_v48, %v13812_v7  ;;  %v13946_v49 = vld [vmem:[#allocation7 + $0x1ab0] sm:$0xf]  ;;  %v13796_v48 = vld [vmem:[#allocation7 + $0x19a0] sm:$0xf0]  ;;  %v16371_v7 = vld [vmem:[#allocation7 + $0x1a64] sm:$0xf0] }
 0xa52   :  { %v6465_v38 = vmin.f32 %v6464_v1, 6.0  ;;  %v13890_v1 = vld [vmem:[#allocation7 + $0x1a48] sm:$0xf]  ;;  %v13947_v18 = vor.u32 %v16383_v45, %v13946_v49 }
 0xa53   :  { %v13891_v30 = vor.u32 %v16370_v63, %v13890_v1  ;;  %v13799_v1 = vor.u32 %v16343_v28, %v13796_v48  ;;  %v16347_v45 = vld [vmem:[#allocation7 + $0x19a4] sm:$0xf0] }
 0xa54   :  { %v6466_v14 = vpack.c.bf16 %v6465_v38, %v6465_v38  ;;  %v6425_v15 = vpop.f32.mrf.mxu3  ;;  %v13892_v38 = vld [vmem:[#allocation7 + $0x1a60] sm:$0xf0] }
 0xa55   :  { %v6462_v0 = vpop.f32.mrf.mxu2  ;;  %7155 = vmatpush.bf16.msrb.mxu1 %v13835_v5  ;;  %v13786_v15 = vld [vmem:[#allocation7 + $0x1980] sm:$0xf] }
 0xa56   :  { %6764 = vmatmul.bf16.vlgmr.msrb.gmra.mxu0 %v6466_v14  ;;  %6777 = vmatmul.bf16.vlgmr.msra.gmra.mxu2 %v6466_v14  ;;  %v13922_v5 = vld [vmem:[#allocation7 + $0x1a80] sm:$0xf] }
 0xa57   :  { %6790 = vmatmul.bf16.vlgmr.msra.gmra.mxu3 %v6466_v14  ;;  %6803 = vmatmul.bf16.vlgmr.msra.gmra.mxu1 %v6466_v14  ;;  %v13923_v51 = vor.u32 %v16377_v37, %v13922_v5  ;;  %v14124_v5 = vld [vmem:[#allocation7 + $0x1c20] sm:$0xf]  ;;  %v16429_v37 = vld [vmem:[#allocation7 + $0x1c34] sm:$0xf0] }
 0xa58   :  { %7163 = vmatpush.bf16.msra.mxu3 %v13959_v6  ;;  %7176 = vmatpush.bf16.msrb.mxu0 %v13963_v57  ;;  %v16345_v6 = vld [vmem:[#allocation7 + $0x1994] sm:$0xf0]  ;;  %v13975_v57 = vor.u32 %v16386_v27, %v13972_v17  ;;  %v13826_v27 = vld [vmem:[#allocation7 + $0x19c0] sm:$0xf] }
 0xa59   :  { %7189 = vmatpush.bf16.msra.mxu2 %v13967_v13  ;;  %7156 = vmatpush.bf16.msrb.mxu1 %v13811_v9  ;;  %v13787_v0 = vor.u32 %v16345_v6, %v13786_v15  ;;  %v16358_v13 = vld [vmem:[#allocation7 + $0x19fc] sm:$0xf0]  ;;  %v13898_v9 = vld [vmem:[#allocation7 + $0x1a50] sm:$0xf]  ;;  %v16362_v15 = vld [vmem:[#allocation7 + $0x1a24] sm:$0xf] }
 0xa5a   :  { %v13843_v32 = vor.u32 %v16358_v13, %v13842_v35  ;;  %v13899_v63 = vor.u32 %v16371_v7, %v13898_v9  ;;  %v16353_v17 = vld [vmem:[#allocation7 + $0x19d4] sm:$0xf0]  ;;  %v14150_v9 = vld [vmem:[#allocation7 + $0x1c68] sm:$0xf0]  ;;  %v14076_v7 = vld [vmem:[#allocation7 + $0x1bc0] sm:$0xf] }
 0xa5b   :  { %v13827_v26 = vor.u32 %v16353_v17, %v13826_v27 }
 0xa5c   :  { %7164 = vmatpush.bf16.msra.mxu3 %v13935_v36  ;;  %7177 = vmatpush.bf16.msrb.mxu0 %v13939_v22  ;;  %v16364_v36 = vld [vmem:[#allocation7 + $0x1a2c] sm:$0xf0]  ;;  %v13948_v22 = vld [vmem:[#allocation7 + $0x1ac8] sm:$0xf0] }
 0xa5d   :  { %7190 = vmatpush.bf16.msra.mxu2 %v13943_v39  ;;  %v13867_v4 = vor.u32 %v16364_v36, %v13866_v58  ;;  %7157 = vmatpush.bf16.msrb.mxu1 %v13787_v0  ;;  %v16352_v39 = vld [vmem:[#allocation7 + $0x19cc] sm:$0xf0]  ;;  %v13876_v0 = vld [vmem:[#allocation7 + $0x1a38] sm:$0xf0] }
 0xa5e   :  { %v13819_v41 = vor.u32 %v16352_v39, %v13818_v16  ;;  %v13879_v36 = vor.u32 %v16362_v15, %v13876_v0 }
 0xa60   :  { %7165 = vmatpush.bf16.msra.mxu3 %v13911_v19  ;;  %7178 = vmatpush.bf16.msrb.mxu0 %v13915_v2  ;;  %v16361_v19 = vld [vmem:[#allocation7 + $0x1a1c] sm:$0xf] }
 0xa61   :  { %7191 = vmatpush.bf16.msra.mxu2 %v13919_v60  ;;  %v13924_v2 = vld [vmem:[#allocation7 + $0x1a98] sm:$0xf0]  ;;  %v16346_v60 = vld [vmem:[#allocation7 + $0x199c] sm:$0xf0] }
 0xa62   :  { %v13795_v43 = vor.u32 %v16346_v60, %v13794_v40 }
 0xa64   :  { %7166 = vmatpush.bf16.msra.mxu3 %v13887_v44  ;;  %7179 = vmatpush.bf16.msrb.mxu0 %v13891_v30  ;;  %v13871_v44 = vor.u32 %v16361_v19, %v13868_v52  ;;  %v13900_v30 = vld [vmem:[#allocation7 + $0x1a68] sm:$0xf0]  ;;  %v16356_v19 = vld [vmem:[#allocation7 + $0x19f4] sm:$0xf] }
 0xa66   :  { %6816 = vmatmul.bf16.vlgmr.msra.gmra.mxu0 %v6466_v14  ;;  %6829 = vmatmul.bf16.vlgmr.msrb.gmra.mxu2 %v6466_v14  ;;  %v13895_v14 = vor.u32 %v16367_v12, %v13892_v38  ;;  %v13874_v38 = vld [vmem:[#allocation7 + $0x1a20] sm:$0xf] }
 0xa67   :  { %13783 = vmatmul.msk.bf16.vlgmr.msrb.gmra.mxu3 %vm140_vm1, %v13782_v59  ;;  %v16389_v59 = vld [vmem:[#allocation7 + $0x1af4] sm:$0xf0] }
 0xa68   :  { %7167 = vmatpush.bf16.msra.mxu3 %v13863_v21  ;;  %7192 = vmatpush.bf16.msra.mxu2 %v13895_v14  ;;  %v13971_v31 = vor.u32 %v16389_v59, %v13970_v33  ;;  %v16380_v21 = vld [vmem:[#allocation7 + $0x1ab4] sm:$0xf]  ;;  %v16365_v14 = vld [vmem:[#allocation7 + $0x1a34] sm:$0xf0]  ;;  %v13852_v33 = vld [vmem:[#allocation7 + $0x1a08] sm:$0xf0] }
 0xa69   :  { %7180 = vmatpush.bf16.msrb.mxu0 %v13867_v4  ;;  %v13951_v50 = vor.u32 %v16380_v21, %v13948_v22  ;;  %v13875_v42 = vor.u32 %v16365_v14, %v13874_v38  ;;  %v16359_v4 = vld [vmem:[#allocation7 + $0x1a04] sm:$0xf0]  ;;  %v13855_v59 = vor.u32 %v16356_v19, %v13852_v33  ;;  %v14158_v38 = vld [vmem:[#allocation7 + $0x1c70] sm:$0xf0]  ;;  %v16430_v33 = vld [vmem:[#allocation7 + $0x1c3c] sm:$0xf0] }
 0xa6a   :  { %7202 = vmatpush.bf16.msra.mxu1 %v13971_v31  ;;  %v16350_v31 = vld [vmem:[#allocation7 + $0x19c4] sm:$0xf]  ;;  %v14132_v19 = vld [vmem:[#allocation7 + $0x1c28] sm:$0xf] }
 0xa6c   :  { %7168 = vmatpush.bf16.msra.mxu3 %v13839_v61  ;;  %7193 = vmatpush.bf16.msra.mxu2 %v13871_v44  ;;  %v16374_v61 = vld [vmem:[#allocation7 + $0x1a84] sm:$0xf] }
 0xa6d   :  { %7181 = vmatpush.bf16.msrb.mxu0 %v13843_v32  ;;  %v13927_v53 = vor.u32 %v16374_v61, %v13924_v2  ;;  %v16423_v61 = vld [vmem:[#allocation7 + $0x1c04] sm:$0xf0] }
 0xa6e   :  { %7203 = vmatpush.bf16.msra.mxu1 %v13947_v18  ;;  %v13804_v18 = vld [vmem:[#allocation7 + $0x19a8] sm:$0xf0] }
 0xa70   :  { %7169 = vmatpush.bf16.msra.mxu3 %v13815_v11  ;;  %7194 = vmatpush.bf16.msra.mxu2 %v13847_v55  ;;  %v16368_v11 = vld [vmem:[#allocation7 + $0x1a54] sm:$0xf] }
 0xa71   :  { %7182 = vmatpush.bf16.msrb.mxu0 %v13819_v41  ;;  %v13903_v12 = vor.u32 %v16368_v11, %v13900_v30  ;;  %v16344_v55 = vld [vmem:[#allocation7 + $0x1994] sm:$0xf]  ;;  %v14148_v41 = vld [vmem:[#allocation7 + $0x1c50] sm:$0xf] }
 0xa72   :  { %7204 = vmatpush.bf16.msra.mxu1 %v13923_v51  ;;  %v14100_v51 = vld [vmem:[#allocation7 + $0x1bf0] sm:$0xf] }
 0xa73   :  { %v16436_v11 = vld [vmem:[#allocation7 + $0x1c6c] sm:$0xf0] }
 0xa74   :  { %7170 = vmatpush.bf16.msra.mxu3 %v13791_v20  ;;  %7195 = vmatpush.bf16.msra.mxu2 %v13823_v47  ;;  %v13850_v20 = vld [vmem:[#allocation7 + $0x19f0] sm:$0xf]  ;;  %v14125_v47 = vor.u32 %v16429_v37, %v14124_v5  ;;  %v16421_v37 = vld [vmem:[#allocation7 + $0x1bfc] sm:$0xf] }
 0xa75   :  { %7183 = vmatpush.bf16.msrb.mxu0 %v13795_v43  ;;  %v13851_v44 = vor.u32 %v16359_v4, %v13850_v20  ;;  %v16432_v43 = vld [vmem:[#allocation7 + $0x1c54] sm:$0xf]  ;;  %v14052_v20 = vld [vmem:[#allocation7 + $0x1b90] sm:$0xf]  ;;  %v16411_v4 = vld [vmem:[#allocation7 + $0x1ba4] sm:$0xf0] }
 0xa76   :  { %7205 = vmatpush.bf16.msra.mxu1 %v13899_v63  ;;  %v14156_v63 = vld [vmem:[#allocation7 + $0x1c58] sm:$0xf]  ;;  %v14153_v15 = vor.u32 %v16432_v43, %v14150_v9  ;;  %v14053_v17 = vor.u32 %v16411_v4, %v14052_v20  ;;  %v14084_v43 = vld [vmem:[#allocation7 + $0x1bc8] sm:$0xf]  ;;  %v16415_v9 = vld [vmem:[#allocation7 + $0x1bcc] sm:$0xf] }
 0xa77   :  { %v16437_v20 = vld [vmem:[#allocation7 + $0x1c74] sm:$0xf0]  ;;  %v16434_v4 = vld [vmem:[#allocation7 + $0x1c64] sm:$0xf] }
 0xa78   :  { %7215 = vmatpush.bf16.msrb.mxu3 %v13975_v57  ;;  %7196 = vmatpush.bf16.msra.mxu2 %v13799_v1  ;;  %v13828_v57 = vld [vmem:[#allocation7 + $0x19d8] sm:$0xf0]  ;;  %v16417_v1 = vld [vmem:[#allocation7 + $0x1bd4] sm:$0xf0] }
 0xa79   :  { %7246 = vmatpush.bf16.msra.mxu0 %v17045_v3  ;;  %v13831_v32 = vor.u32 %v16350_v31, %v13828_v57  ;;  %v16420_v31 = vld [vmem:[#allocation7 + $0x1bf4] sm:$0xf]  ;;  %v14102_v57 = vld [vmem:[#allocation7 + $0x1c08] sm:$0xf0] }
 0xa7a   :  { %7206 = vmatpush.bf16.msra.mxu1 %v13875_v42  ;;  %v14126_v42 = vld [vmem:[#allocation7 + $0x1c38] sm:$0xf0] }
 0xa7c   :  { %7216 = vmatpush.bf16.msrb.mxu3 %v13951_v50  ;;  %v13807_v50 = vor.u32 %v16344_v55, %v13804_v18  ;;  %v14054_v55 = vld [vmem:[#allocation7 + $0x1ba8] sm:$0xf0] }
 0xa7d   :  { %v13976_v18 = vld [vmem:[%s17652_s0 + $0x12] sm:$0x1] }
 0xa7e   :  { %7207 = vmatpush.bf16.msra.mxu1 %v13851_v44  ;;  %v16427_v44 = vld [vmem:[#allocation7 + $0x1c2c] sm:$0xf] }
 0xa80   :  { %7217 = vmatpush.bf16.msrb.mxu3 %v13927_v53 }
 0xa82   :  { %7208 = vmatpush.bf16.msra.mxu1 %v13827_v26  ;;  %v14105_v26 = vor.u32 %v16420_v31, %v14102_v57  ;;  %v14038_v57 = vld [vmem:[#allocation7 + $0x1b80] sm:$0xf0] }
 0xa84   :  { %7218 = vmatpush.bf16.msrb.mxu3 %v13903_v12  ;;  %v16433_v12 = vld [vmem:[#allocation7 + $0x1c5c] sm:$0xf] }
 0xa88   :  { %7219 = vmatpush.bf16.msrb.mxu3 %v13879_v36  ;;  %v14161_v36 = vor.u32 %v16433_v12, %v14158_v38  ;;  %v16390_v12 = vld [vmem:[#allocation7 + $0x1b04] sm:$0xf] }
 0xa8c   :  { %7220 = vmatpush.bf16.msrb.mxu3 %v13855_v59  ;;  %v14134_v59 = vld [vmem:[#allocation7 + $0x1c40] sm:$0xf0] }
 0xa90   :  { %7221 = vmatpush.bf16.msrb.mxu3 %v13831_v32  ;;  %v16414_v32 = vld [vmem:[#allocation7 + $0x1bc4] sm:$0xf] }
 0xa94   :  { %7222 = vmatpush.bf16.msrb.mxu3 %v13807_v50  ;;  %v16405_v50 = vld [vmem:[#allocation7 + $0x1b74] sm:$0xf0] }
 0xad3   :  { %v6765_v6 = vpop.f32.mrf.mxu0 }
 0xad4   :  { %v17455_v10 = vadd.f32 %v6765_v6, %v17437_v23  ;;  %v6804_v58 = vpop.f32.mrf.mxu1  ;;  %v16426_v6 = vld [vmem:[#allocation7 + $0x1c24] sm:$0xf] }
 0xad5   :  { %v17458_v52 = vadd.f32 %v6804_v58, %v17434_v34  ;;  %v13802_v34 = vld [vmem:[#allocation7 + $0x1990] sm:$0xf]  ;;  %v14157_v58 = vor.u32 %v16436_v11, %v14156_v63  ;;  %v14129_v27 = vor.u32 %v16426_v6, %v14126_v42  ;;  %v13980_v11 = vld [vmem:[#allocation7 + $0x1b00] sm:$0xf] }
 0xad6   :  { %v13803_v22 = vor.u32 %v16347_v45, %v13802_v34  ;;  %v14078_v34 = vld [vmem:[#allocation7 + $0x1bd8] sm:$0xf0]  ;;  %v16408_v45 = vld [vmem:[#allocation7 + $0x1b94] sm:$0xf] }
 0xad8   :  { %7209 = vmatpush.bf16.msra.mxu1 %v13803_v22  ;;  %v14028_v22 = vld [vmem:[#allocation7 + $0x1b60] sm:$0xf] }
 0xad9   :  { %v6778_v35 = vpop.f32.mrf.mxu2 }
 0xada   :  { %v17461_v23 = vadd.f32 %v6778_v35, %v17431_v29  ;;  %v6791_v13 = vpop.f32.mrf.mxu3  ;;  %v14133_v35 = vor.u32 %v16430_v33, %v14132_v19  ;;  %v14166_v19 = vld [vmem:[#allocation7 + $0x1c78] sm:$0xf0] }
 0xadb   :  { %v17464_v54 = vadd.f32 %v6791_v13, %v17440_v56  ;;  %v6767_v49 = vpop.f32.mrf.mxu0  ;;  %v16435_v56 = vld [vmem:[#allocation7 + $0x1c64] sm:$0xf0]  ;;  %v14137_v13 = vor.u32 %v16427_v44, %v14134_v59  ;;  %v14169_v44 = vor.u32 %v16434_v4, %v14166_v19 }
 0xadc   :  { %v6806_v21 = vpop.f32.mrf.mxu1  ;;  %v14149_v24 = vor.u32 %v16435_v56, %v14148_v41  ;;  %v14081_v49 = vor.u32 %v16414_v32, %v14078_v34  ;;  %v14108_v41 = vld [vmem:[#allocation7 + $0x1bf8] sm:$0xf]  ;;  %v16424_v56 = vld [vmem:[#allocation7 + $0x1c0c] sm:$0xf0]  ;;  %v14036_v59 = vld [vmem:[#allocation7 + $0x1b68] sm:$0xf] }
 0xadd   :  { %v14057_v21 = vor.u32 %v16408_v45, %v14054_v55  ;;  %v14109_v5 = vor.u32 %v16424_v56, %v14108_v41  ;;  %v16428_v34 = vld [vmem:[#allocation7 + $0x1c34] sm:$0xf]  ;;  %v14012_v55 = vld [vmem:[#allocation7 + $0x1b38] sm:$0xf]  ;;  %v16422_v56 = vld [vmem:[#allocation7 + $0x1c04] sm:$0xf] }
 0xade   :  { %7544 = vmatpush.bf16.msrb.mxu2 %v14149_v24 }
 0xae1   :  { %v6780_v29 = vpop.f32.mrf.mxu2 }
 0xae2   :  { %v6793_v16 = vpop.f32.mrf.mxu3  ;;  %7545 = vmatpush.bf16.msrb.mxu2 %v14125_v47  ;;  %v16402_v29 = vld [vmem:[#allocation7 + $0x1b64] sm:$0xf]  ;;  %v14110_v47 = vld [vmem:[#allocation7 + $0x1c10] sm:$0xf0] }
 0xae3   :  { %v6817_v39 = vpop.f32.mrf.mxu0  ;;  %v14029_v16 = vor.u32 %v16405_v50, %v14028_v22  ;;  %v14014_v50 = vld [vmem:[#allocation7 + $0x1b50] sm:$0xf0] }
 0xae4   :  { %v17467_v25 = vadd.f32 %v6817_v39, %v17446_v62  ;;  %v14101_v62 = vor.u32 %v16423_v61, %v14100_v51  ;;  %v14030_v39 = vld [vmem:[#allocation7 + $0x1b78] sm:$0xf0]  ;;  %v14113_v51 = vor.u32 %v16421_v37, %v14110_v47  ;;  %v14004_v61 = vld [vmem:[#allocation7 + $0x1b30] sm:$0xf]  ;;  %v13988_v37 = vld [vmem:[#allocation7 + $0x1b08] sm:$0xf] }
 0xae5   :  { %v14033_v24 = vor.u32 %v16402_v29, %v14030_v39  ;;  %v14116_v29 = vld [vmem:[#allocation7 + $0x1c00] sm:$0xf] }
 0xae6   :  { %7546 = vmatpush.bf16.msrb.mxu2 %v14101_v62  ;;  %v16394_v47 = vld [vmem:[#allocation7 + $0x1b1c] sm:$0xf0] }
 0xae9   :  { %v6830_v2 = vpop.f32.mrf.mxu2 }
 0xaea   :  { %v17470_v53 = vadd.f32 %v6830_v2, %v17443_v46  ;;  %v6854_v40 = vpop.f32.mrf.mxu3  ;;  %v16399_v2 = vld [vmem:[#allocation7 + $0x1b44] sm:$0xf0] }
 0xaeb   :  { %v6855_v60 = vadd.f32 %v17419_v8, %v6854_v40  ;;  %v6819_v28 = vpop.f32.mrf.mxu0  ;;  %v14077_v8 = vor.u32 %v16417_v1, %v14076_v7  ;;  %v16396_v40 = vld [vmem:[#allocation7 + $0x1b34] sm:$0xf]  ;;  %v14086_v1 = vld [vmem:[#allocation7 + $0x1be0] sm:$0xf0] }
 0xaec   :  { %v14006_v28 = vld [vmem:[#allocation7 + $0x1b48] sm:$0xf0]  ;;  %v14089_v63 = vor.u32 %v16415_v9, %v14086_v1  ;;  %v16413_v1 = vld [vmem:[#allocation7 + $0x1bb4] sm:$0xf0] }
 0xaed   :  { %v6858_v48 = vmax.f32 %v6855_v60, 0.0  ;;  %7547 = vmatpush.bf16.msrb.mxu2 %v14077_v8  ;;  %v14005_v60 = vor.u32 %v16399_v2, %v14004_v61  ;;  %v14009_v62 = vor.u32 %v16396_v40, %v14006_v28  ;;  %v16409_v8 = vld [vmem:[#allocation7 + $0x1b9c] sm:$0xf]  ;;  %v13989_v61 = vor.u32 %v16394_v47, %v13988_v37  ;;  %v13990_v2 = vld [vmem:[#allocation7 + $0x1b20] sm:$0xf0] }
 0xaee   :  { %v14092_v40 = vld [vmem:[#allocation7 + $0x1bd0] sm:$0xf]  ;;  %v16480_v47 = vld [vmem:[#allocation7 + $0x1dd4] sm:$0xf] }
 0xaef   :  { %v6859_v30 = vmin.f32 %v6858_v48, 6.0  ;;  %v16418_v48 = vld [vmem:[#allocation7 + $0x1bdc] sm:$0xf0] }
 0xaf0   :  { %v14085_v7 = vor.u32 %v16418_v48, %v14084_v43  ;;  %v16416_v43 = vld [vmem:[#allocation7 + $0x1bd4] sm:$0xf]  ;;  %v14094_v48 = vld [vmem:[#allocation7 + $0x1be8] sm:$0xf0] }
 0xaf1   :  { %v6860_v14 = vpack.c.bf16 %v6859_v30, %v6859_v30  ;;  %v6832_v46 = vpop.f32.mrf.mxu2  ;;  %7548 = vmatpush.bf16.msrb.mxu2 %v14053_v17  ;;  %v16393_v30 = vld [vmem:[#allocation7 + $0x1b14] sm:$0xf0]  ;;  %v16403_v17 = vld [vmem:[#allocation7 + $0x1b6c] sm:$0xf]  ;;  %v14097_v9 = vor.u32 %v16416_v43, %v14094_v48  ;;  %v16481_v48 = vld [vmem:[#allocation7 + $0x1ddc] sm:$0xf] }
 0xaf2   :  { %v6856_v0 = vpop.f32.mrf.mxu3  ;;  %v13981_v38 = vor.u32 %v16393_v30, %v13980_v11  ;;  %v14060_v46 = vld [vmem:[#allocation7 + $0x1b98] sm:$0xf]  ;;  %v14070_v30 = vld [vmem:[#allocation7 + $0x1bb8] sm:$0xf0] }
 0xaf3   :  { %7158 = vmatmul.bf16.vlgmr.msrb.gmra.mxu1 %v6860_v14  ;;  %7171 = vmatmul.bf16.vlgmr.msra.gmra.mxu3 %v6860_v14  ;;  %v14062_v0 = vld [vmem:[#allocation7 + $0x1bb0] sm:$0xf0] }
 0xaf4   :  { %7184 = vmatmul.bf16.vlgmr.msrb.gmra.mxu0 %v6860_v14  ;;  %7197 = vmatmul.bf16.vlgmr.msra.gmra.mxu2 %v6860_v14 }
 0xaf5   :  { %7557 = vmatpush.bf16.msrb.mxu0 %v14153_v15  ;;  %7570 = vmatpush.bf16.msrb.mxu1 %v14157_v58  ;;  %v16412_v15 = vld [vmem:[#allocation7 + $0x1bac] sm:$0xf0]  ;;  %v14164_v58 = vld [vmem:[#allocation7 + $0x1c60] sm:$0xf] }
 0xaf6   :  { %7583 = vmatpush.bf16.msra.mxu3 %v14161_v36  ;;  %7549 = vmatpush.bf16.msrb.mxu2 %v14029_v16  ;;  %v14061_v42 = vor.u32 %v16412_v15, %v14060_v46  ;;  %v14065_v36 = vor.u32 %v16409_v8, %v14062_v0  ;;  %v14165_v33 = vor.u32 %v16437_v20, %v14164_v58  ;;  %v16425_v16 = vld [vmem:[#allocation7 + $0x1c14] sm:$0xf0]  ;;  %v16404_v46 = vld [vmem:[#allocation7 + $0x1b74] sm:$0xf]  ;;  %v16398_v58 = vld [vmem:[#allocation7 + $0x1b44] sm:$0xf] }
 0xaf7   :  { %v14117_v41 = vor.u32 %v16425_v16, %v14116_v29  ;;  %v16401_v8 = vld [vmem:[#allocation7 + $0x1b54] sm:$0xf0] }
 0xaf9   :  { %7558 = vmatpush.bf16.msrb.mxu0 %v14129_v27  ;;  %7571 = vmatpush.bf16.msrb.mxu1 %v14133_v35  ;;  %v16406_v27 = vld [vmem:[#allocation7 + $0x1b7c] sm:$0xf0]  ;;  %v14140_v35 = vld [vmem:[#allocation7 + $0x1c30] sm:$0xf] }
 0xafa   :  { %7584 = vmatpush.bf16.msra.mxu3 %v14137_v13  ;;  %7550 = vmatpush.bf16.msrb.mxu2 %v14005_v60  ;;  %v14037_v31 = vor.u32 %v16406_v27, %v14036_v59  ;;  %v16431_v13 = vld [vmem:[#allocation7 + $0x1c44] sm:$0xf0]  ;;  %v13996_v59 = vld [vmem:[#allocation7 + $0x1b10] sm:$0xf] }
 0xafb   :  { %v14141_v32 = vor.u32 %v16431_v13, %v14140_v35  ;;  %v16419_v60 = vld [vmem:[#allocation7 + $0x1be4] sm:$0xf0] }
 0xafd   :  { %7559 = vmatpush.bf16.msrb.mxu0 %v14105_v26  ;;  %7572 = vmatpush.bf16.msrb.mxu1 %v14109_v5  ;;  %v14041_v26 = vor.u32 %v16403_v17, %v14038_v57  ;;  %v16395_v17 = vld [vmem:[#allocation7 + $0x1b24] sm:$0xf0]  ;;  %v13998_v57 = vld [vmem:[#allocation7 + $0x1b28] sm:$0xf0] }
 0xafe   :  { %7585 = vmatpush.bf16.msra.mxu3 %v14113_v51  ;;  %7551 = vmatpush.bf16.msrb.mxu2 %v13981_v38  ;;  %v16391_v51 = vld [vmem:[#allocation7 + $0x1b0c] sm:$0xf]  ;;  %v14044_v38 = vld [vmem:[#allocation7 + $0x1b70] sm:$0xf]  ;;  %v13997_v35 = vor.u32 %v16395_v17, %v13996_v59 }
 0xaff   :  { %v13993_v28 = vor.u32 %v16391_v51, %v13990_v2  ;;  %v14270_v2 = vld [vmem:[#allocation7 + $0x1d40] sm:$0xf] }
 0xb01   :  { %7560 = vmatpush.bf16.msrb.mxu0 %v14081_v49  ;;  %7573 = vmatpush.bf16.msrb.mxu1 %v14085_v7  ;;  %v14142_v49 = vld [vmem:[#allocation7 + $0x1c48] sm:$0xf0]  ;;  %v14068_v7 = vld [vmem:[#allocation7 + $0x1ba0] sm:$0xf] }
 0xb02   :  { %7586 = vmatpush.bf16.msra.mxu3 %v14089_v63  ;;  %7596 = vmatpush.bf16.msra.mxu2 %v14165_v33  ;;  %v14145_v45 = vor.u32 %v16428_v34, %v14142_v49  ;;  %v16410_v63 = vld [vmem:[#allocation7 + $0x1ba4] sm:$0xf]  ;;  %v14069_v11 = vor.u32 %v16413_v1, %v14068_v7 }
 0xb03   :  { %7210 = vmatmul.bf16.vlgmr.msra.gmra.mxu1 %v6860_v14  ;;  %7223 = vmatmul.bf16.vlgmr.msrb.gmra.mxu3 %v6860_v14  ;;  %v13982_v14 = vld [vmem:[#allocation7 + $0x1b18] sm:$0xf0] }
 0xb04   :  { %13977 = vmatmul.msk.bf16.vlgmr.msra.gmra.mxu0 %vm140_vm1, %v13976_v18  ;;  %v13985_v6 = vor.u32 %v16390_v12, %v13982_v14  ;;  %v16400_v18 = vld [vmem:[#allocation7 + $0x1b4c] sm:$0xf0]  ;;  %v14073_v12 = vor.u32 %v16410_v63, %v14070_v30  ;;  %v16407_v14 = vld [vmem:[#allocation7 + $0x1b84] sm:$0xf0]  ;;  %v14320_v30 = vld [vmem:[#allocation7 + $0x1db8] sm:$0xf0] }
 0xb05   :  { %7561 = vmatpush.bf16.msrb.mxu0 %v14057_v21  ;;  %7574 = vmatpush.bf16.msrb.mxu1 %v14061_v42  ;;  %v16397_v21 = vld [vmem:[#allocation7 + $0x1b3c] sm:$0xf]  ;;  %v14013_v22 = vor.u32 %v16400_v18, %v14012_v55  ;;  %v14045_v15 = vor.u32 %v16407_v14, %v14044_v38  ;;  %v14020_v42 = vld [vmem:[#allocation7 + $0x1b40] sm:$0xf]  ;;  %v16483_v55 = vld [vmem:[#allocation7 + $0x1de4] sm:$0xf0] }
 0xb06   :  { %7587 = vmatpush.bf16.msra.mxu3 %v14065_v36  ;;  %7597 = vmatpush.bf16.msra.mxu2 %v14141_v32  ;;  %v14017_v39 = vor.u32 %v16397_v21, %v14014_v50  ;;  %v14022_v36 = vld [vmem:[#allocation7 + $0x1b58] sm:$0xf0]  ;;  %v14021_v33 = vor.u32 %v16401_v8, %v14020_v42  ;;  %v14318_v21 = vld [vmem:[#allocation7 + $0x1da0] sm:$0xf]  ;;  %v14326_v42 = vld [vmem:[#allocation7 + $0x1da8] sm:$0xf] }
 0xb07   :  { %v16478_v8 = vld [vmem:[#allocation7 + $0x1dbc] sm:$0xf0] }
 0xb09   :  { %7562 = vmatpush.bf16.msrb.mxu0 %v14033_v24  ;;  %7575 = vmatpush.bf16.msrb.mxu1 %v14037_v31  ;;  %v14118_v24 = vld [vmem:[#allocation7 + $0x1c18] sm:$0xf0]  ;;  %v16392_v31 = vld [vmem:[#allocation7 + $0x1b14] sm:$0xf] }
 0xb0a   :  { %7588 = vmatpush.bf16.msra.mxu3 %v14041_v26  ;;  %v14121_v5 = vor.u32 %v16422_v56, %v14118_v24  ;;  %7598 = vmatpush.bf16.msra.mxu2 %v14117_v41  ;;  %v14001_v13 = vor.u32 %v16392_v31, %v13998_v57  ;;  %v17493_v24 = vld [vmem:[#allocation5] ss:$0 sm:$0xff]  ;;  %v16462_v31 = vld [vmem:[#allocation7 + $0x1d44] sm:$0xf] }
 0xb0b   :  { %v14272_v57 = vld [vmem:[#allocation7 + $0x1d58] sm:$0xf0] }
 0xb0d   :  { %7563 = vmatpush.bf16.msrb.mxu0 %v14009_v62  ;;  %7576 = vmatpush.bf16.msrb.mxu1 %v14013_v22  ;;  %v14093_v62 = vor.u32 %v16419_v60, %v14092_v40  ;;  %v16477_v22 = vld [vmem:[#allocation7 + $0x1db4] sm:$0xf0] }
 0xb0e   :  { %7589 = vmatpush.bf16.msra.mxu3 %v14017_v39  ;;  %v14319_v29 = vor.u32 %v16477_v22, %v14318_v21  ;;  %v14294_v39 = vld [vmem:[#allocation7 + $0x1d70] sm:$0xf]  ;;  %v16465_v40 = vld [vmem:[#allocation7 + $0x1d54] sm:$0xf0]  ;;  %v14224_v21 = vld [vmem:[#allocation7 + $0x1cf8] sm:$0xf0] }
 0xb0f   :  { %7599 = vmatpush.bf16.msra.mxu2 %v14093_v62  ;;  %v14350_v60 = vld [vmem:[#allocation7 + $0x1dd8] sm:$0xf] }
 0xb10   :  { %v14302_v22 = vld [vmem:[#allocation7 + $0x1d78] sm:$0xf] }
 0xb11   :  { %7564 = vmatpush.bf16.msrb.mxu0 %v13985_v6  ;;  %7577 = vmatpush.bf16.msrb.mxu1 %v13989_v61  ;;  %v14046_v6 = vld [vmem:[#allocation7 + $0x1b88] sm:$0xf0] }
 0xb12   :  { %7590 = vmatpush.bf16.msra.mxu3 %v13993_v28  ;;  %v14049_v0 = vor.u32 %v16404_v46, %v14046_v6  ;;  %v14344_v61 = vld [vmem:[#allocation7 + $0x1de8] sm:$0xf0]  ;;  %v16484_v28 = vld [vmem:[#allocation7 + $0x1dec] sm:$0xf0]  ;;  %v16459_v6 = vld [vmem:[#allocation7 + $0x1d24] sm:$0xf0] }
 0xb13   :  { %7600 = vmatpush.bf16.msra.mxu2 %v14069_v11  ;;  %v14347_v63 = vor.u32 %v16480_v47, %v14344_v61  ;;  %v16474_v11 = vld [vmem:[#allocation7 + $0x1da4] sm:$0xf]  ;;  %v14351_v14 = vor.u32 %v16484_v28, %v14350_v60  ;;  %v16463_v60 = vld [vmem:[#allocation7 + $0x1d4c] sm:$0xf] }
 0xb15   :  { %7609 = vmatpush.bf16.msra.mxu0 %v14169_v44  ;;  %7640 = vmatpush.bf16.msra.mxu1 %v17045_v3  ;;  %v14025_v44 = vor.u32 %v16398_v58, %v14022_v36  ;;  %v14328_v58 = vld [vmem:[#allocation7 + $0x1dc0] sm:$0xf0] }
 0xb17   :  { %7601 = vmatpush.bf16.msra.mxu2 %v14045_v15  ;;  %v14246_v15 = vld [vmem:[#allocation7 + $0x1d10] sm:$0xf] }
 0xb18   :  { %v14247_v36 = vor.u32 %v16459_v6, %v14246_v15  ;;  %v14358_v15 = vld [vmem:[#allocation7 + $0x1de0] sm:$0xf] }
 0xb19   :  { %7610 = vmatpush.bf16.msra.mxu0 %v14145_v45 }
 0xb1b   :  { %7602 = vmatpush.bf16.msra.mxu2 %v14021_v33  ;;  %v14327_v33 = vor.u32 %v16478_v8, %v14326_v42  ;;  %v16485_v42 = vld [vmem:[#allocation7 + $0x1df4] sm:$0xf0]  ;;  %v16482_v8 = vld [vmem:[#allocation7 + $0x1de4] sm:$0xf] }
 0xb1d   :  { %7611 = vmatpush.bf16.msra.mxu0 %v14121_v5 }
 0xb1f   :  { %7603 = vmatpush.bf16.msra.mxu2 %v13997_v35  ;;  %v14275_v35 = vor.u32 %v16462_v31, %v14272_v57 }
 0xb21   :  { %7612 = vmatpush.bf16.msra.mxu0 %v14097_v9 }
 0xb25   :  { %7613 = vmatpush.bf16.msra.mxu0 %v14073_v12  ;;  %v14271_v12 = vor.u32 %v16465_v40, %v14270_v2  ;;  %v14278_v2 = vld [vmem:[#allocation7 + $0x1d48] sm:$0xf]  ;;  %v16466_v40 = vld [vmem:[#allocation7 + $0x1d5c] sm:$0xf0] }
 0xb26   :  { %v14279_v28 = vor.u32 %v16466_v40, %v14278_v2  ;;  %v16464_v40 = vld [vmem:[#allocation7 + $0x1d54] sm:$0xf] }
 0xb29   :  { %7614 = vmatpush.bf16.msra.mxu0 %v14049_v0  ;;  %v16475_v0 = vld [vmem:[#allocation7 + $0x1dac] sm:$0xf] }
 0xb2d   :  { %7615 = vmatpush.bf16.msra.mxu0 %v14025_v44  ;;  %v14331_v44 = vor.u32 %v16475_v0, %v14328_v58  ;;  %v14360_v0 = vld [vmem:[#allocation7 + $0x1df8] sm:$0xf0]  ;;  %v14359_v58 = vor.u32 %v16485_v42, %v14358_v15 }
 0xb2e   :  { %v14216_v42 = vld [vmem:[#allocation7 + $0x1cd8] sm:$0xf0] }
 0xb31   :  { %7616 = vmatpush.bf16.msra.mxu0 %v14001_v13  ;;  %v16456_v13 = vld [vmem:[#allocation7 + $0x1d14] sm:$0xf] }
 0xb70   :  { %v7159_v20 = vpop.f32.mrf.mxu1 }
 0xb71   :  { %v17479_v4 = vadd.f32 %v7159_v20, %v17455_v10  ;;  %v7185_v19 = vpop.f32.mrf.mxu0  ;;  %v16468_v20 = vld [vmem:[#allocation7 + $0x1d74] sm:$0xf] }
 0xb72   :  { %v17482_v27 = vadd.f32 %v7185_v19, %v17464_v54  ;;  %v14342_v54 = vld [vmem:[#allocation7 + $0x1dd0] sm:$0xf]  ;;  %v14296_v19 = vld [vmem:[#allocation7 + $0x1d88] sm:$0xf0] }
 0xb73   :  { %v14343_v18 = vor.u32 %v16483_v55, %v14342_v54  ;;  %v14299_v17 = vor.u32 %v16468_v20, %v14296_v19  ;;  %v16453_v54 = vld [vmem:[#allocation7 + $0x1cf4] sm:$0xf0]  ;;  %v16450_v55 = vld [vmem:[#allocation7 + $0x1ce4] sm:$0xf]  ;;  %v16454_v20 = vld [vmem:[#allocation7 + $0x1cfc] sm:$0xf0] }
 0xb74   :  { %v16451_v19 = vld [vmem:[#allocation7 + $0x1cec] sm:$0xf] }
 0xb75   :  { %7938 = vmatpush.bf16.msrb.mxu3 %v14343_v18 }
 0xb76   :  { %v7172_v26 = vpop.f32.mrf.mxu3 }
 0xb77   :  { %v17485_v10 = vadd.f32 %v7172_v26, %v17461_v23  ;;  %v7198_v32 = vpop.f32.mrf.mxu2  ;;  %v16471_v23 = vld [vmem:[#allocation7 + $0x1d84] sm:$0xf0]  ;;  %v14248_v26 = vld [vmem:[#allocation7 + $0x1d28] sm:$0xf0] }
 0xb78   :  { %v17488_v34 = vadd.f32 %v7198_v32, %v17458_v52  ;;  %v7161_v49 = vpop.f32.mrf.mxu1  ;;  %v14295_v37 = vor.u32 %v16471_v23, %v14294_v39  ;;  %v14170_v32 = vld [vmem:[%s17652_s0 + $0x13] sm:$0x1]  ;;  %v16469_v39 = vld [vmem:[#allocation7 + $0x1d7c] sm:$0xf]  ;;  %v14304_v23 = vld [vmem:[#allocation7 + $0x1d90] sm:$0xf0] }
 0xb79   :  { %v7187_v45 = vpop.f32.mrf.mxu0  ;;  %7939 = vmatpush.bf16.msrb.mxu3 %v14319_v29  ;;  %v14251_v49 = vor.u32 %v16456_v13, %v14248_v26  ;;  %v14227_v29 = vor.u32 %v16450_v55, %v14224_v21  ;;  %v14336_v13 = vld [vmem:[#allocation7 + $0x1dc8] sm:$0xf0]  ;;  %v14208_v55 = vld [vmem:[#allocation7 + $0x1cd0] sm:$0xf0]  ;;  %v16473_v21 = vld [vmem:[#allocation7 + $0x1d94] sm:$0xf0] }
 0xb7a   :  { %v14222_v45 = vld [vmem:[#allocation7 + $0x1ce0] sm:$0xf] }
 0xb7b   :  { %v14223_v18 = vor.u32 %v16453_v54, %v14222_v45  ;;  %v16445_v45 = vld [vmem:[#allocation7 + $0x1cbc] sm:$0xf] }
 0xb7d   :  { %7940 = vmatpush.bf16.msrb.mxu3 %v14295_v37  ;;  %v16444_v37 = vld [vmem:[#allocation7 + $0x1cb4] sm:$0xf] }
 0xb7e   :  { %v7174_v50 = vpop.f32.mrf.mxu3 }
 0xb7f   :  { %v7200_v16 = vpop.f32.mrf.mxu2  ;;  %v16472_v50 = vld [vmem:[#allocation7 + $0x1d8c] sm:$0xf0] }
 0xb80   :  { %v7211_v41 = vpop.f32.mrf.mxu1  ;;  %v14303_v16 = vor.u32 %v16472_v50, %v14302_v22  ;;  %v14211_v22 = vor.u32 %v16445_v45, %v14208_v55  ;;  %v16525_v55 = vld [vmem:[#allocation7 + $0x1f34] sm:$0xf0] }
 0xb81   :  { %v17491_v56 = vadd.f32 %v7211_v41, %v17467_v25  ;;  %v7248_v52 = vpop.f32.mrf.mxu0  ;;  %v14352_v25 = vld [vmem:[#allocation7 + $0x1df0] sm:$0xf0]  ;;  %7941 = vmatpush.bf16.msrb.mxu3 %v14271_v12  ;;  %v14307_v41 = vor.u32 %v16469_v39, %v14304_v23  ;;  %v14182_v23 = vld [vmem:[#allocation7 + $0x1c88] sm:$0xf] }
 0xb82   :  { %v7249_v5 = vadd.f32 %v17493_v24, %v7248_v52  ;;  %v14355_v46 = vor.u32 %v16481_v48, %v14352_v25  ;;  %v14198_v52 = vld [vmem:[#allocation7 + $0x1cb0] sm:$0xf]  ;;  %v14174_v48 = vld [vmem:[#allocation7 + $0x1c80] sm:$0xf]  ;;  %v16441_v25 = vld [vmem:[#allocation7 + $0x1c94] sm:$0xf0] }
 0xb84   :  { %v7252_v51 = vmax.f32 %v7249_v5, 0.0  ;;  %v16447_v5 = vld [vmem:[#allocation7 + $0x1cc4] sm:$0xf0] }
 0xb85   :  { %7942 = vmatpush.bf16.msrb.mxu3 %v14247_v36  ;;  %v14199_v47 = vor.u32 %v16447_v5, %v14198_v52  ;;  %v14230_v36 = vld [vmem:[#allocation7 + $0x1ce8] sm:$0xf]  ;;  %v16439_v52 = vld [vmem:[#allocation7 + $0x1c8c] sm:$0xf] }
 0xb86   :  { %v7253_v62 = vmin.f32 %v7252_v51, 6.0  ;;  %v7224_v43 = vpop.f32.mrf.mxu3  ;;  %v14200_v51 = vld [vmem:[#allocation7 + $0x1cc8] sm:$0xf0] }
 0xb87   :  { %v17497_v9 = vadd.f32 %v7224_v43, %v17470_v53  ;;  %v14323_v53 = vor.u32 %v16474_v11, %v14320_v30  ;;  %v14203_v61 = vor.u32 %v16444_v37, %v14200_v51  ;;  %v14254_v11 = vld [vmem:[#allocation7 + $0x1d18] sm:$0xf]  ;;  %v16460_v30 = vld [vmem:[#allocation7 + $0x1d2c] sm:$0xf0]  ;;  %v14184_v37 = vld [vmem:[#allocation7 + $0x1ca0] sm:$0xf0] }
 0xb88   :  { %v7254_v7 = vpack.c.bf16 %v7253_v62, %v7253_v62  ;;  %v7213_v1 = vpop.f32.mrf.mxu1  ;;  %v14280_v62 = vld [vmem:[#allocation7 + $0x1d60] sm:$0xf0]  ;;  %v16467_v51 = vld [vmem:[#allocation7 + $0x1d64] sm:$0xf0] }
 0xb89   :  { %v7250_v38 = vpop.f32.mrf.mxu0  ;;  %7943 = vmatpush.bf16.msrb.mxu3 %v14223_v18  ;;  %v14283_v43 = vor.u32 %v16463_v60, %v14280_v62  ;;  %v14175_v1 = vor.u32 %v16441_v25, %v14174_v48  ;;  %v14310_v18 = vld [vmem:[#allocation7 + $0x1d80] sm:$0xf]  ;;  %v14288_v60 = vld [vmem:[#allocation7 + $0x1d68] sm:$0xf0]  ;;  %v16458_v48 = vld [vmem:[#allocation7 + $0x1d24] sm:$0xf] }
 0xb8a   :  { %7552 = vmatmul.bf16.vlgmr.msrb.gmra.mxu2 %v7254_v7  ;;  %7565 = vmatmul.bf16.vlgmr.msrb.gmra.mxu0 %v7254_v7  ;;  %v14255_v38 = vor.u32 %v16460_v30, %v14254_v11  ;;  %v14311_v50 = vor.u32 %v16473_v21, %v14310_v18  ;;  %v14262_v62 = vld [vmem:[#allocation7 + $0x1d20] sm:$0xf]  ;;  %v16455_v11 = vld [vmem:[#allocation7 + $0x1d04] sm:$0xf0]  ;;  %v16452_v30 = vld [vmem:[#allocation7 + $0x1cf4] sm:$0xf] }
 0xb8b   :  { %7578 = vmatmul.bf16.vlgmr.msrb.gmra.mxu1 %v7254_v7  ;;  %7591 = vmatmul.bf16.vlgmr.msra.gmra.mxu3 %v7254_v7 }
 0xb8c   :  { %7951 = vmatpush.bf16.msrb.mxu1 %v14347_v63  ;;  %7964 = vmatpush.bf16.msrb.mxu2 %v14351_v14  ;;  %v14176_v63 = vld [vmem:[#allocation7 + $0x1c98] sm:$0xf0] }
 0xb8d   :  { %7977 = vmatpush.bf16.msrb.mxu0 %v14355_v46  ;;  %7944 = vmatpush.bf16.msrb.mxu3 %v14199_v47  ;;  %v16457_v14 = vld [vmem:[#allocation7 + $0x1d1c] sm:$0xf]  ;;  %v14256_v46 = vld [vmem:[#allocation7 + $0x1d30] sm:$0xf0]  ;;  %v14286_v47 = vld [vmem:[#allocation7 + $0x1d50] sm:$0xf] }
 0xb8e   :  { %v7226_v59 = vpop.f32.mrf.mxu3  ;;  %v14259_v6 = vor.u32 %v16457_v14, %v14256_v46  ;;  %v14287_v2 = vor.u32 %v16467_v51, %v14286_v47  ;;  %v14214_v14 = vld [vmem:[#allocation7 + $0x1cc0] sm:$0xf]  ;;  %v16449_v46 = vld [vmem:[#allocation7 + $0x1cd4] sm:$0xf0] }
 0xb8f   :  { %v14334_v59 = vld [vmem:[#allocation7 + $0x1db0] sm:$0xf]  ;;  %v16513_v47 = vld [vmem:[#allocation7 + $0x1ed4] sm:$0xf0] }
 0xb90   :  { %7952 = vmatpush.bf16.msrb.mxu1 %v14323_v53  ;;  %7965 = vmatpush.bf16.msrb.mxu2 %v14327_v33  ;;  %v14363_v53 = vor.u32 %v16482_v8, %v14360_v0  ;;  %v14231_v33 = vor.u32 %v16454_v20, %v14230_v36  ;;  %v14190_v20 = vld [vmem:[#allocation7 + $0x1c90] sm:$0xf] }
 0xb91   :  { %7978 = vmatpush.bf16.msrb.mxu0 %v14331_v44  ;;  %7945 = vmatpush.bf16.msrb.mxu3 %v14175_v1  ;;  %v14232_v44 = vld [vmem:[#allocation7 + $0x1d00] sm:$0xf0] }
 0xb92   :  { %v14235_v31 = vor.u32 %v16451_v19, %v14232_v44  ;;  %v16440_v44 = vld [vmem:[#allocation7 + $0x1c94] sm:$0xf] }
 0xb94   :  { %7953 = vmatpush.bf16.msrb.mxu1 %v14299_v17  ;;  %7966 = vmatpush.bf16.msrb.mxu2 %v14303_v16  ;;  %v16479_v17 = vld [vmem:[#allocation7 + $0x1dc4] sm:$0xf0]  ;;  %v14312_v16 = vld [vmem:[#allocation7 + $0x1d98] sm:$0xf0] }
 0xb95   :  { %7979 = vmatpush.bf16.msrb.mxu0 %v14307_v41  ;;  %7990 = vmatpush.bf16.msra.mxu3 %v14359_v58  ;;  %v14335_v57 = vor.u32 %v16479_v17, %v14334_v59  ;;  %v16442_v41 = vld [vmem:[#allocation7 + $0x1c9c] sm:$0xf0]  ;;  %v14192_v59 = vld [vmem:[#allocation7 + $0x1ca8] sm:$0xf0] }
 0xb96   :  { %v14183_v5 = vor.u32 %v16442_v41, %v14182_v23 }
 0xb98   :  { %7954 = vmatpush.bf16.msrb.mxu1 %v14275_v35  ;;  %7967 = vmatpush.bf16.msrb.mxu2 %v14279_v28  ;;  %v16476_v35 = vld [vmem:[#allocation7 + $0x1db4] sm:$0xf]  ;;  %v14291_v28 = vor.u32 %v16464_v40, %v14288_v60 }
 0xb99   :  { %7980 = vmatpush.bf16.msrb.mxu0 %v14283_v43  ;;  %v14339_v26 = vor.u32 %v16476_v35, %v14336_v13  ;;  %7991 = vmatpush.bf16.msra.mxu3 %v14335_v57  ;;  %v16461_v43 = vld [vmem:[#allocation7 + $0x1d34] sm:$0xf0] }
 0xb9a   :  { %7604 = vmatmul.bf16.vlgmr.msra.gmra.mxu2 %v7254_v7  ;;  %7617 = vmatmul.bf16.vlgmr.msra.gmra.mxu0 %v7254_v7  ;;  %v16438_v7 = vld [vmem:[#allocation7 + $0x1c84] sm:$0xf]  ;;  %v14263_v25 = vor.u32 %v16461_v43, %v14262_v62 }
 0xb9b   :  { %14171 = vmatmul.msk.bf16.vlgmr.msra.gmra.mxu1 %vm140_vm1, %v14170_v32  ;;  %v14179_v12 = vor.u32 %v16438_v7, %v14176_v63  ;;  %v14206_v32 = vld [vmem:[#allocation7 + $0x1cb8] sm:$0xf]  ;;  %v14264_v7 = vld [vmem:[#allocation7 + $0x1d38] sm:$0xf0]  ;;  %v14238_v63 = vld [vmem:[#allocation7 + $0x1cf0] sm:$0xf] }
 0xb9c   :  { %7955 = vmatpush.bf16.msrb.mxu1 %v14251_v49  ;;  %7968 = vmatpush.bf16.msrb.mxu2 %v14255_v38  ;;  %v16448_v49 = vld [vmem:[#allocation7 + $0x1ccc] sm:$0xf0]  ;;  %v14267_v1 = vor.u32 %v16458_v48, %v14264_v7  ;;  %v14240_v38 = vld [vmem:[#allocation7 + $0x1d08] sm:$0xf0]  ;;  %v16522_v43 = vld [vmem:[#allocation7 + $0x1f24] sm:$0xf] }
 0xb9d   :  { %7981 = vmatpush.bf16.msrb.mxu0 %v14259_v6  ;;  %v14207_v54 = vor.u32 %v16448_v49, %v14206_v32  ;;  %7992 = vmatpush.bf16.msra.mxu3 %v14311_v50  ;;  %v14243_v15 = vor.u32 %v16452_v30, %v14240_v38  ;;  %v16446_v6 = vld [vmem:[#allocation7 + $0x1cc4] sm:$0xf]  ;;  %v16531_v49 = vld [vmem:[#allocation7 + $0x1f64] sm:$0xf0]  ;;  %v14488_v50 = vld [vmem:[#allocation7 + $0x1ef0] sm:$0xf] }
 0xb9e   :  { %v14219_v36 = vor.u32 %v16446_v6, %v14216_v42  ;;  %v14514_v48 = vld [vmem:[#allocation7 + $0x1f38] sm:$0xf0]  ;;  %v16516_v7 = vld [vmem:[#allocation7 + $0x1ef4] sm:$0xf]  ;;  %v14364_v38 = vld [vmem:[%s17652_s0 + $0x14] sm:$0x1] }
 0xb9f   :  { %v14466_v30 = vld [vmem:[#allocation7 + $0x1ed8] sm:$0xf0]  ;;  %v14546_v42 = vld [vmem:[#allocation7 + $0x1f70] sm:$0xf0] }
 0xba0   :  { %7956 = vmatpush.bf16.msrb.mxu1 %v14227_v29  ;;  %7969 = vmatpush.bf16.msrb.mxu2 %v14231_v33  ;;  %v16470_v29 = vld [vmem:[#allocation7 + $0x1d84] sm:$0xf]  ;;  %v16443_v33 = vld [vmem:[#allocation7 + $0x1ca4] sm:$0xf0] }
 0xba1   :  { %7982 = vmatpush.bf16.msrb.mxu0 %v14235_v31  ;;  %v14315_v39 = vor.u32 %v16470_v29, %v14312_v16  ;;  %7993 = vmatpush.bf16.msra.mxu3 %v14287_v2  ;;  %v14191_v17 = vor.u32 %v16443_v33, %v14190_v20  ;;  %v14195_v31 = vor.u32 %v16440_v44, %v14192_v59  ;;  %v14442_v33 = vld [vmem:[#allocation7 + $0x1ea8] sm:$0xf0]  ;;  %v14520_v44 = vld [vmem:[#allocation7 + $0x1f28] sm:$0xf]  ;;  %v16526_v59 = vld [vmem:[#allocation7 + $0x1f3c] sm:$0xf0] }
 0xba4   :  { %7957 = vmatpush.bf16.msrb.mxu1 %v14203_v61  ;;  %7970 = vmatpush.bf16.msrb.mxu2 %v14207_v54  ;;  %v14187_v61 = vor.u32 %v16439_v52, %v14184_v37  ;;  %v14512_v54 = vld [vmem:[#allocation7 + $0x1f20] sm:$0xf]  ;;  %v16528_v52 = vld [vmem:[#allocation7 + $0x1f54] sm:$0xf] }
 0xba5   :  { %7983 = vmatpush.bf16.msrb.mxu0 %v14211_v22  ;;  %7994 = vmatpush.bf16.msra.mxu3 %v14263_v25  ;;  %v14513_v21 = vor.u32 %v16525_v55, %v14512_v54  ;;  %v14464_v37 = vld [vmem:[#allocation7 + $0x1ec0] sm:$0xf]  ;;  %v14517_v25 = vor.u32 %v16522_v43, %v14514_v48  ;;  %v14418_v54 = vld [vmem:[#allocation7 + $0x1e78] sm:$0xf0]  ;;  %v14496_v55 = vld [vmem:[#allocation7 + $0x1ef8] sm:$0xf] }
 0xba6   :  { %v14370_v48 = vld [vmem:[#allocation7 + $0x1e18] sm:$0xf0] }
 0xba8   :  { %7958 = vmatpush.bf16.msrb.mxu1 %v14179_v12  ;;  %7971 = vmatpush.bf16.msrb.mxu2 %v14183_v5  ;;  %v14239_v12 = vor.u32 %v16455_v11, %v14238_v63  ;;  %v14538_v5 = vld [vmem:[#allocation7 + $0x1f68] sm:$0xf0]  ;;  %v16510_v11 = vld [vmem:[#allocation7 + $0x1ec4] sm:$0xf] }
 0xba9   :  { %7984 = vmatpush.bf16.msrb.mxu0 %v14187_v61 }
 0xbaa   :  { %7995 = vmatpush.bf16.msra.mxu3 %v14239_v12  ;;  %v14469_v12 = vor.u32 %v16510_v11, %v14466_v30  ;;  %v14450_v11 = vld [vmem:[#allocation7 + $0x1eb0] sm:$0xf0]  ;;  %v14552_v30 = vld [vmem:[#allocation7 + $0x1f60] sm:$0xf] }
 0xbac   :  { %8003 = vmatpush.bf16.msra.mxu1 %v14363_v53  ;;  %8034 = vmatpush.bf16.msra.mxu2 %v17045_v3  ;;  %v14215_v53 = vor.u32 %v16449_v46, %v14214_v14  ;;  %v14544_v14 = vld [vmem:[#allocation7 + $0x1f58] sm:$0xf]  ;;  %v16532_v46 = vld [vmem:[#allocation7 + $0x1f6c] sm:$0xf0] }
 0xbad   :  { %v14545_v6 = vor.u32 %v16532_v46, %v14544_v14  ;;  %v16530_v14 = vld [vmem:[#allocation7 + $0x1f64] sm:$0xf]  ;;  %v14554_v46 = vld [vmem:[#allocation7 + $0x1f78] sm:$0xf0] }
 0xbae   :  { %7996 = vmatpush.bf16.msra.mxu3 %v14215_v53  ;;  %v16507_v53 = vld [vmem:[#allocation7 + $0x1ea4] sm:$0xf0] }
 0xbb0   :  { %8004 = vmatpush.bf16.msra.mxu1 %v14339_v26 }
 0xbb2   :  { %7997 = vmatpush.bf16.msra.mxu3 %v14191_v17 }
 0xbb4   :  { %8005 = vmatpush.bf16.msra.mxu1 %v14315_v39 }
 0xbb8   :  { %8006 = vmatpush.bf16.msra.mxu1 %v14291_v28  ;;  %v14465_v28 = vor.u32 %v16513_v47, %v14464_v37  ;;  %v16514_v37 = vld [vmem:[#allocation7 + $0x1edc] sm:$0xf0] }
 0xbbc   :  { %8007 = vmatpush.bf16.msra.mxu1 %v14267_v1  ;;  %v14490_v1 = vld [vmem:[#allocation7 + $0x1f08] sm:$0xf0] }
 0xbc0   :  { %8008 = vmatpush.bf16.msra.mxu1 %v14243_v15  ;;  %v16529_v15 = vld [vmem:[#allocation7 + $0x1f5c] sm:$0xf] }
 0xbc4   :  { %8009 = vmatpush.bf16.msra.mxu1 %v14219_v36  ;;  %v16504_v36 = vld [vmem:[#allocation7 + $0x1e94] sm:$0xf] }
 0xbc5   :  { %v14445_v17 = vor.u32 %v16504_v36, %v14442_v33  ;;  %v14426_v36 = vld [vmem:[#allocation7 + $0x1e80] sm:$0xf0]  ;;  %v16527_v33 = vld [vmem:[#allocation7 + $0x1f44] sm:$0xf0] }
 0xbc8   :  { %8010 = vmatpush.bf16.msra.mxu1 %v14195_v31  ;;  %v14521_v31 = vor.u32 %v16526_v59, %v14520_v44 }
 0xc07   :  { %v7566_v8 = vpop.f32.mrf.mxu0 }
 0xc08   :  { %v17505_v0 = vadd.f32 %v7566_v8, %v17485_v10  ;;  %v7579_v58 = vpop.f32.mrf.mxu1  ;;  %v14549_v8 = vor.u32 %v16529_v15, %v14546_v42  ;;  %v14424_v42 = vld [vmem:[#allocation7 + $0x1e68] sm:$0xf] }
 0xc09   :  { %v17508_v19 = vadd.f32 %v7579_v58, %v17482_v27  ;;  %v14536_v27 = vld [vmem:[#allocation7 + $0x1f50] sm:$0xf] }
 0xc0a   :  { %v14537_v45 = vor.u32 %v16531_v49, %v14536_v27  ;;  %v14440_v58 = vld [vmem:[#allocation7 + $0x1e90] sm:$0xf]  ;;  %v16501_v27 = vld [vmem:[#allocation7 + $0x1e74] sm:$0xf0]  ;;  %v16498_v49 = vld [vmem:[#allocation7 + $0x1e64] sm:$0xf] }
 0xc0b   :  { %v14441_v20 = vor.u32 %v16507_v53, %v14440_v58  ;;  %v16499_v58 = vld [vmem:[#allocation7 + $0x1e6c] sm:$0xf] }
 0xc0c   :  { %8332 = vmatpush.bf16.msra.mxu0 %v14537_v45  ;;  %v14429_v44 = vor.u32 %v16499_v58, %v14426_v36 }
 0xc0d   :  { %v7553_v57 = vpop.f32.mrf.mxu2 }
 0xc0e   :  { %v17511_v10 = vadd.f32 %v7553_v57, %v17479_v4  ;;  %v7592_v35 = vpop.f32.mrf.mxu3  ;;  %v16519_v4 = vld [vmem:[#allocation7 + $0x1f04] sm:$0xf0]  ;;  %v16523_v57 = vld [vmem:[#allocation7 + $0x1f2c] sm:$0xf] }
 0xc0f   :  { %v17514_v13 = vadd.f32 %v7592_v35, %v17488_v34  ;;  %v7568_v26 = vpop.f32.mrf.mxu0  ;;  %v14489_v23 = vor.u32 %v16519_v4, %v14488_v50  ;;  %v14522_v35 = vld [vmem:[#allocation7 + $0x1f40] sm:$0xf0]  ;;  %v16517_v50 = vld [vmem:[#allocation7 + $0x1efc] sm:$0xf]  ;;  %v14498_v4 = vld [vmem:[#allocation7 + $0x1f10] sm:$0xf0] }
 0xc10   :  { %v7581_v32 = vpop.f32.mrf.mxu1  ;;  %8333 = vmatpush.bf16.msra.mxu0 %v14513_v21  ;;  %v14525_v26 = vor.u32 %v16523_v57, %v14522_v35  ;;  %v14421_v21 = vor.u32 %v16498_v49, %v14418_v54  ;;  %v14400_v35 = vld [vmem:[#allocation7 + $0x1e38] sm:$0xf]  ;;  %v14402_v49 = vld [vmem:[#allocation7 + $0x1e50] sm:$0xf0] }
 0xc11   :  { %v14416_v32 = vld [vmem:[#allocation7 + $0x1e60] sm:$0xf]  ;;  %v16521_v54 = vld [vmem:[#allocation7 + $0x1f14] sm:$0xf0] }
 0xc12   :  { %v14417_v45 = vor.u32 %v16501_v27, %v14416_v32  ;;  %v16493_v32 = vld [vmem:[#allocation7 + $0x1e3c] sm:$0xf] }
 0xc14   :  { %8334 = vmatpush.bf16.msra.mxu0 %v14489_v23  ;;  %v16492_v23 = vld [vmem:[#allocation7 + $0x1e34] sm:$0xf] }
 0xc15   :  { %v7555_v18 = vpop.f32.mrf.mxu2 }
 0xc16   :  { %v7594_v22 = vpop.f32.mrf.mxu3  ;;  %v16520_v18 = vld [vmem:[#allocation7 + $0x1f0c] sm:$0xf0] }
 0xc17   :  { %v7618_v29 = vpop.f32.mrf.mxu0  ;;  %v14497_v22 = vor.u32 %v16520_v18, %v14496_v55  ;;  %v14405_v55 = vor.u32 %v16493_v32, %v14402_v49 }
 0xc18   :  { %v17517_v16 = vadd.f32 %v7618_v29, %v17497_v9  ;;  %v7642_v34 = vpop.f32.mrf.mxu1  ;;  %v14541_v9 = vor.u32 %v16528_v52, %v14538_v5  ;;  %8335 = vmatpush.bf16.msra.mxu0 %v14465_v28  ;;  %v14501_v29 = vor.u32 %v16517_v50, %v14498_v4  ;;  %v14394_v52 = vld [vmem:[#allocation7 + $0x1e48] sm:$0xf0]  ;;  %v14472_v5 = vld [vmem:[#allocation7 + $0x1ec8] sm:$0xf]  ;;  %v16489_v28 = vld [vmem:[#allocation7 + $0x1e14] sm:$0xf0] }
 0xc19   :  { %v7643_v39 = vadd.f32 %v17493_v24, %v7642_v34  ;;  %v14392_v34 = vld [vmem:[#allocation7 + $0x1e30] sm:$0xf]  ;;  %v14397_v47 = vor.u32 %v16492_v23, %v14394_v52  ;;  %v14376_v4 = vld [vmem:[#allocation7 + $0x1e08] sm:$0xf]  ;;  %v14378_v23 = vld [vmem:[#allocation7 + $0x1e20] sm:$0xf0] }
 0xc1a   :  { %v16515_v52 = vld [vmem:[#allocation7 + $0x1ee4] sm:$0xf0] }
 0xc1b   :  { %v7646_v41 = vmax.f32 %v7643_v39, 0.0  ;;  %v16495_v39 = vld [vmem:[#allocation7 + $0x1e44] sm:$0xf0] }
 0xc1c   :  { %8336 = vmatpush.bf16.msra.mxu0 %v14441_v20  ;;  %v14528_v20 = vld [vmem:[#allocation7 + $0x1f30] sm:$0xf] }
 0xc1d   :  { %v7647_v51 = vmin.f32 %v7646_v41, 6.0  ;;  %v7605_v61 = vpop.f32.mrf.mxu2  ;;  %v14393_v41 = vor.u32 %v16495_v39, %v14392_v34  ;;  %v14529_v59 = vor.u32 %v16527_v33, %v14528_v20  ;;  %v16487_v34 = vld [vmem:[#allocation7 + $0x1e0c] sm:$0xf]  ;;  %v16491_v33 = vld [vmem:[#allocation7 + $0x1e24] sm:$0xf0] }
 0xc1e   :  { %v17521_v2 = vadd.f32 %v7605_v61, %v17491_v56  ;;  %v14493_v56 = vor.u32 %v16516_v7, %v14490_v1  ;;  %v16511_v61 = vld [vmem:[#allocation7 + $0x1ecc] sm:$0xf]  ;;  %v16508_v7 = vld [vmem:[#allocation7 + $0x1eac] sm:$0xf0] }
 0xc1f   :  { %v7648_v40 = vpack.c.bf16 %v7647_v51, %v7647_v51  ;;  %v7620_v60 = vpop.f32.mrf.mxu0  ;;  %v14473_v51 = vor.u32 %v16514_v37, %v14472_v5  ;;  %v14381_v5 = vor.u32 %v16487_v34, %v14378_v23  ;;  %v16576_v23 = vld [vmem:[#allocation7 + $0x20d4] sm:$0xf] }
 0xc20   :  { %v7644_v62 = vpop.f32.mrf.mxu1  ;;  %8337 = vmatpush.bf16.msra.mxu0 %v14417_v45  ;;  %v14504_v45 = vld [vmem:[#allocation7 + $0x1f00] sm:$0xf] }
 0xc21   :  { %7946 = vmatmul.bf16.vlgmr.msrb.gmra.mxu3 %v7648_v40  ;;  %7959 = vmatmul.bf16.vlgmr.msrb.gmra.mxu1 %v7648_v40  ;;  %v16486_v62 = vld [vmem:[#allocation7 + $0x1e04] sm:$0xf]  ;;  %v14505_v18 = vor.u32 %v16521_v54, %v14504_v45  ;;  %v14706_v45 = vld [vmem:[#allocation7 + $0x20a0] sm:$0xf]  ;;  %v16573_v54 = vld [vmem:[#allocation7 + $0x20b4] sm:$0xf0] }
 0xc22   :  { %7972 = vmatmul.bf16.vlgmr.msrb.gmra.mxu2 %v7648_v40  ;;  %7985 = vmatmul.bf16.vlgmr.msrb.gmra.mxu0 %v7648_v40  ;;  %v14373_v1 = vor.u32 %v16486_v62, %v14370_v48 }
 0xc23   :  { %8345 = vmatpush.bf16.msrb.mxu2 %v14541_v9  ;;  %8358 = vmatpush.bf16.msrb.mxu3 %v14545_v6  ;;  %v14368_v9 = vld [vmem:[#allocation7 + $0x1e00] sm:$0xf]  ;;  %v14557_v6 = vor.u32 %v16530_v14, %v14554_v46  ;;  %v16497_v46 = vld [vmem:[#allocation7 + $0x1e54] sm:$0xf0] }
 0xc24   :  { %8371 = vmatpush.bf16.msrb.mxu1 %v14549_v8  ;;  %8338 = vmatpush.bf16.msra.mxu0 %v14393_v41  ;;  %v14369_v43 = vor.u32 %v16489_v28, %v14368_v9  ;;  %v16502_v8 = vld [vmem:[#allocation7 + $0x1e7c] sm:$0xf0]  ;;  %v14480_v41 = vld [vmem:[#allocation7 + $0x1ed0] sm:$0xf]  ;;  %v16506_v9 = vld [vmem:[#allocation7 + $0x1ea4] sm:$0xf] }
 0xc25   :  { %v7607_v63 = vpop.f32.mrf.mxu2  ;;  %v14425_v53 = vor.u32 %v16502_v8, %v14424_v42  ;;  %v14481_v37 = vor.u32 %v16515_v52, %v14480_v41  ;;  %v14408_v14 = vld [vmem:[#allocation7 + $0x1e40] sm:$0xf]  ;;  %v14732_v41 = vld [vmem:[#allocation7 + $0x20e8] sm:$0xf0] }
 0xc26   :  { %v14409_v58 = vor.u32 %v16497_v46, %v14408_v14  ;;  %v14658_v52 = vld [vmem:[#allocation7 + $0x2040] sm:$0xf]  ;;  %v14740_v14 = vld [vmem:[#allocation7 + $0x20f0] sm:$0xf0] }
 0xc27   :  { %8346 = vmatpush.bf16.msrb.mxu2 %v14517_v25  ;;  %8359 = vmatpush.bf16.msrb.mxu3 %v14521_v31  ;;  %v14448_v25 = vld [vmem:[#allocation7 + $0x1e98] sm:$0xf]  ;;  %v14530_v31 = vld [vmem:[#allocation7 + $0x1f48] sm:$0xf0] }
 0xc28   :  { %8372 = vmatpush.bf16.msrb.mxu1 %v14525_v26  ;;  %v14449_v63 = vor.u32 %v16508_v7, %v14448_v25  ;;  %8339 = vmatpush.bf16.msra.mxu0 %v14369_v43  ;;  %v16496_v26 = vld [vmem:[#allocation7 + $0x1e4c] sm:$0xf0]  ;;  %v14458_v43 = vld [vmem:[#allocation7 + $0x1eb8] sm:$0xf0] }
 0xc29   :  { %v14401_v27 = vor.u32 %v16496_v26, %v14400_v35  ;;  %v14461_v7 = vor.u32 %v16506_v9, %v14458_v43  ;;  %v14708_v9 = vld [vmem:[#allocation7 + $0x20b8] sm:$0xf0] }
 0xc2b   :  { %8347 = vmatpush.bf16.msrb.mxu2 %v14493_v56  ;;  %8360 = vmatpush.bf16.msrb.mxu3 %v14497_v22  ;;  %v16505_v56 = vld [vmem:[#allocation7 + $0x1e9c] sm:$0xf] }
 0xc2c   :  { %8373 = vmatpush.bf16.msrb.mxu1 %v14501_v29  ;;  %v14506_v22 = vld [vmem:[#allocation7 + $0x1f18] sm:$0xf0]  ;;  %v16490_v29 = vld [vmem:[#allocation7 + $0x1e1c] sm:$0xf0] }
 0xc2d   :  { %v14377_v39 = vor.u32 %v16490_v29, %v14376_v4 }
 0xc2f   :  { %8348 = vmatpush.bf16.msrb.mxu2 %v14469_v12  ;;  %8361 = vmatpush.bf16.msrb.mxu3 %v14473_v51  ;;  %v14453_v12 = vor.u32 %v16505_v56, %v14450_v11  ;;  %v14482_v51 = vld [vmem:[#allocation7 + $0x1ee8] sm:$0xf0]  ;;  %v16500_v56 = vld [vmem:[#allocation7 + $0x1e74] sm:$0xf] }
 0xc31   :  { %7998 = vmatmul.bf16.vlgmr.msra.gmra.mxu3 %v7648_v40  ;;  %8011 = vmatmul.bf16.vlgmr.msra.gmra.mxu1 %v7648_v40  ;;  %v14474_v40 = vld [vmem:[#allocation7 + $0x1ee0] sm:$0xf0] }
 0xc32   :  { %14365 = vmatmul.msk.bf16.vlgmr.msra.gmra.mxu2 %vm140_vm1, %v14364_v38  ;;  %v14477_v60 = vor.u32 %v16511_v61, %v14474_v40  ;;  %v16533_v38 = vld [vmem:[#allocation7 + $0x1f74] sm:$0xf0]  ;;  %v14456_v40 = vld [vmem:[#allocation7 + $0x1ea0] sm:$0xf] }
 0xc33   :  { %8349 = vmatpush.bf16.msrb.mxu2 %v14445_v17  ;;  %8362 = vmatpush.bf16.msrb.mxu3 %v14449_v63  ;;  %v14553_v15 = vor.u32 %v16533_v38, %v14552_v30  ;;  %v16524_v17 = vld [vmem:[#allocation7 + $0x1f34] sm:$0xf]  ;;  %v16503_v63 = vld [vmem:[#allocation7 + $0x1e84] sm:$0xf0]  ;;  %v14434_v30 = vld [vmem:[#allocation7 + $0x1e88] sm:$0xf0] }
 0xc34   :  { %8374 = vmatpush.bf16.msrb.mxu1 %v14477_v60  ;;  %v14533_v57 = vor.u32 %v16524_v17, %v14530_v31  ;;  %v16509_v60 = vld [vmem:[#allocation7 + $0x1eb4] sm:$0xf0]  ;;  %v14437_v38 = vor.u32 %v16500_v56, %v14434_v30  ;;  %v16580_v30 = vld [vmem:[#allocation7 + $0x20ec] sm:$0xf0] }
 0xc35   :  { %8384 = vmatpush.bf16.msrb.mxu0 %v14553_v15  ;;  %v14457_v62 = vor.u32 %v16509_v60, %v14456_v40  ;;  %v16494_v15 = vld [vmem:[#allocation7 + $0x1e44] sm:$0xf]  ;;  %v14738_v56 = vld [vmem:[#allocation7 + $0x20d8] sm:$0xf] }
 0xc37   :  { %8350 = vmatpush.bf16.msrb.mxu2 %v14421_v21  ;;  %8363 = vmatpush.bf16.msrb.mxu3 %v14425_v53  ;;  %v16518_v21 = vld [vmem:[#allocation7 + $0x1f04] sm:$0xf] }
 0xc38   :  { %8375 = vmatpush.bf16.msrb.mxu1 %v14453_v12  ;;  %v14509_v50 = vor.u32 %v16518_v21, %v14506_v22  ;;  %v16567_v21 = vld [vmem:[#allocation7 + $0x2084] sm:$0xf0] }
 0xc39   :  { %8385 = vmatpush.bf16.msrb.mxu0 %v14529_v59  ;;  %v14386_v59 = vld [vmem:[#allocation7 + $0x1e28] sm:$0xf0] }
 0xc3b   :  { %8351 = vmatpush.bf16.msrb.mxu2 %v14397_v47  ;;  %8364 = vmatpush.bf16.msrb.mxu3 %v14401_v27  ;;  %v16512_v47 = vld [vmem:[#allocation7 + $0x1ed4] sm:$0xf]  ;;  %v14730_v27 = vld [vmem:[#allocation7 + $0x20d0] sm:$0xf] }
 0xc3c   :  { %8376 = vmatpush.bf16.msrb.mxu1 %v14429_v44  ;;  %v14485_v61 = vor.u32 %v16512_v47, %v14482_v51  ;;  %v16488_v44 = vld [vmem:[#allocation7 + $0x1e14] sm:$0xf] }
 0xc3d   :  { %8386 = vmatpush.bf16.msrb.mxu0 %v14505_v18  ;;  %v14682_v18 = vld [vmem:[#allocation7 + $0x2070] sm:$0xf] }
 0xc3f   :  { %8352 = vmatpush.bf16.msrb.mxu2 %v14373_v1  ;;  %8365 = vmatpush.bf16.msrb.mxu3 %v14377_v39  ;;  %v14432_v1 = vld [vmem:[#allocation7 + $0x1e70] sm:$0xf] }
 0xc40   :  { %8377 = vmatpush.bf16.msrb.mxu1 %v14405_v55  ;;  %v14433_v12 = vor.u32 %v16503_v63, %v14432_v1  ;;  %v14707_v55 = vor.u32 %v16573_v54, %v14706_v45  ;;  %v14558_v63 = vld [vmem:[%s17652_s0 + $0x15] sm:$0x1]  ;;  %v16565_v54 = vld [vmem:[#allocation7 + $0x207c] sm:$0xf] }
 0xc41   :  { %8387 = vmatpush.bf16.msrb.mxu0 %v14481_v37 }
 0xc43   :  { %8397 = vmatpush.bf16.msra.mxu2 %v14557_v6  ;;  %8428 = vmatpush.bf16.msra.mxu3 %v17045_v3  ;;  %v14410_v6 = vld [vmem:[#allocation7 + $0x1e58] sm:$0xf0] }
 0xc44   :  { %8378 = vmatpush.bf16.msrb.mxu1 %v14381_v5  ;;  %v14413_v53 = vor.u32 %v16494_v15, %v14410_v6  ;;  %v16561_v5 = vld [vmem:[#allocation7 + $0x2054] sm:$0xf0]  ;;  %v14634_v15 = vld [vmem:[#allocation7 + $0x2010] sm:$0xf]  ;;  %v16555_v6 = vld [vmem:[#allocation7 + $0x2024] sm:$0xf0] }
 0xc45   :  { %8388 = vmatpush.bf16.msrb.mxu0 %v14457_v62  ;;  %v14659_v40 = vor.u32 %v16561_v5, %v14658_v52  ;;  %v14684_v62 = vld [vmem:[#allocation7 + $0x2088] sm:$0xf0]  ;;  %v14668_v5 = vld [vmem:[#allocation7 + $0x2060] sm:$0xf0] }
 0xc46   :  { %v16559_v52 = vld [vmem:[#allocation7 + $0x204c] sm:$0xf] }
 0xc47   :  { %8398 = vmatpush.bf16.msra.mxu2 %v14533_v57  ;;  %v14389_v57 = vor.u32 %v16488_v44, %v14386_v59  ;;  %v16571_v44 = vld [vmem:[#allocation7 + $0x20ac] sm:$0xf]  ;;  %v14716_v59 = vld [vmem:[#allocation7 + $0x20c0] sm:$0xf0] }
 0xc49   :  { %8389 = vmatpush.bf16.msrb.mxu0 %v14433_v12  ;;  %v16577_v12 = vld [vmem:[#allocation7 + $0x20dc] sm:$0xf] }
 0xc4a   :  { %v14743_v46 = vor.u32 %v16577_v12, %v14740_v14  ;;  %v16550_v14 = vld [vmem:[#allocation7 + $0x1ffc] sm:$0xf0] }
 0xc4b   :  { %8399 = vmatpush.bf16.msra.mxu2 %v14509_v50 }
 0xc4d   :  { %8390 = vmatpush.bf16.msrb.mxu0 %v14409_v58  ;;  %v14636_v58 = vld [vmem:[#allocation7 + $0x2028] sm:$0xf0] }
 0xc4f   :  { %8400 = vmatpush.bf16.msra.mxu2 %v14485_v61  ;;  %v14735_v61 = vor.u32 %v16576_v23, %v14732_v41 }
 0xc53   :  { %8401 = vmatpush.bf16.msra.mxu2 %v14461_v7  ;;  %v14660_v7 = vld [vmem:[#allocation7 + $0x2058] sm:$0xf0] }
 0xc57   :  { %8402 = vmatpush.bf16.msra.mxu2 %v14437_v38  ;;  %v14739_v38 = vor.u32 %v16580_v30, %v14738_v56  ;;  %v14748_v56 = vld [vmem:[#allocation7 + $0x20f8] sm:$0xf0] }
 0xc5b   :  { %8403 = vmatpush.bf16.msra.mxu2 %v14413_v53  ;;  %v14714_v53 = vld [vmem:[#allocation7 + $0x20a8] sm:$0xf] }
 0xc5f   :  { %8404 = vmatpush.bf16.msra.mxu2 %v14389_v57  ;;  %v16549_v57 = vld [vmem:[#allocation7 + $0x1ff4] sm:$0xf0] }
 0xc9e   :  { %v7960_v28 = vpop.f32.mrf.mxu1 }
 0xc9f   :  { %v17529_v48 = vadd.f32 %v7960_v28, %v17505_v0  ;;  %v7986_v25 = vpop.f32.mrf.mxu0  ;;  %v16564_v28 = vld [vmem:[#allocation7 + $0x2074] sm:$0xf] }
 0xca0   :  { %v17532_v11 = vadd.f32 %v7986_v25, %v17514_v13  ;;  %v14384_v13 = vld [vmem:[#allocation7 + $0x1e10] sm:$0xf]  ;;  %v14687_v43 = vor.u32 %v16564_v28, %v14684_v62  ;;  %v16558_v25 = vld [vmem:[#allocation7 + $0x2044] sm:$0xf]  ;;  %v16553_v62 = vld [vmem:[#allocation7 + $0x201c] sm:$0xf] }
 0xca1   :  { %v14385_v31 = vor.u32 %v16491_v33, %v14384_v13  ;;  %v14663_v1 = vor.u32 %v16558_v25, %v14660_v7  ;;  %v16574_v13 = vld [vmem:[#allocation7 + $0x20bc] sm:$0xf0] }
 0xca2   :  { %v14715_v33 = vor.u32 %v16574_v13, %v14714_v53  ;;  %v14746_v25 = vld [vmem:[#allocation7 + $0x20e0] sm:$0xf]  ;;  %v16572_v13 = vld [vmem:[#allocation7 + $0x20b4] sm:$0xf] }
 0xca3   :  { %8391 = vmatpush.bf16.msrb.mxu0 %v14385_v31  ;;  %v14610_v31 = vld [vmem:[#allocation7 + $0x1fe0] sm:$0xf] }
 0xca4   :  { %v7947_v42 = vpop.f32.mrf.mxu3 }
 0xca5   :  { %v17535_v0 = vadd.f32 %v7947_v42, %v17511_v10  ;;  %v7973_v8 = vpop.f32.mrf.mxu2  ;;  %v16552_v42 = vld [vmem:[#allocation7 + $0x2014] sm:$0xf] }
 0xca6   :  { %v17538_v36 = vadd.f32 %v7973_v8, %v17508_v19  ;;  %v7962_v20 = vpop.f32.mrf.mxu1  ;;  %v16579_v19 = vld [vmem:[#allocation7 + $0x20e4] sm:$0xf0]  ;;  %v14635_v8 = vor.u32 %v16555_v6, %v14634_v15  ;;  %v14620_v6 = vld [vmem:[#allocation7 + $0x2000] sm:$0xf0] }
 0xca7   :  { %v7988_v17 = vpop.f32.mrf.mxu0  ;;  %v14731_v49 = vor.u32 %v16579_v19, %v14730_v27  ;;  %v14639_v20 = vor.u32 %v16552_v42, %v14636_v58  ;;  %v14690_v27 = vld [vmem:[#allocation7 + $0x2078] sm:$0xf]  ;;  %v16568_v19 = vld [vmem:[#allocation7 + $0x208c] sm:$0xf0] }
 0xca8   :  { %v14719_v17 = vor.u32 %v16571_v44, %v14716_v59  ;;  %v14691_v45 = vor.u32 %v16568_v19, %v14690_v27  ;;  %v14722_v42 = vld [vmem:[#allocation7 + $0x20b0] sm:$0xf]  ;;  %v14594_v44 = vld [vmem:[#allocation7 + $0x1fb8] sm:$0xf]  ;;  %v16566_v19 = vld [vmem:[#allocation7 + $0x2084] sm:$0xf] }
 0xca9   :  { %8726 = vmatpush.bf16.msra.mxu1 %v14731_v49  ;;  %v16544_v59 = vld [vmem:[#allocation7 + $0x1fcc] sm:$0xf0] }
 0xcac   :  { %v7949_v10 = vpop.f32.mrf.mxu3 }
 0xcad   :  { %v7975_v35 = vpop.f32.mrf.mxu2  ;;  %8727 = vmatpush.bf16.msra.mxu1 %v14707_v55  ;;  %v16546_v10 = vld [vmem:[#allocation7 + $0x1fe4] sm:$0xf]  ;;  %v14692_v55 = vld [vmem:[#allocation7 + $0x2090] sm:$0xf0] }
 0xcae   :  { %v8012_v26 = vpop.f32.mrf.mxu1  ;;  %v14611_v35 = vor.u32 %v16549_v57, %v14610_v31  ;;  %v14595_v31 = vor.u32 %v16544_v59, %v14594_v44  ;;  %v14596_v57 = vld [vmem:[#allocation7 + $0x1fd0] sm:$0xf0] }
 0xcaf   :  { %v17541_v32 = vadd.f32 %v8012_v26, %v17517_v16  ;;  %v14683_v16 = vor.u32 %v16567_v21, %v14682_v18  ;;  %v14612_v26 = vld [vmem:[#allocation7 + $0x1ff8] sm:$0xf0]  ;;  %v14695_v18 = vor.u32 %v16565_v54, %v14692_v55  ;;  %v14586_v21 = vld [vmem:[#allocation7 + $0x1fb0] sm:$0xf]  ;;  %v14570_v54 = vld [vmem:[#allocation7 + $0x1f88] sm:$0xf] }
 0xcb0   :  { %v14615_v49 = vor.u32 %v16546_v10, %v14612_v26  ;;  %v14698_v10 = vld [vmem:[#allocation7 + $0x2080] sm:$0xf] }
 0xcb1   :  { %8728 = vmatpush.bf16.msra.mxu1 %v14683_v16  ;;  %v14666_v16 = vld [vmem:[#allocation7 + $0x2048] sm:$0xf]  ;;  %v16538_v55 = vld [vmem:[#allocation7 + $0x1f9c] sm:$0xf0] }
 0xcb4   :  { %v7999_v22 = vpop.f32.mrf.mxu3 }
 0xcb5   :  { %v17544_v50 = vadd.f32 %v7999_v22, %v17521_v2  ;;  %v8036_v4 = vpop.f32.mrf.mxu2  ;;  %v16570_v2 = vld [vmem:[#allocation7 + $0x20a4] sm:$0xf]  ;;  %8729 = vmatpush.bf16.msra.mxu1 %v14659_v40  ;;  %v16543_v22 = vld [vmem:[#allocation7 + $0x1fc4] sm:$0xf0] }
 0xcb6   :  { %v8037_v29 = vadd.f32 %v17493_v24, %v8036_v4  ;;  %v8014_v34 = vpop.f32.mrf.mxu1  ;;  %v14711_v24 = vor.u32 %v16570_v2, %v14708_v9  ;;  %v16540_v4 = vld [vmem:[#allocation7 + $0x1fb4] sm:$0xf]  ;;  %v14642_v2 = vld [vmem:[#allocation7 + $0x2018] sm:$0xf]  ;;  %v16556_v9 = vld [vmem:[#allocation7 + $0x202c] sm:$0xf0] }
 0xcb7   :  { %v14588_v34 = vld [vmem:[#allocation7 + $0x1fc8] sm:$0xf0]  ;;  %v14643_v28 = vor.u32 %v16556_v9, %v14642_v2  ;;  %v14626_v9 = vld [vmem:[#allocation7 + $0x1ff0] sm:$0xf] }
 0xcb8   :  { %v8040_v39 = vmax.f32 %v8037_v29, 0.0  ;;  %v14587_v29 = vor.u32 %v16543_v22, %v14586_v21  ;;  %v14591_v23 = vor.u32 %v16540_v4, %v14588_v34  ;;  %v14571_v21 = vor.u32 %v16538_v55, %v14570_v54  ;;  %v14572_v22 = vld [vmem:[#allocation7 + $0x1fa0] sm:$0xf0]  ;;  %v14674_v4 = vld [vmem:[#allocation7 + $0x2050] sm:$0xf] }
 0xcb9   :  { %8730 = vmatpush.bf16.msra.mxu1 %v14635_v8  ;;  %v16575_v8 = vld [vmem:[#allocation7 + $0x20c4] sm:$0xf0]  ;;  %v17570_v54 = vld [vmem:[#allocation5] ss:$0 sm:$0xff] }
 0xcba   :  { %v8041_v37 = vmin.f32 %v8040_v39, 6.0  ;;  %v16562_v39 = vld [vmem:[#allocation7 + $0x205c] sm:$0xf0]  ;;  %v14723_v53 = vor.u32 %v16575_v8, %v14722_v42  ;;  %v16539_v42 = vld [vmem:[#allocation7 + $0x1fa4] sm:$0xf0] }
 0xcbb   :  { %v14667_v41 = vor.u32 %v16562_v39, %v14666_v16  ;;  %v16560_v39 = vld [vmem:[#allocation7 + $0x2054] sm:$0xf] }
 0xcbc   :  { %v8042_v47 = vpack.c.bf16 %v8041_v37, %v8041_v37  ;;  %v8001_v51 = vpop.f32.mrf.mxu3  ;;  %v14671_v37 = vor.u32 %v16559_v52, %v14668_v5  ;;  %v14650_v52 = vld [vmem:[#allocation7 + $0x2020] sm:$0xf]  ;;  %v16557_v5 = vld [vmem:[#allocation7 + $0x2034] sm:$0xf0]  ;;  %v16536_v8 = vld [vmem:[#allocation7 + $0x1f94] sm:$0xf] }
 0xcbd   :  { %v8038_v60 = vpop.f32.mrf.mxu2  ;;  %8731 = vmatpush.bf16.msra.mxu1 %v14611_v35  ;;  %v16537_v51 = vld [vmem:[#allocation7 + $0x1f94] sm:$0xf0] }
 0xcbe   :  { %8340 = vmatmul.bf16.vlgmr.msra.gmra.mxu0 %v8042_v47  ;;  %8353 = vmatmul.bf16.vlgmr.msrb.gmra.mxu2 %v8042_v47  ;;  %v14564_v60 = vld [vmem:[#allocation7 + $0x1f98] sm:$0xf0]  ;;  %v16569_v35 = vld [vmem:[#allocation7 + $0x2094] sm:$0xf0] }
 0xcbf   :  { %8366 = vmatmul.bf16.vlgmr.msrb.gmra.mxu3 %v8042_v47  ;;  %8379 = vmatmul.bf16.vlgmr.msrb.gmra.mxu1 %v8042_v47  ;;  %v14699_v27 = vor.u32 %v16569_v35, %v14698_v10  ;;  %v16621_v10 = vld [vmem:[#allocation7 + $0x2234] sm:$0xf0] }
 0xcc0   :  { %8739 = vmatpush.bf16.msrb.mxu3 %v14735_v61  ;;  %8752 = vmatpush.bf16.msra.mxu0 %v14739_v38  ;;  %v16534_v61 = vld [vmem:[#allocation7 + $0x1f84] sm:$0xf]  ;;  %v14618_v38 = vld [vmem:[#allocation7 + $0x1fe8] sm:$0xf] }
 0xcc1   :  { %8765 = vmatpush.bf16.msrb.mxu2 %v14743_v46  ;;  %8732 = vmatpush.bf16.msra.mxu1 %v14587_v29  ;;  %v16547_v46 = vld [vmem:[#allocation7 + $0x1fec] sm:$0xf]  ;;  %v14619_v15 = vor.u32 %v16550_v14, %v14618_v38  ;;  %v16563_v29 = vld [vmem:[#allocation7 + $0x2064] sm:$0xf0] }
 0xcc2   :  { %v14623_v58 = vor.u32 %v16547_v46, %v14620_v6  ;;  %v14675_v16 = vor.u32 %v16563_v29, %v14674_v4  ;;  %v14926_v4 = vld [vmem:[#allocation7 + $0x2268] sm:$0xf0]  ;;  %v14852_v29 = vld [vmem:[#allocation7 + $0x21c0] sm:$0xf] }
 0xcc4   :  { %8740 = vmatpush.bf16.msrb.mxu3 %v14711_v24  ;;  %8753 = vmatpush.bf16.msra.mxu0 %v14715_v33  ;;  %v14567_v24 = vor.u32 %v16534_v61, %v14564_v60  ;;  %v14652_v61 = vld [vmem:[#allocation7 + $0x2038] sm:$0xf0] }
 0xcc5   :  { %8766 = vmatpush.bf16.msrb.mxu2 %v14719_v17  ;;  %v16541_v17 = vld [vmem:[#allocation7 + $0x1fbc] sm:$0xf] }
 0xcc6   :  { %v14599_v26 = vor.u32 %v16541_v17, %v14596_v57  ;;  %v14924_v17 = vld [vmem:[#allocation7 + $0x2250] sm:$0xf]  ;;  %v14900_v57 = vld [vmem:[#allocation7 + $0x2220] sm:$0xf] }
 0xcc7   :  { %v14901_v35 = vor.u32 %v16621_v10, %v14900_v57 }
 0xcc8   :  { %8741 = vmatpush.bf16.msrb.mxu3 %v14687_v43  ;;  %8754 = vmatpush.bf16.msra.mxu0 %v14691_v45  ;;  %v14644_v43 = vld [vmem:[#allocation7 + $0x2030] sm:$0xf0] }
 0xcc9   :  { %8767 = vmatpush.bf16.msrb.mxu2 %v14695_v18  ;;  %v14647_v7 = vor.u32 %v16553_v62, %v14644_v43  ;;  %v16535_v18 = vld [vmem:[#allocation7 + $0x1f8c] sm:$0xf] }
 0xcca   :  { %v14575_v34 = vor.u32 %v16535_v18, %v14572_v22  ;;  %v14628_v43 = vld [vmem:[#allocation7 + $0x2008] sm:$0xf0] }
 0xccc   :  { %8742 = vmatpush.bf16.msrb.mxu3 %v14663_v1  ;;  %8755 = vmatpush.bf16.msra.mxu0 %v14667_v41  ;;  %v16581_v1 = vld [vmem:[#allocation7 + $0x20f4] sm:$0xf0] }
 0xccd   :  { %8768 = vmatpush.bf16.msrb.mxu2 %v14671_v37  ;;  %v14747_v30 = vor.u32 %v16581_v1, %v14746_v25  ;;  %v16554_v37 = vld [vmem:[#allocation7 + $0x2024] sm:$0xf]  ;;  %v14602_v1 = vld [vmem:[#allocation7 + $0x1fc0] sm:$0xf] }
 0xcce   :  { %8392 = vmatmul.bf16.vlgmr.msrb.gmra.mxu0 %v8042_v47  ;;  %8405 = vmatmul.bf16.vlgmr.msra.gmra.mxu2 %v8042_v47  ;;  %v14562_v47 = vld [vmem:[#allocation7 + $0x1f80] sm:$0xf]  ;;  %v14655_v2 = vor.u32 %v16554_v37, %v14652_v61 }
 0xccf   :  { %14559 = vmatmul.msk.bf16.vlgmr.msra.gmra.mxu3 %vm140_vm1, %v14558_v63  ;;  %v14563_v40 = vor.u32 %v16537_v51, %v14562_v47  ;;  %v16578_v63 = vld [vmem:[#allocation7 + $0x20e4] sm:$0xf]  ;;  %v14651_v51 = vor.u32 %v16557_v5, %v14650_v52 }
 0xcd0   :  { %8743 = vmatpush.bf16.msrb.mxu3 %v14639_v20  ;;  %8756 = vmatpush.bf16.msra.mxu0 %v14643_v28  ;;  %v14751_v12 = vor.u32 %v16578_v63, %v14748_v56  ;;  %v14724_v20 = vld [vmem:[#allocation7 + $0x20c8] sm:$0xf0]  ;;  %v16548_v28 = vld [vmem:[#allocation7 + $0x1ff4] sm:$0xf]  ;;  %v16545_v63 = vld [vmem:[#allocation7 + $0x1fd4] sm:$0xf0] }
 0xcd1   :  { %8733 = vmatpush.bf16.msra.mxu1 %v14563_v40  ;;  %8769 = vmatpush.bf16.msrb.mxu2 %v14647_v7  ;;  %v14727_v33 = vor.u32 %v16572_v13, %v14724_v20  ;;  %v14631_v7 = vor.u32 %v16548_v28, %v14628_v43  ;;  %v16542_v56 = vld [vmem:[#allocation7 + $0x1fc4] sm:$0xf]  ;;  %v14603_v14 = vor.u32 %v16545_v63, %v14602_v1  ;;  %v16603_v28 = vld [vmem:[#allocation7 + $0x21a4] sm:$0xf0] }
 0xcd2   :  { %v14908_v43 = vld [vmem:[#allocation7 + $0x2228] sm:$0xf]  ;;  %v14910_v1 = vld [vmem:[#allocation7 + $0x2240] sm:$0xf0] }
 0xcd4   :  { %8744 = vmatpush.bf16.msrb.mxu3 %v14615_v49  ;;  %8757 = vmatpush.bf16.msra.mxu0 %v14619_v15  ;;  %v14700_v49 = vld [vmem:[#allocation7 + $0x2098] sm:$0xf0] }
 0xcd5   :  { %8778 = vmatpush.bf16.msrb.mxu1 %v14747_v30  ;;  %8770 = vmatpush.bf16.msrb.mxu2 %v14623_v58  ;;  %v14703_v45 = vor.u32 %v16566_v19, %v14700_v49  ;;  %v14604_v30 = vld [vmem:[#allocation7 + $0x1fd8] sm:$0xf0]  ;;  %v14580_v58 = vld [vmem:[#allocation7 + $0x1fa8] sm:$0xf0] }
 0xcd6   :  { %v14607_v46 = vor.u32 %v16542_v56, %v14604_v30  ;;  %v14583_v20 = vor.u32 %v16536_v8, %v14580_v58  ;;  %v16612_v30 = vld [vmem:[#allocation7 + $0x21f4] sm:$0xf]  ;;  %v14830_v58 = vld [vmem:[#allocation7 + $0x21a8] sm:$0xf0] }
 0xcd7   :  { %v16600_v8 = vld [vmem:[#allocation7 + $0x2194] sm:$0xf] }
 0xcd8   :  { %8745 = vmatpush.bf16.msrb.mxu3 %v14591_v23  ;;  %8758 = vmatpush.bf16.msra.mxu0 %v14595_v31  ;;  %v14676_v23 = vld [vmem:[#allocation7 + $0x2068] sm:$0xf0] }
 0xcd9   :  { %8779 = vmatpush.bf16.msrb.mxu1 %v14723_v53  ;;  %8771 = vmatpush.bf16.msrb.mxu2 %v14599_v26  ;;  %v14679_v41 = vor.u32 %v16560_v39, %v14676_v23  ;;  %v14876_v26 = vld [vmem:[#allocation7 + $0x21f0] sm:$0xf] }
 0xcda   :  { %v16628_v39 = vld [vmem:[#allocation7 + $0x226c] sm:$0xf0] }
 0xcdc   :  { %8746 = vmatpush.bf16.msrb.mxu3 %v14567_v24  ;;  %8759 = vmatpush.bf16.msra.mxu0 %v14571_v21  ;;  %v16551_v24 = vld [vmem:[#allocation7 + $0x2004] sm:$0xf0]  ;;  %v16624_v21 = vld [vmem:[#allocation7 + $0x2254] sm:$0xf] }
 0xcdd   :  { %8780 = vmatpush.bf16.msrb.mxu1 %v14699_v27  ;;  %8772 = vmatpush.bf16.msrb.mxu2 %v14575_v34  ;;  %v14627_v25 = vor.u32 %v16551_v24, %v14626_v9  ;;  %v16615_v27 = vld [vmem:[#allocation7 + $0x2204] sm:$0xf0]  ;;  %v16609_v34 = vld [vmem:[#allocation7 + $0x21d4] sm:$0xf0]  ;;  %v14929_v37 = vor.u32 %v16624_v21, %v14926_v4  ;;  %v14828_v24 = vld [vmem:[#allocation7 + $0x2190] sm:$0xf] }
 0xcde   :  { %v14877_v18 = vor.u32 %v16615_v27, %v14876_v26  ;;  %v14853_v61 = vor.u32 %v16609_v34, %v14852_v29  ;;  %v14829_v56 = vor.u32 %v16603_v28, %v14828_v24  ;;  %v14886_v26 = vld [vmem:[#allocation7 + $0x2210] sm:$0xf0]  ;;  %v16610_v4 = vld [vmem:[#allocation7 + $0x21dc] sm:$0xf0]  ;;  %v16607_v29 = vld [vmem:[#allocation7 + $0x21cc] sm:$0xf] }
 0xcdf   :  { %v16629_v28 = vld [vmem:[#allocation7 + $0x2274] sm:$0xf0] }
 0xce0   :  { %8791 = vmatpush.bf16.msra.mxu3 %v14751_v12  ;;  %8822 = vmatpush.bf16.msrb.mxu0 %v17045_v3 }
 0xce1   :  { %8781 = vmatpush.bf16.msrb.mxu1 %v14675_v16  ;;  %v14932_v16 = vld [vmem:[#allocation7 + $0x2258] sm:$0xf] }
 0xce4   :  { %8792 = vmatpush.bf16.msra.mxu3 %v14727_v33 }
 0xce5   :  { %8782 = vmatpush.bf16.msrb.mxu1 %v14651_v51  ;;  %v14902_v51 = vld [vmem:[#allocation7 + $0x2238] sm:$0xf0] }
 0xce8   :  { %8793 = vmatpush.bf16.msra.mxu3 %v14703_v45 }
 0xce9   :  { %8783 = vmatpush.bf16.msrb.mxu1 %v14627_v25  ;;  %v16622_v25 = vld [vmem:[#allocation7 + $0x223c] sm:$0xf0] }
 0xcec   :  { %8794 = vmatpush.bf16.msra.mxu3 %v14679_v41  ;;  %v16625_v41 = vld [vmem:[#allocation7 + $0x225c] sm:$0xf] }
 0xced   :  { %8784 = vmatpush.bf16.msrb.mxu1 %v14603_v14 }
 0xcf0   :  { %8795 = vmatpush.bf16.msra.mxu3 %v14655_v2  ;;  %v14933_v2 = vor.u32 %v16628_v39, %v14932_v16  ;;  %v14862_v16 = vld [vmem:[#allocation7 + $0x21e0] sm:$0xf0] }
 0xcf1   :  { %v14865_v39 = vor.u32 %v16607_v29, %v14862_v16  ;;  %v14870_v29 = vld [vmem:[#allocation7 + $0x21e8] sm:$0xf0]  ;;  %v14844_v16 = vld [vmem:[#allocation7 + $0x21a0] sm:$0xf] }
 0xcf4   :  { %8796 = vmatpush.bf16.msra.mxu3 %v14631_v7  ;;  %v16619_v7 = vld [vmem:[#allocation7 + $0x222c] sm:$0xf] }
 0xcf5   :  { %v14913_v14 = vor.u32 %v16619_v7, %v14910_v1 }
 0xcf8   :  { %8797 = vmatpush.bf16.msra.mxu3 %v14607_v46 }
 0xcfc   :  { %8798 = vmatpush.bf16.msra.mxu3 %v14583_v20  ;;  %v14804_v20 = vld [vmem:[#allocation7 + $0x2160] sm:$0xf] }
 0xd3b   :  { %v8341_v47 = vpop.f32.mrf.mxu0 }
 0xd3c   :  { %v17553_v40 = vadd.f32 %v8341_v47, %v17535_v0  ;;  %v8380_v60 = vpop.f32.mrf.mxu1  ;;  %v16618_v47 = vld [vmem:[#allocation7 + $0x2224] sm:$0xf] }
 0xd3d   :  { %v17556_v62 = vadd.f32 %v8380_v60, %v17532_v11  ;;  %v14578_v11 = vld [vmem:[#allocation7 + $0x1f90] sm:$0xf]  ;;  %v14905_v63 = vor.u32 %v16618_v47, %v14902_v51 }
 0xd3e   :  { %v14579_v13 = vor.u32 %v16539_v42, %v14578_v11  ;;  %v16606_v11 = vld [vmem:[#allocation7 + $0x21c4] sm:$0xf]  ;;  %v16604_v47 = vld [vmem:[#allocation7 + $0x21ac] sm:$0xf0] }
 0xd40   :  { %8785 = vmatpush.bf16.msrb.mxu1 %v14579_v13  ;;  %v14833_v13 = vor.u32 %v16600_v8, %v14830_v58  ;;  %v14918_v8 = vld [vmem:[#allocation7 + $0x2248] sm:$0xf0] }
 0xd41   :  { %v8354_v12 = vpop.f32.mrf.mxu2 }
 0xd42   :  { %v17559_v0 = vadd.f32 %v8354_v12, %v17529_v48  ;;  %v8367_v38 = vpop.f32.mrf.mxu3  ;;  %v14878_v12 = vld [vmem:[#allocation7 + $0x2208] sm:$0xf0] }
 0xd43   :  { %v17562_v15 = vadd.f32 %v8367_v38, %v17538_v36  ;;  %v8343_v6 = vpop.f32.mrf.mxu0  ;;  %v16627_v36 = vld [vmem:[#allocation7 + $0x2264] sm:$0xf0]  ;;  %v14909_v38 = vor.u32 %v16622_v25, %v14908_v43  ;;  %v14881_v46 = vor.u32 %v16612_v30, %v14878_v12  ;;  %v16626_v43 = vld [vmem:[#allocation7 + $0x2264] sm:$0xf]  ;;  %v14942_v25 = vld [vmem:[#allocation7 + $0x2278] sm:$0xf0] }
 0xd44   :  { %v8382_v53 = vpop.f32.mrf.mxu1  ;;  %v14925_v31 = vor.u32 %v16627_v36, %v14924_v17  ;;  %v14854_v6 = vld [vmem:[#allocation7 + $0x21d8] sm:$0xf0]  ;;  %v14884_v36 = vld [vmem:[#allocation7 + $0x21f8] sm:$0xf]  ;;  %v14945_v1 = vor.u32 %v16626_v43, %v14942_v25  ;;  %v16595_v30 = vld [vmem:[#allocation7 + $0x216c] sm:$0xf] }
 0xd45   :  { %v14857_v42 = vor.u32 %v16606_v11, %v14854_v6  ;;  %v14752_v53 = vld [vmem:[%s17652_s0 + $0x16] sm:$0x1]  ;;  %v14806_v17 = vld [vmem:[#allocation7 + $0x2178] sm:$0xf0] }
 0xd46   :  { %9120 = vmatpush.bf16.msra.mxu2 %v14925_v31  ;;  %v16616_v31 = vld [vmem:[#allocation7 + $0x220c] sm:$0xf0] }
 0xd47   :  { %v14885_v10 = vor.u32 %v16616_v31, %v14884_v36 }
 0xd49   :  { %v8356_v48 = vpop.f32.mrf.mxu2 }
 0xd4a   :  { %v8369_v33 = vpop.f32.mrf.mxu3  ;;  %9121 = vmatpush.bf16.msra.mxu2 %v14901_v35  ;;  %v16597_v48 = vld [vmem:[#allocation7 + $0x2174] sm:$0xf0]  ;;  %v16613_v35 = vld [vmem:[#allocation7 + $0x21fc] sm:$0xf] }
 0xd4b   :  { %v8393_v44 = vpop.f32.mrf.mxu0  ;;  %v16594_v33 = vld [vmem:[#allocation7 + $0x2164] sm:$0xf]  ;;  %v14889_v27 = vor.u32 %v16613_v35, %v14886_v26  ;;  %v14764_v26 = vld [vmem:[#allocation7 + $0x2108] sm:$0xf] }
 0xd4c   :  { %v17565_v59 = vadd.f32 %v8393_v44, %v17544_v50  ;;  %v14805_v44 = vor.u32 %v16597_v48, %v14804_v20  ;;  %v14809_v57 = vor.u32 %v16594_v33, %v14806_v17  ;;  %v16589_v20 = vld [vmem:[#allocation7 + $0x213c] sm:$0xf]  ;;  %v14790_v33 = vld [vmem:[#allocation7 + $0x2150] sm:$0xf0]  ;;  %v16617_v17 = vld [vmem:[#allocation7 + $0x2214] sm:$0xf0] }
 0xd4d   :  { %v14793_v36 = vor.u32 %v16589_v20, %v14790_v33  ;;  %v16669_v33 = vld [vmem:[#allocation7 + $0x23b4] sm:$0xf0] }
 0xd4e   :  { %9122 = vmatpush.bf16.msra.mxu2 %v14877_v18  ;;  %v14782_v18 = vld [vmem:[#allocation7 + $0x2148] sm:$0xf0] }
 0xd51   :  { %v8406_v19 = vpop.f32.mrf.mxu2 }
 0xd52   :  { %v17568_v49 = vadd.f32 %v8406_v19, %v17541_v32  ;;  %v8430_v45 = vpop.f32.mrf.mxu3  ;;  %v14934_v32 = vld [vmem:[#allocation7 + $0x2270] sm:$0xf0]  ;;  %9123 = vmatpush.bf16.msra.mxu2 %v14853_v61  ;;  %v14780_v19 = vld [vmem:[#allocation7 + $0x2130] sm:$0xf] }
 0xd53   :  { %v8431_v55 = vadd.f32 %v17570_v54, %v8430_v45  ;;  %v8395_v50 = vpop.f32.mrf.mxu0  ;;  %v14937_v9 = vor.u32 %v16625_v41, %v14934_v32  ;;  %v16591_v45 = vld [vmem:[#allocation7 + $0x2144] sm:$0xf0]  ;;  %v16585_v41 = vld [vmem:[#allocation7 + $0x2114] sm:$0xf0]  ;;  %v16582_v32 = vld [vmem:[#allocation7 + $0x2104] sm:$0xf] }
 0xd54   :  { %v14781_v50 = vor.u32 %v16591_v45, %v14780_v19  ;;  %v16583_v19 = vld [vmem:[#allocation7 + $0x210c] sm:$0xf] }
 0xd55   :  { %v8434_v22 = vmax.f32 %v8431_v55, 0.0  ;;  %v16588_v55 = vld [vmem:[#allocation7 + $0x2134] sm:$0xf] }
 0xd56   :  { %9124 = vmatpush.bf16.msra.mxu2 %v14829_v56  ;;  %v14785_v21 = vor.u32 %v16588_v55, %v14782_v18  ;;  %v16598_v56 = vld [vmem:[#allocation7 + $0x217c] sm:$0xf0]  ;;  %v14766_v55 = vld [vmem:[#allocation7 + $0x2120] sm:$0xf0]  ;;  %v16611_v18 = vld [vmem:[#allocation7 + $0x21e4] sm:$0xf0] }
 0xd57   :  { %v8435_v23 = vmin.f32 %v8434_v22, 6.0  ;;  %v14860_v22 = vld [vmem:[#allocation7 + $0x21c8] sm:$0xf] }
 0xd58   :  { %v14861_v34 = vor.u32 %v16610_v4, %v14860_v22  ;;  %v16608_v4 = vld [vmem:[#allocation7 + $0x21d4] sm:$0xf] }
 0xd59   :  { %v8436_v52 = vpack.c.bf16 %v8435_v23, %v8435_v23  ;;  %v8408_v5 = vpop.f32.mrf.mxu2  ;;  %v14756_v23 = vld [vmem:[#allocation7 + $0x2100] sm:$0xf] }
 0xd5a   :  { %v8432_v60 = vpop.f32.mrf.mxu3  ;;  %9125 = vmatpush.bf16.msra.mxu2 %v14805_v44  ;;  %v14758_v5 = vld [vmem:[#allocation7 + $0x2118] sm:$0xf0]  ;;  %v14892_v44 = vld [vmem:[#allocation7 + $0x2200] sm:$0xf] }
 0xd5b   :  { %8734 = vmatmul.bf16.vlgmr.msra.gmra.mxu1 %v8436_v52  ;;  %8747 = vmatmul.bf16.vlgmr.msrb.gmra.mxu3 %v8436_v52  ;;  %v14761_v51 = vor.u32 %v16582_v32, %v14758_v5  ;;  %v16601_v60 = vld [vmem:[#allocation7 + $0x219c] sm:$0xf]  ;;  %v14893_v31 = vor.u32 %v16617_v17, %v14892_v44  ;;  %v14820_v5 = vld [vmem:[#allocation7 + $0x2170] sm:$0xf] }
 0xd5c   :  { %8760 = vmatmul.bf16.vlgmr.msra.gmra.mxu0 %v8436_v52  ;;  %8773 = vmatmul.bf16.vlgmr.msrb.gmra.mxu2 %v8436_v52  ;;  %v14846_v32 = vld [vmem:[#allocation7 + $0x21b8] sm:$0xf0] }
 0xd5d   :  { %9133 = vmatpush.bf16.msra.mxu0 %v14929_v37  ;;  %9146 = vmatpush.bf16.msra.mxu1 %v14933_v2  ;;  %v14836_v37 = vld [vmem:[#allocation7 + $0x2198] sm:$0xf]  ;;  %v14838_v2 = vld [vmem:[#allocation7 + $0x21b0] sm:$0xf0] }
 0xd5e   :  { %9159 = vmatpush.bf16.msrb.mxu3 %v14937_v9  ;;  %9126 = vmatpush.bf16.msra.mxu2 %v14781_v50  ;;  %v14837_v61 = vor.u32 %v16604_v47, %v14836_v37  ;;  %v14940_v9 = vld [vmem:[#allocation7 + $0x2260] sm:$0xf]  ;;  %v14841_v24 = vor.u32 %v16601_v60, %v14838_v2  ;;  %v14868_v50 = vld [vmem:[#allocation7 + $0x21d0] sm:$0xf]  ;;  %v16599_v37 = vld [vmem:[#allocation7 + $0x2184] sm:$0xf0] }
 0xd5f   :  { %v14941_v7 = vor.u32 %v16629_v28, %v14940_v9  ;;  %v14869_v22 = vor.u32 %v16611_v18, %v14868_v50  ;;  %v16596_v47 = vld [vmem:[#allocation7 + $0x2174] sm:$0xf]  ;;  %v14796_v60 = vld [vmem:[#allocation7 + $0x2140] sm:$0xf]  ;;  %v16593_v2 = vld [vmem:[#allocation7 + $0x2154] sm:$0xf0] }
 0xd60   :  { %v14798_v28 = vld [vmem:[#allocation7 + $0x2158] sm:$0xf0]  ;;  %v16657_v50 = vld [vmem:[#allocation7 + $0x2354] sm:$0xf0] }
 0xd61   :  { %9134 = vmatpush.bf16.msra.mxu0 %v14905_v63  ;;  %9147 = vmatpush.bf16.msra.mxu1 %v14909_v38  ;;  %v14812_v63 = vld [vmem:[#allocation7 + $0x2168] sm:$0xf]  ;;  %v14814_v38 = vld [vmem:[#allocation7 + $0x2180] sm:$0xf0]  ;;  %v15126_v18 = vld [vmem:[#allocation7 + $0x23d8] sm:$0xf] }
 0xd62   :  { %9160 = vmatpush.bf16.msrb.mxu3 %v14913_v14  ;;  %v14813_v12 = vor.u32 %v16598_v56, %v14812_v63  ;;  %v14916_v14 = vld [vmem:[#allocation7 + $0x2230] sm:$0xf]  ;;  %v14817_v11 = vor.u32 %v16595_v30, %v14814_v38  ;;  %v16584_v38 = vld [vmem:[#allocation7 + $0x2114] sm:$0xf] }
 0xd63   :  { %v14772_v56 = vld [vmem:[#allocation7 + $0x2110] sm:$0xf] }
 0xd65   :  { %9135 = vmatpush.bf16.msra.mxu0 %v14881_v46  ;;  %9148 = vmatpush.bf16.msra.mxu1 %v14885_v10  ;;  %v16623_v46 = vld [vmem:[#allocation7 + $0x2244] sm:$0xf0]  ;;  %v14894_v10 = vld [vmem:[#allocation7 + $0x2218] sm:$0xf0] }
 0xd66   :  { %9161 = vmatpush.bf16.msrb.mxu3 %v14889_v27  ;;  %v14917_v6 = vor.u32 %v16623_v46, %v14916_v14  ;;  %v16586_v27 = vld [vmem:[#allocation7 + $0x211c] sm:$0xf0]  ;;  %v14774_v14 = vld [vmem:[#allocation7 + $0x2128] sm:$0xf0] }
 0xd67   :  { %v14765_v45 = vor.u32 %v16586_v27, %v14764_v26  ;;  %v16672_v27 = vld [vmem:[#allocation7 + $0x23d4] sm:$0xf] }
 0xd69   :  { %9136 = vmatpush.bf16.msra.mxu0 %v14857_v42  ;;  %9149 = vmatpush.bf16.msra.mxu1 %v14861_v34  ;;  %v16620_v42 = vld [vmem:[#allocation7 + $0x2234] sm:$0xf]  ;;  %v14873_v34 = vor.u32 %v16608_v4, %v14870_v29  ;;  %v16673_v29 = vld [vmem:[#allocation7 + $0x23dc] sm:$0xf] }
 0xd6a   :  { %9162 = vmatpush.bf16.msrb.mxu3 %v14865_v39  ;;  %v14921_v58 = vor.u32 %v16620_v42, %v14918_v8  ;;  %v16605_v39 = vld [vmem:[#allocation7 + $0x21b4] sm:$0xf0] }
 0xd6b   :  { %8786 = vmatmul.bf16.vlgmr.msrb.gmra.mxu1 %v8436_v52  ;;  %8799 = vmatmul.bf16.vlgmr.msra.gmra.mxu3 %v8436_v52  ;;  %v14757_v52 = vor.u32 %v16585_v41, %v14756_v23  ;;  %v16602_v23 = vld [vmem:[#allocation7 + $0x21a4] sm:$0xf]  ;;  %v14845_v41 = vor.u32 %v16605_v39, %v14844_v16 }
 0xd6c   :  { %14753 = vmatmul.msk.bf16.vlgmr.msrb.gmra.mxu0 %vm140_vm1, %v14752_v53  ;;  %v14788_v53 = vld [vmem:[#allocation7 + $0x2138] sm:$0xf] }
 0xd6d   :  { %9137 = vmatpush.bf16.msra.mxu0 %v14833_v13  ;;  %9127 = vmatpush.bf16.msra.mxu2 %v14757_v52  ;;  %v16592_v13 = vld [vmem:[#allocation7 + $0x214c] sm:$0xf0]  ;;  %v14849_v52 = vor.u32 %v16602_v23, %v14846_v32  ;;  %v15096_v32 = vld [vmem:[#allocation7 + $0x23b8] sm:$0xf0] }
 0xd6e   :  { %9150 = vmatpush.bf16.msra.mxu1 %v14837_v61  ;;  %9163 = vmatpush.bf16.msrb.mxu3 %v14841_v24  ;;  %v14789_v48 = vor.u32 %v16592_v13, %v14788_v53  ;;  %v14822_v61 = vld [vmem:[#allocation7 + $0x2188] sm:$0xf0]  ;;  %v16590_v24 = vld [vmem:[#allocation7 + $0x2144] sm:$0xf]  ;;  %v16675_v13 = vld [vmem:[#allocation7 + $0x23e4] sm:$0xf0] }
 0xd6f   :  { %v14825_v9 = vor.u32 %v16596_v47, %v14822_v61  ;;  %v14801_v63 = vor.u32 %v16590_v24, %v14798_v28  ;;  %v16651_v61 = vld [vmem:[#allocation7 + $0x2324] sm:$0xf0]  ;;  %v15104_v24 = vld [vmem:[#allocation7 + $0x23c0] sm:$0xf0] }
 0xd71   :  { %9138 = vmatpush.bf16.msra.mxu0 %v14809_v57  ;;  %9172 = vmatpush.bf16.msrb.mxu2 %v14941_v7  ;;  %v16614_v57 = vld [vmem:[#allocation7 + $0x2204] sm:$0xf] }
 0xd72   :  { %9151 = vmatpush.bf16.msra.mxu1 %v14813_v12  ;;  %9164 = vmatpush.bf16.msrb.mxu3 %v14817_v11  ;;  %v14897_v35 = vor.u32 %v16614_v57, %v14894_v10  ;;  %v16587_v12 = vld [vmem:[#allocation7 + $0x2124] sm:$0xf0]  ;;  %v14777_v11 = vor.u32 %v16584_v38, %v14774_v14  ;;  %v16654_v38 = vld [vmem:[#allocation7 + $0x2344] sm:$0xf]  ;;  %v15048_v14 = vld [vmem:[#allocation7 + $0x2358] sm:$0xf0] }
 0xd73   :  { %v14773_v46 = vor.u32 %v16587_v12, %v14772_v56 }
 0xd75   :  { %9139 = vmatpush.bf16.msra.mxu0 %v14785_v21  ;;  %9173 = vmatpush.bf16.msrb.mxu2 %v14917_v6  ;;  %v14769_v21 = vor.u32 %v16583_v19, %v14766_v55  ;;  %v15046_v55 = vld [vmem:[#allocation7 + $0x2340] sm:$0xf] }
 0xd76   :  { %9152 = vmatpush.bf16.msra.mxu1 %v14789_v48  ;;  %9165 = vmatpush.bf16.msrb.mxu3 %v14793_v36  ;;  %v15094_v48 = vld [vmem:[#allocation7 + $0x23a0] sm:$0xf] }
 0xd77   :  { %v15095_v17 = vor.u32 %v16669_v33, %v15094_v48  ;;  %v15000_v48 = vld [vmem:[#allocation7 + $0x22f8] sm:$0xf0]  ;;  %v15078_v33 = vld [vmem:[#allocation7 + $0x2378] sm:$0xf] }
 0xd79   :  { %9140 = vmatpush.bf16.msra.mxu0 %v14761_v51  ;;  %9174 = vmatpush.bf16.msrb.mxu2 %v14893_v31  ;;  %v14821_v51 = vor.u32 %v16599_v37, %v14820_v5  ;;  %v15070_v31 = vld [vmem:[#allocation7 + $0x2370] sm:$0xf] }
 0xd7a   :  { %9153 = vmatpush.bf16.msra.mxu1 %v14765_v45  ;;  %9166 = vmatpush.bf16.msrb.mxu3 %v14769_v21  ;;  %v15120_v45 = vld [vmem:[#allocation7 + $0x23e8] sm:$0xf0]  ;;  %v16676_v21 = vld [vmem:[#allocation7 + $0x23ec] sm:$0xf0] }
 0xd7b   :  { %v15123_v23 = vor.u32 %v16672_v27, %v15120_v45  ;;  %v15127_v37 = vor.u32 %v16676_v21, %v15126_v18  ;;  %v16655_v18 = vld [vmem:[#allocation7 + $0x234c] sm:$0xf] }
 0xd7d   :  { %9185 = vmatpush.bf16.msrb.mxu0 %v14945_v1  ;;  %9175 = vmatpush.bf16.msrb.mxu2 %v14869_v22  ;;  %v14797_v1 = vor.u32 %v16593_v2, %v14796_v60  ;;  %v15102_v60 = vld [vmem:[#allocation7 + $0x23a8] sm:$0xf]  ;;  %v16670_v2 = vld [vmem:[#allocation7 + $0x23bc] sm:$0xf0] }
 0xd7e   :  { %9216 = vmatpush.bf16.msrb.mxu1 %v17045_v3 }
 0xd81   :  { %9186 = vmatpush.bf16.msrb.mxu0 %v14921_v58  ;;  %9176 = vmatpush.bf16.msrb.mxu2 %v14845_v41  ;;  %v16666_v41 = vld [vmem:[#allocation7 + $0x23a4] sm:$0xf] }
 0xd85   :  { %9187 = vmatpush.bf16.msrb.mxu0 %v14897_v35  ;;  %9177 = vmatpush.bf16.msrb.mxu2 %v14821_v51  ;;  %v15022_v51 = vld [vmem:[#allocation7 + $0x2310] sm:$0xf] }
 0xd86   :  { %v15023_v28 = vor.u32 %v16651_v61, %v15022_v51  ;;  %v15134_v51 = vld [vmem:[#allocation7 + $0x23e0] sm:$0xf] }
 0xd89   :  { %9188 = vmatpush.bf16.msrb.mxu0 %v14873_v34  ;;  %9178 = vmatpush.bf16.msrb.mxu2 %v14797_v1  ;;  %v15128_v34 = vld [vmem:[#allocation7 + $0x23f0] sm:$0xf0]  ;;  %v15103_v1 = vor.u32 %v16670_v2, %v15102_v60  ;;  %v16677_v60 = vld [vmem:[#allocation7 + $0x23f4] sm:$0xf0]  ;;  %v16674_v2 = vld [vmem:[#allocation7 + $0x23e4] sm:$0xf] }
 0xd8a   :  { %v15131_v47 = vor.u32 %v16673_v29, %v15128_v34  ;;  %v14950_v29 = vld [vmem:[#allocation7 + $0x2280] sm:$0xf]  ;;  %v16633_v34 = vld [vmem:[#allocation7 + $0x2294] sm:$0xf0] }
 0xd8d   :  { %9189 = vmatpush.bf16.msrb.mxu0 %v14849_v52  ;;  %9179 = vmatpush.bf16.msrb.mxu2 %v14773_v46  ;;  %v15047_v52 = vor.u32 %v16657_v50, %v15046_v55  ;;  %v15051_v46 = vor.u32 %v16654_v38, %v15048_v14  ;;  %v15054_v55 = vld [vmem:[#allocation7 + $0x2348] sm:$0xf]  ;;  %v16658_v50 = vld [vmem:[#allocation7 + $0x235c] sm:$0xf0] }
 0xd8e   :  { %v15055_v21 = vor.u32 %v16658_v50, %v15054_v55  ;;  %v16656_v50 = vld [vmem:[#allocation7 + $0x2354] sm:$0xf] }
 0xd91   :  { %9190 = vmatpush.bf16.msrb.mxu0 %v14825_v9  ;;  %v16667_v9 = vld [vmem:[#allocation7 + $0x23ac] sm:$0xf] }
 0xd95   :  { %9191 = vmatpush.bf16.msrb.mxu0 %v14801_v63  ;;  %v15107_v63 = vor.u32 %v16667_v9, %v15104_v24  ;;  %v15136_v9 = vld [vmem:[#allocation7 + $0x23f8] sm:$0xf0]  ;;  %v15135_v24 = vor.u32 %v16677_v60, %v15134_v51 }
 0xd99   :  { %9192 = vmatpush.bf16.msrb.mxu0 %v14777_v11  ;;  %v16648_v11 = vld [vmem:[#allocation7 + $0x2314] sm:$0xf] }
 0xdd8   :  { %v8735_v43 = vpop.f32.mrf.mxu1 }
 0xdd9   :  { %v17579_v25 = vadd.f32 %v8735_v43, %v17553_v40  ;;  %v8761_v7 = vpop.f32.mrf.mxu0  ;;  %v16660_v43 = vld [vmem:[#allocation7 + $0x2374] sm:$0xf] }
 0xdda   :  { %v17582_v30 = vadd.f32 %v8761_v7, %v17562_v15  ;;  %v15118_v15 = vld [vmem:[#allocation7 + $0x23d0] sm:$0xf]  ;;  %v15072_v7 = vld [vmem:[#allocation7 + $0x2388] sm:$0xf0] }
 0xddb   :  { %v15119_v20 = vor.u32 %v16675_v13, %v15118_v15  ;;  %v15075_v12 = vor.u32 %v16660_v43, %v15072_v7  ;;  %v16645_v15 = vld [vmem:[#allocation7 + $0x22f4] sm:$0xf0]  ;;  %v16642_v13 = vld [vmem:[#allocation7 + $0x22e4] sm:$0xf]  ;;  %v16646_v43 = vld [vmem:[#allocation7 + $0x22fc] sm:$0xf0] }
 0xddc   :  { %v16643_v7 = vld [vmem:[#allocation7 + $0x22ec] sm:$0xf] }
 0xddd   :  { %9514 = vmatpush.bf16.msra.mxu3 %v15119_v20 }
 0xdde   :  { %v8748_v6 = vpop.f32.mrf.mxu3 }
 0xddf   :  { %v17585_v40 = vadd.f32 %v8748_v6, %v17559_v0  ;;  %v8774_v42 = vpop.f32.mrf.mxu2  ;;  %v16663_v0 = vld [vmem:[#allocation7 + $0x2384] sm:$0xf0]  ;;  %v15024_v6 = vld [vmem:[#allocation7 + $0x2328] sm:$0xf0] }
 0xde0   :  { %v17588_v8 = vadd.f32 %v8774_v42, %v17556_v62  ;;  %v8737_v58 = vpop.f32.mrf.mxu1  ;;  %v15071_v26 = vor.u32 %v16663_v0, %v15070_v31  ;;  %v14946_v42 = vld [vmem:[%s17652_s0 + $0x17] sm:$0x1]  ;;  %v16661_v31 = vld [vmem:[#allocation7 + $0x237c] sm:$0xf]  ;;  %v15080_v0 = vld [vmem:[#allocation7 + $0x2390] sm:$0xf0] }
 0xde1   :  { %v8763_v53 = vpop.f32.mrf.mxu0  ;;  %9515 = vmatpush.bf16.msra.mxu3 %v15095_v17  ;;  %v15027_v58 = vor.u32 %v16648_v11, %v15024_v6  ;;  %v15003_v17 = vor.u32 %v16642_v13, %v15000_v48  ;;  %v15112_v11 = vld [vmem:[#allocation7 + $0x23c8] sm:$0xf0]  ;;  %v14984_v13 = vld [vmem:[#allocation7 + $0x22d0] sm:$0xf0]  ;;  %v16665_v48 = vld [vmem:[#allocation7 + $0x2394] sm:$0xf0] }
 0xde2   :  { %v14998_v53 = vld [vmem:[#allocation7 + $0x22e0] sm:$0xf] }
 0xde3   :  { %v14999_v20 = vor.u32 %v16645_v15, %v14998_v53  ;;  %v16637_v53 = vld [vmem:[#allocation7 + $0x22bc] sm:$0xf] }
 0xde5   :  { %9516 = vmatpush.bf16.msra.mxu3 %v15071_v26  ;;  %v16636_v26 = vld [vmem:[#allocation7 + $0x22b4] sm:$0xf] }
 0xde6   :  { %v8750_v44 = vpop.f32.mrf.mxu3 }
 0xde7   :  { %v8776_v36 = vpop.f32.mrf.mxu2  ;;  %v16664_v44 = vld [vmem:[#allocation7 + $0x238c] sm:$0xf0] }
 0xde8   :  { %v8787_v57 = vpop.f32.mrf.mxu1  ;;  %v15079_v36 = vor.u32 %v16664_v44, %v15078_v33  ;;  %v14987_v33 = vor.u32 %v16637_v53, %v14984_v13  ;;  %v15288_v53 = vld [vmem:[#allocation7 + $0x2520] sm:$0xf] }
 0xde9   :  { %v17591_v10 = vadd.f32 %v8787_v57, %v17565_v59  ;;  %v8824_v62 = vpop.f32.mrf.mxu0  ;;  %9517 = vmatpush.bf16.msra.mxu3 %v15047_v52  ;;  %v15083_v57 = vor.u32 %v16661_v31, %v15080_v0  ;;  %v14958_v0 = vld [vmem:[#allocation7 + $0x2288] sm:$0xf] }
 0xdea   :  { %v8825_v35 = vadd.f32 %v17570_v54, %v8824_v62  ;;  %v14974_v62 = vld [vmem:[#allocation7 + $0x22b0] sm:$0xf] }
 0xdec   :  { %v8828_v19 = vmax.f32 %v8825_v35, 0.0  ;;  %v16639_v35 = vld [vmem:[#allocation7 + $0x22c4] sm:$0xf0] }
 0xded   :  { %9518 = vmatpush.bf16.msra.mxu3 %v15023_v28  ;;  %v14975_v27 = vor.u32 %v16639_v35, %v14974_v62  ;;  %v15006_v28 = vld [vmem:[#allocation7 + $0x22e8] sm:$0xf]  ;;  %v16631_v62 = vld [vmem:[#allocation7 + $0x228c] sm:$0xf] }
 0xdee   :  { %v8829_v22 = vmin.f32 %v8828_v19, 6.0  ;;  %v8800_v4 = vpop.f32.mrf.mxu3  ;;  %v14976_v19 = vld [vmem:[#allocation7 + $0x22c8] sm:$0xf0] }
 0xdef   :  { %v17595_v59 = vadd.f32 %v8800_v4, %v17568_v49  ;;  %v15099_v49 = vor.u32 %v16666_v41, %v15096_v32  ;;  %v14979_v45 = vor.u32 %v16636_v26, %v14976_v19  ;;  %v15030_v41 = vld [vmem:[#allocation7 + $0x2318] sm:$0xf]  ;;  %v16652_v32 = vld [vmem:[#allocation7 + $0x232c] sm:$0xf0]  ;;  %v14960_v26 = vld [vmem:[#allocation7 + $0x22a0] sm:$0xf0] }
 0xdf0   :  { %v8830_v16 = vpack.c.bf16 %v8829_v22, %v8829_v22  ;;  %v8789_v39 = vpop.f32.mrf.mxu1  ;;  %v15056_v22 = vld [vmem:[#allocation7 + $0x2360] sm:$0xf0]  ;;  %v16659_v19 = vld [vmem:[#allocation7 + $0x2364] sm:$0xf0] }
 0xdf1   :  { %v8826_v5 = vpop.f32.mrf.mxu0  ;;  %9519 = vmatpush.bf16.msra.mxu3 %v14999_v20  ;;  %v15059_v4 = vor.u32 %v16655_v18, %v15056_v22  ;;  %v14951_v39 = vor.u32 %v16633_v34, %v14950_v29  ;;  %v15086_v20 = vld [vmem:[#allocation7 + $0x2380] sm:$0xf]  ;;  %v15064_v18 = vld [vmem:[#allocation7 + $0x2368] sm:$0xf0]  ;;  %v16650_v29 = vld [vmem:[#allocation7 + $0x2324] sm:$0xf] }
 0xdf2   :  { %9128 = vmatmul.bf16.vlgmr.msra.gmra.mxu2 %v8830_v16  ;;  %9141 = vmatmul.bf16.vlgmr.msra.gmra.mxu0 %v8830_v16  ;;  %v15031_v5 = vor.u32 %v16652_v32, %v15030_v41  ;;  %v15087_v44 = vor.u32 %v16665_v48, %v15086_v20  ;;  %v15038_v22 = vld [vmem:[#allocation7 + $0x2320] sm:$0xf]  ;;  %v16647_v41 = vld [vmem:[#allocation7 + $0x2304] sm:$0xf0]  ;;  %v16644_v32 = vld [vmem:[#allocation7 + $0x22f4] sm:$0xf] }
 0xdf3   :  { %9154 = vmatmul.bf16.vlgmr.msra.gmra.mxu1 %v8830_v16  ;;  %9167 = vmatmul.bf16.vlgmr.msrb.gmra.mxu3 %v8830_v16 }
 0xdf4   :  { %9527 = vmatpush.bf16.msra.mxu1 %v15123_v23  ;;  %9540 = vmatpush.bf16.msra.mxu2 %v15127_v37  ;;  %v14952_v23 = vld [vmem:[#allocation7 + $0x2298] sm:$0xf0] }
 0xdf5   :  { %9553 = vmatpush.bf16.msra.mxu0 %v15131_v47  ;;  %9520 = vmatpush.bf16.msra.mxu3 %v14975_v27  ;;  %v16649_v37 = vld [vmem:[#allocation7 + $0x231c] sm:$0xf]  ;;  %v15032_v47 = vld [vmem:[#allocation7 + $0x2330] sm:$0xf0]  ;;  %v15062_v27 = vld [vmem:[#allocation7 + $0x2350] sm:$0xf] }
 0xdf6   :  { %v8802_v56 = vpop.f32.mrf.mxu3  ;;  %v15035_v61 = vor.u32 %v16649_v37, %v15032_v47  ;;  %v15063_v55 = vor.u32 %v16659_v19, %v15062_v27  ;;  %v14990_v37 = vld [vmem:[#allocation7 + $0x22c0] sm:$0xf]  ;;  %v16641_v47 = vld [vmem:[#allocation7 + $0x22d4] sm:$0xf0] }
 0xdf7   :  { %v15110_v56 = vld [vmem:[#allocation7 + $0x23b0] sm:$0xf] }
 0xdf8   :  { %9528 = vmatpush.bf16.msra.mxu1 %v15099_v49  ;;  %9541 = vmatpush.bf16.msra.mxu2 %v15103_v1  ;;  %v15139_v49 = vor.u32 %v16674_v2, %v15136_v9  ;;  %v15007_v1 = vor.u32 %v16646_v43, %v15006_v28  ;;  %v14966_v28 = vld [vmem:[#allocation7 + $0x2290] sm:$0xf] }
 0xdf9   :  { %9554 = vmatpush.bf16.msra.mxu0 %v15107_v63  ;;  %9521 = vmatpush.bf16.msra.mxu3 %v14951_v39  ;;  %v15008_v63 = vld [vmem:[#allocation7 + $0x2300] sm:$0xf0] }
 0xdfa   :  { %v15011_v38 = vor.u32 %v16643_v7, %v15008_v63  ;;  %v16635_v7 = vld [vmem:[#allocation7 + $0x22a4] sm:$0xf0]  ;;  %v14968_v63 = vld [vmem:[#allocation7 + $0x22a8] sm:$0xf0] }
 0xdfc   :  { %9529 = vmatpush.bf16.msra.mxu1 %v15075_v12  ;;  %9542 = vmatpush.bf16.msra.mxu2 %v15079_v36  ;;  %v16671_v12 = vld [vmem:[#allocation7 + $0x23c4] sm:$0xf0]  ;;  %v15088_v36 = vld [vmem:[#allocation7 + $0x2398] sm:$0xf0] }
 0xdfd   :  { %9555 = vmatpush.bf16.msra.mxu0 %v15083_v57  ;;  %9566 = vmatpush.bf16.msrb.mxu3 %v15135_v24  ;;  %v15111_v14 = vor.u32 %v16671_v12, %v15110_v56  ;;  %v16634_v57 = vld [vmem:[#allocation7 + $0x229c] sm:$0xf0]  ;;  %v14991_v24 = vor.u32 %v16641_v47, %v14990_v37  ;;  %v14967_v56 = vor.u32 %v16635_v7, %v14966_v28  ;;  %v16721_v37 = vld [vmem:[#allocation7 + $0x255c] sm:$0xf]  ;;  %v15296_v28 = vld [vmem:[#allocation7 + $0x2528] sm:$0xf] }
 0xdfe   :  { %v14959_v35 = vor.u32 %v16634_v57, %v14958_v0  ;;  %v16720_v57 = vld [vmem:[#allocation7 + $0x2554] sm:$0xf]  ;;  %v16718_v7 = vld [vmem:[#allocation7 + $0x253c] sm:$0xf0] }
 0xe00   :  { %9530 = vmatpush.bf16.msra.mxu1 %v15051_v46  ;;  %9543 = vmatpush.bf16.msra.mxu2 %v15055_v21  ;;  %v16668_v46 = vld [vmem:[#allocation7 + $0x23b4] sm:$0xf]  ;;  %v15067_v21 = vor.u32 %v16656_v50, %v15064_v18 }
 0xe01   :  { %9556 = vmatpush.bf16.msra.mxu0 %v15059_v4  ;;  %v15115_v6 = vor.u32 %v16668_v46, %v15112_v11  ;;  %9567 = vmatpush.bf16.msrb.mxu3 %v15111_v14  ;;  %v16653_v4 = vld [vmem:[#allocation7 + $0x2334] sm:$0xf0] }
 0xe02   :  { %9180 = vmatmul.bf16.vlgmr.msrb.gmra.mxu2 %v8830_v16  ;;  %9193 = vmatmul.bf16.vlgmr.msrb.gmra.mxu0 %v8830_v16  ;;  %v16630_v16 = vld [vmem:[#allocation7 + $0x2284] sm:$0xf]  ;;  %v15039_v34 = vor.u32 %v16653_v4, %v15038_v22 }
 0xe03   :  { %14947 = vmatmul.msk.bf16.vlgmr.msrb.gmra.mxu1 %vm140_vm1, %v14946_v42  ;;  %v14955_v52 = vor.u32 %v16630_v16, %v14952_v23  ;;  %v14982_v42 = vld [vmem:[#allocation7 + $0x22b8] sm:$0xf]  ;;  %v15040_v16 = vld [vmem:[#allocation7 + $0x2338] sm:$0xf0]  ;;  %v15014_v23 = vld [vmem:[#allocation7 + $0x22f0] sm:$0xf] }
 0xe04   :  { %9531 = vmatpush.bf16.msra.mxu1 %v15027_v58  ;;  %9544 = vmatpush.bf16.msra.mxu2 %v15031_v5  ;;  %v16640_v58 = vld [vmem:[#allocation7 + $0x22cc] sm:$0xf0]  ;;  %v15043_v39 = vor.u32 %v16650_v29, %v15040_v16  ;;  %v15016_v5 = vld [vmem:[#allocation7 + $0x2308] sm:$0xf0]  ;;  %v16714_v22 = vld [vmem:[#allocation7 + $0x2524] sm:$0xf] }
 0xe05   :  { %9557 = vmatpush.bf16.msra.mxu0 %v15035_v61  ;;  %v14983_v15 = vor.u32 %v16640_v58, %v14982_v42  ;;  %9568 = vmatpush.bf16.msrb.mxu3 %v15087_v44  ;;  %v15019_v51 = vor.u32 %v16644_v32, %v15016_v5  ;;  %v16638_v61 = vld [vmem:[#allocation7 + $0x22c4] sm:$0xf]  ;;  %v16723_v42 = vld [vmem:[#allocation7 + $0x2564] sm:$0xf0]  ;;  %v16708_v29 = vld [vmem:[#allocation7 + $0x24f4] sm:$0xf] }
 0xe06   :  { %v15140_v32 = vld [vmem:[%s17652_s0 + $0x18] sm:$0x1]  ;;  %s16983_s0 = smov [#allocation13]  }
 0xe07   :  { %v16724_v5 = vld [vmem:[#allocation7 + $0x256c] sm:$0xf0]  ;;  %s10470_s24 = sshll.u32 %s16983_s0, 4  ;;  %s10471_s24 = int_to_ptr.vmem [resolvable:$true] %s10470_s24 }
 0xe08   :  { %9532 = vmatpush.bf16.msra.mxu1 %v15003_v17  ;;  %9545 = vmatpush.bf16.msra.mxu2 %v15007_v1  ;;  %v16662_v17 = vld [vmem:[#allocation7 + $0x2384] sm:$0xf]  ;;  %v16632_v1 = vld [vmem:[#allocation7 + $0x2294] sm:$0xf] }
 0xe09   :  { %9558 = vmatpush.bf16.msra.mxu0 %v15011_v38  ;;  %v15091_v31 = vor.u32 %v16662_v17, %v15088_v36  ;;  %9569 = vmatpush.bf16.msrb.mxu3 %v15063_v55  ;;  %v14971_v12 = vor.u32 %v16632_v1, %v14968_v63  ;;  %v15297_v63 = vor.u32 %v16718_v7, %v15296_v28  ;;  %v16716_v28 = vld [vmem:[#allocation7 + $0x2534] sm:$0xf]  ;;  %v15306_v7 = vld [vmem:[#allocation7 + $0x2548] sm:$0xf0] }
 0xe0c   :  { %9533 = vmatpush.bf16.msra.mxu1 %v14979_v45  ;;  %9546 = vmatpush.bf16.msra.mxu2 %v14983_v15  ;;  %v14963_v45 = vor.u32 %v16631_v62, %v14960_v26  ;;  %v16717_v15 = vld [vmem:[#allocation7 + $0x2534] sm:$0xf0]  ;;  %v15314_v62 = vld [vmem:[#allocation7 + $0x2568] sm:$0xf0] }
 0xe0d   :  { %9559 = vmatpush.bf16.msra.mxu0 %v14987_v33  ;;  %9570 = vmatpush.bf16.msrb.mxu3 %v15039_v34  ;;  %v15289_v20 = vor.u32 %v16717_v15, %v15288_v53  ;;  %v15264_v33 = vld [vmem:[#allocation7 + $0x24f0] sm:$0xf]  ;;  %v16705_v26 = vld [vmem:[#allocation7 + $0x24d4] sm:$0xf0]  ;;  %v15266_v34 = vld [vmem:[#allocation7 + $0x2508] sm:$0xf0] }
 0xe0e   :  { %v16712_v53 = vld [vmem:[#allocation7 + $0x250c] sm:$0xf0] }
 0xe10   :  { %9534 = vmatpush.bf16.msra.mxu1 %v14955_v52  ;;  %9547 = vmatpush.bf16.msra.mxu2 %v14959_v35  ;;  %v15015_v52 = vor.u32 %v16647_v41, %v15014_v23  ;;  %v15240_v35 = vld [vmem:[#allocation7 + $0x24c0] sm:$0xf]  ;;  %v15242_v23 = vld [vmem:[#allocation7 + $0x24d8] sm:$0xf0] }
 0xe11   :  { %9560 = vmatpush.bf16.msra.mxu0 %v14963_v45  ;;  %v15241_v18 = vor.u32 %v16705_v26, %v15240_v35  ;;  %v16703_v26 = vld [vmem:[#allocation7 + $0x24cc] sm:$0xf] }
 0xe12   :  { %9571 = vmatpush.bf16.msrb.mxu3 %v15015_v52  ;;  %v15320_v52 = vld [vmem:[#allocation7 + $0x2558] sm:$0xf] }
 0xe13   :  { %v15321_v47 = vor.u32 %v16724_v5, %v15320_v52 }
 0xe14   :  { %9579 = vmatpush.bf16.msrb.mxu1 %v15139_v49  ;;  %9610 = vmatpush.bf16.msrb.mxu2 %v17045_v3  ;;  %v14992_v3 = vld [vmem:[#allocation7 + $0x22d8] sm:$0xf0] }
 0xe15   :  { %v14995_v49 = vor.u32 %v16638_v61, %v14992_v3  ;;  %v15216_v3 = vld [vmem:[#allocation7 + $0x2490] sm:$0xf] }
 0xe16   :  { %9572 = vmatpush.bf16.msrb.mxu3 %v14991_v24 }
 0xe18   :  { %9580 = vmatpush.bf16.msrb.mxu1 %v15115_v6 }
 0xe1a   :  { %9573 = vmatpush.bf16.msrb.mxu3 %v14967_v56  ;;  %v16715_v56 = vld [vmem:[#allocation7 + $0x252c] sm:$0xf] }
 0xe1c   :  { %9581 = vmatpush.bf16.msrb.mxu1 %v15091_v31 }
 0xe20   :  { %9582 = vmatpush.bf16.msrb.mxu1 %v15067_v21 }
 0xe24   :  { %9583 = vmatpush.bf16.msrb.mxu1 %v15043_v39  ;;  %v16702_v39 = vld [vmem:[#allocation7 + $0x24c4] sm:$0xf] }
 0xe25   :  { %v15245_v41 = vor.u32 %v16702_v39, %v15242_v23  ;;  %v16725_v23 = vld [vmem:[#allocation7 + $0x2574] sm:$0xf0] }
 0xe28   :  { %9584 = vmatpush.bf16.msrb.mxu1 %v15019_v51  ;;  %v15322_v51 = vld [vmem:[#allocation7 + $0x2570] sm:$0xf0] }
 0xe29   :  { %v15325_v61 = vor.u32 %v16721_v37, %v15322_v51  ;;  %v15200_v37 = vld [vmem:[#allocation7 + $0x2468] sm:$0xf]  ;;  %v16691_v51 = vld [vmem:[#allocation7 + $0x246c] sm:$0xf] }
 0xe2c   :  { %9585 = vmatpush.bf16.msrb.mxu1 %v14995_v49  ;;  %v15218_v49 = vld [vmem:[#allocation7 + $0x24a8] sm:$0xf0] }
 0xe30   :  { %9586 = vmatpush.bf16.msrb.mxu1 %v14971_v12  ;;  %v15298_v12 = vld [vmem:[#allocation7 + $0x2540] sm:$0xf0] }
 0xe6f   :  { %v9142_v60 = vpop.f32.mrf.mxu0 }
 0xe70   :  { %v17603_v2 = vadd.f32 %v9142_v60, %v17585_v40  ;;  %v9155_v9 = vpop.f32.mrf.mxu1  ;;  %v16699_v60 = vld [vmem:[#allocation7 + $0x24a4] sm:$0xf0] }
 0xe71   :  { %v17606_v43 = vadd.f32 %v9155_v9, %v17582_v30  ;;  %v15312_v30 = vld [vmem:[#allocation7 + $0x2550] sm:$0xf]  ;;  %v16696_v9 = vld [vmem:[#allocation7 + $0x2494] sm:$0xf]  ;;  %v15217_v24 = vor.u32 %v16699_v60, %v15216_v3  ;;  %v15202_v3 = vld [vmem:[#allocation7 + $0x2480] sm:$0xf0] }
 0xe72   :  { %v15313_v58 = vor.u32 %v16723_v42, %v15312_v30  ;;  %v15221_v1 = vor.u32 %v16696_v9, %v15218_v49  ;;  %v15194_v42 = vld [vmem:[#allocation7 + $0x2478] sm:$0xf0]  ;;  %v15304_v60 = vld [vmem:[#allocation7 + $0x2530] sm:$0xf]  ;;  %v16719_v9 = vld [vmem:[#allocation7 + $0x2544] sm:$0xf0] }
 0xe73   :  { %v15305_v49 = vor.u32 %v16719_v9, %v15304_v60  ;;  %v16680_v60 = vld [vmem:[#allocation7 + $0x2414] sm:$0xf]  ;;  %v15162_v9 = vld [vmem:[#allocation7 + $0x2428] sm:$0xf0] }
 0xe74   :  { %9908 = vmatpush.bf16.msrb.mxu0 %v15313_v58  ;;  %v15272_v58 = vld [vmem:[#allocation7 + $0x24f8] sm:$0xf] }
 0xe75   :  { %v9129_v38 = vpop.f32.mrf.mxu2 }
 0xe76   :  { %v17609_v40 = vadd.f32 %v9129_v38, %v17579_v25  ;;  %v9168_v14 = vpop.f32.mrf.mxu3  ;;  %v16711_v25 = vld [vmem:[#allocation7 + $0x2504] sm:$0xf0]  ;;  %v15301_v38 = vor.u32 %v16715_v56, %v15298_v12  ;;  %v16688_v56 = vld [vmem:[#allocation7 + $0x244c] sm:$0xf0]  ;;  %v16685_v12 = vld [vmem:[#allocation7 + $0x243c] sm:$0xf] }
 0xe77   :  { %v17612_v46 = vadd.f32 %v9168_v14, %v17588_v8  ;;  %v9144_v11 = vpop.f32.mrf.mxu0  ;;  %v15265_v31 = vor.u32 %v16711_v25, %v15264_v33  ;;  %v15192_v14 = vld [vmem:[#allocation7 + $0x2460] sm:$0xf]  ;;  %v15168_v25 = vld [vmem:[#allocation7 + $0x2430] sm:$0xf] }
 0xe78   :  { %v9157_v6 = vpop.f32.mrf.mxu1  ;;  %9909 = vmatpush.bf16.msrb.mxu0 %v15289_v20  ;;  %v16693_v11 = vld [vmem:[#allocation7 + $0x2474] sm:$0xf0]  ;;  %v16709_v20 = vld [vmem:[#allocation7 + $0x24fc] sm:$0xf] }
 0xe79   :  { %v16690_v6 = vld [vmem:[#allocation7 + $0x2464] sm:$0xf]  ;;  %v15193_v30 = vor.u32 %v16693_v11, %v15192_v14  ;;  %v15178_v14 = vld [vmem:[#allocation7 + $0x2450] sm:$0xf0]  ;;  %v15280_v11 = vld [vmem:[#allocation7 + $0x2500] sm:$0xf] }
 0xe7a   :  { %v15197_v15 = vor.u32 %v16690_v6, %v15194_v42  ;;  %v16713_v6 = vld [vmem:[#allocation7 + $0x2514] sm:$0xf0] }
 0xe7b   :  { %v15281_v42 = vor.u32 %v16713_v6, %v15280_v11  ;;  %v16731_v11 = vld [vmem:[#allocation10 + $0x28] sm:$0xff] }
 0xe7c   :  { %9910 = vmatpush.bf16.msrb.mxu0 %v15265_v31  ;;  %v15170_v31 = vld [vmem:[#allocation7 + $0x2448] sm:$0xf0] }
 0xe7d   :  { %v9131_v13 = vpop.f32.mrf.mxu2  ;;  %v16739_v6 = vld [vmem:[#allocation10 + $0x68] sm:$0xff] }
 0xe7e   :  { %v9170_v48 = vpop.f32.mrf.mxu3  ;;  %v15273_v13 = vor.u32 %v16712_v53, %v15272_v58  ;;  %v16710_v58 = vld [vmem:[#allocation7 + $0x2504] sm:$0xf]  ;;  %v15282_v53 = vld [vmem:[#allocation7 + $0x2518] sm:$0xf0] }
 0xe7f   :  { %v9194_v44 = vpop.f32.mrf.mxu0  ;;  %v15274_v48 = vld [vmem:[#allocation7 + $0x2510] sm:$0xf0] }
 0xe80   :  { %v17615_v17 = vadd.f32 %v9194_v44, %v17595_v59  ;;  %v9218_v8 = vpop.f32.mrf.mxu1  ;;  %v15317_v59 = vor.u32 %v16720_v57, %v15314_v62  ;;  %9911 = vmatpush.bf16.msrb.mxu0 %v15241_v18  ;;  %v15277_v33 = vor.u32 %v16709_v20, %v15274_v48  ;;  %v16687_v44 = vld [vmem:[#allocation7 + $0x2444] sm:$0xf0]  ;;  %v16706_v57 = vld [vmem:[#allocation7 + $0x24dc] sm:$0xf0]  ;;  %v16679_v48 = vld [vmem:[#allocation7 + $0x240c] sm:$0xf] }
 0xe81   :  { %v9219_v36 = vadd.f32 %v17570_v54, %v9218_v8  ;;  %v15290_v54 = vld [vmem:[#allocation7 + $0x2538] sm:$0xf0]  ;;  %v16684_v8 = vld [vmem:[#allocation7 + $0x2434] sm:$0xf]  ;;  %v16682_v20 = vld [vmem:[#allocation7 + $0x241c] sm:$0xf0] }
 0xe82   :  { %v15293_v4 = vor.u32 %v16714_v22, %v15290_v54  ;;  %v15173_v62 = vor.u32 %v16684_v8, %v15170_v31  ;;  %v15224_v22 = vld [vmem:[#allocation7 + $0x2498] sm:$0xf]  ;;  %v16700_v54 = vld [vmem:[#allocation7 + $0x24ac] sm:$0xf0]  ;;  %v16707_v8 = vld [vmem:[#allocation7 + $0x24e4] sm:$0xf0] }
 0xe83   :  { %v9222_v0 = vmax.f32 %v9219_v36, 0.0  ;;  %v15169_v36 = vor.u32 %v16687_v44, %v15168_v25  ;;  %v15154_v25 = vld [vmem:[#allocation7 + $0x2420] sm:$0xf0]  ;;  %v15256_v44 = vld [vmem:[#allocation7 + $0x24d0] sm:$0xf] }
 0xe84   :  { %9912 = vmatpush.bf16.msrb.mxu0 %v15217_v24  ;;  %v15205_v24 = vor.u32 %v16691_v51, %v15202_v3  ;;  %v15257_v31 = vor.u32 %v16707_v8, %v15256_v44  ;;  %v16683_v3 = vld [vmem:[#allocation7 + $0x2424] sm:$0xf0]  ;;  %v16757_v44 = vld [vmem:[#allocation10 + $0xf8] sm:$0xff] }
 0xe85   :  { %v9223_v27 = vmin.f32 %v9222_v0, 6.0  ;;  %v9181_v19 = vpop.f32.mrf.mxu2  ;;  %v15248_v0 = vld [vmem:[#allocation7 + $0x24c8] sm:$0xf]  ;;  %v16729_v8 = vld [vmem:[#allocation10 + $0x18] sm:$0xff] }
 0xe86   :  { %v17619_v45 = vadd.f32 %v9181_v19, %v17591_v10  ;;  %v15269_v10 = vor.u32 %v16708_v29, %v15266_v34  ;;  %v15249_v35 = vor.u32 %v16706_v57, %v15248_v0  ;;  %v15225_v29 = vor.u32 %v16700_v54, %v15224_v22  ;;  %v16697_v34 = vld [vmem:[#allocation7 + $0x249c] sm:$0xf]  ;;  %v16704_v0 = vld [vmem:[#allocation7 + $0x24d4] sm:$0xf]  ;;  %v15258_v57 = vld [vmem:[#allocation7 + $0x24e8] sm:$0xf0] }
 0xe87   :  { %v9224_v55 = vpack.c.bf16 %v9223_v27, %v9223_v27  ;;  %v9196_v50 = vpop.f32.mrf.mxu0  ;;  %v15250_v27 = vld [vmem:[#allocation7 + $0x24e0] sm:$0xf0]  ;;  %v15208_v22 = vld [vmem:[#allocation7 + $0x2470] sm:$0xf]  ;;  %v16695_v54 = vld [vmem:[#allocation7 + $0x2484] sm:$0xf0] }
 0xe88   :  { %v9220_v21 = vpop.f32.mrf.mxu1  ;;  %9913 = vmatpush.bf16.msrb.mxu0 %v15193_v30  ;;  %v15253_v19 = vor.u32 %v16703_v26, %v15250_v27  ;;  %v16681_v50 = vld [vmem:[#allocation7 + $0x2414] sm:$0xf0]  ;;  %v15181_v30 = vor.u32 %v16685_v12, %v15178_v14  ;;  %v16698_v27 = vld [vmem:[#allocation7 + $0x24a4] sm:$0xf] }
 0xe89   :  { %9522 = vmatmul.bf16.vlgmr.msra.gmra.mxu3 %v9224_v55  ;;  %9535 = vmatmul.bf16.vlgmr.msra.gmra.mxu1 %v9224_v55  ;;  %v15146_v21 = vld [vmem:[#allocation7 + $0x2418] sm:$0xf0]  ;;  %v16701_v26 = vld [vmem:[#allocation7 + $0x24b4] sm:$0xf0] }
 0xe8a   :  { %9548 = vmatmul.bf16.vlgmr.msra.gmra.mxu2 %v9224_v55  ;;  %9561 = vmatmul.bf16.vlgmr.msra.gmra.mxu0 %v9224_v55 }
 0xe8b   :  { %9921 = vmatpush.bf16.msra.mxu2 %v15317_v59  ;;  %9934 = vmatpush.bf16.msra.mxu3 %v15321_v47  ;;  %v16678_v59 = vld [vmem:[#allocation7 + $0x2404] sm:$0xf]  ;;  %v16694_v47 = vld [vmem:[#allocation7 + $0x247c] sm:$0xf0] }
 0xe8c   :  { %9947 = vmatpush.bf16.msra.mxu1 %v15325_v61  ;;  %9914 = vmatpush.bf16.msrb.mxu0 %v15169_v36  ;;  %v15201_v61 = vor.u32 %v16694_v47, %v15200_v37  ;;  %v15157_v36 = vor.u32 %v16679_v48, %v15154_v25 }
 0xe8d   :  { %v9183_v16 = vpop.f32.mrf.mxu2 }
 0xe8e   :  { %v15226_v16 = vld [vmem:[#allocation7 + $0x24b0] sm:$0xf0] }
 0xe8f   :  { %9922 = vmatpush.bf16.msra.mxu2 %v15293_v4  ;;  %9935 = vmatpush.bf16.msra.mxu3 %v15297_v63  ;;  %v15149_v4 = vor.u32 %v16678_v59, %v15146_v21  ;;  %v15229_v39 = vor.u32 %v16697_v34, %v15226_v16  ;;  %v15176_v63 = vld [vmem:[#allocation7 + $0x2438] sm:$0xf]  ;;  %v15210_v34 = vld [vmem:[#allocation7 + $0x2488] sm:$0xf0]  ;;  %v15209_v16 = vor.u32 %v16695_v54, %v15208_v22 }
 0xe90   :  { %9948 = vmatpush.bf16.msra.mxu1 %v15301_v38  ;;  %v15177_v38 = vor.u32 %v16688_v56, %v15176_v63  ;;  %v16733_v63 = vld [vmem:[#allocation10 + $0x38] sm:$0xff]  ;;  %v16746_v22 = vld [vmem:[#allocation10 + $0xa0] sm:$0xff] }
 0xe91   :  { %v16741_v56 = vld [vmem:[#allocation10 + $0x78] sm:$0xff]  ;;  %v16734_v54 = vld [vmem:[#allocation10 + $0x40] sm:$0xff] }
 0xe93   :  { %9923 = vmatpush.bf16.msra.mxu2 %v15269_v10  ;;  %9936 = vmatpush.bf16.msra.mxu3 %v15273_v13  ;;  %v15328_v10 = vld [vmem:[#allocation7 + $0x2560] sm:$0xf]  ;;  %v15152_v13 = vld [vmem:[#allocation7 + $0x2408] sm:$0xf] }
 0xe94   :  { %9949 = vmatpush.bf16.msra.mxu1 %v15277_v33  ;;  %v15329_v52 = vor.u32 %v16725_v23, %v15328_v10  ;;  %v15153_v33 = vor.u32 %v16682_v20, %v15152_v13  ;;  %v16689_v23 = vld [vmem:[#allocation7 + $0x2454] sm:$0xf0]  ;;  %v16738_v20 = vld [vmem:[#allocation10 + $0x60] sm:$0xff] }
 0xe97   :  { %9924 = vmatpush.bf16.msra.mxu2 %v15245_v41  ;;  %9937 = vmatpush.bf16.msra.mxu3 %v15249_v35  ;;  %v16722_v41 = vld [vmem:[#allocation7 + $0x2564] sm:$0xf]  ;;  %v15232_v35 = vld [vmem:[#allocation7 + $0x24a0] sm:$0xf] }
 0xe98   :  { %9950 = vmatpush.bf16.msra.mxu1 %v15253_v19 }
 0xe99   :  { %9574 = vmatmul.bf16.vlgmr.msrb.gmra.mxu3 %v9224_v55  ;;  %9587 = vmatmul.bf16.vlgmr.msrb.gmra.mxu1 %v9224_v55  ;;  %v15144_v55 = vld [vmem:[#allocation7 + $0x2400] sm:$0xf] }
 0xe9a   :  { %15141 = vmatmul.msk.bf16.vlgmr.msrb.gmra.mxu2 %vm140_vm1, %v15140_v32  ;;  %v15145_v18 = vor.u32 %v16681_v50, %v15144_v55  ;;  %v15330_v32 = vld [vmem:[#allocation7 + $0x2578] sm:$0xf0]  ;;  %v15233_v55 = vor.u32 %v16701_v26, %v15232_v35  ;;  %v16755_v26 = vld [vmem:[#allocation10 + $0xe8] sm:$0xff] }
 0xe9b   :  { %9925 = vmatpush.bf16.msra.mxu2 %v15221_v1  ;;  %9938 = vmatpush.bf16.msra.mxu3 %v15225_v29  ;;  %v15333_v5 = vor.u32 %v16722_v41, %v15330_v32  ;;  %v15309_v1 = vor.u32 %v16716_v28, %v15306_v7  ;;  %v15234_v50 = vld [vmem:[#allocation7 + $0x24b8] sm:$0xf0]  ;;  %v16686_v41 = vld [vmem:[#allocation7 + $0x2444] sm:$0xf]  ;;  %v15165_v28 = vor.u32 %v16680_v60, %v15162_v9 }
 0xe9c   :  { %9915 = vmatpush.bf16.msrb.mxu0 %v15145_v18  ;;  %9951 = vmatpush.bf16.msra.mxu1 %v15229_v39  ;;  %v15237_v21 = vor.u32 %v16698_v27, %v15234_v50  ;;  %v15184_v39 = vld [vmem:[#allocation7 + $0x2440] sm:$0xf]  ;;  %v15186_v32 = vld [vmem:[#allocation7 + $0x2458] sm:$0xf0]  ;;  %v16727_v27 = vld [vmem:[#allocation10 + $0x8] sm:$0xff] }
 0xe9d   :  { %v15185_v37 = vor.u32 %v16689_v23, %v15184_v39  ;;  %v15189_v47 = vor.u32 %v16686_v41, %v15186_v32  ;;  %v16736_v35 = vld [vmem:[#allocation10 + $0x50] sm:$0xff]  ;;  %v16754_v50 = vld [vmem:[#allocation10 + $0xe0] sm:$0xff]  ;;  %v16763_v23 = vld [vmem:[#allocation10 + $0x128] sm:$0xff] }
 0xe9e   :  { %v16752_v39 = vld [vmem:[#allocation10 + $0xd0] sm:$0xff]  ;;  %v16751_v41 = vld [vmem:[#allocation10 + $0xc8] sm:$0xff]  ;;  %v16770_v60 = vld [vmem:[#allocation10 + $0x160] sm:$0xff] }
 0xe9f   :  { %9926 = vmatpush.bf16.msra.mxu2 %v15197_v15  ;;  %9939 = vmatpush.bf16.msra.mxu3 %v15201_v61  ;;  %v15285_v15 = vor.u32 %v16710_v58, %v15282_v53  ;;  %v16794_v58 = vld [vmem:[#allocation5] ss:$0 sm:$0xff]  ;;  %v16744_v32 = vld [vmem:[#allocation10 + $0x90] sm:$0xff] }
 0xea0   :  { %9960 = vmatpush.bf16.msra.mxu0 %v15329_v52  ;;  %9952 = vmatpush.bf16.msra.mxu1 %v15205_v24  ;;  %v16760_v9 = vld [vmem:[#allocation10 + $0x110] sm:$0xff] }
 0xea3   :  { %9927 = vmatpush.bf16.msra.mxu2 %v15173_v62  ;;  %9940 = vmatpush.bf16.msra.mxu3 %v15177_v38  ;;  %v15261_v62 = vor.u32 %v16704_v0, %v15258_v57  ;;  %v16740_v38 = vld [vmem:[#allocation10 + $0x70] sm:$0xff] }
 0xea4   :  { %9961 = vmatpush.bf16.msra.mxu0 %v15305_v49  ;;  %9953 = vmatpush.bf16.msra.mxu1 %v15181_v30  ;;  %v16756_v0 = vld [vmem:[#allocation10 + $0xf0] sm:$0xff] }
 0xea5   :  { %v16728_v57 = vld [vmem:[#allocation10 + $0x10] sm:$0xff] }
 0xea7   :  { %9928 = vmatpush.bf16.msra.mxu2 %v15149_v4  ;;  %9941 = vmatpush.bf16.msra.mxu3 %v15153_v33  ;;  %v16692_v4 = vld [vmem:[#allocation7 + $0x2474] sm:$0xf] }
 0xea8   :  { %9962 = vmatpush.bf16.msra.mxu0 %v15281_v42  ;;  %9954 = vmatpush.bf16.msra.mxu1 %v15157_v36  ;;  %v15213_v10 = vor.u32 %v16692_v4, %v15210_v34  ;;  %v16753_v4 = vld [vmem:[#allocation10 + $0xd8] sm:$0xff] }
 0xea9   :  { %v16773_v34 = vld [vmem:[#allocation10 + $0x178] sm:$0xff] }
 0xeab   :  { %9973 = vmatpush.bf16.msrb.mxu2 %v15333_v5  ;;  %10386 = vmatpush.bf16.msrb.mxu3 %v16733_v63 }
 0xeac   :  { %9963 = vmatpush.bf16.msra.mxu0 %v15257_v31  ;;  %10399 = vmatpush.bf16.msrb.mxu1 %v16741_v56  ;;  %v16749_v31 = vld [vmem:[#allocation10 + $0xb8] sm:$0xff] }
 0xeaf   :  { %9974 = vmatpush.bf16.msrb.mxu2 %v15309_v1 }
 0xeb0   :  { %9964 = vmatpush.bf16.msra.mxu0 %v15233_v55  ;;  %10400 = vmatpush.bf16.msrb.mxu1 %v16740_v38  ;;  %v16735_v55 = vld [vmem:[#allocation10 + $0x48] sm:$0xff] }
 0xeb3   :  { %9975 = vmatpush.bf16.msrb.mxu2 %v15285_v15 }
 0xeb4   :  { %9965 = vmatpush.bf16.msra.mxu0 %v15209_v16  ;;  %10401 = vmatpush.bf16.msrb.mxu1 %v16739_v6  ;;  %v16764_v16 = vld [vmem:[#allocation10 + $0x130] sm:$0xff] }
 0xeb7   :  { %9976 = vmatpush.bf16.msrb.mxu2 %v15261_v62  ;;  %v16748_v62 = vld [vmem:[#allocation10 + $0xb0] sm:$0xff] }
 0xeb8   :  { %9966 = vmatpush.bf16.msra.mxu0 %v15185_v37  ;;  %10402 = vmatpush.bf16.msrb.mxu1 %v16738_v20  ;;  %v16762_v37 = vld [vmem:[#allocation10 + $0x120] sm:$0xff] }
 0xebb   :  { %9977 = vmatpush.bf16.msrb.mxu2 %v15237_v21  ;;  %v16765_v21 = vld [vmem:[#allocation10 + $0x138] sm:$0xff] }
 0xebf   :  { %9978 = vmatpush.bf16.msrb.mxu2 %v15213_v10  ;;  %v16745_v10 = vld [vmem:[#allocation10 + $0x98] sm:$0xff] }
 0xec3   :  { %9979 = vmatpush.bf16.msrb.mxu2 %v15189_v47  ;;  %v16743_v47 = vld [vmem:[#allocation10 + $0x88] sm:$0xff] }
 0xec7   :  { %9980 = vmatpush.bf16.msrb.mxu2 %v15165_v28  ;;  %v16768_v28 = vld [vmem:[#allocation10 + $0x150] sm:$0xff] }
 0xf06   :  { %v9536_v19 = vpop.f32.mrf.mxu1 }
 0xf07   :  { %v17626_v59 = vadd.f32 %v9536_v19, %v17603_v2  ;;  %v9562_v18 = vpop.f32.mrf.mxu0  ;;  %v16747_v19 = vld [vmem:[#allocation10 + $0xa8] sm:$0xff] }
 0xf08   :  { %v17629_v29 = vadd.f32 %v9562_v18, %v17612_v46  ;;  %v15160_v46 = vld [vmem:[#allocation7 + $0x2410] sm:$0xf]  ;;  %v16726_v18 = vld [vmem:[#allocation10] sm:$0xff] }
 0xf09   :  { %v15161_v49 = vor.u32 %v16683_v3, %v15160_v46  ;;  %v16771_v46 = vld [vmem:[#allocation10 + $0x168] sm:$0xff]  ;;  %v16742_v3 = vld [vmem:[#allocation10 + $0x80] sm:$0xff] }
 0xf0b   :  { %9967 = vmatpush.bf16.msra.mxu0 %v15161_v49  ;;  %v16759_v49 = vld [vmem:[#allocation10 + $0x108] sm:$0xff] }
 0xf0c   :  { %v9523_v52 = vpop.f32.mrf.mxu3 }
 0xf0d   :  { %v17632_v2 = vadd.f32 %v9523_v52, %v17609_v40  ;;  %v9549_v5 = vpop.f32.mrf.mxu2  ;;  %v16772_v52 = vld [vmem:[#allocation10 + $0x170] sm:$0xff] }
 0xf0e   :  { %v17635_v51 = vadd.f32 %v9549_v5, %v17606_v43  ;;  %v9538_v61 = vpop.f32.mrf.mxu1  ;;  %v16732_v43 = vld [vmem:[#allocation10 + $0x30] sm:$0xff]  ;;  %v16750_v5 = vld [vmem:[#allocation10 + $0xc0] sm:$0xff] }
 0xf0f   :  { %v9564_v24 = vpop.f32.mrf.mxu0  ;;  %10387 = vmatpush.bf16.msrb.mxu3 %v16732_v43  ;;  %v16761_v61 = vld [vmem:[#allocation10 + $0x118] sm:$0xff] }
 0xf10   :  { %v16769_v24 = vld [vmem:[#allocation10 + $0x158] sm:$0xff] }
 0xf13   :  { %10388 = vmatpush.bf16.msrb.mxu3 %v16731_v11 }
 0xf14   :  { %v9525_v40 = vpop.f32.mrf.mxu3 }
 0xf15   :  { %v9551_v7 = vpop.f32.mrf.mxu2  ;;  %v16758_v40 = vld [vmem:[#allocation10 + $0x100] sm:$0xff] }
 0xf16   :  { %v9588_v1 = vpop.f32.mrf.mxu1  ;;  %v16767_v7 = vld [vmem:[#allocation10 + $0x148] sm:$0xff] }
 0xf17   :  { %v17638_v12 = vadd.f32 %v9588_v1, %v17615_v17  ;;  %v16730_v17 = vld [vmem:[#allocation10 + $0x20] sm:$0xff] }
 0xf18   :  { %10389 = vmatpush.bf16.msrb.mxu3 %v16730_v17  ;;  %v16766_v1 = vld [vmem:[#allocation10 + $0x140] sm:$0xff] }
 0xf1c   :  { %v9575_v14 = vpop.f32.mrf.mxu3  ;;  %10390 = vmatpush.bf16.msrb.mxu3 %v16729_v8 }
 0xf1d   :  { %v17641_v30 = vadd.f32 %v9575_v14, %v17619_v45  ;;  %v9612_v42 = vpop.f32.mrf.mxu2  ;;  %v16737_v45 = vld [vmem:[#allocation10 + $0x58] sm:$0xff] }
 0xf1e   :  { %v9613_v53 = vadd.f32 %v16794_v58, %v9612_v42  ;;  %v9590_v15 = vpop.f32.mrf.mxu1  ;;  %10403 = vmatpush.bf16.msrb.mxu1 %v16737_v45 }
 0xf20   :  { %v9616_v13 = vmax.f32 %v9613_v53, 0.0  ;;  %10391 = vmatpush.bf16.msrb.mxu3 %v16728_v57 }
 0xf22   :  { %v9617_v48 = vmin.f32 %v9616_v13, 6.0  ;;  %10404 = vmatpush.bf16.msrb.mxu1 %v16736_v35 }
 0xf24   :  { %v9618_v33 = vpack.c.bf16 %v9617_v48, %v9617_v48  ;;  %v9577_v25 = vpop.f32.mrf.mxu3  ;;  %10392 = vmatpush.bf16.msrb.mxu3 %v16727_v27 }
 0xf25   :  { %v9614_v36 = vpop.f32.mrf.mxu2 }
 0xf26   :  { %9916 = vmatmul.bf16.vlgmr.msrb.gmra.mxu0 %v9618_v33  ;;  %9929 = vmatmul.bf16.vlgmr.msra.gmra.mxu2 %v9618_v33 }
 0xf27   :  { %9942 = vmatmul.bf16.vlgmr.msra.gmra.mxu3 %v9618_v33  ;;  %9955 = vmatmul.bf16.vlgmr.msra.gmra.mxu1 %v9618_v33 }
 0xf28   :  { %10425 = vmatpush.bf16.msra.mxu2 %v16757_v44  ;;  %10412 = vmatpush.bf16.msrb.mxu0 %v16749_v31  ;;  %v16786_v31 = vld [vmem:[#allocation11] ss:$0 sm:$0xff] }
 0xf29   :  { %10405 = vmatpush.bf16.msrb.mxu1 %v16735_v55  ;;  %10393 = vmatpush.bf16.msrb.mxu3 %v16726_v18 }
 0xf2c   :  { %10426 = vmatpush.bf16.msra.mxu2 %v16756_v0  ;;  %10413 = vmatpush.bf16.msrb.mxu0 %v16748_v62 }
 0xf2d   :  { %10438 = vmatpush.bf16.msra.mxu3 %v16765_v21  ;;  %10406 = vmatpush.bf16.msrb.mxu1 %v16734_v54 }
 0xf30   :  { %10427 = vmatpush.bf16.msra.mxu2 %v16755_v26  ;;  %10414 = vmatpush.bf16.msrb.mxu0 %v16747_v19 }
 0xf31   :  { %10451 = vmatpush.bf16.msra.mxu1 %v16773_v34  ;;  %10439 = vmatpush.bf16.msra.mxu3 %v16764_v16 }
 0xf34   :  { %10428 = vmatpush.bf16.msra.mxu2 %v16754_v50  ;;  %10415 = vmatpush.bf16.msrb.mxu0 %v16746_v22 }
 0xf35   :  { %10440 = vmatpush.bf16.msra.mxu3 %v16763_v23  ;;  %10452 = vmatpush.bf16.msra.mxu1 %v16772_v52 }
 0xf36   :  { %9968 = vmatmul.bf16.vlgmr.msra.gmra.mxu0 %v9618_v33  ;;  %9981 = vmatmul.bf16.vlgmr.msrb.gmra.mxu2 %v9618_v33 }
 0xf38   :  { %10429 = vmatpush.bf16.msra.mxu2 %v16753_v4  ;;  %10416 = vmatpush.bf16.msrb.mxu0 %v16745_v10 }
 0xf39   :  { %10441 = vmatpush.bf16.msra.mxu3 %v16762_v37  ;;  %10453 = vmatpush.bf16.msra.mxu1 %v16771_v46 }
 0xf3c   :  { %10430 = vmatpush.bf16.msra.mxu2 %v16752_v39  ;;  %10417 = vmatpush.bf16.msrb.mxu0 %v16744_v32 }
 0xf3d   :  { %10442 = vmatpush.bf16.msra.mxu3 %v16761_v61  ;;  %10454 = vmatpush.bf16.msra.mxu1 %v16770_v60 }
 0xf40   :  { %10431 = vmatpush.bf16.msra.mxu2 %v16751_v41  ;;  %10418 = vmatpush.bf16.msrb.mxu0 %v16743_v47 }
 0xf41   :  { %10443 = vmatpush.bf16.msra.mxu3 %v16760_v9  ;;  %10455 = vmatpush.bf16.msra.mxu1 %v16769_v24 }
 0xf44   :  { %10432 = vmatpush.bf16.msra.mxu2 %v16750_v5  ;;  %10419 = vmatpush.bf16.msrb.mxu0 %v16742_v3 }
 0xf45   :  { %10444 = vmatpush.bf16.msra.mxu3 %v16759_v49  ;;  %10456 = vmatpush.bf16.msra.mxu1 %v16768_v28 }
 0xf49   :  { %10445 = vmatpush.bf16.msra.mxu3 %v16758_v40  ;;  %10457 = vmatpush.bf16.msra.mxu1 %v16767_v7 }
 0xf4d   :  { %10458 = vmatpush.bf16.msra.mxu1 %v16766_v1 }
 0xfa3   :  { %v9917_v63 = vpop.f32.mrf.mxu0 }
 0xfa4   :  { %v9986_v56 = vadd.f32 %v9917_v63, %v17632_v2  ;;  %v9956_v43 = vpop.f32.mrf.mxu1 }
 0xfa5   :  { %v9989_v38 = vadd.f32 %v9956_v43, %v17629_v29 }
 0xfa6   :  { %v9992_v14 = vpack.c.bf16 %v9986_v56, %v9986_v56 }
 0xfa7   :  { %v9995_v11 = vpack.c.bf16 %v9989_v38, %v9989_v38 }
 0xfa8   :  { %10394 = vmatmul.bf16.vlgmr.msrb.gmra.mxu3 %v9992_v14 }
 0xfa9   :  { %10433 = vmatmul.bf16.vlgmr.msra.gmra.mxu2 %v9995_v11  ;;  %v9930_v6 = vpop.f32.mrf.mxu2 }
 0xfaa   :  { %v9987_v42 = vadd.f32 %v9930_v6, %v17626_v59  ;;  %v9943_v58 = vpop.f32.mrf.mxu3 }
 0xfab   :  { %v9988_v53 = vadd.f32 %v9943_v58, %v17635_v51  ;;  %v9919_v15 = vpop.f32.mrf.mxu0 }
 0xfac   :  { %v9993_v13 = vpack.c.bf16 %v9987_v42, %v9987_v42  ;;  %v9958_v17 = vpop.f32.mrf.mxu1 }
 0xfad   :  { %v9994_v20 = vpack.c.bf16 %v9988_v53, %v9988_v53 }
 0xfae   :  { %10407 = vmatmul.bf16.vlgmr.msrb.gmra.mxu1 %v9993_v13 }
 0xfaf   :  { %10420 = vmatmul.bf16.vlgmr.msrb.gmra.mxu0 %v9994_v20 }
 0xfb1   :  { %v9932_v2 = vpop.f32.mrf.mxu2 }
 0xfb2   :  { %v9945_v48 = vpop.f32.mrf.mxu3 }
 0xfb3   :  { %v9969_v33 = vpop.f32.mrf.mxu0 }
 0xfb4   :  { %v9990_v29 = vadd.f32 %v9969_v33, %v17641_v30 }
 0xfb6   :  { %v9996_v25 = vpack.c.bf16 %v9990_v29, %v9990_v29 }
 0xfb8   :  { %10446 = vmatmul.bf16.vlgmr.msra.gmra.mxu3 %v9996_v25 }
 0xfb9   :  { %v9982_v44 = vpop.f32.mrf.mxu2 }
 0xfba   :  { %v9991_v8 = vadd.f32 %v9982_v44, %v17638_v12 }
 0xfbb   :  { %v9971_v59 = vpop.f32.mrf.mxu0 }
 0xfbc   :  { %v9997_v36 = vpack.c.bf16 %v9991_v8, %v9991_v8 }
 0xfbe   :  { %10459 = vmatmul.bf16.vlgmr.msra.gmra.mxu1 %v9997_v36 }
 0xfc1   :  { %v9984_v51 = vpop.f32.mrf.mxu2 }
0x102b   :  { %v10395_v45 = vpop.f32.mrf.mxu3  ;;  %v10408_v0 = vpop.f32.mrf.mxu1 }
0x102c   :  { %v10421_v57 = vpop.f32.mrf.mxu0  ;;  %v10434_v62 = vpop.f32.mrf.mxu2  ;;  %v10396_v35 = vadd.f32 %v16786_v31, %v10395_v45 }
0x102e   :  { %v10409_v26 = vadd.f32 %v10408_v0, %v10396_v35 }
0x1030   :  { %v10422_v50 = vadd.f32 %v10421_v57, %v10409_v26 }
0x1032   :  { %v10435_v18 = vadd.f32 %v10434_v62, %v10422_v50 }
0x1033   :  { %v10397_v27 = vpop.f32.mrf.mxu3  ;;  %v10410_v19 = vpop.f32.mrf.mxu1 }
0x1034   :  { %v10423_v55 = vpop.f32.mrf.mxu0  ;;  %v10436_v30 = vpop.f32.mrf.mxu2 }
0x103b   :  { %v10447_v21 = vpop.f32.mrf.mxu3  ;;  %v10460_v22 = vpop.f32.mrf.mxu1 }
0x103c   :  { %v10448_v12 = vadd.f32 %v10447_v21, %v10435_v18 }
0x103e   :  { %v10461_v54 = vadd.f32 %v10460_v22, %v10448_v12 }
0x1040   :  { %10464 = vst [vmem:[#allocation13] sm:$0x3] %v10461_v54 }
0x1041   :  { %10475 = dma.vmem_to_hbm [thread:$0]  %s10471_s24, 32, %s10473_s26, [#allocation4]  }
0x1043   :  { %v10449_v4 = vpop.f32.mrf.mxu3  ;;  %v10462_v34 = vpop.f32.mrf.mxu1 }
0x1044   :  { %16971 = dma.done.wait [#allocation4], 32  }
0x1045   :  { %16972 = vsyncadd [#allocation4], 4294967264 }
0x1046   :  { %10480 = vsyncpa [#allocation3], 1 }
0x1047   :  { %10481 = vsyncpa [#allocation6], 1 }
0x1048   :  { %10482 = vsyncpa [#allocation9], 1 }
0x1049   :  { %10483 = vsyncpa [#allocation12], 1 }
0x104a   :  { %10484 = vsyncpa [#allocation4], 1 }

</bundles_post_ra>
